<compile_context>
chip_gen: v7x
topology: tpu7x:2x2x1
jax: 0.10.0
libtpu: 0.0.40
codegen_flags: <defaults>
</compile_context>

<pallas_src>
import functools
import math

import jax
import jax.numpy as jnp
from jax.experimental import pallas as pl
from jax.experimental.pallas import tpu as pltpu


_BF16 = jnp.bfloat16
_F32 = jnp.float32


# ----------------------------------------------------------------------------
# In-kernel helpers.
# ----------------------------------------------------------------------------
def _layer_norm(x, g, b, eps=1e-5):
    mu = jnp.mean(x, axis=-1, keepdims=True)
    var = jnp.mean(jnp.square(x - mu), axis=-1, keepdims=True)
    return (x - mu) * jax.lax.rsqrt(var + eps) * g + b


def _sigmoid(x):
    # EUP reciprocal instead of a VPU divide.
    return pl.reciprocal(1.0 + jnp.exp(-x), approx=True)


def _const_spec(arr):
    """Whole-array block, same block for every grid step."""
    nd = arr.ndim
    return pl.BlockSpec(arr.shape, lambda *_, n=nd: (0,) * n)


def _pick_block(n, target, align=1, min_steps=1):
    """Largest divisor of n that is <= target and (multiple of align or == n).

    If possible, prefer a block giving >= min_steps grid steps (keeps v7x's
    second TensorCore busy and exercises the pipelined path)."""
    cands = [c for c in range(1, n + 1)
             if n % c == 0 and (c % align == 0 or c == n)]
    small = [c for c in cands if c <= target]
    best = max(small) if small else min(cands)
    if min_steps > 1 and small:
        multi = [c for c in small if n // c >= min_steps]
        if multi:
            best = max(multi)
    return best


# Conservative per-kernel VMEM budget (bytes) that also fits v7x (64 MiB phys).
_VMEM_BUDGET = 24 * 1024 * 1024


# ----------------------------------------------------------------------------
# Kernel 1: gated multi-head attention with optional pair bias + residual.
# One kernel invocation handles all heads; LN / projections / pair bias /
# output projection are fused MXU matmuls; kv axis handled flash-style.
# Used for: MSARow, MSACol (no bias), TriAttStart, TriAttEnd (on z^T).
# ----------------------------------------------------------------------------
def _gated_attn_kernel(x_ref, *rest, sm_scale, n_heads, head_dim, use_bias,
                       kv_blk):
    if use_bias:
        (p_ref, lnx_g, lnx_b, lnp_g, lnp_b,
         wq, wk, wv, wg, bg, wb_t, wo, bo, out_ref) = rest
    else:
        (lnx_g, lnx_b, wq, wk, wv, wg, bg, wo, bo, out_ref) = rest

    H, D = n_heads, head_dim
    x = x_ref[...]                                        # (TB, L, C)
    TB, L, C = x.shape

    x_ln = _layer_norm(x, lnx_g[...], lnx_b[...])
    xb = x_ln.reshape(TB * L, C).astype(_BF16)

    def proj(w_ref):                                      # fused all-head matmul
        return jnp.dot(xb, w_ref[...].astype(_BF16),
                       preferred_element_type=_F32)       # (TB*L, H*D)

    # bf16 once, softmax scale folded into q (smaller tensor than logits).
    qf = (proj(wq) * sm_scale).astype(_BF16)
    kf = proj(wk).astype(_BF16)
    vf = proj(wv).astype(_BF16)
    gate = _sigmoid(proj(wg) + bg[...])                   # (TB*L, H*D) f32

    if use_bias:
        # Pair LayerNorm + bias for ALL heads via ONE MXU matmul, hoisted out of
        # the per-head loop (was an (L,L,Cp) VPU reduce per head).
        p = p_ref[...]                                    # (L, L, Cp)
        Lp, _, Cp = p.shape
        p_ln = _layer_norm(p, lnp_g[...], lnp_b[...]).reshape(Lp * Lp, Cp)
        bias3 = jnp.dot(p_ln.astype(_BF16), wb_t[...].astype(_BF16),
                        preferred_element_type=_F32).reshape(Lp, Lp, H)

    n_kv = max(1, -(-L // kv_blk))
    head_outs = []
    for h in range(H):
        sl = slice(h * D, (h + 1) * D)
        q = qf[:, sl].reshape(TB, L, D)
        k = kf[:, sl].reshape(TB, L, D)
        v = vf[:, sl].reshape(TB, L, D)
        g_h = gate[:, sl].reshape(TB, L, D)
        if use_bias:
            # (L, L) per-head bias extracted via width-1 slice + minor reduce
            # (avoids a minor-dim-changing reshape / squeeze relayout).
            bias_h = jnp.sum(bias3[:, :, h:h + 1], axis=-1)

        if n_kv == 1:
            logits = jnp.einsum('bid,bjd->bij', q, k,
                                preferred_element_type=_F32)
            if use_bias:
                logits = logits + bias_h[None, :, :]
            mx = jnp.max(logits, axis=-1, keepdims=True)
            e = jnp.exp(logits - mx)
            attn = e * pl.reciprocal(jnp.sum(e, axis=-1, keepdims=True),
                                     approx=True)
            o = jnp.einsum('bij,bjd->bid', attn.astype(_BF16), v,
                           preferred_element_type=_F32)
        else:
            # Flash-style online softmax over kv chunks: live logits bounded to
            # (TB, L, kv_blk) so the batch block stays large at realistic L.
            m_i = jnp.full((TB, L, 1), -jnp.inf, _F32)
            l_i = jnp.zeros((TB, L, 1), _F32)
            acc = jnp.zeros((TB, L, D), _F32)
            for s0 in range(0, L, kv_blk):
                kc = k[:, s0:s0 + kv_blk]
                vc = v[:, s0:s0 + kv_blk]
                lo = jnp.einsum('bid,bjd->bij', q, kc,
                                preferred_element_type=_F32)
                if use_bias:
                    lo = lo + bias_h[None, :, s0:s0 + kv_blk]
                m_new = jnp.maximum(m_i, jnp.max(lo, axis=-1, keepdims=True))
                alpha = jnp.exp(m_i - m_new)
                pexp = jnp.exp(lo - m_new)
                l_i = alpha * l_i + jnp.sum(pexp, axis=-1, keepdims=True)
                acc = alpha * acc + jnp.einsum('bij,bjd->bid',
                                               pexp.astype(_BF16), vc,
                                               preferred_element_type=_F32)
                m_i = m_new
            o = acc * pl.reciprocal(l_i, approx=True)

        head_outs.append((g_h * o).astype(_BF16))

    # Single fused output projection: (TB*L, H*D) @ (H*D, C) on the MXU.
    go_all = jnp.concatenate(head_outs, axis=-1).reshape(TB * L, H * D)
    y = jnp.dot(go_all, wo[...].astype(_BF16), preferred_element_type=_F32)
    out_ref[...] = x + bo[...] + y.reshape(TB, L, C)


def gated_attention(x, pair, params, *, n_heads, head_dim, use_bias=True):
    B, L, C = x.shape
    HD = n_heads * head_dim
    kv_blk = min(L, 512)
    # Rough per-batch-row footprint (x in/out f32 double-buffered, q/k/v/gate,
    # per-chunk logits) -> cap block_b so it also fits v7x's smaller VMEM.
    per_row = L * (C * 16 + HD * 12 + kv_blk * 8 + head_dim * 16)
    budget = _VMEM_BUDGET
    if use_bias:
        budget -= pair.shape[0] * pair.shape[1] * (pair.shape[2] * 4
                                                   + n_heads * 4)
    target_b = max(1, budget // max(per_row, 1))
    block_b = _pick_block(B, target_b, align=1, min_steps=2)
    grid = (B // block_b,)
    x_spec = pl.BlockSpec((block_b, L, C), lambda i: (i, 0, 0))

    if use_bias:
        args = (x, pair, params['ln_x_g'], params['ln_x_b'],
                params['ln_p_g'], params['ln_p_b'],
                params['wq'], params['wk'], params['wv'], params['wg'],
                params['bg'], params['wb_t'], params['wo'], params['bo'])
    else:
        args = (x, params['ln_x_g'], params['ln_x_b'],
                params['wq'], params['wk'], params['wv'], params['wg'],
                params['bg'], params['wo'], params['bo'])
    in_specs = [x_spec] + [_const_spec(a) for a in args[1:]]

    kernel = functools.partial(_gated_attn_kernel,
                               sm_scale=1.0 / math.sqrt(head_dim),
                               n_heads=n_heads, head_dim=head_dim,
                               use_bias=use_bias, kv_blk=kv_blk)
    return pl.pallas_call(
        kernel,
        grid=grid,
        in_specs=in_specs,
        out_specs=x_spec,
        out_shape=jax.ShapeDtypeStruct((B, L, C), jnp.float32),
        compiler_params=pltpu.CompilerParams(dimension_semantics=("parallel",)),
    )(*args)


# ----------------------------------------------------------------------------
# Kernel 2: transition (LN -> Linear -> ReLU -> Linear) + residual.
# Rows flattened and tiled (bounded hidden activation), hidden kept in bf16.
# ----------------------------------------------------------------------------
def _transition_kernel(x_ref, ln_g, ln_b, w1, b1, w2, b2, out_ref):
    x = x_ref[...]                                        # (rows, C)
    x_ln = _layer_norm(x, ln_g[...], ln_b[...]).astype(_BF16)
    hid = jnp.maximum(
        jnp.dot(x_ln, w1[...].astype(_BF16),
                preferred_element_type=_F32) + b1[...], 0.0)
    hid = hid.astype(_BF16)          # bf16 right after ReLU (store traffic)
    y = jnp.dot(hid, w2[...].astype(_BF16),
                preferred_element_type=_F32) + b2[...]
    out_ref[...] = x + y


def transition(x, params):
    orig_shape = x.shape
    C = orig_shape[-1]
    x2 = x.reshape(-1, C)                                 # layout-free in XLA
    N = x2.shape[0]
    Ch = params['w1'].shape[1]
    per_row = C * 16 + Ch * 8
    rows = _pick_block(N, max(8, _VMEM_BUDGET // per_row), align=8, min_steps=2)
    grid = (N // rows,)
    row_spec = pl.BlockSpec((rows, C), lambda i: (i, 0))
    args = (x2, params['ln_g'], params['ln_b'],
            params['w1'], params['b1'], params['w2'], params['b2'])
    out = pl.pallas_call(
        _transition_kernel,
        grid=grid,
        in_specs=[row_spec] + [_const_spec(a) for a in args[1:]],
        out_specs=row_spec,
        out_shape=jax.ShapeDtypeStruct((N, C), jnp.float32),
        compiler_params=pltpu.CompilerParams(dimension_semantics=("parallel",)),
    )(*args)
    return out.reshape(orig_shape)


# ----------------------------------------------------------------------------
# Kernel 3: MSA outer-product-mean -> pair update (+ residual on z).
# Tiled over (i, j) pair blocks (parallel) with an 'arbitrary' reduction axis
# over S-chunks accumulating into the resident output block.
# ----------------------------------------------------------------------------
def _opm_kernel(ma_ref, mb_ref, z_ref, ln_g, ln_b, wa, wb_, wo_ref, bo,
                out_ref, *, n_opm, inv_s):
    k = pl.program_id(2)

    @pl.when(k == 0)
    def _():
        out_ref[...] = z_ref[...] + bo[...]               # residual + out bias

    ma = _layer_norm(ma_ref[...], ln_g[...], ln_b[...])   # (ts, tr, Cm)
    mb = _layer_norm(mb_ref[...], ln_g[...], ln_b[...])
    ts, tr, Cm = ma.shape
    P = n_opm
    # Left/right projections on the MXU (was a per-channel VPU reduce).
    a = jnp.dot(ma.reshape(ts * tr, Cm).astype(_BF16), wa[...].astype(_BF16),
                preferred_element_type=_F32).reshape(ts, tr, P)
    b = jnp.dot(mb.reshape(ts * tr, Cm).astype(_BF16), wb_[...].astype(_BF16),
                preferred_element_type=_F32).reshape(ts, tr, P)
    wo = wo_ref[...]                                      # (P, P, Cz)

    a_cols = [jnp.sum(a[:, :, p:p + 1], axis=-1).astype(_BF16)   # (ts, tr)
              for p in range(P)]
    b_cols = [jnp.sum(b[:, :, q:q + 1], axis=-1).astype(_BF16)
              for q in range(P)]

    # TODO(synk): the fully-fused single-matmul wo contraction needs minor-dim
    # relayout reshapes; keep MXU dots per (p,q) with a VPU wo-broadcast add.
    upd = jnp.zeros(out_ref.shape, _F32)
    for p in range(P):
        for q in range(P):
            o_pq = jax.lax.dot_general(a_cols[p], b_cols[q],
                                       (((0,), (0,)), ((), ())),
                                       preferred_element_type=_F32)  # (tr, tr)
            upd = upd + o_pq[:, :, None] * wo[p, q]
    out_ref[...] += upd * inv_s


def outer_product_mean(m, z, params, *, n_opm):
    S, R, Cm = m.shape
    Cz = z.shape[-1]
    tr = _pick_block(R, 256, align=8, min_steps=1)
    ts = _pick_block(S, 256, align=1, min_steps=2)
    grid = (R // tr, R // tr, S // ts)
    ma_spec = pl.BlockSpec((ts, tr, Cm), lambda i, j, k: (k, i, 0))
    mb_spec = pl.BlockSpec((ts, tr, Cm), lambda i, j, k: (k, j, 0))
    z_spec = pl.BlockSpec((tr, tr, Cz), lambda i, j, k: (i, j, 0))
    args = (m, m, z, params['ln_g'], params['ln_b'], params['wa'],
            params['wb'], params['wo'], params['bo'])
    kernel = functools.partial(_opm_kernel, n_opm=n_opm, inv_s=1.0 / S)
    return pl.pallas_call(
        kernel,
        grid=grid,
        in_specs=[ma_spec, mb_spec, z_spec] + [_const_spec(a) for a in args[3:]],
        out_specs=z_spec,
        out_shape=jax.ShapeDtypeStruct(z.shape, jnp.float32),
        compiler_params=pltpu.CompilerParams(
            dimension_semantics=("parallel", "parallel", "arbitrary")),
    )(*args)


# ----------------------------------------------------------------------------
# Kernels 4a/4b/4c: triangle multiplicative update (outgoing / incoming).
#   4a: LN(z) + gated left/right projections, channel-major (H, R*R) bf16.
#   4b: batched MXU contraction over the hidden channel (bf16 in/out).
#   4c: hidden-axis LN + gate + output projection + residual, row-tiled.
# The reshapes between kernels are row-major no-ops in XLA.
# TODO(synk): fuse 4a+4b with pltpu.emit_pipeline so a/b never touch HBM.
# ----------------------------------------------------------------------------
def _tri_proj_kernel(z_ref, ln_g, ln_b, wag, bag, wap, bap, wbg, bbg, wbp, bbp,
                     a_ref, b_ref):
    z_ln = _layer_norm(z_ref[...], ln_g[...], ln_b[...])  # (nb, Cz)
    zb = z_ln.astype(_BF16)

    def proj_t(w, b):          # (H, Cz) x (nb, Cz)^T -> (H, nb), channel-major
        y = jax.lax.dot_general(w[...].astype(_BF16), zb,
                                (((1,), (1,)), ((), ())),
                                preferred_element_type=_F32)
        return y + b[...]

    a_ref[...] = (_sigmoid(proj_t(wag, bag)) * proj_t(wap, bap)).astype(_BF16)
    b_ref[...] = (_sigmoid(proj_t(wbg, bbg)) * proj_t(wbp, bbp)).astype(_BF16)


def _tri_contract_kernel(a_ref, b_ref, o_ref, *, outgoing):
    a = a_ref[...]                                        # (hb, R, R) bf16
    b = b_ref[...]
    if outgoing:      # o[h,i,j] = sum_k a[h,i,k] * b[h,j,k]
        dims = (((2,), (2,)), ((0,), (0,)))
    else:             # o[h,i,j] = sum_k a[h,k,i] * b[h,k,j]
        dims = (((1,), (1,)), ((0,), (0,)))
    o_ref[...] = jax.lax.dot_general(
        a, b, dims, preferred_element_type=_F32).astype(o_ref.dtype)


def _tri_finish_kernel(z_ref, o_ref, ln_g, ln_b, wg, bgg, ln2_g, ln2_b, wo, bo,
                       out_ref):
    z = z_ref[...]                                        # (nb, Cz)
    z_ln = _layer_norm(z, ln_g[...], ln_b[...])
    gate = _sigmoid(jnp.dot(z_ln.astype(_BF16), wg[...].astype(_BF16),
                            preferred_element_type=_F32) + bgg[...])

    o = o_ref[...].astype(_F32)                           # (H, nb) channel-major
    mu = jnp.mean(o, axis=0, keepdims=True)
    var = jnp.mean(jnp.square(o - mu), axis=0, keepdims=True)
    o_ln = (o - mu) * jax.lax.rsqrt(var + 1e-5) * ln2_g[...] + ln2_b[...]

    # Per-tile transposed-LHS matmul: contract hidden axis (dim 0) with wo.
    proj = jax.lax.dot_general(o_ln.astype(_BF16), wo[...].astype(_BF16),
                               (((0,), (0,)), ((), ())),
                               preferred_element_type=_F32)    # (nb, Cz)
    out_ref[...] = z + gate * (proj + bo[...])


def triangle_multiply(z, params, *, outgoing):
    R, _, Cz = z.shape
    H = params['wag'].shape[0]
    N = R * R
    z2 = z.reshape(N, Cz)                                 # layout-free reshape

    # Row/column tile over the flattened pair positions: must be a multiple of
    # 128 (it is the lane dim of the (H, nb) channel-major outputs) or full.
    nb = _pick_block(N, max(128, _VMEM_BUDGET // (Cz * 16 + H * 12)),
                     align=128, min_steps=2)
    z_row_spec = pl.BlockSpec((nb, Cz), lambda i: (i, 0))
    hcol_spec = pl.BlockSpec((H, nb), lambda i: (0, i))

    # 4a: projections (channel-major bf16 outputs).
    proj_args = (z2, params['ln_g'], params['ln_b'],
                 params['wag'], params['bag'], params['wap'], params['bap'],
                 params['wbg'], params['bbg'], params['wbp'], params['bbp'])
    a2, b2 = pl.pallas_call(
        _tri_proj_kernel,
        grid=(N // nb,),
        in_specs=[z_row_spec] + [_const_spec(a) for a in proj_args[1:]],
        out_specs=(hcol_spec, hcol_spec),
        out_shape=(jax.ShapeDtypeStruct((H, N), jnp.bfloat16),
                   jax.ShapeDtypeStruct((H, N), jnp.bfloat16)),
        compiler_params=pltpu.CompilerParams(dimension_semantics=("parallel",)),
    )(*proj_args)

    a_cb = a2.reshape(H, R, R)                            # layout-free
    b_cb = b2.reshape(H, R, R)

    # 4b: batched MXU contraction, small hidden-channel tiles (VMEM-bounded).
    hb = _pick_block(H, max(1, _VMEM_BUDGET // max(R * R * 12, 1)),
                     align=1, min_steps=2)
    contract = functools.partial(_tri_contract_kernel, outgoing=outgoing)
    o_cb = pl.pallas_call(
        contract,
        grid=(H // hb,),
        in_specs=[pl.BlockSpec((hb, R, R), lambda i: (i, 0, 0)),
                  pl.BlockSpec((hb, R, R), lambda i: (i, 0, 0))],
        out_specs=pl.BlockSpec((hb, R, R), lambda i: (i, 0, 0)),
        out_shape=jax.ShapeDtypeStruct((H, R, R), jnp.bfloat16),
        compiler_params=pltpu.CompilerParams(dimension_semantics=("parallel",)),
    )(a_cb, b_cb)

    o2 = o_cb.reshape(H, N)                               # layout-free

    # 4c: LN(hidden) + gate + output projection + residual, row-tiled.
    fin_args = (z2, o2, params['ln_g'], params['ln_b'], params['wg'],
                params['bgg'], params['ln2_g'], params['ln2_b'],
                params['wo'], params['bo'])
    out2 = pl.pallas_call(
        _tri_finish_kernel,
        grid=(N // nb,),
        in_specs=[z_row_spec, hcol_spec] + [_const_spec(a) for a in fin_args[2:]],
        out_specs=z_row_spec,
        out_shape=jax.ShapeDtypeStruct((N, Cz), jnp.float32),
        compiler_params=pltpu.CompilerParams(dimension_semantics=("parallel",)),
    )(*fin_args)
    return out2.reshape(R, R, Cz)


# ----------------------------------------------------------------------------
# Parameter initialization (deterministic, synthetic).
# ----------------------------------------------------------------------------
def _normal(key, shape, scale=0.1):
    return scale * jax.random.normal(key, shape, dtype=jnp.float32)


def _init_attn(key, c_x, c_p, n_heads, d_head, pair_bias):
    ks = jax.random.split(key, 6)
    hd = n_heads * d_head
    p = {
        'ln_x_g': jnp.ones((1, c_x), jnp.float32),
        'ln_x_b': jnp.zeros((1, c_x), jnp.float32),
        'wq': _normal(ks[0], (c_x, hd)),
        'wk': _normal(ks[1], (c_x, hd)),
        'wv': _normal(ks[2], (c_x, hd)),
        'wg': _normal(ks[3], (c_x, hd)),
        'bg': jnp.ones((1, hd), jnp.float32),
        'wo': _normal(ks[5], (hd, c_x)),        # flattened for one fused matmul
        'bo': jnp.zeros((1, c_x), jnp.float32),
    }
    if pair_bias:
        p['ln_p_g'] = jnp.ones((1, c_p), jnp.float32)
        p['ln_p_b'] = jnp.zeros((1, c_p), jnp.float32)
        p['wb_t'] = _normal(ks[4], (c_p, n_heads))   # (Cp, H) for one MXU matmul
    return p


def _init_transition(key, c, c_hidden):
    ks = jax.random.split(key, 2)
    return {
        'ln_g': jnp.ones((1, c), jnp.float32),
        'ln_b': jnp.zeros((1, c), jnp.float32),
        'w1': _normal(ks[0], (c, c_hidden)),
        'b1': jnp.zeros((1, c_hidden), jnp.float32),
        'w2': _normal(ks[1], (c_hidden, c)),
        'b2': jnp.zeros((1, c), jnp.float32),
    }


def _init_opm(key, c_m, c_z, n_opm):
    ks = jax.random.split(key, 3)
    return {
        'ln_g': jnp.ones((1, c_m), jnp.float32),
        'ln_b': jnp.zeros((1, c_m), jnp.float32),
        'wa': _normal(ks[0], (c_m, n_opm)),
        'wb': _normal(ks[1], (c_m, n_opm)),
        'wo': _normal(ks[2], (n_opm, n_opm, c_z)),
        'bo': jnp.zeros((1, c_z), jnp.float32),
    }


def _init_tri_mul(key, c_z, c_hidden):
    ks = jax.random.split(key, 6)
    return {
        'ln_g': jnp.ones((1, c_z), jnp.float32),
        'ln_b': jnp.zeros((1, c_z), jnp.float32),
        # Projection weights stored channel-major (H, Cz) so the kernel emits
        # channel-leading activations with plain A @ B^T matmuls.
        'wag': _normal(ks[0], (c_hidden, c_z)),
        'bag': jnp.ones((c_hidden, 1), jnp.float32),
        'wap': _normal(ks[1], (c_hidden, c_z)),
        'bap': jnp.zeros((c_hidden, 1), jnp.float32),
        'wbg': _normal(ks[2], (c_hidden, c_z)),
        'bbg': jnp.ones((c_hidden, 1), jnp.float32),
        'wbp': _normal(ks[3], (c_hidden, c_z)),
        'bbp': jnp.zeros((c_hidden, 1), jnp.float32),
        'wg': _normal(ks[4], (c_z, c_z)),
        'bgg': jnp.ones((1, c_z), jnp.float32),
        'ln2_g': jnp.ones((c_hidden, 1), jnp.float32),
        'ln2_b': jnp.zeros((c_hidden, 1), jnp.float32),
        'wo': _normal(ks[5], (c_hidden, c_z)),
        'bo': jnp.zeros((1, c_z), jnp.float32),
    }


def init_evoblock_params(key, c_m, c_z, *, n_heads, head_dim, n_opm, c_tri):
    ks = jax.random.split(key, 9)
    return {
        'msa_row':       _init_attn(ks[0], c_m, c_z, n_heads, head_dim, True),
        'msa_col':       _init_attn(ks[1], c_m, c_z, n_heads, head_dim, False),
        'msa_trans':     _init_transition(ks[2], c_m, 4 * c_m),
        'msa_opm':       _init_opm(ks[3], c_m, c_z, n_opm),
        'pair_triout':   _init_tri_mul(ks[4], c_z, c_tri),
        'pair_triin':    _init_tri_mul(ks[5], c_z, c_tri),
        'pair_tristart': _init_attn(ks[6], c_z, c_z, n_heads, head_dim, True),
        'pair_triend':   _init_attn(ks[7], c_z, c_z, n_heads, head_dim, True),
        'pair_trans':    _init_transition(ks[8], c_z, 4 * c_z),
    }


# ----------------------------------------------------------------------------
# EvoBlock forward (mirrors the PyTorch module's forward exactly).
# ----------------------------------------------------------------------------
def evoblock_apply(m, z, params, *, n_heads, head_dim, n_opm):
    m_in = m

    # m = m + MSARow(m, z)
    m = gated_attention(m, z, params['msa_row'],
                        n_heads=n_heads, head_dim=head_dim, use_bias=True)

    # m = m + MSACol(m)  (column attention == row attention on m^T, no bias).
    # TODO(synk): fold this transpose into the kernel access pattern; the
    # required in-kernel leading-dim transpose is not portable in Mosaic.
    mt = jnp.transpose(m, (1, 0, 2))
    mt = gated_attention(mt, None, params['msa_col'],
                         n_heads=n_heads, head_dim=head_dim, use_bias=False)
    m = jnp.transpose(mt, (1, 0, 2))

    # m = m + MSATrans(m)
    m = transition(m, params['msa_trans'])

    # z = z + MSAOPM(m_in)
    z = outer_product_mean(m_in, z, params['msa_opm'], n_opm=n_opm)

    # z = z + TriOut(z); z = z + TriIn(z)
    z = triangle_multiply(z, params['pair_triout'], outgoing=True)
    z = triangle_multiply(z, params['pair_triin'], outgoing=False)

    # z = z + TriAttStart(z)
    z = gated_attention(z, z, params['pair_tristart'],
                        n_heads=n_heads, head_dim=head_dim, use_bias=True)

    # z = z + TriAttEnd(z)  (start-style attention on the transposed pair rep).
    # TODO(synk): same transpose-folding follow-up as MSACol.
    zt = jnp.transpose(z, (1, 0, 2))
    zt = gated_attention(zt, zt, params['pair_triend'],
                         n_heads=n_heads, head_dim=head_dim, use_bias=True)
    z = jnp.transpose(zt, (1, 0, 2))

    # z = z + PairTrans(z)
    z = transition(z, params['pair_trans'])
    return m, z


# ----------------------------------------------------------------------------
if __name__ == "__main__":
    S, R = 4, 8              # n_seq, n_res
    C_M, C_Z = 32, 32        # m_dim, z_dim
    N_HEADS, HEAD_DIM = 2, 16
    N_OPM, C_TRI = 4, 32

    key = jax.random.PRNGKey(0)
    k_m, k_z, k_p = jax.random.split(key, 3)
    m = jax.random.normal(k_m, (S, R, C_M), dtype=jnp.float32)
    z = jax.random.normal(k_z, (R, R, C_Z), dtype=jnp.float32)
    params = init_evoblock_params(k_p, C_M, C_Z, n_heads=N_HEADS,
                                  head_dim=HEAD_DIM, n_opm=N_OPM, c_tri=C_TRI)

    fwd = jax.jit(functools.partial(evoblock_apply, n_heads=N_HEADS,
                                    head_dim=HEAD_DIM, n_opm=N_OPM))
    m_out, z_out = fwd(m, z, params)
    jax.block_until_ready((m_out, z_out))

    assert m_out.shape == (S, R, C_M) and m_out.dtype == jnp.float32
    assert z_out.shape == (R, R, C_Z) and z_out.dtype == jnp.float32
    assert bool(jnp.all(jnp.isfinite(m_out))) and bool(jnp.all(jnp.isfinite(z_out)))
    print("KERNEL_OK")
</pallas_src>

<mosaic_0001>
module attributes {stable_mosaic.version = 11 : i64} {
  func.func @_tri_proj_kernel(%arg0: i32, %arg1: memref<64x32xf32, #tpu.memory_space<vmem>>, %arg2: memref<1x32xf32, #tpu.memory_space<vmem>>, %arg3: memref<1x32xf32, #tpu.memory_space<vmem>>, %arg4: memref<32x32xf32, #tpu.memory_space<vmem>>, %arg5: memref<32x1xf32, #tpu.memory_space<vmem>>, %arg6: memref<32x32xf32, #tpu.memory_space<vmem>>, %arg7: memref<32x1xf32, #tpu.memory_space<vmem>>, %arg8: memref<32x32xf32, #tpu.memory_space<vmem>>, %arg9: memref<32x1xf32, #tpu.memory_space<vmem>>, %arg10: memref<32x32xf32, #tpu.memory_space<vmem>>, %arg11: memref<32x1xf32, #tpu.memory_space<vmem>>, %arg12: memref<32x64xbf16, #tpu.memory_space<vmem>>, %arg13: memref<32x64xbf16, #tpu.memory_space<vmem>>) attributes {dimension_semantics = [#tpu.dimension_semantics<parallel>], iteration_bounds = array<i64: 1>, scalar_prefetch = 0 : i64, scratch_operands = 0 : i64, tpu.core_type = #tpu.core_type<tc>, window_params = [{transform_indices = @transform_0, window_bounds = array<i64: 64, 32>}, {pipeline_mode = #tpu.pipeline_mode<synchronous>, transform_indices = @transform_1, window_bounds = array<i64: 1, 32>}, {pipeline_mode = #tpu.pipeline_mode<synchronous>, transform_indices = @transform_2, window_bounds = array<i64: 1, 32>}, {pipeline_mode = #tpu.pipeline_mode<synchronous>, transform_indices = @transform_3, window_bounds = array<i64: 32, 32>}, {pipeline_mode = #tpu.pipeline_mode<synchronous>, transform_indices = @transform_4, window_bounds = array<i64: 32, 1>}, {pipeline_mode = #tpu.pipeline_mode<synchronous>, transform_indices = @transform_5, window_bounds = array<i64: 32, 32>}, {pipeline_mode = #tpu.pipeline_mode<synchronous>, transform_indices = @transform_6, window_bounds = array<i64: 32, 1>}, {pipeline_mode = #tpu.pipeline_mode<synchronous>, transform_indices = @transform_7, window_bounds = array<i64: 32, 32>}, {pipeline_mode = #tpu.pipeline_mode<synchronous>, transform_indices = @transform_8, window_bounds = array<i64: 32, 1>}, {pipeline_mode = #tpu.pipeline_mode<synchronous>, transform_indices = @transform_9, window_bounds = array<i64: 32, 32>}, {pipeline_mode = #tpu.pipeline_mode<synchronous>, transform_indices = @transform_10, window_bounds = array<i64: 32, 1>}, {transform_indices = @transform_11, window_bounds = array<i64: 32, 64>}, {transform_indices = @transform_12, window_bounds = array<i64: 32, 64>}]} {
    %c0 = arith.constant 0 : index
    %c0_0 = arith.constant 0 : index
    %0 = vector.load %arg1[%c0, %c0_0] : memref<64x32xf32, #tpu.memory_space<vmem>>, vector<64x32xf32>
    %c0_1 = arith.constant 0 : index
    %c0_2 = arith.constant 0 : index
    %1 = vector.load %arg2[%c0_1, %c0_2] : memref<1x32xf32, #tpu.memory_space<vmem>>, vector<1x32xf32>
    %c0_3 = arith.constant 0 : index
    %c0_4 = arith.constant 0 : index
    %2 = vector.load %arg3[%c0_3, %c0_4] : memref<1x32xf32, #tpu.memory_space<vmem>>, vector<1x32xf32>
    %cst = arith.constant dense<0.000000e+00> : vector<64xf32>
    %3 = vector.multi_reduction <add>, %0, %cst [1] : vector<64x32xf32> to vector<64xf32>
    %4 = vector.shape_cast %3 : vector<64xf32> to vector<64x1xf32>
    %cst_5 = arith.constant 3.200000e+01 : f32
    %5 = vector.broadcast %cst_5 : f32 to vector<64x1xf32>
    %6 = arith.divf %4, %5 : vector<64x1xf32>
    %7 = vector.broadcast %6 : vector<64x1xf32> to vector<64x32xf32>
    %8 = arith.subf %0, %7 : vector<64x32xf32>
    %9 = arith.mulf %8, %8 : vector<64x32xf32>
    %cst_6 = arith.constant dense<0.000000e+00> : vector<64xf32>
    %10 = vector.multi_reduction <add>, %9, %cst_6 [1] : vector<64x32xf32> to vector<64xf32>
    %11 = vector.shape_cast %10 : vector<64xf32> to vector<64x1xf32>
    %cst_7 = arith.constant 3.200000e+01 : f32
    %12 = vector.broadcast %cst_7 : f32 to vector<64x1xf32>
    %13 = arith.divf %11, %12 : vector<64x1xf32>
    %14 = vector.broadcast %6 : vector<64x1xf32> to vector<64x32xf32>
    %15 = arith.subf %0, %14 : vector<64x32xf32>
    %cst_8 = arith.constant 9.99999974E-6 : f32
    %16 = vector.broadcast %cst_8 : f32 to vector<64x1xf32>
    %17 = arith.addf %13, %16 : vector<64x1xf32>
    %18 = math.rsqrt %17 : vector<64x1xf32>
    %19 = vector.broadcast %18 : vector<64x1xf32> to vector<64x32xf32>
    %20 = arith.mulf %15, %19 : vector<64x32xf32>
    %21 = vector.broadcast %1 : vector<1x32xf32> to vector<64x32xf32>
    %22 = arith.mulf %20, %21 : vector<64x32xf32>
    %23 = vector.broadcast %2 : vector<1x32xf32> to vector<64x32xf32>
    %24 = arith.addf %22, %23 : vector<64x32xf32>
    %25 = arith.truncf %24 : vector<64x32xf32> to vector<64x32xbf16>
    %c0_9 = arith.constant 0 : index
    %c0_10 = arith.constant 0 : index
    %26 = vector.load %arg4[%c0_9, %c0_10] : memref<32x32xf32, #tpu.memory_space<vmem>>, vector<32x32xf32>
    %27 = arith.truncf %26 : vector<32x32xf32> to vector<32x32xbf16>
    %cst_11 = arith.constant dense<0.000000e+00> : vector<32x64xf32>
    %28 = tpu.matmul %27, %25, %cst_11 {dimension_numbers = #tpu.dot_dimension_numbers<[1], [1], [0], [0], [0, 0, 1, 0], [], []>} : vector<32x32xbf16>, vector<64x32xbf16>, vector<32x64xf32> -> vector<32x64xf32>
    %c0_12 = arith.constant 0 : index
    %c0_13 = arith.constant 0 : index
    %29 = vector.load %arg5[%c0_12, %c0_13] : memref<32x1xf32, #tpu.memory_space<vmem>>, vector<32x1xf32>
    %30 = vector.broadcast %29 : vector<32x1xf32> to vector<32x64xf32>
    %31 = arith.addf %28, %30 : vector<32x64xf32>
    %cst_14 = arith.constant 0.000000e+00 : f32
    %32 = vector.broadcast %cst_14 : f32 to vector<32x64xf32>
    %33 = arith.subf %32, %31 : vector<32x64xf32>
    %34 = math.exp %33 : vector<32x64xf32>
    %cst_15 = arith.constant 1.000000e+00 : f32
    %35 = vector.broadcast %cst_15 : f32 to vector<32x64xf32>
    %36 = arith.addf %35, %34 : vector<32x64xf32>
    %37 = tpu.reciprocal %36 {approx = true} : vector<32x64xf32> -> vector<32x64xf32>
    %c0_16 = arith.constant 0 : index
    %c0_17 = arith.constant 0 : index
    %38 = vector.load %arg6[%c0_16, %c0_17] : memref<32x32xf32, #tpu.memory_space<vmem>>, vector<32x32xf32>
    %39 = arith.truncf %38 : vector<32x32xf32> to vector<32x32xbf16>
    %cst_18 = arith.constant dense<0.000000e+00> : vector<32x64xf32>
    %40 = tpu.matmul %39, %25, %cst_18 {dimension_numbers = #tpu.dot_dimension_numbers<[1], [1], [0], [0], [0, 0, 1, 0], [], []>} : vector<32x32xbf16>, vector<64x32xbf16>, vector<32x64xf32> -> vector<32x64xf32>
    %c0_19 = arith.constant 0 : index
    %c0_20 = arith.constant 0 : index
    %41 = vector.load %arg7[%c0_19, %c0_20] : memref<32x1xf32, #tpu.memory_space<vmem>>, vector<32x1xf32>
    %42 = vector.broadcast %41 : vector<32x1xf32> to vector<32x64xf32>
    %43 = arith.addf %40, %42 : vector<32x64xf32>
    %44 = arith.mulf %37, %43 : vector<32x64xf32>
    %45 = arith.truncf %44 : vector<32x64xf32> to vector<32x64xbf16>
    %c0_21 = arith.constant 0 : index
    %c0_22 = arith.constant 0 : index
    %46 = vector.load %arg12[%c0_21, %c0_22] : memref<32x64xbf16, #tpu.memory_space<vmem>>, vector<32x64xbf16>
    tpu.vector_store %arg12[%c0_21, %c0_22], %45 {strides = array<i32>} : memref<32x64xbf16, #tpu.memory_space<vmem>>, vector<32x64xbf16>,
    %c0_23 = arith.constant 0 : index
    %c0_24 = arith.constant 0 : index
    %47 = vector.load %arg8[%c0_23, %c0_24] : memref<32x32xf32, #tpu.memory_space<vmem>>, vector<32x32xf32>
    %48 = arith.truncf %47 : vector<32x32xf32> to vector<32x32xbf16>
    %cst_25 = arith.constant dense<0.000000e+00> : vector<32x64xf32>
    %49 = tpu.matmul %48, %25, %cst_25 {dimension_numbers = #tpu.dot_dimension_numbers<[1], [1], [0], [0], [0, 0, 1, 0], [], []>} : vector<32x32xbf16>, vector<64x32xbf16>, vector<32x64xf32> -> vector<32x64xf32>
    %c0_26 = arith.constant 0 : index
    %c0_27 = arith.constant 0 : index
    %50 = vector.load %arg9[%c0_26, %c0_27] : memref<32x1xf32, #tpu.memory_space<vmem>>, vector<32x1xf32>
    %51 = vector.broadcast %50 : vector<32x1xf32> to vector<32x64xf32>
    %52 = arith.addf %49, %51 : vector<32x64xf32>
    %cst_28 = arith.constant 0.000000e+00 : f32
    %53 = vector.broadcast %cst_28 : f32 to vector<32x64xf32>
    %54 = arith.subf %53, %52 : vector<32x64xf32>
    %55 = math.exp %54 : vector<32x64xf32>
    %cst_29 = arith.constant 1.000000e+00 : f32
    %56 = vector.broadcast %cst_29 : f32 to vector<32x64xf32>
    %57 = arith.addf %56, %55 : vector<32x64xf32>
    %58 = tpu.reciprocal %57 {approx = true} : vector<32x64xf32> -> vector<32x64xf32>
    %c0_30 = arith.constant 0 : index
    %c0_31 = arith.constant 0 : index
    %59 = vector.load %arg10[%c0_30, %c0_31] : memref<32x32xf32, #tpu.memory_space<vmem>>, vector<32x32xf32>
    %60 = arith.truncf %59 : vector<32x32xf32> to vector<32x32xbf16>
    %cst_32 = arith.constant dense<0.000000e+00> : vector<32x64xf32>
    %61 = tpu.matmul %60, %25, %cst_32 {dimension_numbers = #tpu.dot_dimension_numbers<[1], [1], [0], [0], [0, 0, 1, 0], [], []>} : vector<32x32xbf16>, vector<64x32xbf16>, vector<32x64xf32> -> vector<32x64xf32>
    %c0_33 = arith.constant 0 : index
    %c0_34 = arith.constant 0 : index
    %62 = vector.load %arg11[%c0_33, %c0_34] : memref<32x1xf32, #tpu.memory_space<vmem>>, vector<32x1xf32>
    %63 = vector.broadcast %62 : vector<32x1xf32> to vector<32x64xf32>
    %64 = arith.addf %61, %63 : vector<32x64xf32>
    %65 = arith.mulf %58, %64 : vector<32x64xf32>
    %66 = arith.truncf %65 : vector<32x64xf32> to vector<32x64xbf16>
    %c0_35 = arith.constant 0 : index
    %c0_36 = arith.constant 0 : index
    %67 = vector.load %arg13[%c0_35, %c0_36] : memref<32x64xbf16, #tpu.memory_space<vmem>>, vector<32x64xbf16>
    tpu.vector_store %arg13[%c0_35, %c0_36], %66 {strides = array<i32>} : memref<32x64xbf16, #tpu.memory_space<vmem>>, vector<32x64xbf16>,
    return
  }
  func.func @transform_0(%arg0: i32) -> (i32, i32) {
    %c0_i32 = arith.constant 0 : i32
    %c0_i32_0 = arith.constant 0 : i32
    return %arg0, %c0_i32 : i32, i32
  }
  func.func @transform_1(%arg0: i32) -> (i32, i32) {
    %c0_i32 = arith.constant 0 : i32
    %c0_i32_0 = arith.constant 0 : i32
    %c0_i32_1 = arith.constant 0 : i32
    return %c0_i32, %c0_i32_0 : i32, i32
  }
  func.func @transform_2(%arg0: i32) -> (i32, i32) {
    %c0_i32 = arith.constant 0 : i32
    %c0_i32_0 = arith.constant 0 : i32
    %c0_i32_1 = arith.constant 0 : i32
    return %c0_i32, %c0_i32_0 : i32, i32
  }
  func.func @transform_3(%arg0: i32) -> (i32, i32) {
    %c0_i32 = arith.constant 0 : i32
    %c0_i32_0 = arith.constant 0 : i32
    %c0_i32_1 = arith.constant 0 : i32
    return %c0_i32, %c0_i32_0 : i32, i32
  }
  func.func @transform_4(%arg0: i32) -> (i32, i32) {
    %c0_i32 = arith.constant 0 : i32
    %c0_i32_0 = arith.constant 0 : i32
    %c0_i32_1 = arith.constant 0 : i32
    return %c0_i32, %c0_i32_0 : i32, i32
  }
  func.func @transform_5(%arg0: i32) -> (i32, i32) {
    %c0_i32 = arith.constant 0 : i32
    %c0_i32_0 = arith.constant 0 : i32
    %c0_i32_1 = arith.constant 0 : i32
    return %c0_i32, %c0_i32_0 : i32, i32
  }
  func.func @transform_6(%arg0: i32) -> (i32, i32) {
    %c0_i32 = arith.constant 0 : i32
    %c0_i32_0 = arith.constant 0 : i32
    %c0_i32_1 = arith.constant 0 : i32
    return %c0_i32, %c0_i32_0 : i32, i32
  }
  func.func @transform_7(%arg0: i32) -> (i32, i32) {
    %c0_i32 = arith.constant 0 : i32
    %c0_i32_0 = arith.constant 0 : i32
    %c0_i32_1 = arith.constant 0 : i32
    return %c0_i32, %c0_i32_0 : i32, i32
  }
  func.func @transform_8(%arg0: i32) -> (i32, i32) {
    %c0_i32 = arith.constant 0 : i32
    %c0_i32_0 = arith.constant 0 : i32
    %c0_i32_1 = arith.constant 0 : i32
    return %c0_i32, %c0_i32_0 : i32, i32
  }
  func.func @transform_9(%arg0: i32) -> (i32, i32) {
    %c0_i32 = arith.constant 0 : i32
    %c0_i32_0 = arith.constant 0 : i32
    %c0_i32_1 = arith.constant 0 : i32
    return %c0_i32, %c0_i32_0 : i32, i32
  }
  func.func @transform_10(%arg0: i32) -> (i32, i32) {
    %c0_i32 = arith.constant 0 : i32
    %c0_i32_0 = arith.constant 0 : i32
    %c0_i32_1 = arith.constant 0 : i32
    return %c0_i32, %c0_i32_0 : i32, i32
  }
  func.func @transform_11(%arg0: i32) -> (i32, i32) {
    %c0_i32 = arith.constant 0 : i32
    %c0_i32_0 = arith.constant 0 : i32
    return %c0_i32, %arg0 : i32, i32
  }
  func.func @transform_12(%arg0: i32) -> (i32, i32) {
    %c0_i32 = arith.constant 0 : i32
    %c0_i32_0 = arith.constant 0 : i32
    return %c0_i32, %arg0 : i32, i32
  }
}

module attributes {stable_mosaic.version = 11 : i64} {
  func.func @_opm_kernel(%arg0: i32, %arg1: i32, %arg2: i32, %arg3: memref<2x8x32xf32, #tpu.memory_space<vmem>>, %arg4: memref<2x8x32xf32, #tpu.memory_space<vmem>>, %arg5: memref<8x8x32xf32, #tpu.memory_space<vmem>>, %arg6: memref<1x32xf32, #tpu.memory_space<vmem>>, %arg7: memref<1x32xf32, #tpu.memory_space<vmem>>, %arg8: memref<32x4xf32, #tpu.memory_space<vmem>>, %arg9: memref<32x4xf32, #tpu.memory_space<vmem>>, %arg10: memref<4x4x32xf32, #tpu.memory_space<vmem>>, %arg11: memref<1x32xf32, #tpu.memory_space<vmem>>, %arg12: memref<8x8x32xf32, #tpu.memory_space<vmem>>) attributes {dimension_semantics = [#tpu.dimension_semantics<parallel>, #tpu.dimension_semantics<parallel>, #tpu.dimension_semantics<arbitrary>], iteration_bounds = array<i64: 1, 1, 2>, scalar_prefetch = 0 : i64, scratch_operands = 0 : i64, tpu.core_type = #tpu.core_type<tc>, window_params = [{transform_indices = @transform_0, window_bounds = array<i64: 2, 8, 32>}, {transform_indices = @transform_1, window_bounds = array<i64: 2, 8, 32>}, {transform_indices = @transform_2, window_bounds = array<i64: 8, 8, 32>}, {pipeline_mode = #tpu.pipeline_mode<synchronous>, transform_indices = @transform_3, window_bounds = array<i64: 1, 32>}, {pipeline_mode = #tpu.pipeline_mode<synchronous>, transform_indices = @transform_4, window_bounds = array<i64: 1, 32>}, {pipeline_mode = #tpu.pipeline_mode<synchronous>, transform_indices = @transform_5, window_bounds = array<i64: 32, 4>}, {pipeline_mode = #tpu.pipeline_mode<synchronous>, transform_indices = @transform_6, window_bounds = array<i64: 32, 4>}, {pipeline_mode = #tpu.pipeline_mode<synchronous>, transform_indices = @transform_7, window_bounds = array<i64: 4, 4, 32>}, {pipeline_mode = #tpu.pipeline_mode<synchronous>, transform_indices = @transform_8, window_bounds = array<i64: 1, 32>}, {transform_indices = @transform_9, window_bounds = array<i64: 8, 8, 32>}]} {
    %c0_i32 = arith.constant 0 : i32
    %0 = arith.cmpi eq, %arg2, %c0_i32 : i32
    %1 = arith.extui %0 : i1 to i32
    %c0_i32_0 = arith.constant 0 : i32
    %2 = arith.cmpi ne, %1, %c0_i32_0 : i32
    scf.if %2 {
      %c0_64 = arith.constant 0 : index
      %c0_65 = arith.constant 0 : index
      %c0_66 = arith.constant 0 : index
      %244 = vector.load %arg5[%c0_64, %c0_65, %c0_66] : memref<8x8x32xf32, #tpu.memory_space<vmem>>, vector<8x8x32xf32>
      %c0_67 = arith.constant 0 : index
      %c0_68 = arith.constant 0 : index
      %245 = vector.load %arg11[%c0_67, %c0_68] : memref<1x32xf32, #tpu.memory_space<vmem>>, vector<1x32xf32>
      %246 = vector.shape_cast %245 : vector<1x32xf32> to vector<1x1x32xf32>
      %247 = vector.broadcast %246 : vector<1x1x32xf32> to vector<8x8x32xf32>
      %248 = arith.addf %244, %247 : vector<8x8x32xf32>
      %c0_69 = arith.constant 0 : index
      %c0_70 = arith.constant 0 : index
      %c0_71 = arith.constant 0 : index
      %249 = vector.load %arg12[%c0_69, %c0_70, %c0_71] : memref<8x8x32xf32, #tpu.memory_space<vmem>>, vector<8x8x32xf32>
      tpu.vector_store %arg12[%c0_69, %c0_70, %c0_71], %248 {strides = array<i32>} : memref<8x8x32xf32, #tpu.memory_space<vmem>>, vector<8x8x32xf32>,
    } else {
    }
    %c0 = arith.constant 0 : index
    %c0_1 = arith.constant 0 : index
    %c0_2 = arith.constant 0 : index
    %3 = vector.load %arg3[%c0, %c0_1, %c0_2] : memref<2x8x32xf32, #tpu.memory_space<vmem>>, vector<2x8x32xf32>
    %c0_3 = arith.constant 0 : index
    %c0_4 = arith.constant 0 : index
    %4 = vector.load %arg6[%c0_3, %c0_4] : memref<1x32xf32, #tpu.memory_space<vmem>>, vector<1x32xf32>
    %c0_5 = arith.constant 0 : index
    %c0_6 = arith.constant 0 : index
    %5 = vector.load %arg7[%c0_5, %c0_6] : memref<1x32xf32, #tpu.memory_space<vmem>>, vector<1x32xf32>
    %cst = arith.constant dense<0.000000e+00> : vector<2x8xf32>
    %6 = vector.multi_reduction <add>, %3, %cst [2] : vector<2x8x32xf32> to vector<2x8xf32>
    %7 = vector.shape_cast %6 : vector<2x8xf32> to vector<2x8x1xf32>
    %cst_7 = arith.constant 3.200000e+01 : f32
    %8 = vector.broadcast %cst_7 : f32 to vector<2x8x1xf32>
    %9 = arith.divf %7, %8 : vector<2x8x1xf32>
    %10 = vector.broadcast %9 : vector<2x8x1xf32> to vector<2x8x32xf32>
    %11 = arith.subf %3, %10 : vector<2x8x32xf32>
    %12 = arith.mulf %11, %11 : vector<2x8x32xf32>
    %cst_8 = arith.constant dense<0.000000e+00> : vector<2x8xf32>
    %13 = vector.multi_reduction <add>, %12, %cst_8 [2] : vector<2x8x32xf32> to vector<2x8xf32>
    %14 = vector.shape_cast %13 : vector<2x8xf32> to vector<2x8x1xf32>
    %cst_9 = arith.constant 3.200000e+01 : f32
    %15 = vector.broadcast %cst_9 : f32 to vector<2x8x1xf32>
    %16 = arith.divf %14, %15 : vector<2x8x1xf32>
    %17 = vector.broadcast %9 : vector<2x8x1xf32> to vector<2x8x32xf32>
    %18 = arith.subf %3, %17 : vector<2x8x32xf32>
    %cst_10 = arith.constant 9.99999974E-6 : f32
    %19 = vector.broadcast %cst_10 : f32 to vector<2x8x1xf32>
    %20 = arith.addf %16, %19 : vector<2x8x1xf32>
    %21 = math.rsqrt %20 : vector<2x8x1xf32>
    %22 = vector.broadcast %21 : vector<2x8x1xf32> to vector<2x8x32xf32>
    %23 = arith.mulf %18, %22 : vector<2x8x32xf32>
    %24 = vector.shape_cast %4 : vector<1x32xf32> to vector<1x1x32xf32>
    %25 = vector.broadcast %24 : vector<1x1x32xf32> to vector<2x8x32xf32>
    %26 = arith.mulf %23, %25 : vector<2x8x32xf32>
    %27 = vector.shape_cast %5 : vector<1x32xf32> to vector<1x1x32xf32>
    %28 = vector.broadcast %27 : vector<1x1x32xf32> to vector<2x8x32xf32>
    %29 = arith.addf %26, %28 : vector<2x8x32xf32>
    %c0_11 = arith.constant 0 : index
    %c0_12 = arith.constant 0 : index
    %c0_13 = arith.constant 0 : index
    %30 = vector.load %arg4[%c0_11, %c0_12, %c0_13] : memref<2x8x32xf32, #tpu.memory_space<vmem>>, vector<2x8x32xf32>
    %c0_14 = arith.constant 0 : index
    %c0_15 = arith.constant 0 : index
    %31 = vector.load %arg6[%c0_14, %c0_15] : memref<1x32xf32, #tpu.memory_space<vmem>>, vector<1x32xf32>
    %c0_16 = arith.constant 0 : index
    %c0_17 = arith.constant 0 : index
    %32 = vector.load %arg7[%c0_16, %c0_17] : memref<1x32xf32, #tpu.memory_space<vmem>>, vector<1x32xf32>
    %cst_18 = arith.constant dense<0.000000e+00> : vector<2x8xf32>
    %33 = vector.multi_reduction <add>, %30, %cst_18 [2] : vector<2x8x32xf32> to vector<2x8xf32>
    %34 = vector.shape_cast %33 : vector<2x8xf32> to vector<2x8x1xf32>
    %cst_19 = arith.constant 3.200000e+01 : f32
    %35 = vector.broadcast %cst_19 : f32 to vector<2x8x1xf32>
    %36 = arith.divf %34, %35 : vector<2x8x1xf32>
    %37 = vector.broadcast %36 : vector<2x8x1xf32> to vector<2x8x32xf32>
    %38 = arith.subf %30, %37 : vector<2x8x32xf32>
    %39 = arith.mulf %38, %38 : vector<2x8x32xf32>
    %cst_20 = arith.constant dense<0.000000e+00> : vector<2x8xf32>
    %40 = vector.multi_reduction <add>, %39, %cst_20 [2] : vector<2x8x32xf32> to vector<2x8xf32>
    %41 = vector.shape_cast %40 : vector<2x8xf32> to vector<2x8x1xf32>
    %cst_21 = arith.constant 3.200000e+01 : f32
    %42 = vector.broadcast %cst_21 : f32 to vector<2x8x1xf32>
    %43 = arith.divf %41, %42 : vector<2x8x1xf32>
    %44 = vector.broadcast %36 : vector<2x8x1xf32> to vector<2x8x32xf32>
    %45 = arith.subf %30, %44 : vector<2x8x32xf32>
    %cst_22 = arith.constant 9.99999974E-6 : f32
    %46 = vector.broadcast %cst_22 : f32 to vector<2x8x1xf32>
    %47 = arith.addf %43, %46 : vector<2x8x1xf32>
    %48 = math.rsqrt %47 : vector<2x8x1xf32>
    %49 = vector.broadcast %48 : vector<2x8x1xf32> to vector<2x8x32xf32>
    %50 = arith.mulf %45, %49 : vector<2x8x32xf32>
    %51 = vector.shape_cast %31 : vector<1x32xf32> to vector<1x1x32xf32>
    %52 = vector.broadcast %51 : vector<1x1x32xf32> to vector<2x8x32xf32>
    %53 = arith.mulf %50, %52 : vector<2x8x32xf32>
    %54 = vector.shape_cast %32 : vector<1x32xf32> to vector<1x1x32xf32>
    %55 = vector.broadcast %54 : vector<1x1x32xf32> to vector<2x8x32xf32>
    %56 = arith.addf %53, %55 : vector<2x8x32xf32>
    %57 = vector.shape_cast %29 : vector<2x8x32xf32> to vector<16x32xf32>
    %58 = arith.truncf %57 : vector<16x32xf32> to vector<16x32xbf16>
    %c0_23 = arith.constant 0 : index
    %c0_24 = arith.constant 0 : index
    %59 = vector.load %arg8[%c0_23, %c0_24] : memref<32x4xf32, #tpu.memory_space<vmem>>, vector<32x4xf32>
    %60 = arith.truncf %59 : vector<32x4xf32> to vector<32x4xbf16>
    %cst_25 = arith.constant dense<0.000000e+00> : vector<16x4xf32>
    %61 = tpu.matmul %58, %60, %cst_25 {dimension_numbers = #tpu.dot_dimension_numbers<[1], [0], [0], [1], [0, 0, 1, 1], [], []>} : vector<16x32xbf16>, vector<32x4xbf16>, vector<16x4xf32> -> vector<16x4xf32>
    %62 = vector.shape_cast %61 : vector<16x4xf32> to vector<2x8x4xf32>
    %63 = vector.shape_cast %56 : vector<2x8x32xf32> to vector<16x32xf32>
    %64 = arith.truncf %63 : vector<16x32xf32> to vector<16x32xbf16>
    %c0_26 = arith.constant 0 : index
    %c0_27 = arith.constant 0 : index
    %65 = vector.load %arg9[%c0_26, %c0_27] : memref<32x4xf32, #tpu.memory_space<vmem>>, vector<32x4xf32>
    %66 = arith.truncf %65 : vector<32x4xf32> to vector<32x4xbf16>
    %cst_28 = arith.constant dense<0.000000e+00> : vector<16x4xf32>
    %67 = tpu.matmul %64, %66, %cst_28 {dimension_numbers = #tpu.dot_dimension_numbers<[1], [0], [0], [1], [0, 0, 1, 1], [], []>} : vector<16x32xbf16>, vector<32x4xbf16>, vector<16x4xf32> -> vector<16x4xf32>
    %68 = vector.shape_cast %67 : vector<16x4xf32> to vector<2x8x4xf32>
    %c0_29 = arith.constant 0 : index
    %c0_30 = arith.constant 0 : index
    %c0_31 = arith.constant 0 : index
    %69 = vector.load %arg10[%c0_29, %c0_30, %c0_31] : memref<4x4x32xf32, #tpu.memory_space<vmem>>, vector<4x4x32xf32>
    %70 = vector.extract_strided_slice %62 {offsets = [0, 0, 0], sizes = [2, 8, 1], strides = [1, 1, 1]} : vector<2x8x4xf32> to vector<2x8x1xf32>
    %cst_32 = arith.constant dense<0.000000e+00> : vector<2x8xf32>
    %71 = vector.multi_reduction <add>, %70, %cst_32 [2] : vector<2x8x1xf32> to vector<2x8xf32>
    %72 = arith.truncf %71 : vector<2x8xf32> to vector<2x8xbf16>
    %73 = vector.extract_strided_slice %62 {offsets = [0, 0, 1], sizes = [2, 8, 1], strides = [1, 1, 1]} : vector<2x8x4xf32> to vector<2x8x1xf32>
    %cst_33 = arith.constant dense<0.000000e+00> : vector<2x8xf32>
    %74 = vector.multi_reduction <add>, %73, %cst_33 [2] : vector<2x8x1xf32> to vector<2x8xf32>
    %75 = arith.truncf %74 : vector<2x8xf32> to vector<2x8xbf16>
    %76 = vector.extract_strided_slice %62 {offsets = [0, 0, 2], sizes = [2, 8, 1], strides = [1, 1, 1]} : vector<2x8x4xf32> to vector<2x8x1xf32>
    %cst_34 = arith.constant dense<0.000000e+00> : vector<2x8xf32>
    %77 = vector.multi_reduction <add>, %76, %cst_34 [2] : vector<2x8x1xf32> to vector<2x8xf32>
    %78 = arith.truncf %77 : vector<2x8xf32> to vector<2x8xbf16>
    %79 = vector.extract_strided_slice %62 {offsets = [0, 0, 3], sizes = [2, 8, 1], strides = [1, 1, 1]} : vector<2x8x4xf32> to vector<2x8x1xf32>
    %cst_35 = arith.constant dense<0.000000e+00> : vector<2x8xf32>
    %80 = vector.multi_reduction <add>, %79, %cst_35 [2] : vector<2x8x1xf32> to vector<2x8xf32>
    %81 = arith.truncf %80 : vector<2x8xf32> to vector<2x8xbf16>
    %82 = vector.extract_strided_slice %68 {offsets = [0, 0, 0], sizes = [2, 8, 1], strides = [1, 1, 1]} : vector<2x8x4xf32> to vector<2x8x1xf32>
    %cst_36 = arith.constant dense<0.000000e+00> : vector<2x8xf32>
    %83 = vector.multi_reduction <add>, %82, %cst_36 [2] : vector<2x8x1xf32> to vector<2x8xf32>
    %84 = arith.truncf %83 : vector<2x8xf32> to vector<2x8xbf16>
    %85 = vector.extract_strided_slice %68 {offsets = [0, 0, 1], sizes = [2, 8, 1], strides = [1, 1, 1]} : vector<2x8x4xf32> to vector<2x8x1xf32>
    %cst_37 = arith.constant dense<0.000000e+00> : vector<2x8xf32>
    %86 = vector.multi_reduction <add>, %85, %cst_37 [2] : vector<2x8x1xf32> to vector<2x8xf32>
    %87 = arith.truncf %86 : vector<2x8xf32> to vector<2x8xbf16>
    %88 = vector.extract_strided_slice %68 {offsets = [0, 0, 2], sizes = [2, 8, 1], strides = [1, 1, 1]} : vector<2x8x4xf32> to vector<2x8x1xf32>
    %cst_38 = arith.constant dense<0.000000e+00> : vector<2x8xf32>
    %89 = vector.multi_reduction <add>, %88, %cst_38 [2] : vector<2x8x1xf32> to vector<2x8xf32>
    %90 = arith.truncf %89 : vector<2x8xf32> to vector<2x8xbf16>
    %91 = vector.extract_strided_slice %68 {offsets = [0, 0, 3], sizes = [2, 8, 1], strides = [1, 1, 1]} : vector<2x8x4xf32> to vector<2x8x1xf32>
    %cst_39 = arith.constant dense<0.000000e+00> : vector<2x8xf32>
    %92 = vector.multi_reduction <add>, %91, %cst_39 [2] : vector<2x8x1xf32> to vector<2x8xf32>
    %93 = arith.truncf %92 : vector<2x8xf32> to vector<2x8xbf16>
    %cst_40 = arith.constant 0.000000e+00 : f32
    %94 = vector.broadcast %cst_40 : f32 to vector<8x8x32xf32>
    %cst_41 = arith.constant dense<0.000000e+00> : vector<8x8xf32>
    %95 = tpu.matmul %72, %84, %cst_41 {dimension_numbers = #tpu.dot_dimension_numbers<[0], [0], [1], [1], [0, 1, 1, 1], [], []>} : vector<2x8xbf16>, vector<2x8xbf16>, vector<8x8xf32> -> vector<8x8xf32>
    %96 = vector.shape_cast %95 : vector<8x8xf32> to vector<8x8x1xf32>
    %97 = vector.extract_strided_slice %69 {offsets = [0, 0, 0], sizes = [1, 1, 32], strides = [1, 1, 1]} : vector<4x4x32xf32> to vector<1x1x32xf32>
    %98 = vector.shape_cast %97 : vector<1x1x32xf32> to vector<32xf32>
    %99 = vector.shape_cast %98 : vector<32xf32> to vector<1x1x32xf32>
    %100 = vector.broadcast %96 : vector<8x8x1xf32> to vector<8x8x32xf32>
    %101 = vector.broadcast %99 : vector<1x1x32xf32> to vector<8x8x32xf32>
    %102 = arith.mulf %100, %101 : vector<8x8x32xf32>
    %103 = arith.addf %94, %102 : vector<8x8x32xf32>
    %cst_42 = arith.constant dense<0.000000e+00> : vector<8x8xf32>
    %104 = tpu.matmul %72, %87, %cst_42 {dimension_numbers = #tpu.dot_dimension_numbers<[0], [0], [1], [1], [0, 1, 1, 1], [], []>} : vector<2x8xbf16>, vector<2x8xbf16>, vector<8x8xf32> -> vector<8x8xf32>
    %105 = vector.shape_cast %104 : vector<8x8xf32> to vector<8x8x1xf32>
    %106 = vector.extract_strided_slice %69 {offsets = [0, 1, 0], sizes = [1, 1, 32], strides = [1, 1, 1]} : vector<4x4x32xf32> to vector<1x1x32xf32>
    %107 = vector.shape_cast %106 : vector<1x1x32xf32> to vector<32xf32>
    %108 = vector.shape_cast %107 : vector<32xf32> to vector<1x1x32xf32>
    %109 = vector.broadcast %105 : vector<8x8x1xf32> to vector<8x8x32xf32>
    %110 = vector.broadcast %108 : vector<1x1x32xf32> to vector<8x8x32xf32>
    %111 = arith.mulf %109, %110 : vector<8x8x32xf32>
    %112 = arith.addf %103, %111 : vector<8x8x32xf32>
    %cst_43 = arith.constant dense<0.000000e+00> : vector<8x8xf32>
    %113 = tpu.matmul %72, %90, %cst_43 {dimension_numbers = #tpu.dot_dimension_numbers<[0], [0], [1], [1], [0, 1, 1, 1], [], []>} : vector<2x8xbf16>, vector<2x8xbf16>, vector<8x8xf32> -> vector<8x8xf32>
    %114 = vector.shape_cast %113 : vector<8x8xf32> to vector<8x8x1xf32>
    %115 = vector.extract_strided_slice %69 {offsets = [0, 2, 0], sizes = [1, 1, 32], strides = [1, 1, 1]} : vector<4x4x32xf32> to vector<1x1x32xf32>
    %116 = vector.shape_cast %115 : vector<1x1x32xf32> to vector<32xf32>
    %117 = vector.shape_cast %116 : vector<32xf32> to vector<1x1x32xf32>
    %118 = vector.broadcast %114 : vector<8x8x1xf32> to vector<8x8x32xf32>
    %119 = vector.broadcast %117 : vector<1x1x32xf32> to vector<8x8x32xf32>
    %120 = arith.mulf %118, %119 : vector<8x8x32xf32>
    %121 = arith.addf %112, %120 : vector<8x8x32xf32>
    %cst_44 = arith.constant dense<0.000000e+00> : vector<8x8xf32>
    %122 = tpu.matmul %72, %93, %cst_44 {dimension_numbers = #tpu.dot_dimension_numbers<[0], [0], [1], [1], [0, 1, 1, 1], [], []>} : vector<2x8xbf16>, vector<2x8xbf16>, vector<8x8xf32> -> vector<8x8xf32>
    %123 = vector.shape_cast %122 : vector<8x8xf32> to vector<8x8x1xf32>
    %124 = vector.extract_strided_slice %69 {offsets = [0, 3, 0], sizes = [1, 1, 32], strides = [1, 1, 1]} : vector<4x4x32xf32> to vector<1x1x32xf32>
    %125 = vector.shape_cast %124 : vector<1x1x32xf32> to vector<32xf32>
    %126 = vector.shape_cast %125 : vector<32xf32> to vector<1x1x32xf32>
    %127 = vector.broadcast %123 : vector<8x8x1xf32> to vector<8x8x32xf32>
    %128 = vector.broadcast %126 : vector<1x1x32xf32> to vector<8x8x32xf32>
    %129 = arith.mulf %127, %128 : vector<8x8x32xf32>
    %130 = arith.addf %121, %129 : vector<8x8x32xf32>
    %cst_45 = arith.constant dense<0.000000e+00> : vector<8x8xf32>
    %131 = tpu.matmul %75, %84, %cst_45 {dimension_numbers = #tpu.dot_dimension_numbers<[0], [0], [1], [1], [0, 1, 1, 1], [], []>} : vector<2x8xbf16>, vector<2x8xbf16>, vector<8x8xf32> -> vector<8x8xf32>
    %132 = vector.shape_cast %131 : vector<8x8xf32> to vector<8x8x1xf32>
    %133 = vector.extract_strided_slice %69 {offsets = [1, 0, 0], sizes = [1, 1, 32], strides = [1, 1, 1]} : vector<4x4x32xf32> to vector<1x1x32xf32>
    %134 = vector.shape_cast %133 : vector<1x1x32xf32> to vector<32xf32>
    %135 = vector.shape_cast %134 : vector<32xf32> to vector<1x1x32xf32>
    %136 = vector.broadcast %132 : vector<8x8x1xf32> to vector<8x8x32xf32>
    %137 = vector.broadcast %135 : vector<1x1x32xf32> to vector<8x8x32xf32>
    %138 = arith.mulf %136, %137 : vector<8x8x32xf32>
    %139 = arith.addf %130, %138 : vector<8x8x32xf32>
    %cst_46 = arith.constant dense<0.000000e+00> : vector<8x8xf32>
    %140 = tpu.matmul %75, %87, %cst_46 {dimension_numbers = #tpu.dot_dimension_numbers<[0], [0], [1], [1], [0, 1, 1, 1], [], []>} : vector<2x8xbf16>, vector<2x8xbf16>, vector<8x8xf32> -> vector<8x8xf32>
    %141 = vector.shape_cast %140 : vector<8x8xf32> to vector<8x8x1xf32>
    %142 = vector.extract_strided_slice %69 {offsets = [1, 1, 0], sizes = [1, 1, 32], strides = [1, 1, 1]} : vector<4x4x32xf32> to vector<1x1x32xf32>
    %143 = vector.shape_cast %142 : vector<1x1x32xf32> to vector<32xf32>
    %144 = vector.shape_cast %143 : vector<32xf32> to vector<1x1x32xf32>
    %145 = vector.broadcast %141 : vector<8x8x1xf32> to vector<8x8x32xf32>
    %146 = vector.broadcast %144 : vector<1x1x32xf32> to vector<8x8x32xf32>
    %147 = arith.mulf %145, %146 : vector<8x8x32xf32>
    %148 = arith.addf %139, %147 : vector<8x8x32xf32>
    %cst_47 = arith.constant dense<0.000000e+00> : vector<8x8xf32>
    %149 = tpu.matmul %75, %90, %cst_47 {dimension_numbers = #tpu.dot_dimension_numbers<[0], [0], [1], [1], [0, 1, 1, 1], [], []>} : vector<2x8xbf16>, vector<2x8xbf16>, vector<8x8xf32> -> vector<8x8xf32>
    %150 = vector.shape_cast %149 : vector<8x8xf32> to vector<8x8x1xf32>
    %151 = vector.extract_strided_slice %69 {offsets = [1, 2, 0], sizes = [1, 1, 32], strides = [1, 1, 1]} : vector<4x4x32xf32> to vector<1x1x32xf32>
    %152 = vector.shape_cast %151 : vector<1x1x32xf32> to vector<32xf32>
    %153 = vector.shape_cast %152 : vector<32xf32> to vector<1x1x32xf32>
    %154 = vector.broadcast %150 : vector<8x8x1xf32> to vector<8x8x32xf32>
    %155 = vector.broadcast %153 : vector<1x1x32xf32> to vector<8x8x32xf32>
    %156 = arith.mulf %154, %155 : vector<8x8x32xf32>
    %157 = arith.addf %148, %156 : vector<8x8x32xf32>
    %cst_48 = arith.constant dense<0.000000e+00> : vector<8x8xf32>
    %158 = tpu.matmul %75, %93, %cst_48 {dimension_numbers = #tpu.dot_dimension_numbers<[0], [0], [1], [1], [0, 1, 1, 1], [], []>} : vector<2x8xbf16>, vector<2x8xbf16>, vector<8x8xf32> -> vector<8x8xf32>
    %159 = vector.shape_cast %158 : vector<8x8xf32> to vector<8x8x1xf32>
    %160 = vector.extract_strided_slice %69 {offsets = [1, 3, 0], sizes = [1, 1, 32], strides = [1, 1, 1]} : vector<4x4x32xf32> to vector<1x1x32xf32>
    %161 = vector.shape_cast %160 : vector<1x1x32xf32> to vector<32xf32>
    %162 = vector.shape_cast %161 : vector<32xf32> to vector<1x1x32xf32>
    %163 = vector.broadcast %159 : vector<8x8x1xf32> to vector<8x8x32xf32>
    %164 = vector.broadcast %162 : vector<1x1x32xf32> to vector<8x8x32xf32>
    %165 = arith.mulf %163, %164 : vector<8x8x32xf32>
    %166 = arith.addf %157, %165 : vector<8x8x32xf32>
    %cst_49 = arith.constant dense<0.000000e+00> : vector<8x8xf32>
    %167 = tpu.matmul %78, %84, %cst_49 {dimension_numbers = #tpu.dot_dimension_numbers<[0], [0], [1], [1], [0, 1, 1, 1], [], []>} : vector<2x8xbf16>, vector<2x8xbf16>, vector<8x8xf32> -> vector<8x8xf32>
    %168 = vector.shape_cast %167 : vector<8x8xf32> to vector<8x8x1xf32>
    %169 = vector.extract_strided_slice %69 {offsets = [2, 0, 0], sizes = [1, 1, 32], strides = [1, 1, 1]} : vector<4x4x32xf32> to vector<1x1x32xf32>
    %170 = vector.shape_cast %169 : vector<1x1x32xf32> to vector<32xf32>
    %171 = vector.shape_cast %170 : vector<32xf32> to vector<1x1x32xf32>
    %172 = vector.broadcast %168 : vector<8x8x1xf32> to vector<8x8x32xf32>
    %173 = vector.broadcast %171 : vector<1x1x32xf32> to vector<8x8x32xf32>
    %174 = arith.mulf %172, %173 : vector<8x8x32xf32>
    %175 = arith.addf %166, %174 : vector<8x8x32xf32>
    %cst_50 = arith.constant dense<0.000000e+00> : vector<8x8xf32>
    %176 = tpu.matmul %78, %87, %cst_50 {dimension_numbers = #tpu.dot_dimension_numbers<[0], [0], [1], [1], [0, 1, 1, 1], [], []>} : vector<2x8xbf16>, vector<2x8xbf16>, vector<8x8xf32> -> vector<8x8xf32>
    %177 = vector.shape_cast %176 : vector<8x8xf32> to vector<8x8x1xf32>
    %178 = vector.extract_strided_slice %69 {offsets = [2, 1, 0], sizes = [1, 1, 32], strides = [1, 1, 1]} : vector<4x4x32xf32> to vector<1x1x32xf32>
    %179 = vector.shape_cast %178 : vector<1x1x32xf32> to vector<32xf32>
    %180 = vector.shape_cast %179 : vector<32xf32> to vector<1x1x32xf32>
    %181 = vector.broadcast %177 : vector<8x8x1xf32> to vector<8x8x32xf32>
    %182 = vector.broadcast %180 : vector<1x1x32xf32> to vector<8x8x32xf32>
    %183 = arith.mulf %181, %182 : vector<8x8x32xf32>
    %184 = arith.addf %175, %183 : vector<8x8x32xf32>
    %cst_51 = arith.constant dense<0.000000e+00> : vector<8x8xf32>
    %185 = tpu.matmul %78, %90, %cst_51 {dimension_numbers = #tpu.dot_dimension_numbers<[0], [0], [1], [1], [0, 1, 1, 1], [], []>} : vector<2x8xbf16>, vector<2x8xbf16>, vector<8x8xf32> -> vector<8x8xf32>
    %186 = vector.shape_cast %185 : vector<8x8xf32> to vector<8x8x1xf32>
    %187 = vector.extract_strided_slice %69 {offsets = [2, 2, 0], sizes = [1, 1, 32], strides = [1, 1, 1]} : vector<4x4x32xf32> to vector<1x1x32xf32>
    %188 = vector.shape_cast %187 : vector<1x1x32xf32> to vector<32xf32>
    %189 = vector.shape_cast %188 : vector<32xf32> to vector<1x1x32xf32>
    %190 = vector.broadcast %186 : vector<8x8x1xf32> to vector<8x8x32xf32>
    %191 = vector.broadcast %189 : vector<1x1x32xf32> to vector<8x8x32xf32>
    %192 = arith.mulf %190, %191 : vector<8x8x32xf32>
    %193 = arith.addf %184, %192 : vector<8x8x32xf32>
    %cst_52 = arith.constant dense<0.000000e+00> : vector<8x8xf32>
    %194 = tpu.matmul %78, %93, %cst_52 {dimension_numbers = #tpu.dot_dimension_numbers<[0], [0], [1], [1], [0, 1, 1, 1], [], []>} : vector<2x8xbf16>, vector<2x8xbf16>, vector<8x8xf32> -> vector<8x8xf32>
    %195 = vector.shape_cast %194 : vector<8x8xf32> to vector<8x8x1xf32>
    %196 = vector.extract_strided_slice %69 {offsets = [2, 3, 0], sizes = [1, 1, 32], strides = [1, 1, 1]} : vector<4x4x32xf32> to vector<1x1x32xf32>
    %197 = vector.shape_cast %196 : vector<1x1x32xf32> to vector<32xf32>
    %198 = vector.shape_cast %197 : vector<32xf32> to vector<1x1x32xf32>
    %199 = vector.broadcast %195 : vector<8x8x1xf32> to vector<8x8x32xf32>
    %200 = vector.broadcast %198 : vector<1x1x32xf32> to vector<8x8x32xf32>
    %201 = arith.mulf %199, %200 : vector<8x8x32xf32>
    %202 = arith.addf %193, %201 : vector<8x8x32xf32>
    %cst_53 = arith.constant dense<0.000000e+00> : vector<8x8xf32>
    %203 = tpu.matmul %81, %84, %cst_53 {dimension_numbers = #tpu.dot_dimension_numbers<[0], [0], [1], [1], [0, 1, 1, 1], [], []>} : vector<2x8xbf16>, vector<2x8xbf16>, vector<8x8xf32> -> vector<8x8xf32>
    %204 = vector.shape_cast %203 : vector<8x8xf32> to vector<8x8x1xf32>
    %205 = vector.extract_strided_slice %69 {offsets = [3, 0, 0], sizes = [1, 1, 32], strides = [1, 1, 1]} : vector<4x4x32xf32> to vector<1x1x32xf32>
    %206 = vector.shape_cast %205 : vector<1x1x32xf32> to vector<32xf32>
    %207 = vector.shape_cast %206 : vector<32xf32> to vector<1x1x32xf32>
    %208 = vector.broadcast %204 : vector<8x8x1xf32> to vector<8x8x32xf32>
    %209 = vector.broadcast %207 : vector<1x1x32xf32> to vector<8x8x32xf32>
    %210 = arith.mulf %208, %209 : vector<8x8x32xf32>
    %211 = arith.addf %202, %210 : vector<8x8x32xf32>
    %cst_54 = arith.constant dense<0.000000e+00> : vector<8x8xf32>
    %212 = tpu.matmul %81, %87, %cst_54 {dimension_numbers = #tpu.dot_dimension_numbers<[0], [0], [1], [1], [0, 1, 1, 1], [], []>} : vector<2x8xbf16>, vector<2x8xbf16>, vector<8x8xf32> -> vector<8x8xf32>
    %213 = vector.shape_cast %212 : vector<8x8xf32> to vector<8x8x1xf32>
    %214 = vector.extract_strided_slice %69 {offsets = [3, 1, 0], sizes = [1, 1, 32], strides = [1, 1, 1]} : vector<4x4x32xf32> to vector<1x1x32xf32>
    %215 = vector.shape_cast %214 : vector<1x1x32xf32> to vector<32xf32>
    %216 = vector.shape_cast %215 : vector<32xf32> to vector<1x1x32xf32>
    %217 = vector.broadcast %213 : vector<8x8x1xf32> to vector<8x8x32xf32>
    %218 = vector.broadcast %216 : vector<1x1x32xf32> to vector<8x8x32xf32>
    %219 = arith.mulf %217, %218 : vector<8x8x32xf32>
    %220 = arith.addf %211, %219 : vector<8x8x32xf32>
    %cst_55 = arith.constant dense<0.000000e+00> : vector<8x8xf32>
    %221 = tpu.matmul %81, %90, %cst_55 {dimension_numbers = #tpu.dot_dimension_numbers<[0], [0], [1], [1], [0, 1, 1, 1], [], []>} : vector<2x8xbf16>, vector<2x8xbf16>, vector<8x8xf32> -> vector<8x8xf32>
    %222 = vector.shape_cast %221 : vector<8x8xf32> to vector<8x8x1xf32>
    %223 = vector.extract_strided_slice %69 {offsets = [3, 2, 0], sizes = [1, 1, 32], strides = [1, 1, 1]} : vector<4x4x32xf32> to vector<1x1x32xf32>
    %224 = vector.shape_cast %223 : vector<1x1x32xf32> to vector<32xf32>
    %225 = vector.shape_cast %224 : vector<32xf32> to vector<1x1x32xf32>
    %226 = vector.broadcast %222 : vector<8x8x1xf32> to vector<8x8x32xf32>
    %227 = vector.broadcast %225 : vector<1x1x32xf32> to vector<8x8x32xf32>
    %228 = arith.mulf %226, %227 : vector<8x8x32xf32>
    %229 = arith.addf %220, %228 : vector<8x8x32xf32>
    %cst_56 = arith.constant dense<0.000000e+00> : vector<8x8xf32>
    %230 = tpu.matmul %81, %93, %cst_56 {dimension_numbers = #tpu.dot_dimension_numbers<[0], [0], [1], [1], [0, 1, 1, 1], [], []>} : vector<2x8xbf16>, vector<2x8xbf16>, vector<8x8xf32> -> vector<8x8xf32>
    %231 = vector.shape_cast %230 : vector<8x8xf32> to vector<8x8x1xf32>
    %232 = vector.extract_strided_slice %69 {offsets = [3, 3, 0], sizes = [1, 1, 32], strides = [1, 1, 1]} : vector<4x4x32xf32> to vector<1x1x32xf32>
    %233 = vector.shape_cast %232 : vector<1x1x32xf32> to vector<32xf32>
    %234 = vector.shape_cast %233 : vector<32xf32> to vector<1x1x32xf32>
    %235 = vector.broadcast %231 : vector<8x8x1xf32> to vector<8x8x32xf32>
    %236 = vector.broadcast %234 : vector<1x1x32xf32> to vector<8x8x32xf32>
    %237 = arith.mulf %235, %236 : vector<8x8x32xf32>
    %238 = arith.addf %229, %237 : vector<8x8x32xf32>
    %c0_57 = arith.constant 0 : index
    %c0_58 = arith.constant 0 : index
    %c0_59 = arith.constant 0 : index
    %239 = vector.load %arg12[%c0_57, %c0_58, %c0_59] : memref<8x8x32xf32, #tpu.memory_space<vmem>>, vector<8x8x32xf32>
    %cst_60 = arith.constant 2.500000e-01 : f32
    %240 = vector.broadcast %cst_60 : f32 to vector<8x8x32xf32>
    %241 = arith.mulf %238, %240 : vector<8x8x32xf32>
    %242 = arith.addf %239, %241 : vector<8x8x32xf32>
    %c0_61 = arith.constant 0 : index
    %c0_62 = arith.constant 0 : index
    %c0_63 = arith.constant 0 : index
    %243 = vector.load %arg12[%c0_61, %c0_62, %c0_63] : memref<8x8x32xf32, #tpu.memory_space<vmem>>, vector<8x8x32xf32>
    tpu.vector_store %arg12[%c0_61, %c0_62, %c0_63], %242 {strides = array<i32>} : memref<8x8x32xf32, #tpu.memory_space<vmem>>, vector<8x8x32xf32>,
    return
  }
  func.func @transform_0(%arg0: i32, %arg1: i32, %arg2: i32) -> (i32, i32, i32) {
    %c0_i32 = arith.constant 0 : i32
    %c0_i32_0 = arith.constant 0 : i32
    return %arg2, %arg0, %c0_i32 : i32, i32, i32
  }
  func.func @transform_1(%arg0: i32, %arg1: i32, %arg2: i32) -> (i32, i32, i32) {
    %c0_i32 = arith.constant 0 : i32
    %c0_i32_0 = arith.constant 0 : i32
    return %arg2, %arg1, %c0_i32 : i32, i32, i32
  }
  func.func @transform_2(%arg0: i32, %arg1: i32, %arg2: i32) -> (i32, i32, i32) {
    %c0_i32 = arith.constant 0 : i32
    %c0_i32_0 = arith.constant 0 : i32
    return %arg0, %arg1, %c0_i32 : i32, i32, i32
  }
  func.func @transform_3(%arg0: i32, %arg1: i32, %arg2: i32) -> (i32, i32) {
    %c0_i32 = arith.constant 0 : i32
    %c0_i32_0 = arith.constant 0 : i32
    %c0_i32_1 = arith.constant 0 : i32
    return %c0_i32, %c0_i32_0 : i32, i32
  }
  func.func @transform_4(%arg0: i32, %arg1: i32, %arg2: i32) -> (i32, i32) {
    %c0_i32 = arith.constant 0 : i32
    %c0_i32_0 = arith.constant 0 : i32
    %c0_i32_1 = arith.constant 0 : i32
    return %c0_i32, %c0_i32_0 : i32, i32
  }
  func.func @transform_5(%arg0: i32, %arg1: i32, %arg2: i32) -> (i32, i32) {
    %c0_i32 = arith.constant 0 : i32
    %c0_i32_0 = arith.constant 0 : i32
    %c0_i32_1 = arith.constant 0 : i32
    return %c0_i32, %c0_i32_0 : i32, i32
  }
  func.func @transform_6(%arg0: i32, %arg1: i32, %arg2: i32) -> (i32, i32) {
    %c0_i32 = arith.constant 0 : i32
    %c0_i32_0 = arith.constant 0 : i32
    %c0_i32_1 = arith.constant 0 : i32
    return %c0_i32, %c0_i32_0 : i32, i32
  }
  func.func @transform_7(%arg0: i32, %arg1: i32, %arg2: i32) -> (i32, i32, i32) {
    %c0_i32 = arith.constant 0 : i32
    %c0_i32_0 = arith.constant 0 : i32
    %c0_i32_1 = arith.constant 0 : i32
    %c0_i32_2 = arith.constant 0 : i32
    return %c0_i32, %c0_i32_0, %c0_i32_1 : i32, i32, i32
  }
  func.func @transform_8(%arg0: i32, %arg1: i32, %arg2: i32) -> (i32, i32) {
    %c0_i32 = arith.constant 0 : i32
    %c0_i32_0 = arith.constant 0 : i32
    %c0_i32_1 = arith.constant 0 : i32
    return %c0_i32, %c0_i32_0 : i32, i32
  }
  func.func @transform_9(%arg0: i32, %arg1: i32, %arg2: i32) -> (i32, i32, i32) {
    %c0_i32 = arith.constant 0 : i32
    %c0_i32_0 = arith.constant 0 : i32
    return %arg0, %arg1, %c0_i32 : i32, i32, i32
  }
}

module attributes {stable_mosaic.version = 11 : i64} {
  func.func @_tri_contract_kernel(%arg0: i32, %arg1: memref<16x8x8xbf16, #tpu.memory_space<vmem>>, %arg2: memref<16x8x8xbf16, #tpu.memory_space<vmem>>, %arg3: memref<16x8x8xbf16, #tpu.memory_space<vmem>>) attributes {dimension_semantics = [#tpu.dimension_semantics<parallel>], iteration_bounds = array<i64: 2>, scalar_prefetch = 0 : i64, scratch_operands = 0 : i64, tpu.core_type = #tpu.core_type<tc>, window_params = [{transform_indices = @transform_0, window_bounds = array<i64: 16, 8, 8>}, {transform_indices = @transform_1, window_bounds = array<i64: 16, 8, 8>}, {transform_indices = @transform_2, window_bounds = array<i64: 16, 8, 8>}]} {
    %c0 = arith.constant 0 : index
    %c0_0 = arith.constant 0 : index
    %c0_1 = arith.constant 0 : index
    %0 = vector.load %arg1[%c0, %c0_0, %c0_1] : memref<16x8x8xbf16, #tpu.memory_space<vmem>>, vector<16x8x8xbf16>
    %c0_2 = arith.constant 0 : index
    %c0_3 = arith.constant 0 : index
    %c0_4 = arith.constant 0 : index
    %1 = vector.load %arg2[%c0_2, %c0_3, %c0_4] : memref<16x8x8xbf16, #tpu.memory_space<vmem>>, vector<16x8x8xbf16>
    %cst = arith.constant dense<0.000000e+00> : vector<16x8x8xf32>
    %2 = tpu.matmul %0, %1, %cst {dimension_numbers = #tpu.dot_dimension_numbers<[2], [2], [1], [1], [0, 0, 0, 1, 1, 1], [0], [0]>} : vector<16x8x8xbf16>, vector<16x8x8xbf16>, vector<16x8x8xf32> -> vector<16x8x8xf32>
    %3 = arith.truncf %2 : vector<16x8x8xf32> to vector<16x8x8xbf16>
    %c0_5 = arith.constant 0 : index
    %c0_6 = arith.constant 0 : index
    %c0_7 = arith.constant 0 : index
    %4 = vector.load %arg3[%c0_5, %c0_6, %c0_7] : memref<16x8x8xbf16, #tpu.memory_space<vmem>>, vector<16x8x8xbf16>
    tpu.vector_store %arg3[%c0_5, %c0_6, %c0_7], %3 {strides = array<i32>} : memref<16x8x8xbf16, #tpu.memory_space<vmem>>, vector<16x8x8xbf16>,
    return
  }
  func.func @transform_0(%arg0: i32) -> (i32, i32, i32) {
    %c0_i32 = arith.constant 0 : i32
    %c0_i32_0 = arith.constant 0 : i32
    %c0_i32_1 = arith.constant 0 : i32
    return %arg0, %c0_i32, %c0_i32_0 : i32, i32, i32
  }
  func.func @transform_1(%arg0: i32) -> (i32, i32, i32) {
    %c0_i32 = arith.constant 0 : i32
    %c0_i32_0 = arith.constant 0 : i32
    %c0_i32_1 = arith.constant 0 : i32
    return %arg0, %c0_i32, %c0_i32_0 : i32, i32, i32
  }
  func.func @transform_2(%arg0: i32) -> (i32, i32, i32) {
    %c0_i32 = arith.constant 0 : i32
    %c0_i32_0 = arith.constant 0 : i32
    %c0_i32_1 = arith.constant 0 : i32
    return %arg0, %c0_i32, %c0_i32_0 : i32, i32, i32
  }
}

module attributes {stable_mosaic.version = 11 : i64} {
  func.func @_tri_finish_kernel(%arg0: i32, %arg1: memref<64x32xf32, #tpu.memory_space<vmem>>, %arg2: memref<32x64xbf16, #tpu.memory_space<vmem>>, %arg3: memref<1x32xf32, #tpu.memory_space<vmem>>, %arg4: memref<1x32xf32, #tpu.memory_space<vmem>>, %arg5: memref<32x32xf32, #tpu.memory_space<vmem>>, %arg6: memref<1x32xf32, #tpu.memory_space<vmem>>, %arg7: memref<32x1xf32, #tpu.memory_space<vmem>>, %arg8: memref<32x1xf32, #tpu.memory_space<vmem>>, %arg9: memref<32x32xf32, #tpu.memory_space<vmem>>, %arg10: memref<1x32xf32, #tpu.memory_space<vmem>>, %arg11: memref<64x32xf32, #tpu.memory_space<vmem>>) attributes {dimension_semantics = [#tpu.dimension_semantics<parallel>], iteration_bounds = array<i64: 1>, scalar_prefetch = 0 : i64, scratch_operands = 0 : i64, tpu.core_type = #tpu.core_type<tc>, window_params = [{transform_indices = @transform_0, window_bounds = array<i64: 64, 32>}, {transform_indices = @transform_1, window_bounds = array<i64: 32, 64>}, {pipeline_mode = #tpu.pipeline_mode<synchronous>, transform_indices = @transform_2, window_bounds = array<i64: 1, 32>}, {pipeline_mode = #tpu.pipeline_mode<synchronous>, transform_indices = @transform_3, window_bounds = array<i64: 1, 32>}, {pipeline_mode = #tpu.pipeline_mode<synchronous>, transform_indices = @transform_4, window_bounds = array<i64: 32, 32>}, {pipeline_mode = #tpu.pipeline_mode<synchronous>, transform_indices = @transform_5, window_bounds = array<i64: 1, 32>}, {pipeline_mode = #tpu.pipeline_mode<synchronous>, transform_indices = @transform_6, window_bounds = array<i64: 32, 1>}, {pipeline_mode = #tpu.pipeline_mode<synchronous>, transform_indices = @transform_7, window_bounds = array<i64: 32, 1>}, {pipeline_mode = #tpu.pipeline_mode<synchronous>, transform_indices = @transform_8, window_bounds = array<i64: 32, 32>}, {pipeline_mode = #tpu.pipeline_mode<synchronous>, transform_indices = @transform_9, window_bounds = array<i64: 1, 32>}, {transform_indices = @transform_10, window_bounds = array<i64: 64, 32>}]} {
    %c0 = arith.constant 0 : index
    %c0_0 = arith.constant 0 : index
    %0 = vector.load %arg1[%c0, %c0_0] : memref<64x32xf32, #tpu.memory_space<vmem>>, vector<64x32xf32>
    %c0_1 = arith.constant 0 : index
    %c0_2 = arith.constant 0 : index
    %1 = vector.load %arg3[%c0_1, %c0_2] : memref<1x32xf32, #tpu.memory_space<vmem>>, vector<1x32xf32>
    %c0_3 = arith.constant 0 : index
    %c0_4 = arith.constant 0 : index
    %2 = vector.load %arg4[%c0_3, %c0_4] : memref<1x32xf32, #tpu.memory_space<vmem>>, vector<1x32xf32>
    %cst = arith.constant dense<0.000000e+00> : vector<64xf32>
    %3 = vector.multi_reduction <add>, %0, %cst [1] : vector<64x32xf32> to vector<64xf32>
    %4 = vector.shape_cast %3 : vector<64xf32> to vector<64x1xf32>
    %cst_5 = arith.constant 3.200000e+01 : f32
    %5 = vector.broadcast %cst_5 : f32 to vector<64x1xf32>
    %6 = arith.divf %4, %5 : vector<64x1xf32>
    %7 = vector.broadcast %6 : vector<64x1xf32> to vector<64x32xf32>
    %8 = arith.subf %0, %7 : vector<64x32xf32>
    %9 = arith.mulf %8, %8 : vector<64x32xf32>
    %cst_6 = arith.constant dense<0.000000e+00> : vector<64xf32>
    %10 = vector.multi_reduction <add>, %9, %cst_6 [1] : vector<64x32xf32> to vector<64xf32>
    %11 = vector.shape_cast %10 : vector<64xf32> to vector<64x1xf32>
    %cst_7 = arith.constant 3.200000e+01 : f32
    %12 = vector.broadcast %cst_7 : f32 to vector<64x1xf32>
    %13 = arith.divf %11, %12 : vector<64x1xf32>
    %14 = vector.broadcast %6 : vector<64x1xf32> to vector<64x32xf32>
    %15 = arith.subf %0, %14 : vector<64x32xf32>
    %cst_8 = arith.constant 9.99999974E-6 : f32
    %16 = vector.broadcast %cst_8 : f32 to vector<64x1xf32>
    %17 = arith.addf %13, %16 : vector<64x1xf32>
    %18 = math.rsqrt %17 : vector<64x1xf32>
    %19 = vector.broadcast %18 : vector<64x1xf32> to vector<64x32xf32>
    %20 = arith.mulf %15, %19 : vector<64x32xf32>
    %21 = vector.broadcast %1 : vector<1x32xf32> to vector<64x32xf32>
    %22 = arith.mulf %20, %21 : vector<64x32xf32>
    %23 = vector.broadcast %2 : vector<1x32xf32> to vector<64x32xf32>
    %24 = arith.addf %22, %23 : vector<64x32xf32>
    %25 = arith.truncf %24 : vector<64x32xf32> to vector<64x32xbf16>
    %c0_9 = arith.constant 0 : index
    %c0_10 = arith.constant 0 : index
    %26 = vector.load %arg5[%c0_9, %c0_10] : memref<32x32xf32, #tpu.memory_space<vmem>>, vector<32x32xf32>
    %27 = arith.truncf %26 : vector<32x32xf32> to vector<32x32xbf16>
    %cst_11 = arith.constant dense<0.000000e+00> : vector<64x32xf32>
    %28 = tpu.matmul %25, %27, %cst_11 {dimension_numbers = #tpu.dot_dimension_numbers<[1], [0], [0], [1], [0, 0, 1, 1], [], []>} : vector<64x32xbf16>, vector<32x32xbf16>, vector<64x32xf32> -> vector<64x32xf32>
    %c0_12 = arith.constant 0 : index
    %c0_13 = arith.constant 0 : index
    %29 = vector.load %arg6[%c0_12, %c0_13] : memref<1x32xf32, #tpu.memory_space<vmem>>, vector<1x32xf32>
    %30 = vector.broadcast %29 : vector<1x32xf32> to vector<64x32xf32>
    %31 = arith.addf %28, %30 : vector<64x32xf32>
    %cst_14 = arith.constant 0.000000e+00 : f32
    %32 = vector.broadcast %cst_14 : f32 to vector<64x32xf32>
    %33 = arith.subf %32, %31 : vector<64x32xf32>
    %34 = math.exp %33 : vector<64x32xf32>
    %cst_15 = arith.constant 1.000000e+00 : f32
    %35 = vector.broadcast %cst_15 : f32 to vector<64x32xf32>
    %36 = arith.addf %35, %34 : vector<64x32xf32>
    %37 = tpu.reciprocal %36 {approx = true} : vector<64x32xf32> -> vector<64x32xf32>
    %c0_16 = arith.constant 0 : index
    %c0_17 = arith.constant 0 : index
    %38 = vector.load %arg2[%c0_16, %c0_17] : memref<32x64xbf16, #tpu.memory_space<vmem>>, vector<32x64xbf16>
    %39 = arith.extf %38 : vector<32x64xbf16> to vector<32x64xf32>
    %cst_18 = arith.constant dense<0.000000e+00> : vector<64xf32>
    %40 = vector.multi_reduction <add>, %39, %cst_18 [0] : vector<32x64xf32> to vector<64xf32>
    %41 = vector.shape_cast %40 : vector<64xf32> to vector<1x64xf32>
    %cst_19 = arith.constant 3.200000e+01 : f32
    %42 = vector.broadcast %cst_19 : f32 to vector<1x64xf32>
    %43 = arith.divf %41, %42 : vector<1x64xf32>
    %44 = vector.broadcast %43 : vector<1x64xf32> to vector<32x64xf32>
    %45 = arith.subf %39, %44 : vector<32x64xf32>
    %46 = arith.mulf %45, %45 : vector<32x64xf32>
    %cst_20 = arith.constant dense<0.000000e+00> : vector<64xf32>
    %47 = vector.multi_reduction <add>, %46, %cst_20 [0] : vector<32x64xf32> to vector<64xf32>
    %48 = vector.shape_cast %47 : vector<64xf32> to vector<1x64xf32>
    %cst_21 = arith.constant 3.200000e+01 : f32
    %49 = vector.broadcast %cst_21 : f32 to vector<1x64xf32>
    %50 = arith.divf %48, %49 : vector<1x64xf32>
    %51 = vector.broadcast %43 : vector<1x64xf32> to vector<32x64xf32>
    %52 = arith.subf %39, %51 : vector<32x64xf32>
    %cst_22 = arith.constant 9.99999974E-6 : f32
    %53 = vector.broadcast %cst_22 : f32 to vector<1x64xf32>
    %54 = arith.addf %50, %53 : vector<1x64xf32>
    %55 = math.rsqrt %54 : vector<1x64xf32>
    %56 = vector.broadcast %55 : vector<1x64xf32> to vector<32x64xf32>
    %57 = arith.mulf %52, %56 : vector<32x64xf32>
    %c0_23 = arith.constant 0 : index
    %c0_24 = arith.constant 0 : index
    %58 = vector.load %arg7[%c0_23, %c0_24] : memref<32x1xf32, #tpu.memory_space<vmem>>, vector<32x1xf32>
    %59 = vector.broadcast %58 : vector<32x1xf32> to vector<32x64xf32>
    %60 = arith.mulf %57, %59 : vector<32x64xf32>
    %c0_25 = arith.constant 0 : index
    %c0_26 = arith.constant 0 : index
    %61 = vector.load %arg8[%c0_25, %c0_26] : memref<32x1xf32, #tpu.memory_space<vmem>>, vector<32x1xf32>
    %62 = vector.broadcast %61 : vector<32x1xf32> to vector<32x64xf32>
    %63 = arith.addf %60, %62 : vector<32x64xf32>
    %64 = arith.truncf %63 : vector<32x64xf32> to vector<32x64xbf16>
    %c0_27 = arith.constant 0 : index
    %c0_28 = arith.constant 0 : index
    %65 = vector.load %arg9[%c0_27, %c0_28] : memref<32x32xf32, #tpu.memory_space<vmem>>, vector<32x32xf32>
    %66 = arith.truncf %65 : vector<32x32xf32> to vector<32x32xbf16>
    %cst_29 = arith.constant dense<0.000000e+00> : vector<64x32xf32>
    %67 = tpu.matmul %64, %66, %cst_29 {dimension_numbers = #tpu.dot_dimension_numbers<[0], [0], [1], [1], [0, 1, 1, 1], [], []>} : vector<32x64xbf16>, vector<32x32xbf16>, vector<64x32xf32> -> vector<64x32xf32>
    %c0_30 = arith.constant 0 : index
    %c0_31 = arith.constant 0 : index
    %68 = vector.load %arg10[%c0_30, %c0_31] : memref<1x32xf32, #tpu.memory_space<vmem>>, vector<1x32xf32>
    %69 = vector.broadcast %68 : vector<1x32xf32> to vector<64x32xf32>
    %70 = arith.addf %67, %69 : vector<64x32xf32>
    %71 = arith.mulf %37, %70 : vector<64x32xf32>
    %72 = arith.addf %0, %71 : vector<64x32xf32>
    %c0_32 = arith.constant 0 : index
    %c0_33 = arith.constant 0 : index
    %73 = vector.load %arg11[%c0_32, %c0_33] : memref<64x32xf32, #tpu.memory_space<vmem>>, vector<64x32xf32>
    tpu.vector_store %arg11[%c0_32, %c0_33], %72 {strides = array<i32>} : memref<64x32xf32, #tpu.memory_space<vmem>>, vector<64x32xf32>,
    return
  }
  func.func @transform_0(%arg0: i32) -> (i32, i32) {
    %c0_i32 = arith.constant 0 : i32
    %c0_i32_0 = arith.constant 0 : i32
    return %arg0, %c0_i32 : i32, i32
  }
  func.func @transform_1(%arg0: i32) -> (i32, i32) {
    %c0_i32 = arith.constant 0 : i32
    %c0_i32_0 = arith.constant 0 : i32
    return %c0_i32, %arg0 : i32, i32
  }
  func.func @transform_2(%arg0: i32) -> (i32, i32) {
    %c0_i32 = arith.constant 0 : i32
    %c0_i32_0 = arith.constant 0 : i32
    %c0_i32_1 = arith.constant 0 : i32
    return %c0_i32, %c0_i32_0 : i32, i32
  }
  func.func @transform_3(%arg0: i32) -> (i32, i32) {
    %c0_i32 = arith.constant 0 : i32
    %c0_i32_0 = arith.constant 0 : i32
    %c0_i32_1 = arith.constant 0 : i32
    return %c0_i32, %c0_i32_0 : i32, i32
  }
  func.func @transform_4(%arg0: i32) -> (i32, i32) {
    %c0_i32 = arith.constant 0 : i32
    %c0_i32_0 = arith.constant 0 : i32
    %c0_i32_1 = arith.constant 0 : i32
    return %c0_i32, %c0_i32_0 : i32, i32
  }
  func.func @transform_5(%arg0: i32) -> (i32, i32) {
    %c0_i32 = arith.constant 0 : i32
    %c0_i32_0 = arith.constant 0 : i32
    %c0_i32_1 = arith.constant 0 : i32
    return %c0_i32, %c0_i32_0 : i32, i32
  }
  func.func @transform_6(%arg0: i32) -> (i32, i32) {
    %c0_i32 = arith.constant 0 : i32
    %c0_i32_0 = arith.constant 0 : i32
    %c0_i32_1 = arith.constant 0 : i32
    return %c0_i32, %c0_i32_0 : i32, i32
  }
  func.func @transform_7(%arg0: i32) -> (i32, i32) {
    %c0_i32 = arith.constant 0 : i32
    %c0_i32_0 = arith.constant 0 : i32
    %c0_i32_1 = arith.constant 0 : i32
    return %c0_i32, %c0_i32_0 : i32, i32
  }
  func.func @transform_8(%arg0: i32) -> (i32, i32) {
    %c0_i32 = arith.constant 0 : i32
    %c0_i32_0 = arith.constant 0 : i32
    %c0_i32_1 = arith.constant 0 : i32
    return %c0_i32, %c0_i32_0 : i32, i32
  }
  func.func @transform_9(%arg0: i32) -> (i32, i32) {
    %c0_i32 = arith.constant 0 : i32
    %c0_i32_0 = arith.constant 0 : i32
    %c0_i32_1 = arith.constant 0 : i32
    return %c0_i32, %c0_i32_0 : i32, i32
  }
  func.func @transform_10(%arg0: i32) -> (i32, i32) {
    %c0_i32 = arith.constant 0 : i32
    %c0_i32_0 = arith.constant 0 : i32
    return %arg0, %c0_i32 : i32, i32
  }
}

module attributes {stable_mosaic.version = 11 : i64} {
  func.func @_tri_contract_kernel(%arg0: i32, %arg1: memref<16x8x8xbf16, #tpu.memory_space<vmem>>, %arg2: memref<16x8x8xbf16, #tpu.memory_space<vmem>>, %arg3: memref<16x8x8xbf16, #tpu.memory_space<vmem>>) attributes {dimension_semantics = [#tpu.dimension_semantics<parallel>], iteration_bounds = array<i64: 2>, scalar_prefetch = 0 : i64, scratch_operands = 0 : i64, tpu.core_type = #tpu.core_type<tc>, window_params = [{transform_indices = @transform_0, window_bounds = array<i64: 16, 8, 8>}, {transform_indices = @transform_1, window_bounds = array<i64: 16, 8, 8>}, {transform_indices = @transform_2, window_bounds = array<i64: 16, 8, 8>}]} {
    %c0 = arith.constant 0 : index
    %c0_0 = arith.constant 0 : index
    %c0_1 = arith.constant 0 : index
    %0 = vector.load %arg1[%c0, %c0_0, %c0_1] : memref<16x8x8xbf16, #tpu.memory_space<vmem>>, vector<16x8x8xbf16>
    %c0_2 = arith.constant 0 : index
    %c0_3 = arith.constant 0 : index
    %c0_4 = arith.constant 0 : index
    %1 = vector.load %arg2[%c0_2, %c0_3, %c0_4] : memref<16x8x8xbf16, #tpu.memory_space<vmem>>, vector<16x8x8xbf16>
    %cst = arith.constant dense<0.000000e+00> : vector<16x8x8xf32>
    %2 = tpu.matmul %0, %1, %cst {dimension_numbers = #tpu.dot_dimension_numbers<[1], [1], [2], [2], [0, 0, 0, 2, 1, 2], [0], [0]>} : vector<16x8x8xbf16>, vector<16x8x8xbf16>, vector<16x8x8xf32> -> vector<16x8x8xf32>
    %3 = arith.truncf %2 : vector<16x8x8xf32> to vector<16x8x8xbf16>
    %c0_5 = arith.constant 0 : index
    %c0_6 = arith.constant 0 : index
    %c0_7 = arith.constant 0 : index
    %4 = vector.load %arg3[%c0_5, %c0_6, %c0_7] : memref<16x8x8xbf16, #tpu.memory_space<vmem>>, vector<16x8x8xbf16>
    tpu.vector_store %arg3[%c0_5, %c0_6, %c0_7], %3 {strides = array<i32>} : memref<16x8x8xbf16, #tpu.memory_space<vmem>>, vector<16x8x8xbf16>,
    return
  }
  func.func @transform_0(%arg0: i32) -> (i32, i32, i32) {
    %c0_i32 = arith.constant 0 : i32
    %c0_i32_0 = arith.constant 0 : i32
    %c0_i32_1 = arith.constant 0 : i32
    return %arg0, %c0_i32, %c0_i32_0 : i32, i32, i32
  }
  func.func @transform_1(%arg0: i32) -> (i32, i32, i32) {
    %c0_i32 = arith.constant 0 : i32
    %c0_i32_0 = arith.constant 0 : i32
    %c0_i32_1 = arith.constant 0 : i32
    return %arg0, %c0_i32, %c0_i32_0 : i32, i32, i32
  }
  func.func @transform_2(%arg0: i32) -> (i32, i32, i32) {
    %c0_i32 = arith.constant 0 : i32
    %c0_i32_0 = arith.constant 0 : i32
    %c0_i32_1 = arith.constant 0 : i32
    return %arg0, %c0_i32, %c0_i32_0 : i32, i32, i32
  }
}

module attributes {stable_mosaic.version = 11 : i64} {
  func.func @_transition_kernel(%arg0: i32, %arg1: memref<32x32xf32, #tpu.memory_space<vmem>>, %arg2: memref<1x32xf32, #tpu.memory_space<vmem>>, %arg3: memref<1x32xf32, #tpu.memory_space<vmem>>, %arg4: memref<32x128xf32, #tpu.memory_space<vmem>>, %arg5: memref<1x128xf32, #tpu.memory_space<vmem>>, %arg6: memref<128x32xf32, #tpu.memory_space<vmem>>, %arg7: memref<1x32xf32, #tpu.memory_space<vmem>>, %arg8: memref<32x32xf32, #tpu.memory_space<vmem>>) attributes {dimension_semantics = [#tpu.dimension_semantics<parallel>], iteration_bounds = array<i64: 2>, scalar_prefetch = 0 : i64, scratch_operands = 0 : i64, tpu.core_type = #tpu.core_type<tc>, window_params = [{transform_indices = @transform_0, window_bounds = array<i64: 32, 32>}, {pipeline_mode = #tpu.pipeline_mode<synchronous>, transform_indices = @transform_1, window_bounds = array<i64: 1, 32>}, {pipeline_mode = #tpu.pipeline_mode<synchronous>, transform_indices = @transform_2, window_bounds = array<i64: 1, 32>}, {pipeline_mode = #tpu.pipeline_mode<synchronous>, transform_indices = @transform_3, window_bounds = array<i64: 32, 128>}, {pipeline_mode = #tpu.pipeline_mode<synchronous>, transform_indices = @transform_4, window_bounds = array<i64: 1, 128>}, {pipeline_mode = #tpu.pipeline_mode<synchronous>, transform_indices = @transform_5, window_bounds = array<i64: 128, 32>}, {pipeline_mode = #tpu.pipeline_mode<synchronous>, transform_indices = @transform_6, window_bounds = array<i64: 1, 32>}, {transform_indices = @transform_7, window_bounds = array<i64: 32, 32>}]} {
    %c0 = arith.constant 0 : index
    %c0_0 = arith.constant 0 : index
    %0 = vector.load %arg1[%c0, %c0_0] : memref<32x32xf32, #tpu.memory_space<vmem>>, vector<32x32xf32>
    %c0_1 = arith.constant 0 : index
    %c0_2 = arith.constant 0 : index
    %1 = vector.load %arg2[%c0_1, %c0_2] : memref<1x32xf32, #tpu.memory_space<vmem>>, vector<1x32xf32>
    %c0_3 = arith.constant 0 : index
    %c0_4 = arith.constant 0 : index
    %2 = vector.load %arg3[%c0_3, %c0_4] : memref<1x32xf32, #tpu.memory_space<vmem>>, vector<1x32xf32>
    %cst = arith.constant dense<0.000000e+00> : vector<32xf32>
    %3 = vector.multi_reduction <add>, %0, %cst [1] : vector<32x32xf32> to vector<32xf32>
    %4 = vector.shape_cast %3 : vector<32xf32> to vector<32x1xf32>
    %cst_5 = arith.constant 3.200000e+01 : f32
    %5 = vector.broadcast %cst_5 : f32 to vector<32x1xf32>
    %6 = arith.divf %4, %5 : vector<32x1xf32>
    %7 = vector.broadcast %6 : vector<32x1xf32> to vector<32x32xf32>
    %8 = arith.subf %0, %7 : vector<32x32xf32>
    %9 = arith.mulf %8, %8 : vector<32x32xf32>
    %cst_6 = arith.constant dense<0.000000e+00> : vector<32xf32>
    %10 = vector.multi_reduction <add>, %9, %cst_6 [1] : vector<32x32xf32> to vector<32xf32>
    %11 = vector.shape_cast %10 : vector<32xf32> to vector<32x1xf32>
    %cst_7 = arith.constant 3.200000e+01 : f32
    %12 = vector.broadcast %cst_7 : f32 to vector<32x1xf32>
    %13 = arith.divf %11, %12 : vector<32x1xf32>
    %14 = vector.broadcast %6 : vector<32x1xf32> to vector<32x32xf32>
    %15 = arith.subf %0, %14 : vector<32x32xf32>
    %cst_8 = arith.constant 9.99999974E-6 : f32
    %16 = vector.broadcast %cst_8 : f32 to vector<32x1xf32>
    %17 = arith.addf %13, %16 : vector<32x1xf32>
    %18 = math.rsqrt %17 : vector<32x1xf32>
    %19 = vector.broadcast %18 : vector<32x1xf32> to vector<32x32xf32>
    %20 = arith.mulf %15, %19 : vector<32x32xf32>
    %21 = vector.broadcast %1 : vector<1x32xf32> to vector<32x32xf32>
    %22 = arith.mulf %20, %21 : vector<32x32xf32>
    %23 = vector.broadcast %2 : vector<1x32xf32> to vector<32x32xf32>
    %24 = arith.addf %22, %23 : vector<32x32xf32>
    %25 = arith.truncf %24 : vector<32x32xf32> to vector<32x32xbf16>
    %c0_9 = arith.constant 0 : index
    %c0_10 = arith.constant 0 : index
    %26 = vector.load %arg4[%c0_9, %c0_10] : memref<32x128xf32, #tpu.memory_space<vmem>>, vector<32x128xf32>
    %27 = arith.truncf %26 : vector<32x128xf32> to vector<32x128xbf16>
    %cst_11 = arith.constant dense<0.000000e+00> : vector<32x128xf32>
    %28 = tpu.matmul %25, %27, %cst_11 {dimension_numbers = #tpu.dot_dimension_numbers<[1], [0], [0], [1], [0, 0, 1, 1], [], []>} : vector<32x32xbf16>, vector<32x128xbf16>, vector<32x128xf32> -> vector<32x128xf32>
    %c0_12 = arith.constant 0 : index
    %c0_13 = arith.constant 0 : index
    %29 = vector.load %arg5[%c0_12, %c0_13] : memref<1x128xf32, #tpu.memory_space<vmem>>, vector<1x128xf32>
    %30 = vector.broadcast %29 : vector<1x128xf32> to vector<32x128xf32>
    %31 = arith.addf %28, %30 : vector<32x128xf32>
    %cst_14 = arith.constant 0.000000e+00 : f32
    %32 = vector.broadcast %cst_14 : f32 to vector<32x128xf32>
    %33 = arith.maximumf %31, %32 : vector<32x128xf32>
    %34 = arith.truncf %33 : vector<32x128xf32> to vector<32x128xbf16>
    %c0_15 = arith.constant 0 : index
    %c0_16 = arith.constant 0 : index
    %35 = vector.load %arg6[%c0_15, %c0_16] : memref<128x32xf32, #tpu.memory_space<vmem>>, vector<128x32xf32>
    %36 = arith.truncf %35 : vector<128x32xf32> to vector<128x32xbf16>
    %cst_17 = arith.constant dense<0.000000e+00> : vector<32x32xf32>
    %37 = tpu.matmul %34, %36, %cst_17 {dimension_numbers = #tpu.dot_dimension_numbers<[1], [0], [0], [1], [0, 0, 1, 1], [], []>} : vector<32x128xbf16>, vector<128x32xbf16>, vector<32x32xf32> -> vector<32x32xf32>
    %c0_18 = arith.constant 0 : index
    %c0_19 = arith.constant 0 : index
    %38 = vector.load %arg7[%c0_18, %c0_19] : memref<1x32xf32, #tpu.memory_space<vmem>>, vector<1x32xf32>
    %39 = vector.broadcast %38 : vector<1x32xf32> to vector<32x32xf32>
    %40 = arith.addf %37, %39 : vector<32x32xf32>
    %41 = arith.addf %0, %40 : vector<32x32xf32>
    %c0_20 = arith.constant 0 : index
    %c0_21 = arith.constant 0 : index
    %42 = vector.load %arg8[%c0_20, %c0_21] : memref<32x32xf32, #tpu.memory_space<vmem>>, vector<32x32xf32>
    tpu.vector_store %arg8[%c0_20, %c0_21], %41 {strides = array<i32>} : memref<32x32xf32, #tpu.memory_space<vmem>>, vector<32x32xf32>,
    return
  }
  func.func @transform_0(%arg0: i32) -> (i32, i32) {
    %c0_i32 = arith.constant 0 : i32
    %c0_i32_0 = arith.constant 0 : i32
    return %arg0, %c0_i32 : i32, i32
  }
  func.func @transform_1(%arg0: i32) -> (i32, i32) {
    %c0_i32 = arith.constant 0 : i32
    %c0_i32_0 = arith.constant 0 : i32
    %c0_i32_1 = arith.constant 0 : i32
    return %c0_i32, %c0_i32_0 : i32, i32
  }
  func.func @transform_2(%arg0: i32) -> (i32, i32) {
    %c0_i32 = arith.constant 0 : i32
    %c0_i32_0 = arith.constant 0 : i32
    %c0_i32_1 = arith.constant 0 : i32
    return %c0_i32, %c0_i32_0 : i32, i32
  }
  func.func @transform_3(%arg0: i32) -> (i32, i32) {
    %c0_i32 = arith.constant 0 : i32
    %c0_i32_0 = arith.constant 0 : i32
    %c0_i32_1 = arith.constant 0 : i32
    return %c0_i32, %c0_i32_0 : i32, i32
  }
  func.func @transform_4(%arg0: i32) -> (i32, i32) {
    %c0_i32 = arith.constant 0 : i32
    %c0_i32_0 = arith.constant 0 : i32
    %c0_i32_1 = arith.constant 0 : i32
    return %c0_i32, %c0_i32_0 : i32, i32
  }
  func.func @transform_5(%arg0: i32) -> (i32, i32) {
    %c0_i32 = arith.constant 0 : i32
    %c0_i32_0 = arith.constant 0 : i32
    %c0_i32_1 = arith.constant 0 : i32
    return %c0_i32, %c0_i32_0 : i32, i32
  }
  func.func @transform_6(%arg0: i32) -> (i32, i32) {
    %c0_i32 = arith.constant 0 : i32
    %c0_i32_0 = arith.constant 0 : i32
    %c0_i32_1 = arith.constant 0 : i32
    return %c0_i32, %c0_i32_0 : i32, i32
  }
  func.func @transform_7(%arg0: i32) -> (i32, i32) {
    %c0_i32 = arith.constant 0 : i32
    %c0_i32_0 = arith.constant 0 : i32
    return %arg0, %c0_i32 : i32, i32
  }
}

module attributes {stable_mosaic.version = 11 : i64} {
  func.func @_gated_attn_kernel(%arg0: i32, %arg1: memref<2x8x32xf32, #tpu.memory_space<vmem>>, %arg2: memref<8x8x32xf32, #tpu.memory_space<vmem>>, %arg3: memref<1x32xf32, #tpu.memory_space<vmem>>, %arg4: memref<1x32xf32, #tpu.memory_space<vmem>>, %arg5: memref<1x32xf32, #tpu.memory_space<vmem>>, %arg6: memref<1x32xf32, #tpu.memory_space<vmem>>, %arg7: memref<32x32xf32, #tpu.memory_space<vmem>>, %arg8: memref<32x32xf32, #tpu.memory_space<vmem>>, %arg9: memref<32x32xf32, #tpu.memory_space<vmem>>, %arg10: memref<32x32xf32, #tpu.memory_space<vmem>>, %arg11: memref<1x32xf32, #tpu.memory_space<vmem>>, %arg12: memref<32x2xf32, #tpu.memory_space<vmem>>, %arg13: memref<32x32xf32, #tpu.memory_space<vmem>>, %arg14: memref<1x32xf32, #tpu.memory_space<vmem>>, %arg15: memref<2x8x32xf32, #tpu.memory_space<vmem>>) attributes {dimension_semantics = [#tpu.dimension_semantics<parallel>], iteration_bounds = array<i64: 2>, scalar_prefetch = 0 : i64, scratch_operands = 0 : i64, tpu.core_type = #tpu.core_type<tc>, window_params = [{transform_indices = @transform_0, window_bounds = array<i64: 2, 8, 32>}, {pipeline_mode = #tpu.pipeline_mode<synchronous>, transform_indices = @transform_1, window_bounds = array<i64: 8, 8, 32>}, {pipeline_mode = #tpu.pipeline_mode<synchronous>, transform_indices = @transform_2, window_bounds = array<i64: 1, 32>}, {pipeline_mode = #tpu.pipeline_mode<synchronous>, transform_indices = @transform_3, window_bounds = array<i64: 1, 32>}, {pipeline_mode = #tpu.pipeline_mode<synchronous>, transform_indices = @transform_4, window_bounds = array<i64: 1, 32>}, {pipeline_mode = #tpu.pipeline_mode<synchronous>, transform_indices = @transform_5, window_bounds = array<i64: 1, 32>}, {pipeline_mode = #tpu.pipeline_mode<synchronous>, transform_indices = @transform_6, window_bounds = array<i64: 32, 32>}, {pipeline_mode = #tpu.pipeline_mode<synchronous>, transform_indices = @transform_7, window_bounds = array<i64: 32, 32>}, {pipeline_mode = #tpu.pipeline_mode<synchronous>, transform_indices = @transform_8, window_bounds = array<i64: 32, 32>}, {pipeline_mode = #tpu.pipeline_mode<synchronous>, transform_indices = @transform_9, window_bounds = array<i64: 32, 32>}, {pipeline_mode = #tpu.pipeline_mode<synchronous>, transform_indices = @transform_10, window_bounds = array<i64: 1, 32>}, {pipeline_mode = #tpu.pipeline_mode<synchronous>, transform_indices = @transform_11, window_bounds = array<i64: 32, 2>}, {pipeline_mode = #tpu.pipeline_mode<synchronous>, transform_indices = @transform_12, window_bounds = array<i64: 32, 32>}, {pipeline_mode = #tpu.pipeline_mode<synchronous>, transform_indices = @transform_13, window_bounds = array<i64: 1, 32>}, {transform_indices = @transform_14, window_bounds = array<i64: 2, 8, 32>}]} {
    %c0 = arith.constant 0 : index
    %c0_0 = arith.constant 0 : index
    %c0_1 = arith.constant 0 : index
    %0 = vector.load %arg1[%c0, %c0_0, %c0_1] : memref<2x8x32xf32, #tpu.memory_space<vmem>>, vector<2x8x32xf32>
    %c0_2 = arith.constant 0 : index
    %c0_3 = arith.constant 0 : index
    %1 = vector.load %arg3[%c0_2, %c0_3] : memref<1x32xf32, #tpu.memory_space<vmem>>, vector<1x32xf32>
    %c0_4 = arith.constant 0 : index
    %c0_5 = arith.constant 0 : index
    %2 = vector.load %arg4[%c0_4, %c0_5] : memref<1x32xf32, #tpu.memory_space<vmem>>, vector<1x32xf32>
    %cst = arith.constant dense<0.000000e+00> : vector<2x8xf32>
    %3 = vector.multi_reduction <add>, %0, %cst [2] : vector<2x8x32xf32> to vector<2x8xf32>
    %4 = vector.shape_cast %3 : vector<2x8xf32> to vector<2x8x1xf32>
    %cst_6 = arith.constant 3.200000e+01 : f32
    %5 = vector.broadcast %cst_6 : f32 to vector<2x8x1xf32>
    %6 = arith.divf %4, %5 : vector<2x8x1xf32>
    %7 = vector.broadcast %6 : vector<2x8x1xf32> to vector<2x8x32xf32>
    %8 = arith.subf %0, %7 : vector<2x8x32xf32>
    %9 = arith.mulf %8, %8 : vector<2x8x32xf32>
    %cst_7 = arith.constant dense<0.000000e+00> : vector<2x8xf32>
    %10 = vector.multi_reduction <add>, %9, %cst_7 [2] : vector<2x8x32xf32> to vector<2x8xf32>
    %11 = vector.shape_cast %10 : vector<2x8xf32> to vector<2x8x1xf32>
    %cst_8 = arith.constant 3.200000e+01 : f32
    %12 = vector.broadcast %cst_8 : f32 to vector<2x8x1xf32>
    %13 = arith.divf %11, %12 : vector<2x8x1xf32>
    %14 = vector.broadcast %6 : vector<2x8x1xf32> to vector<2x8x32xf32>
    %15 = arith.subf %0, %14 : vector<2x8x32xf32>
    %cst_9 = arith.constant 9.99999974E-6 : f32
    %16 = vector.broadcast %cst_9 : f32 to vector<2x8x1xf32>
    %17 = arith.addf %13, %16 : vector<2x8x1xf32>
    %18 = math.rsqrt %17 : vector<2x8x1xf32>
    %19 = vector.broadcast %18 : vector<2x8x1xf32> to vector<2x8x32xf32>
    %20 = arith.mulf %15, %19 : vector<2x8x32xf32>
    %21 = vector.shape_cast %1 : vector<1x32xf32> to vector<1x1x32xf32>
    %22 = vector.broadcast %21 : vector<1x1x32xf32> to vector<2x8x32xf32>
    %23 = arith.mulf %20, %22 : vector<2x8x32xf32>
    %24 = vector.shape_cast %2 : vector<1x32xf32> to vector<1x1x32xf32>
    %25 = vector.broadcast %24 : vector<1x1x32xf32> to vector<2x8x32xf32>
    %26 = arith.addf %23, %25 : vector<2x8x32xf32>
    %27 = vector.shape_cast %26 : vector<2x8x32xf32> to vector<16x32xf32>
    %28 = arith.truncf %27 : vector<16x32xf32> to vector<16x32xbf16>
    %c0_10 = arith.constant 0 : index
    %c0_11 = arith.constant 0 : index
    %29 = vector.load %arg7[%c0_10, %c0_11] : memref<32x32xf32, #tpu.memory_space<vmem>>, vector<32x32xf32>
    %30 = arith.truncf %29 : vector<32x32xf32> to vector<32x32xbf16>
    %cst_12 = arith.constant dense<0.000000e+00> : vector<16x32xf32>
    %31 = tpu.matmul %28, %30, %cst_12 {dimension_numbers = #tpu.dot_dimension_numbers<[1], [0], [0], [1], [0, 0, 1, 1], [], []>} : vector<16x32xbf16>, vector<32x32xbf16>, vector<16x32xf32> -> vector<16x32xf32>
    %cst_13 = arith.constant 2.500000e-01 : f32
    %32 = vector.broadcast %cst_13 : f32 to vector<16x32xf32>
    %33 = arith.mulf %31, %32 : vector<16x32xf32>
    %34 = arith.truncf %33 : vector<16x32xf32> to vector<16x32xbf16>
    %c0_14 = arith.constant 0 : index
    %c0_15 = arith.constant 0 : index
    %35 = vector.load %arg8[%c0_14, %c0_15] : memref<32x32xf32, #tpu.memory_space<vmem>>, vector<32x32xf32>
    %36 = arith.truncf %35 : vector<32x32xf32> to vector<32x32xbf16>
    %cst_16 = arith.constant dense<0.000000e+00> : vector<16x32xf32>
    %37 = tpu.matmul %28, %36, %cst_16 {dimension_numbers = #tpu.dot_dimension_numbers<[1], [0], [0], [1], [0, 0, 1, 1], [], []>} : vector<16x32xbf16>, vector<32x32xbf16>, vector<16x32xf32> -> vector<16x32xf32>
    %38 = arith.truncf %37 : vector<16x32xf32> to vector<16x32xbf16>
    %c0_17 = arith.constant 0 : index
    %c0_18 = arith.constant 0 : index
    %39 = vector.load %arg9[%c0_17, %c0_18] : memref<32x32xf32, #tpu.memory_space<vmem>>, vector<32x32xf32>
    %40 = arith.truncf %39 : vector<32x32xf32> to vector<32x32xbf16>
    %cst_19 = arith.constant dense<0.000000e+00> : vector<16x32xf32>
    %41 = tpu.matmul %28, %40, %cst_19 {dimension_numbers = #tpu.dot_dimension_numbers<[1], [0], [0], [1], [0, 0, 1, 1], [], []>} : vector<16x32xbf16>, vector<32x32xbf16>, vector<16x32xf32> -> vector<16x32xf32>
    %42 = arith.truncf %41 : vector<16x32xf32> to vector<16x32xbf16>
    %c0_20 = arith.constant 0 : index
    %c0_21 = arith.constant 0 : index
    %43 = vector.load %arg10[%c0_20, %c0_21] : memref<32x32xf32, #tpu.memory_space<vmem>>, vector<32x32xf32>
    %44 = arith.truncf %43 : vector<32x32xf32> to vector<32x32xbf16>
    %cst_22 = arith.constant dense<0.000000e+00> : vector<16x32xf32>
    %45 = tpu.matmul %28, %44, %cst_22 {dimension_numbers = #tpu.dot_dimension_numbers<[1], [0], [0], [1], [0, 0, 1, 1], [], []>} : vector<16x32xbf16>, vector<32x32xbf16>, vector<16x32xf32> -> vector<16x32xf32>
    %c0_23 = arith.constant 0 : index
    %c0_24 = arith.constant 0 : index
    %46 = vector.load %arg11[%c0_23, %c0_24] : memref<1x32xf32, #tpu.memory_space<vmem>>, vector<1x32xf32>
    %47 = vector.broadcast %46 : vector<1x32xf32> to vector<16x32xf32>
    %48 = arith.addf %45, %47 : vector<16x32xf32>
    %cst_25 = arith.constant 0.000000e+00 : f32
    %49 = vector.broadcast %cst_25 : f32 to vector<16x32xf32>
    %50 = arith.subf %49, %48 : vector<16x32xf32>
    %51 = math.exp %50 : vector<16x32xf32>
    %cst_26 = arith.constant 1.000000e+00 : f32
    %52 = vector.broadcast %cst_26 : f32 to vector<16x32xf32>
    %53 = arith.addf %52, %51 : vector<16x32xf32>
    %54 = tpu.reciprocal %53 {approx = true} : vector<16x32xf32> -> vector<16x32xf32>
    %c0_27 = arith.constant 0 : index
    %c0_28 = arith.constant 0 : index
    %c0_29 = arith.constant 0 : index
    %55 = vector.load %arg2[%c0_27, %c0_28, %c0_29] : memref<8x8x32xf32, #tpu.memory_space<vmem>>, vector<8x8x32xf32>
    %c0_30 = arith.constant 0 : index
    %c0_31 = arith.constant 0 : index
    %56 = vector.load %arg5[%c0_30, %c0_31] : memref<1x32xf32, #tpu.memory_space<vmem>>, vector<1x32xf32>
    %c0_32 = arith.constant 0 : index
    %c0_33 = arith.constant 0 : index
    %57 = vector.load %arg6[%c0_32, %c0_33] : memref<1x32xf32, #tpu.memory_space<vmem>>, vector<1x32xf32>
    %cst_34 = arith.constant dense<0.000000e+00> : vector<8x8xf32>
    %58 = vector.multi_reduction <add>, %55, %cst_34 [2] : vector<8x8x32xf32> to vector<8x8xf32>
    %59 = vector.shape_cast %58 : vector<8x8xf32> to vector<8x8x1xf32>
    %cst_35 = arith.constant 3.200000e+01 : f32
    %60 = vector.broadcast %cst_35 : f32 to vector<8x8x1xf32>
    %61 = arith.divf %59, %60 : vector<8x8x1xf32>
    %62 = vector.broadcast %61 : vector<8x8x1xf32> to vector<8x8x32xf32>
    %63 = arith.subf %55, %62 : vector<8x8x32xf32>
    %64 = arith.mulf %63, %63 : vector<8x8x32xf32>
    %cst_36 = arith.constant dense<0.000000e+00> : vector<8x8xf32>
    %65 = vector.multi_reduction <add>, %64, %cst_36 [2] : vector<8x8x32xf32> to vector<8x8xf32>
    %66 = vector.shape_cast %65 : vector<8x8xf32> to vector<8x8x1xf32>
    %cst_37 = arith.constant 3.200000e+01 : f32
    %67 = vector.broadcast %cst_37 : f32 to vector<8x8x1xf32>
    %68 = arith.divf %66, %67 : vector<8x8x1xf32>
    %69 = vector.broadcast %61 : vector<8x8x1xf32> to vector<8x8x32xf32>
    %70 = arith.subf %55, %69 : vector<8x8x32xf32>
    %cst_38 = arith.constant 9.99999974E-6 : f32
    %71 = vector.broadcast %cst_38 : f32 to vector<8x8x1xf32>
    %72 = arith.addf %68, %71 : vector<8x8x1xf32>
    %73 = math.rsqrt %72 : vector<8x8x1xf32>
    %74 = vector.broadcast %73 : vector<8x8x1xf32> to vector<8x8x32xf32>
    %75 = arith.mulf %70, %74 : vector<8x8x32xf32>
    %76 = vector.shape_cast %56 : vector<1x32xf32> to vector<1x1x32xf32>
    %77 = vector.broadcast %76 : vector<1x1x32xf32> to vector<8x8x32xf32>
    %78 = arith.mulf %75, %77 : vector<8x8x32xf32>
    %79 = vector.shape_cast %57 : vector<1x32xf32> to vector<1x1x32xf32>
    %80 = vector.broadcast %79 : vector<1x1x32xf32> to vector<8x8x32xf32>
    %81 = arith.addf %78, %80 : vector<8x8x32xf32>
    %82 = vector.shape_cast %81 : vector<8x8x32xf32> to vector<64x32xf32>
    %83 = arith.truncf %82 : vector<64x32xf32> to vector<64x32xbf16>
    %c0_39 = arith.constant 0 : index
    %c0_40 = arith.constant 0 : index
    %84 = vector.load %arg12[%c0_39, %c0_40] : memref<32x2xf32, #tpu.memory_space<vmem>>, vector<32x2xf32>
    %85 = arith.truncf %84 : vector<32x2xf32> to vector<32x2xbf16>
    %cst_41 = arith.constant dense<0.000000e+00> : vector<64x2xf32>
    %86 = tpu.matmul %83, %85, %cst_41 {dimension_numbers = #tpu.dot_dimension_numbers<[1], [0], [0], [1], [0, 0, 1, 1], [], []>} : vector<64x32xbf16>, vector<32x2xbf16>, vector<64x2xf32> -> vector<64x2xf32>
    %87 = vector.shape_cast %86 : vector<64x2xf32> to vector<8x8x2xf32>
    %88 = vector.extract_strided_slice %34 {offsets = [0, 0], sizes = [16, 16], strides = [1, 1]} : vector<16x32xbf16> to vector<16x16xbf16>
    %89 = vector.shape_cast %88 : vector<16x16xbf16> to vector<2x8x16xbf16>
    %90 = vector.extract_strided_slice %38 {offsets = [0, 0], sizes = [16, 16], strides = [1, 1]} : vector<16x32xbf16> to vector<16x16xbf16>
    %91 = vector.shape_cast %90 : vector<16x16xbf16> to vector<2x8x16xbf16>
    %92 = vector.extract_strided_slice %42 {offsets = [0, 0], sizes = [16, 16], strides = [1, 1]} : vector<16x32xbf16> to vector<16x16xbf16>
    %93 = vector.shape_cast %92 : vector<16x16xbf16> to vector<2x8x16xbf16>
    %94 = vector.extract_strided_slice %54 {offsets = [0, 0], sizes = [16, 16], strides = [1, 1]} : vector<16x32xf32> to vector<16x16xf32>
    %95 = vector.shape_cast %94 : vector<16x16xf32> to vector<2x8x16xf32>
    %96 = vector.extract_strided_slice %87 {offsets = [0, 0, 0], sizes = [8, 8, 1], strides = [1, 1, 1]} : vector<8x8x2xf32> to vector<8x8x1xf32>
    %cst_42 = arith.constant dense<0.000000e+00> : vector<8x8xf32>
    %97 = vector.multi_reduction <add>, %96, %cst_42 [2] : vector<8x8x1xf32> to vector<8x8xf32>
    "tpu.trace_start"() <{level = 10 : i32, message = "bid,bjd->bij"}> : () -> ()
    %cst_43 = arith.constant dense<0.000000e+00> : vector<2x8x8xf32>
    %98 = tpu.matmul %89, %91, %cst_43 {dimension_numbers = #tpu.dot_dimension_numbers<[2], [2], [1], [1], [0, 0, 0, 1, 1, 1], [0], [0]>} : vector<2x8x16xbf16>, vector<2x8x16xbf16>, vector<2x8x8xf32> -> vector<2x8x8xf32>
    "tpu.trace_stop"() : () -> ()
    %99 = vector.shape_cast %97 : vector<8x8xf32> to vector<1x8x8xf32>
    %100 = vector.broadcast %99 : vector<1x8x8xf32> to vector<2x8x8xf32>
    %101 = arith.addf %98, %100 : vector<2x8x8xf32>
    %cst_44 = arith.constant dense<0xFF800000> : vector<2x8xf32>
    %102 = vector.multi_reduction <maximumf>, %101, %cst_44 [2] : vector<2x8x8xf32> to vector<2x8xf32>
    %103 = vector.shape_cast %102 : vector<2x8xf32> to vector<2x8x1xf32>
    %104 = vector.broadcast %103 : vector<2x8x1xf32> to vector<2x8x8xf32>
    %105 = arith.subf %101, %104 : vector<2x8x8xf32>
    %106 = math.exp %105 : vector<2x8x8xf32>
    %cst_45 = arith.constant dense<0.000000e+00> : vector<2x8xf32>
    %107 = vector.multi_reduction <add>, %106, %cst_45 [2] : vector<2x8x8xf32> to vector<2x8xf32>
    %108 = vector.shape_cast %107 : vector<2x8xf32> to vector<2x8x1xf32>
    %109 = tpu.reciprocal %108 {approx = true} : vector<2x8x1xf32> -> vector<2x8x1xf32>
    %110 = vector.broadcast %109 : vector<2x8x1xf32> to vector<2x8x8xf32>
    %111 = arith.mulf %106, %110 : vector<2x8x8xf32>
    %112 = arith.truncf %111 : vector<2x8x8xf32> to vector<2x8x8xbf16>
    "tpu.trace_start"() <{level = 10 : i32, message = "bij,bjd->bid"}> : () -> ()
    %cst_46 = arith.constant dense<0.000000e+00> : vector<2x8x16xf32>
    %113 = tpu.matmul %112, %93, %cst_46 {dimension_numbers = #tpu.dot_dimension_numbers<[2], [1], [1], [2], [0, 0, 0, 1, 1, 2], [0], [0]>} : vector<2x8x8xbf16>, vector<2x8x16xbf16>, vector<2x8x16xf32> -> vector<2x8x16xf32>
    "tpu.trace_stop"() : () -> ()
    %114 = arith.mulf %95, %113 : vector<2x8x16xf32>
    %115 = arith.truncf %114 : vector<2x8x16xf32> to vector<2x8x16xbf16>
    %116 = vector.extract_strided_slice %34 {offsets = [0, 16], sizes = [16, 16], strides = [1, 1]} : vector<16x32xbf16> to vector<16x16xbf16>
    %117 = vector.shape_cast %116 : vector<16x16xbf16> to vector<2x8x16xbf16>
    %118 = vector.extract_strided_slice %38 {offsets = [0, 16], sizes = [16, 16], strides = [1, 1]} : vector<16x32xbf16> to vector<16x16xbf16>
    %119 = vector.shape_cast %118 : vector<16x16xbf16> to vector<2x8x16xbf16>
    %120 = vector.extract_strided_slice %42 {offsets = [0, 16], sizes = [16, 16], strides = [1, 1]} : vector<16x32xbf16> to vector<16x16xbf16>
    %121 = vector.shape_cast %120 : vector<16x16xbf16> to vector<2x8x16xbf16>
    %122 = vector.extract_strided_slice %54 {offsets = [0, 16], sizes = [16, 16], strides = [1, 1]} : vector<16x32xf32> to vector<16x16xf32>
    %123 = vector.shape_cast %122 : vector<16x16xf32> to vector<2x8x16xf32>
    %124 = vector.extract_strided_slice %87 {offsets = [0, 0, 1], sizes = [8, 8, 1], strides = [1, 1, 1]} : vector<8x8x2xf32> to vector<8x8x1xf32>
    %cst_47 = arith.constant dense<0.000000e+00> : vector<8x8xf32>
    %125 = vector.multi_reduction <add>, %124, %cst_47 [2] : vector<8x8x1xf32> to vector<8x8xf32>
    "tpu.trace_start"() <{level = 10 : i32, message = "bid,bjd->bij"}> : () -> ()
    %cst_48 = arith.constant dense<0.000000e+00> : vector<2x8x8xf32>
    %126 = tpu.matmul %117, %119, %cst_48 {dimension_numbers = #tpu.dot_dimension_numbers<[2], [2], [1], [1], [0, 0, 0, 1, 1, 1], [0], [0]>} : vector<2x8x16xbf16>, vector<2x8x16xbf16>, vector<2x8x8xf32> -> vector<2x8x8xf32>
    "tpu.trace_stop"() : () -> ()
    %127 = vector.shape_cast %125 : vector<8x8xf32> to vector<1x8x8xf32>
    %128 = vector.broadcast %127 : vector<1x8x8xf32> to vector<2x8x8xf32>
    %129 = arith.addf %126, %128 : vector<2x8x8xf32>
    %cst_49 = arith.constant dense<0xFF800000> : vector<2x8xf32>
    %130 = vector.multi_reduction <maximumf>, %129, %cst_49 [2] : vector<2x8x8xf32> to vector<2x8xf32>
    %131 = vector.shape_cast %130 : vector<2x8xf32> to vector<2x8x1xf32>
    %132 = vector.broadcast %131 : vector<2x8x1xf32> to vector<2x8x8xf32>
    %133 = arith.subf %129, %132 : vector<2x8x8xf32>
    %134 = math.exp %133 : vector<2x8x8xf32>
    %cst_50 = arith.constant dense<0.000000e+00> : vector<2x8xf32>
    %135 = vector.multi_reduction <add>, %134, %cst_50 [2] : vector<2x8x8xf32> to vector<2x8xf32>
    %136 = vector.shape_cast %135 : vector<2x8xf32> to vector<2x8x1xf32>
    %137 = tpu.reciprocal %136 {approx = true} : vector<2x8x1xf32> -> vector<2x8x1xf32>
    %138 = vector.broadcast %137 : vector<2x8x1xf32> to vector<2x8x8xf32>
    %139 = arith.mulf %134, %138 : vector<2x8x8xf32>
    %140 = arith.truncf %139 : vector<2x8x8xf32> to vector<2x8x8xbf16>
    "tpu.trace_start"() <{level = 10 : i32, message = "bij,bjd->bid"}> : () -> ()
    %cst_51 = arith.constant dense<0.000000e+00> : vector<2x8x16xf32>
    %141 = tpu.matmul %140, %121, %cst_51 {dimension_numbers = #tpu.dot_dimension_numbers<[2], [1], [1], [2], [0, 0, 0, 1, 1, 2], [0], [0]>} : vector<2x8x8xbf16>, vector<2x8x16xbf16>, vector<2x8x16xf32> -> vector<2x8x16xf32>
    "tpu.trace_stop"() : () -> ()
    %142 = arith.mulf %123, %141 : vector<2x8x16xf32>
    %143 = arith.truncf %142 : vector<2x8x16xf32> to vector<2x8x16xbf16>
    %144 = tpu.concatenate %115, %143 in 2 : vector<2x8x16xbf16>, vector<2x8x16xbf16> -> vector<2x8x32xbf16>
    %145 = vector.shape_cast %144 : vector<2x8x32xbf16> to vector<16x32xbf16>
    %c0_52 = arith.constant 0 : index
    %c0_53 = arith.constant 0 : index
    %146 = vector.load %arg13[%c0_52, %c0_53] : memref<32x32xf32, #tpu.memory_space<vmem>>, vector<32x32xf32>
    %147 = arith.truncf %146 : vector<32x32xf32> to vector<32x32xbf16>
    %cst_54 = arith.constant dense<0.000000e+00> : vector<16x32xf32>
    %148 = tpu.matmul %145, %147, %cst_54 {dimension_numbers = #tpu.dot_dimension_numbers<[1], [0], [0], [1], [0, 0, 1, 1], [], []>} : vector<16x32xbf16>, vector<32x32xbf16>, vector<16x32xf32> -> vector<16x32xf32>
    %c0_55 = arith.constant 0 : index
    %c0_56 = arith.constant 0 : index
    %149 = vector.load %arg14[%c0_55, %c0_56] : memref<1x32xf32, #tpu.memory_space<vmem>>, vector<1x32xf32>
    %150 = vector.shape_cast %149 : vector<1x32xf32> to vector<1x1x32xf32>
    %151 = vector.broadcast %150 : vector<1x1x32xf32> to vector<2x8x32xf32>
    %152 = arith.addf %0, %151 : vector<2x8x32xf32>
    %153 = vector.shape_cast %148 : vector<16x32xf32> to vector<2x8x32xf32>
    %154 = arith.addf %152, %153 : vector<2x8x32xf32>
    %c0_57 = arith.constant 0 : index
    %c0_58 = arith.constant 0 : index
    %c0_59 = arith.constant 0 : index
    %155 = vector.load %arg15[%c0_57, %c0_58, %c0_59] : memref<2x8x32xf32, #tpu.memory_space<vmem>>, vector<2x8x32xf32>
    tpu.vector_store %arg15[%c0_57, %c0_58, %c0_59], %154 {strides = array<i32>} : memref<2x8x32xf32, #tpu.memory_space<vmem>>, vector<2x8x32xf32>,
    return
  }
  func.func @transform_0(%arg0: i32) -> (i32, i32, i32) {
    %c0_i32 = arith.constant 0 : i32
    %c0_i32_0 = arith.constant 0 : i32
    %c0_i32_1 = arith.constant 0 : i32
    return %arg0, %c0_i32, %c0_i32_0 : i32, i32, i32
  }
  func.func @transform_1(%arg0: i32) -> (i32, i32, i32) {
    %c0_i32 = arith.constant 0 : i32
    %c0_i32_0 = arith.constant 0 : i32
    %c0_i32_1 = arith.constant 0 : i32
    %c0_i32_2 = arith.constant 0 : i32
    return %c0_i32, %c0_i32_0, %c0_i32_1 : i32, i32, i32
  }
  func.func @transform_2(%arg0: i32) -> (i32, i32) {
    %c0_i32 = arith.constant 0 : i32
    %c0_i32_0 = arith.constant 0 : i32
    %c0_i32_1 = arith.constant 0 : i32
    return %c0_i32, %c0_i32_0 : i32, i32
  }
  func.func @transform_3(%arg0: i32) -> (i32, i32) {
    %c0_i32 = arith.constant 0 : i32
    %c0_i32_0 = arith.constant 0 : i32
    %c0_i32_1 = arith.constant 0 : i32
    return %c0_i32, %c0_i32_0 : i32, i32
  }
  func.func @transform_4(%arg0: i32) -> (i32, i32) {
    %c0_i32 = arith.constant 0 : i32
    %c0_i32_0 = arith.constant 0 : i32
    %c0_i32_1 = arith.constant 0 : i32
    return %c0_i32, %c0_i32_0 : i32, i32
  }
  func.func @transform_5(%arg0: i32) -> (i32, i32) {
    %c0_i32 = arith.constant 0 : i32
    %c0_i32_0 = arith.constant 0 : i32
    %c0_i32_1 = arith.constant 0 : i32
    return %c0_i32, %c0_i32_0 : i32, i32
  }
  func.func @transform_6(%arg0: i32) -> (i32, i32) {
    %c0_i32 = arith.constant 0 : i32
    %c0_i32_0 = arith.constant 0 : i32
    %c0_i32_1 = arith.constant 0 : i32
    return %c0_i32, %c0_i32_0 : i32, i32
  }
  func.func @transform_7(%arg0: i32) -> (i32, i32) {
    %c0_i32 = arith.constant 0 : i32
    %c0_i32_0 = arith.constant 0 : i32
    %c0_i32_1 = arith.constant 0 : i32
    return %c0_i32, %c0_i32_0 : i32, i32
  }
  func.func @transform_8(%arg0: i32) -> (i32, i32) {
    %c0_i32 = arith.constant 0 : i32
    %c0_i32_0 = arith.constant 0 : i32
    %c0_i32_1 = arith.constant 0 : i32
    return %c0_i32, %c0_i32_0 : i32, i32
  }
  func.func @transform_9(%arg0: i32) -> (i32, i32) {
    %c0_i32 = arith.constant 0 : i32
    %c0_i32_0 = arith.constant 0 : i32
    %c0_i32_1 = arith.constant 0 : i32
    return %c0_i32, %c0_i32_0 : i32, i32
  }
  func.func @transform_10(%arg0: i32) -> (i32, i32) {
    %c0_i32 = arith.constant 0 : i32
    %c0_i32_0 = arith.constant 0 : i32
    %c0_i32_1 = arith.constant 0 : i32
    return %c0_i32, %c0_i32_0 : i32, i32
  }
  func.func @transform_11(%arg0: i32) -> (i32, i32) {
    %c0_i32 = arith.constant 0 : i32
    %c0_i32_0 = arith.constant 0 : i32
    %c0_i32_1 = arith.constant 0 : i32
    return %c0_i32, %c0_i32_0 : i32, i32
  }
  func.func @transform_12(%arg0: i32) -> (i32, i32) {
    %c0_i32 = arith.constant 0 : i32
    %c0_i32_0 = arith.constant 0 : i32
    %c0_i32_1 = arith.constant 0 : i32
    return %c0_i32, %c0_i32_0 : i32, i32
  }
  func.func @transform_13(%arg0: i32) -> (i32, i32) {
    %c0_i32 = arith.constant 0 : i32
    %c0_i32_0 = arith.constant 0 : i32
    %c0_i32_1 = arith.constant 0 : i32
    return %c0_i32, %c0_i32_0 : i32, i32
  }
  func.func @transform_14(%arg0: i32) -> (i32, i32, i32) {
    %c0_i32 = arith.constant 0 : i32
    %c0_i32_0 = arith.constant 0 : i32
    %c0_i32_1 = arith.constant 0 : i32
    return %arg0, %c0_i32, %c0_i32_0 : i32, i32, i32
  }
}

module attributes {stable_mosaic.version = 11 : i64} {
  func.func @_gated_attn_kernel(%arg0: i32, %arg1: memref<4x8x32xf32, #tpu.memory_space<vmem>>, %arg2: memref<8x8x32xf32, #tpu.memory_space<vmem>>, %arg3: memref<1x32xf32, #tpu.memory_space<vmem>>, %arg4: memref<1x32xf32, #tpu.memory_space<vmem>>, %arg5: memref<1x32xf32, #tpu.memory_space<vmem>>, %arg6: memref<1x32xf32, #tpu.memory_space<vmem>>, %arg7: memref<32x32xf32, #tpu.memory_space<vmem>>, %arg8: memref<32x32xf32, #tpu.memory_space<vmem>>, %arg9: memref<32x32xf32, #tpu.memory_space<vmem>>, %arg10: memref<32x32xf32, #tpu.memory_space<vmem>>, %arg11: memref<1x32xf32, #tpu.memory_space<vmem>>, %arg12: memref<32x2xf32, #tpu.memory_space<vmem>>, %arg13: memref<32x32xf32, #tpu.memory_space<vmem>>, %arg14: memref<1x32xf32, #tpu.memory_space<vmem>>, %arg15: memref<4x8x32xf32, #tpu.memory_space<vmem>>) attributes {dimension_semantics = [#tpu.dimension_semantics<parallel>], iteration_bounds = array<i64: 2>, scalar_prefetch = 0 : i64, scratch_operands = 0 : i64, tpu.core_type = #tpu.core_type<tc>, window_params = [{transform_indices = @transform_0, window_bounds = array<i64: 4, 8, 32>}, {pipeline_mode = #tpu.pipeline_mode<synchronous>, transform_indices = @transform_1, window_bounds = array<i64: 8, 8, 32>}, {pipeline_mode = #tpu.pipeline_mode<synchronous>, transform_indices = @transform_2, window_bounds = array<i64: 1, 32>}, {pipeline_mode = #tpu.pipeline_mode<synchronous>, transform_indices = @transform_3, window_bounds = array<i64: 1, 32>}, {pipeline_mode = #tpu.pipeline_mode<synchronous>, transform_indices = @transform_4, window_bounds = array<i64: 1, 32>}, {pipeline_mode = #tpu.pipeline_mode<synchronous>, transform_indices = @transform_5, window_bounds = array<i64: 1, 32>}, {pipeline_mode = #tpu.pipeline_mode<synchronous>, transform_indices = @transform_6, window_bounds = array<i64: 32, 32>}, {pipeline_mode = #tpu.pipeline_mode<synchronous>, transform_indices = @transform_7, window_bounds = array<i64: 32, 32>}, {pipeline_mode = #tpu.pipeline_mode<synchronous>, transform_indices = @transform_8, window_bounds = array<i64: 32, 32>}, {pipeline_mode = #tpu.pipeline_mode<synchronous>, transform_indices = @transform_9, window_bounds = array<i64: 32, 32>}, {pipeline_mode = #tpu.pipeline_mode<synchronous>, transform_indices = @transform_10, window_bounds = array<i64: 1, 32>}, {pipeline_mode = #tpu.pipeline_mode<synchronous>, transform_indices = @transform_11, window_bounds = array<i64: 32, 2>}, {pipeline_mode = #tpu.pipeline_mode<synchronous>, transform_indices = @transform_12, window_bounds = array<i64: 32, 32>}, {pipeline_mode = #tpu.pipeline_mode<synchronous>, transform_indices = @transform_13, window_bounds = array<i64: 1, 32>}, {transform_indices = @transform_14, window_bounds = array<i64: 4, 8, 32>}]} {
    %c0 = arith.constant 0 : index
    %c0_0 = arith.constant 0 : index
    %c0_1 = arith.constant 0 : index
    %0 = vector.load %arg1[%c0, %c0_0, %c0_1] : memref<4x8x32xf32, #tpu.memory_space<vmem>>, vector<4x8x32xf32>
    %c0_2 = arith.constant 0 : index
    %c0_3 = arith.constant 0 : index
    %1 = vector.load %arg3[%c0_2, %c0_3] : memref<1x32xf32, #tpu.memory_space<vmem>>, vector<1x32xf32>
    %c0_4 = arith.constant 0 : index
    %c0_5 = arith.constant 0 : index
    %2 = vector.load %arg4[%c0_4, %c0_5] : memref<1x32xf32, #tpu.memory_space<vmem>>, vector<1x32xf32>
    %cst = arith.constant dense<0.000000e+00> : vector<4x8xf32>
    %3 = vector.multi_reduction <add>, %0, %cst [2] : vector<4x8x32xf32> to vector<4x8xf32>
    %4 = vector.shape_cast %3 : vector<4x8xf32> to vector<4x8x1xf32>
    %cst_6 = arith.constant 3.200000e+01 : f32
    %5 = vector.broadcast %cst_6 : f32 to vector<4x8x1xf32>
    %6 = arith.divf %4, %5 : vector<4x8x1xf32>
    %7 = vector.broadcast %6 : vector<4x8x1xf32> to vector<4x8x32xf32>
    %8 = arith.subf %0, %7 : vector<4x8x32xf32>
    %9 = arith.mulf %8, %8 : vector<4x8x32xf32>
    %cst_7 = arith.constant dense<0.000000e+00> : vector<4x8xf32>
    %10 = vector.multi_reduction <add>, %9, %cst_7 [2] : vector<4x8x32xf32> to vector<4x8xf32>
    %11 = vector.shape_cast %10 : vector<4x8xf32> to vector<4x8x1xf32>
    %cst_8 = arith.constant 3.200000e+01 : f32
    %12 = vector.broadcast %cst_8 : f32 to vector<4x8x1xf32>
    %13 = arith.divf %11, %12 : vector<4x8x1xf32>
    %14 = vector.broadcast %6 : vector<4x8x1xf32> to vector<4x8x32xf32>
    %15 = arith.subf %0, %14 : vector<4x8x32xf32>
    %cst_9 = arith.constant 9.99999974E-6 : f32
    %16 = vector.broadcast %cst_9 : f32 to vector<4x8x1xf32>
    %17 = arith.addf %13, %16 : vector<4x8x1xf32>
    %18 = math.rsqrt %17 : vector<4x8x1xf32>
    %19 = vector.broadcast %18 : vector<4x8x1xf32> to vector<4x8x32xf32>
    %20 = arith.mulf %15, %19 : vector<4x8x32xf32>
    %21 = vector.shape_cast %1 : vector<1x32xf32> to vector<1x1x32xf32>
    %22 = vector.broadcast %21 : vector<1x1x32xf32> to vector<4x8x32xf32>
    %23 = arith.mulf %20, %22 : vector<4x8x32xf32>
    %24 = vector.shape_cast %2 : vector<1x32xf32> to vector<1x1x32xf32>
    %25 = vector.broadcast %24 : vector<1x1x32xf32> to vector<4x8x32xf32>
    %26 = arith.addf %23, %25 : vector<4x8x32xf32>
    %27 = vector.shape_cast %26 : vector<4x8x32xf32> to vector<32x32xf32>
    %28 = arith.truncf %27 : vector<32x32xf32> to vector<32x32xbf16>
    %c0_10 = arith.constant 0 : index
    %c0_11 = arith.constant 0 : index
    %29 = vector.load %arg7[%c0_10, %c0_11] : memref<32x32xf32, #tpu.memory_space<vmem>>, vector<32x32xf32>
    %30 = arith.truncf %29 : vector<32x32xf32> to vector<32x32xbf16>
    %cst_12 = arith.constant dense<0.000000e+00> : vector<32x32xf32>
    %31 = tpu.matmul %28, %30, %cst_12 {dimension_numbers = #tpu.dot_dimension_numbers<[1], [0], [0], [1], [0, 0, 1, 1], [], []>} : vector<32x32xbf16>, vector<32x32xbf16>, vector<32x32xf32> -> vector<32x32xf32>
    %cst_13 = arith.constant 2.500000e-01 : f32
    %32 = vector.broadcast %cst_13 : f32 to vector<32x32xf32>
    %33 = arith.mulf %31, %32 : vector<32x32xf32>
    %34 = arith.truncf %33 : vector<32x32xf32> to vector<32x32xbf16>
    %c0_14 = arith.constant 0 : index
    %c0_15 = arith.constant 0 : index
    %35 = vector.load %arg8[%c0_14, %c0_15] : memref<32x32xf32, #tpu.memory_space<vmem>>, vector<32x32xf32>
    %36 = arith.truncf %35 : vector<32x32xf32> to vector<32x32xbf16>
    %cst_16 = arith.constant dense<0.000000e+00> : vector<32x32xf32>
    %37 = tpu.matmul %28, %36, %cst_16 {dimension_numbers = #tpu.dot_dimension_numbers<[1], [0], [0], [1], [0, 0, 1, 1], [], []>} : vector<32x32xbf16>, vector<32x32xbf16>, vector<32x32xf32> -> vector<32x32xf32>
    %38 = arith.truncf %37 : vector<32x32xf32> to vector<32x32xbf16>
    %c0_17 = arith.constant 0 : index
    %c0_18 = arith.constant 0 : index
    %39 = vector.load %arg9[%c0_17, %c0_18] : memref<32x32xf32, #tpu.memory_space<vmem>>, vector<32x32xf32>
    %40 = arith.truncf %39 : vector<32x32xf32> to vector<32x32xbf16>
    %cst_19 = arith.constant dense<0.000000e+00> : vector<32x32xf32>
    %41 = tpu.matmul %28, %40, %cst_19 {dimension_numbers = #tpu.dot_dimension_numbers<[1], [0], [0], [1], [0, 0, 1, 1], [], []>} : vector<32x32xbf16>, vector<32x32xbf16>, vector<32x32xf32> -> vector<32x32xf32>
    %42 = arith.truncf %41 : vector<32x32xf32> to vector<32x32xbf16>
    %c0_20 = arith.constant 0 : index
    %c0_21 = arith.constant 0 : index
    %43 = vector.load %arg10[%c0_20, %c0_21] : memref<32x32xf32, #tpu.memory_space<vmem>>, vector<32x32xf32>
    %44 = arith.truncf %43 : vector<32x32xf32> to vector<32x32xbf16>
    %cst_22 = arith.constant dense<0.000000e+00> : vector<32x32xf32>
    %45 = tpu.matmul %28, %44, %cst_22 {dimension_numbers = #tpu.dot_dimension_numbers<[1], [0], [0], [1], [0, 0, 1, 1], [], []>} : vector<32x32xbf16>, vector<32x32xbf16>, vector<32x32xf32> -> vector<32x32xf32>
    %c0_23 = arith.constant 0 : index
    %c0_24 = arith.constant 0 : index
    %46 = vector.load %arg11[%c0_23, %c0_24] : memref<1x32xf32, #tpu.memory_space<vmem>>, vector<1x32xf32>
    %47 = vector.broadcast %46 : vector<1x32xf32> to vector<32x32xf32>
    %48 = arith.addf %45, %47 : vector<32x32xf32>
    %cst_25 = arith.constant 0.000000e+00 : f32
    %49 = vector.broadcast %cst_25 : f32 to vector<32x32xf32>
    %50 = arith.subf %49, %48 : vector<32x32xf32>
    %51 = math.exp %50 : vector<32x32xf32>
    %cst_26 = arith.constant 1.000000e+00 : f32
    %52 = vector.broadcast %cst_26 : f32 to vector<32x32xf32>
    %53 = arith.addf %52, %51 : vector<32x32xf32>
    %54 = tpu.reciprocal %53 {approx = true} : vector<32x32xf32> -> vector<32x32xf32>
    %c0_27 = arith.constant 0 : index
    %c0_28 = arith.constant 0 : index
    %c0_29 = arith.constant 0 : index
    %55 = vector.load %arg2[%c0_27, %c0_28, %c0_29] : memref<8x8x32xf32, #tpu.memory_space<vmem>>, vector<8x8x32xf32>
    %c0_30 = arith.constant 0 : index
    %c0_31 = arith.constant 0 : index
    %56 = vector.load %arg5[%c0_30, %c0_31] : memref<1x32xf32, #tpu.memory_space<vmem>>, vector<1x32xf32>
    %c0_32 = arith.constant 0 : index
    %c0_33 = arith.constant 0 : index
    %57 = vector.load %arg6[%c0_32, %c0_33] : memref<1x32xf32, #tpu.memory_space<vmem>>, vector<1x32xf32>
    %cst_34 = arith.constant dense<0.000000e+00> : vector<8x8xf32>
    %58 = vector.multi_reduction <add>, %55, %cst_34 [2] : vector<8x8x32xf32> to vector<8x8xf32>
    %59 = vector.shape_cast %58 : vector<8x8xf32> to vector<8x8x1xf32>
    %cst_35 = arith.constant 3.200000e+01 : f32
    %60 = vector.broadcast %cst_35 : f32 to vector<8x8x1xf32>
    %61 = arith.divf %59, %60 : vector<8x8x1xf32>
    %62 = vector.broadcast %61 : vector<8x8x1xf32> to vector<8x8x32xf32>
    %63 = arith.subf %55, %62 : vector<8x8x32xf32>
    %64 = arith.mulf %63, %63 : vector<8x8x32xf32>
    %cst_36 = arith.constant dense<0.000000e+00> : vector<8x8xf32>
    %65 = vector.multi_reduction <add>, %64, %cst_36 [2] : vector<8x8x32xf32> to vector<8x8xf32>
    %66 = vector.shape_cast %65 : vector<8x8xf32> to vector<8x8x1xf32>
    %cst_37 = arith.constant 3.200000e+01 : f32
    %67 = vector.broadcast %cst_37 : f32 to vector<8x8x1xf32>
    %68 = arith.divf %66, %67 : vector<8x8x1xf32>
    %69 = vector.broadcast %61 : vector<8x8x1xf32> to vector<8x8x32xf32>
    %70 = arith.subf %55, %69 : vector<8x8x32xf32>
    %cst_38 = arith.constant 9.99999974E-6 : f32
    %71 = vector.broadcast %cst_38 : f32 to vector<8x8x1xf32>
    %72 = arith.addf %68, %71 : vector<8x8x1xf32>
    %73 = math.rsqrt %72 : vector<8x8x1xf32>
    %74 = vector.broadcast %73 : vector<8x8x1xf32> to vector<8x8x32xf32>
    %75 = arith.mulf %70, %74 : vector<8x8x32xf32>
    %76 = vector.shape_cast %56 : vector<1x32xf32> to vector<1x1x32xf32>
    %77 = vector.broadcast %76 : vector<1x1x32xf32> to vector<8x8x32xf32>
    %78 = arith.mulf %75, %77 : vector<8x8x32xf32>
    %79 = vector.shape_cast %57 : vector<1x32xf32> to vector<1x1x32xf32>
    %80 = vector.broadcast %79 : vector<1x1x32xf32> to vector<8x8x32xf32>
    %81 = arith.addf %78, %80 : vector<8x8x32xf32>
    %82 = vector.shape_cast %81 : vector<8x8x32xf32> to vector<64x32xf32>
    %83 = arith.truncf %82 : vector<64x32xf32> to vector<64x32xbf16>
    %c0_39 = arith.constant 0 : index
    %c0_40 = arith.constant 0 : index
    %84 = vector.load %arg12[%c0_39, %c0_40] : memref<32x2xf32, #tpu.memory_space<vmem>>, vector<32x2xf32>
    %85 = arith.truncf %84 : vector<32x2xf32> to vector<32x2xbf16>
    %cst_41 = arith.constant dense<0.000000e+00> : vector<64x2xf32>
    %86 = tpu.matmul %83, %85, %cst_41 {dimension_numbers = #tpu.dot_dimension_numbers<[1], [0], [0], [1], [0, 0, 1, 1], [], []>} : vector<64x32xbf16>, vector<32x2xbf16>, vector<64x2xf32> -> vector<64x2xf32>
    %87 = vector.shape_cast %86 : vector<64x2xf32> to vector<8x8x2xf32>
    %88 = vector.extract_strided_slice %34 {offsets = [0, 0], sizes = [32, 16], strides = [1, 1]} : vector<32x32xbf16> to vector<32x16xbf16>
    %89 = vector.shape_cast %88 : vector<32x16xbf16> to vector<4x8x16xbf16>
    %90 = vector.extract_strided_slice %38 {offsets = [0, 0], sizes = [32, 16], strides = [1, 1]} : vector<32x32xbf16> to vector<32x16xbf16>
    %91 = vector.shape_cast %90 : vector<32x16xbf16> to vector<4x8x16xbf16>
    %92 = vector.extract_strided_slice %42 {offsets = [0, 0], sizes = [32, 16], strides = [1, 1]} : vector<32x32xbf16> to vector<32x16xbf16>
    %93 = vector.shape_cast %92 : vector<32x16xbf16> to vector<4x8x16xbf16>
    %94 = vector.extract_strided_slice %54 {offsets = [0, 0], sizes = [32, 16], strides = [1, 1]} : vector<32x32xf32> to vector<32x16xf32>
    %95 = vector.shape_cast %94 : vector<32x16xf32> to vector<4x8x16xf32>
    %96 = vector.extract_strided_slice %87 {offsets = [0, 0, 0], sizes = [8, 8, 1], strides = [1, 1, 1]} : vector<8x8x2xf32> to vector<8x8x1xf32>
    %cst_42 = arith.constant dense<0.000000e+00> : vector<8x8xf32>
    %97 = vector.multi_reduction <add>, %96, %cst_42 [2] : vector<8x8x1xf32> to vector<8x8xf32>
    "tpu.trace_start"() <{level = 10 : i32, message = "bid,bjd->bij"}> : () -> ()
    %cst_43 = arith.constant dense<0.000000e+00> : vector<4x8x8xf32>
    %98 = tpu.matmul %89, %91, %cst_43 {dimension_numbers = #tpu.dot_dimension_numbers<[2], [2], [1], [1], [0, 0, 0, 1, 1, 1], [0], [0]>} : vector<4x8x16xbf16>, vector<4x8x16xbf16>, vector<4x8x8xf32> -> vector<4x8x8xf32>
    "tpu.trace_stop"() : () -> ()
    %99 = vector.shape_cast %97 : vector<8x8xf32> to vector<1x8x8xf32>
    %100 = vector.broadcast %99 : vector<1x8x8xf32> to vector<4x8x8xf32>
    %101 = arith.addf %98, %100 : vector<4x8x8xf32>
    %cst_44 = arith.constant dense<0xFF800000> : vector<4x8xf32>
    %102 = vector.multi_reduction <maximumf>, %101, %cst_44 [2] : vector<4x8x8xf32> to vector<4x8xf32>
    %103 = vector.shape_cast %102 : vector<4x8xf32> to vector<4x8x1xf32>
    %104 = vector.broadcast %103 : vector<4x8x1xf32> to vector<4x8x8xf32>
    %105 = arith.subf %101, %104 : vector<4x8x8xf32>
    %106 = math.exp %105 : vector<4x8x8xf32>
    %cst_45 = arith.constant dense<0.000000e+00> : vector<4x8xf32>
    %107 = vector.multi_reduction <add>, %106, %cst_45 [2] : vector<4x8x8xf32> to vector<4x8xf32>
    %108 = vector.shape_cast %107 : vector<4x8xf32> to vector<4x8x1xf32>
    %109 = tpu.reciprocal %108 {approx = true} : vector<4x8x1xf32> -> vector<4x8x1xf32>
    %110 = vector.broadcast %109 : vector<4x8x1xf32> to vector<4x8x8xf32>
    %111 = arith.mulf %106, %110 : vector<4x8x8xf32>
    %112 = arith.truncf %111 : vector<4x8x8xf32> to vector<4x8x8xbf16>
    "tpu.trace_start"() <{level = 10 : i32, message = "bij,bjd->bid"}> : () -> ()
    %cst_46 = arith.constant dense<0.000000e+00> : vector<4x8x16xf32>
    %113 = tpu.matmul %112, %93, %cst_46 {dimension_numbers = #tpu.dot_dimension_numbers<[2], [1], [1], [2], [0, 0, 0, 1, 1, 2], [0], [0]>} : vector<4x8x8xbf16>, vector<4x8x16xbf16>, vector<4x8x16xf32> -> vector<4x8x16xf32>
    "tpu.trace_stop"() : () -> ()
    %114 = arith.mulf %95, %113 : vector<4x8x16xf32>
    %115 = arith.truncf %114 : vector<4x8x16xf32> to vector<4x8x16xbf16>
    %116 = vector.extract_strided_slice %34 {offsets = [0, 16], sizes = [32, 16], strides = [1, 1]} : vector<32x32xbf16> to vector<32x16xbf16>
    %117 = vector.shape_cast %116 : vector<32x16xbf16> to vector<4x8x16xbf16>
    %118 = vector.extract_strided_slice %38 {offsets = [0, 16], sizes = [32, 16], strides = [1, 1]} : vector<32x32xbf16> to vector<32x16xbf16>
    %119 = vector.shape_cast %118 : vector<32x16xbf16> to vector<4x8x16xbf16>
    %120 = vector.extract_strided_slice %42 {offsets = [0, 16], sizes = [32, 16], strides = [1, 1]} : vector<32x32xbf16> to vector<32x16xbf16>
    %121 = vector.shape_cast %120 : vector<32x16xbf16> to vector<4x8x16xbf16>
    %122 = vector.extract_strided_slice %54 {offsets = [0, 16], sizes = [32, 16], strides = [1, 1]} : vector<32x32xf32> to vector<32x16xf32>
    %123 = vector.shape_cast %122 : vector<32x16xf32> to vector<4x8x16xf32>
    %124 = vector.extract_strided_slice %87 {offsets = [0, 0, 1], sizes = [8, 8, 1], strides = [1, 1, 1]} : vector<8x8x2xf32> to vector<8x8x1xf32>
    %cst_47 = arith.constant dense<0.000000e+00> : vector<8x8xf32>
    %125 = vector.multi_reduction <add>, %124, %cst_47 [2] : vector<8x8x1xf32> to vector<8x8xf32>
    "tpu.trace_start"() <{level = 10 : i32, message = "bid,bjd->bij"}> : () -> ()
    %cst_48 = arith.constant dense<0.000000e+00> : vector<4x8x8xf32>
    %126 = tpu.matmul %117, %119, %cst_48 {dimension_numbers = #tpu.dot_dimension_numbers<[2], [2], [1], [1], [0, 0, 0, 1, 1, 1], [0], [0]>} : vector<4x8x16xbf16>, vector<4x8x16xbf16>, vector<4x8x8xf32> -> vector<4x8x8xf32>
    "tpu.trace_stop"() : () -> ()
    %127 = vector.shape_cast %125 : vector<8x8xf32> to vector<1x8x8xf32>
    %128 = vector.broadcast %127 : vector<1x8x8xf32> to vector<4x8x8xf32>
    %129 = arith.addf %126, %128 : vector<4x8x8xf32>
    %cst_49 = arith.constant dense<0xFF800000> : vector<4x8xf32>
    %130 = vector.multi_reduction <maximumf>, %129, %cst_49 [2] : vector<4x8x8xf32> to vector<4x8xf32>
    %131 = vector.shape_cast %130 : vector<4x8xf32> to vector<4x8x1xf32>
    %132 = vector.broadcast %131 : vector<4x8x1xf32> to vector<4x8x8xf32>
    %133 = arith.subf %129, %132 : vector<4x8x8xf32>
    %134 = math.exp %133 : vector<4x8x8xf32>
    %cst_50 = arith.constant dense<0.000000e+00> : vector<4x8xf32>
    %135 = vector.multi_reduction <add>, %134, %cst_50 [2] : vector<4x8x8xf32> to vector<4x8xf32>
    %136 = vector.shape_cast %135 : vector<4x8xf32> to vector<4x8x1xf32>
    %137 = tpu.reciprocal %136 {approx = true} : vector<4x8x1xf32> -> vector<4x8x1xf32>
    %138 = vector.broadcast %137 : vector<4x8x1xf32> to vector<4x8x8xf32>
    %139 = arith.mulf %134, %138 : vector<4x8x8xf32>
    %140 = arith.truncf %139 : vector<4x8x8xf32> to vector<4x8x8xbf16>
    "tpu.trace_start"() <{level = 10 : i32, message = "bij,bjd->bid"}> : () -> ()
    %cst_51 = arith.constant dense<0.000000e+00> : vector<4x8x16xf32>
    %141 = tpu.matmul %140, %121, %cst_51 {dimension_numbers = #tpu.dot_dimension_numbers<[2], [1], [1], [2], [0, 0, 0, 1, 1, 2], [0], [0]>} : vector<4x8x8xbf16>, vector<4x8x16xbf16>, vector<4x8x16xf32> -> vector<4x8x16xf32>
    "tpu.trace_stop"() : () -> ()
    %142 = arith.mulf %123, %141 : vector<4x8x16xf32>
    %143 = arith.truncf %142 : vector<4x8x16xf32> to vector<4x8x16xbf16>
    %144 = tpu.concatenate %115, %143 in 2 : vector<4x8x16xbf16>, vector<4x8x16xbf16> -> vector<4x8x32xbf16>
    %145 = vector.shape_cast %144 : vector<4x8x32xbf16> to vector<32x32xbf16>
    %c0_52 = arith.constant 0 : index
    %c0_53 = arith.constant 0 : index
    %146 = vector.load %arg13[%c0_52, %c0_53] : memref<32x32xf32, #tpu.memory_space<vmem>>, vector<32x32xf32>
    %147 = arith.truncf %146 : vector<32x32xf32> to vector<32x32xbf16>
    %cst_54 = arith.constant dense<0.000000e+00> : vector<32x32xf32>
    %148 = tpu.matmul %145, %147, %cst_54 {dimension_numbers = #tpu.dot_dimension_numbers<[1], [0], [0], [1], [0, 0, 1, 1], [], []>} : vector<32x32xbf16>, vector<32x32xbf16>, vector<32x32xf32> -> vector<32x32xf32>
    %c0_55 = arith.constant 0 : index
    %c0_56 = arith.constant 0 : index
    %149 = vector.load %arg14[%c0_55, %c0_56] : memref<1x32xf32, #tpu.memory_space<vmem>>, vector<1x32xf32>
    %150 = vector.shape_cast %149 : vector<1x32xf32> to vector<1x1x32xf32>
    %151 = vector.broadcast %150 : vector<1x1x32xf32> to vector<4x8x32xf32>
    %152 = arith.addf %0, %151 : vector<4x8x32xf32>
    %153 = vector.shape_cast %148 : vector<32x32xf32> to vector<4x8x32xf32>
    %154 = arith.addf %152, %153 : vector<4x8x32xf32>
    %c0_57 = arith.constant 0 : index
    %c0_58 = arith.constant 0 : index
    %c0_59 = arith.constant 0 : index
    %155 = vector.load %arg15[%c0_57, %c0_58, %c0_59] : memref<4x8x32xf32, #tpu.memory_space<vmem>>, vector<4x8x32xf32>
    tpu.vector_store %arg15[%c0_57, %c0_58, %c0_59], %154 {strides = array<i32>} : memref<4x8x32xf32, #tpu.memory_space<vmem>>, vector<4x8x32xf32>,
    return
  }
  func.func @transform_0(%arg0: i32) -> (i32, i32, i32) {
    %c0_i32 = arith.constant 0 : i32
    %c0_i32_0 = arith.constant 0 : i32
    %c0_i32_1 = arith.constant 0 : i32
    return %arg0, %c0_i32, %c0_i32_0 : i32, i32, i32
  }
  func.func @transform_1(%arg0: i32) -> (i32, i32, i32) {
    %c0_i32 = arith.constant 0 : i32
    %c0_i32_0 = arith.constant 0 : i32
    %c0_i32_1 = arith.constant 0 : i32
    %c0_i32_2 = arith.constant 0 : i32
    return %c0_i32, %c0_i32_0, %c0_i32_1 : i32, i32, i32
  }
  func.func @transform_2(%arg0: i32) -> (i32, i32) {
    %c0_i32 = arith.constant 0 : i32
    %c0_i32_0 = arith.constant 0 : i32
    %c0_i32_1 = arith.constant 0 : i32
    return %c0_i32, %c0_i32_0 : i32, i32
  }
  func.func @transform_3(%arg0: i32) -> (i32, i32) {
    %c0_i32 = arith.constant 0 : i32
    %c0_i32_0 = arith.constant 0 : i32
    %c0_i32_1 = arith.constant 0 : i32
    return %c0_i32, %c0_i32_0 : i32, i32
  }
  func.func @transform_4(%arg0: i32) -> (i32, i32) {
    %c0_i32 = arith.constant 0 : i32
    %c0_i32_0 = arith.constant 0 : i32
    %c0_i32_1 = arith.constant 0 : i32
    return %c0_i32, %c0_i32_0 : i32, i32
  }
  func.func @transform_5(%arg0: i32) -> (i32, i32) {
    %c0_i32 = arith.constant 0 : i32
    %c0_i32_0 = arith.constant 0 : i32
    %c0_i32_1 = arith.constant 0 : i32
    return %c0_i32, %c0_i32_0 : i32, i32
  }
  func.func @transform_6(%arg0: i32) -> (i32, i32) {
    %c0_i32 = arith.constant 0 : i32
    %c0_i32_0 = arith.constant 0 : i32
    %c0_i32_1 = arith.constant 0 : i32
    return %c0_i32, %c0_i32_0 : i32, i32
  }
  func.func @transform_7(%arg0: i32) -> (i32, i32) {
    %c0_i32 = arith.constant 0 : i32
    %c0_i32_0 = arith.constant 0 : i32
    %c0_i32_1 = arith.constant 0 : i32
    return %c0_i32, %c0_i32_0 : i32, i32
  }
  func.func @transform_8(%arg0: i32) -> (i32, i32) {
    %c0_i32 = arith.constant 0 : i32
    %c0_i32_0 = arith.constant 0 : i32
    %c0_i32_1 = arith.constant 0 : i32
    return %c0_i32, %c0_i32_0 : i32, i32
  }
  func.func @transform_9(%arg0: i32) -> (i32, i32) {
    %c0_i32 = arith.constant 0 : i32
    %c0_i32_0 = arith.constant 0 : i32
    %c0_i32_1 = arith.constant 0 : i32
    return %c0_i32, %c0_i32_0 : i32, i32
  }
  func.func @transform_10(%arg0: i32) -> (i32, i32) {
    %c0_i32 = arith.constant 0 : i32
    %c0_i32_0 = arith.constant 0 : i32
    %c0_i32_1 = arith.constant 0 : i32
    return %c0_i32, %c0_i32_0 : i32, i32
  }
  func.func @transform_11(%arg0: i32) -> (i32, i32) {
    %c0_i32 = arith.constant 0 : i32
    %c0_i32_0 = arith.constant 0 : i32
    %c0_i32_1 = arith.constant 0 : i32
    return %c0_i32, %c0_i32_0 : i32, i32
  }
  func.func @transform_12(%arg0: i32) -> (i32, i32) {
    %c0_i32 = arith.constant 0 : i32
    %c0_i32_0 = arith.constant 0 : i32
    %c0_i32_1 = arith.constant 0 : i32
    return %c0_i32, %c0_i32_0 : i32, i32
  }
  func.func @transform_13(%arg0: i32) -> (i32, i32) {
    %c0_i32 = arith.constant 0 : i32
    %c0_i32_0 = arith.constant 0 : i32
    %c0_i32_1 = arith.constant 0 : i32
    return %c0_i32, %c0_i32_0 : i32, i32
  }
  func.func @transform_14(%arg0: i32) -> (i32, i32, i32) {
    %c0_i32 = arith.constant 0 : i32
    %c0_i32_0 = arith.constant 0 : i32
    %c0_i32_1 = arith.constant 0 : i32
    return %arg0, %c0_i32, %c0_i32_0 : i32, i32, i32
  }
}

module attributes {stable_mosaic.version = 11 : i64} {
  func.func @_gated_attn_kernel(%arg0: i32, %arg1: memref<4x4x32xf32, #tpu.memory_space<vmem>>, %arg2: memref<1x32xf32, #tpu.memory_space<vmem>>, %arg3: memref<1x32xf32, #tpu.memory_space<vmem>>, %arg4: memref<32x32xf32, #tpu.memory_space<vmem>>, %arg5: memref<32x32xf32, #tpu.memory_space<vmem>>, %arg6: memref<32x32xf32, #tpu.memory_space<vmem>>, %arg7: memref<32x32xf32, #tpu.memory_space<vmem>>, %arg8: memref<1x32xf32, #tpu.memory_space<vmem>>, %arg9: memref<32x32xf32, #tpu.memory_space<vmem>>, %arg10: memref<1x32xf32, #tpu.memory_space<vmem>>, %arg11: memref<4x4x32xf32, #tpu.memory_space<vmem>>) attributes {dimension_semantics = [#tpu.dimension_semantics<parallel>], iteration_bounds = array<i64: 2>, scalar_prefetch = 0 : i64, scratch_operands = 0 : i64, tpu.core_type = #tpu.core_type<tc>, window_params = [{transform_indices = @transform_0, window_bounds = array<i64: 4, 4, 32>}, {pipeline_mode = #tpu.pipeline_mode<synchronous>, transform_indices = @transform_1, window_bounds = array<i64: 1, 32>}, {pipeline_mode = #tpu.pipeline_mode<synchronous>, transform_indices = @transform_2, window_bounds = array<i64: 1, 32>}, {pipeline_mode = #tpu.pipeline_mode<synchronous>, transform_indices = @transform_3, window_bounds = array<i64: 32, 32>}, {pipeline_mode = #tpu.pipeline_mode<synchronous>, transform_indices = @transform_4, window_bounds = array<i64: 32, 32>}, {pipeline_mode = #tpu.pipeline_mode<synchronous>, transform_indices = @transform_5, window_bounds = array<i64: 32, 32>}, {pipeline_mode = #tpu.pipeline_mode<synchronous>, transform_indices = @transform_6, window_bounds = array<i64: 32, 32>}, {pipeline_mode = #tpu.pipeline_mode<synchronous>, transform_indices = @transform_7, window_bounds = array<i64: 1, 32>}, {pipeline_mode = #tpu.pipeline_mode<synchronous>, transform_indices = @transform_8, window_bounds = array<i64: 32, 32>}, {pipeline_mode = #tpu.pipeline_mode<synchronous>, transform_indices = @transform_9, window_bounds = array<i64: 1, 32>}, {transform_indices = @transform_10, window_bounds = array<i64: 4, 4, 32>}]} {
    %c0 = arith.constant 0 : index
    %c0_0 = arith.constant 0 : index
    %c0_1 = arith.constant 0 : index
    %0 = vector.load %arg1[%c0, %c0_0, %c0_1] : memref<4x4x32xf32, #tpu.memory_space<vmem>>, vector<4x4x32xf32>
    %c0_2 = arith.constant 0 : index
    %c0_3 = arith.constant 0 : index
    %1 = vector.load %arg2[%c0_2, %c0_3] : memref<1x32xf32, #tpu.memory_space<vmem>>, vector<1x32xf32>
    %c0_4 = arith.constant 0 : index
    %c0_5 = arith.constant 0 : index
    %2 = vector.load %arg3[%c0_4, %c0_5] : memref<1x32xf32, #tpu.memory_space<vmem>>, vector<1x32xf32>
    %cst = arith.constant dense<0.000000e+00> : vector<4x4xf32>
    %3 = vector.multi_reduction <add>, %0, %cst [2] : vector<4x4x32xf32> to vector<4x4xf32>
    %4 = vector.shape_cast %3 : vector<4x4xf32> to vector<4x4x1xf32>
    %cst_6 = arith.constant 3.200000e+01 : f32
    %5 = vector.broadcast %cst_6 : f32 to vector<4x4x1xf32>
    %6 = arith.divf %4, %5 : vector<4x4x1xf32>
    %7 = vector.broadcast %6 : vector<4x4x1xf32> to vector<4x4x32xf32>
    %8 = arith.subf %0, %7 : vector<4x4x32xf32>
    %9 = arith.mulf %8, %8 : vector<4x4x32xf32>
    %cst_7 = arith.constant dense<0.000000e+00> : vector<4x4xf32>
    %10 = vector.multi_reduction <add>, %9, %cst_7 [2] : vector<4x4x32xf32> to vector<4x4xf32>
    %11 = vector.shape_cast %10 : vector<4x4xf32> to vector<4x4x1xf32>
    %cst_8 = arith.constant 3.200000e+01 : f32
    %12 = vector.broadcast %cst_8 : f32 to vector<4x4x1xf32>
    %13 = arith.divf %11, %12 : vector<4x4x1xf32>
    %14 = vector.broadcast %6 : vector<4x4x1xf32> to vector<4x4x32xf32>
    %15 = arith.subf %0, %14 : vector<4x4x32xf32>
    %cst_9 = arith.constant 9.99999974E-6 : f32
    %16 = vector.broadcast %cst_9 : f32 to vector<4x4x1xf32>
    %17 = arith.addf %13, %16 : vector<4x4x1xf32>
    %18 = math.rsqrt %17 : vector<4x4x1xf32>
    %19 = vector.broadcast %18 : vector<4x4x1xf32> to vector<4x4x32xf32>
    %20 = arith.mulf %15, %19 : vector<4x4x32xf32>
    %21 = vector.shape_cast %1 : vector<1x32xf32> to vector<1x1x32xf32>
    %22 = vector.broadcast %21 : vector<1x1x32xf32> to vector<4x4x32xf32>
    %23 = arith.mulf %20, %22 : vector<4x4x32xf32>
    %24 = vector.shape_cast %2 : vector<1x32xf32> to vector<1x1x32xf32>
    %25 = vector.broadcast %24 : vector<1x1x32xf32> to vector<4x4x32xf32>
    %26 = arith.addf %23, %25 : vector<4x4x32xf32>
    %27 = vector.shape_cast %26 : vector<4x4x32xf32> to vector<16x32xf32>
    %28 = arith.truncf %27 : vector<16x32xf32> to vector<16x32xbf16>
    %c0_10 = arith.constant 0 : index
    %c0_11 = arith.constant 0 : index
    %29 = vector.load %arg4[%c0_10, %c0_11] : memref<32x32xf32, #tpu.memory_space<vmem>>, vector<32x32xf32>
    %30 = arith.truncf %29 : vector<32x32xf32> to vector<32x32xbf16>
    %cst_12 = arith.constant dense<0.000000e+00> : vector<16x32xf32>
    %31 = tpu.matmul %28, %30, %cst_12 {dimension_numbers = #tpu.dot_dimension_numbers<[1], [0], [0], [1], [0, 0, 1, 1], [], []>} : vector<16x32xbf16>, vector<32x32xbf16>, vector<16x32xf32> -> vector<16x32xf32>
    %cst_13 = arith.constant 2.500000e-01 : f32
    %32 = vector.broadcast %cst_13 : f32 to vector<16x32xf32>
    %33 = arith.mulf %31, %32 : vector<16x32xf32>
    %34 = arith.truncf %33 : vector<16x32xf32> to vector<16x32xbf16>
    %c0_14 = arith.constant 0 : index
    %c0_15 = arith.constant 0 : index
    %35 = vector.load %arg5[%c0_14, %c0_15] : memref<32x32xf32, #tpu.memory_space<vmem>>, vector<32x32xf32>
    %36 = arith.truncf %35 : vector<32x32xf32> to vector<32x32xbf16>
    %cst_16 = arith.constant dense<0.000000e+00> : vector<16x32xf32>
    %37 = tpu.matmul %28, %36, %cst_16 {dimension_numbers = #tpu.dot_dimension_numbers<[1], [0], [0], [1], [0, 0, 1, 1], [], []>} : vector<16x32xbf16>, vector<32x32xbf16>, vector<16x32xf32> -> vector<16x32xf32>
    %38 = arith.truncf %37 : vector<16x32xf32> to vector<16x32xbf16>
    %c0_17 = arith.constant 0 : index
    %c0_18 = arith.constant 0 : index
    %39 = vector.load %arg6[%c0_17, %c0_18] : memref<32x32xf32, #tpu.memory_space<vmem>>, vector<32x32xf32>
    %40 = arith.truncf %39 : vector<32x32xf32> to vector<32x32xbf16>
    %cst_19 = arith.constant dense<0.000000e+00> : vector<16x32xf32>
    %41 = tpu.matmul %28, %40, %cst_19 {dimension_numbers = #tpu.dot_dimension_numbers<[1], [0], [0], [1], [0, 0, 1, 1], [], []>} : vector<16x32xbf16>, vector<32x32xbf16>, vector<16x32xf32> -> vector<16x32xf32>
    %42 = arith.truncf %41 : vector<16x32xf32> to vector<16x32xbf16>
    %c0_20 = arith.constant 0 : index
    %c0_21 = arith.constant 0 : index
    %43 = vector.load %arg7[%c0_20, %c0_21] : memref<32x32xf32, #tpu.memory_space<vmem>>, vector<32x32xf32>
    %44 = arith.truncf %43 : vector<32x32xf32> to vector<32x32xbf16>
    %cst_22 = arith.constant dense<0.000000e+00> : vector<16x32xf32>
    %45 = tpu.matmul %28, %44, %cst_22 {dimension_numbers = #tpu.dot_dimension_numbers<[1], [0], [0], [1], [0, 0, 1, 1], [], []>} : vector<16x32xbf16>, vector<32x32xbf16>, vector<16x32xf32> -> vector<16x32xf32>
    %c0_23 = arith.constant 0 : index
    %c0_24 = arith.constant 0 : index
    %46 = vector.load %arg8[%c0_23, %c0_24] : memref<1x32xf32, #tpu.memory_space<vmem>>, vector<1x32xf32>
    %47 = vector.broadcast %46 : vector<1x32xf32> to vector<16x32xf32>
    %48 = arith.addf %45, %47 : vector<16x32xf32>
    %cst_25 = arith.constant 0.000000e+00 : f32
    %49 = vector.broadcast %cst_25 : f32 to vector<16x32xf32>
    %50 = arith.subf %49, %48 : vector<16x32xf32>
    %51 = math.exp %50 : vector<16x32xf32>
    %cst_26 = arith.constant 1.000000e+00 : f32
    %52 = vector.broadcast %cst_26 : f32 to vector<16x32xf32>
    %53 = arith.addf %52, %51 : vector<16x32xf32>
    %54 = tpu.reciprocal %53 {approx = true} : vector<16x32xf32> -> vector<16x32xf32>
    %55 = vector.extract_strided_slice %34 {offsets = [0, 0], sizes = [16, 16], strides = [1, 1]} : vector<16x32xbf16> to vector<16x16xbf16>
    %56 = vector.shape_cast %55 : vector<16x16xbf16> to vector<4x4x16xbf16>
    %57 = vector.extract_strided_slice %38 {offsets = [0, 0], sizes = [16, 16], strides = [1, 1]} : vector<16x32xbf16> to vector<16x16xbf16>
    %58 = vector.shape_cast %57 : vector<16x16xbf16> to vector<4x4x16xbf16>
    %59 = vector.extract_strided_slice %42 {offsets = [0, 0], sizes = [16, 16], strides = [1, 1]} : vector<16x32xbf16> to vector<16x16xbf16>
    %60 = vector.shape_cast %59 : vector<16x16xbf16> to vector<4x4x16xbf16>
    %61 = vector.extract_strided_slice %54 {offsets = [0, 0], sizes = [16, 16], strides = [1, 1]} : vector<16x32xf32> to vector<16x16xf32>
    %62 = vector.shape_cast %61 : vector<16x16xf32> to vector<4x4x16xf32>
    "tpu.trace_start"() <{level = 10 : i32, message = "bid,bjd->bij"}> : () -> ()
    %cst_27 = arith.constant dense<0.000000e+00> : vector<4x4x4xf32>
    %63 = tpu.matmul %56, %58, %cst_27 {dimension_numbers = #tpu.dot_dimension_numbers<[2], [2], [1], [1], [0, 0, 0, 1, 1, 1], [0], [0]>} : vector<4x4x16xbf16>, vector<4x4x16xbf16>, vector<4x4x4xf32> -> vector<4x4x4xf32>
    "tpu.trace_stop"() : () -> ()
    %cst_28 = arith.constant dense<0xFF800000> : vector<4x4xf32>
    %64 = vector.multi_reduction <maximumf>, %63, %cst_28 [2] : vector<4x4x4xf32> to vector<4x4xf32>
    %65 = vector.shape_cast %64 : vector<4x4xf32> to vector<4x4x1xf32>
    %66 = vector.broadcast %65 : vector<4x4x1xf32> to vector<4x4x4xf32>
    %67 = arith.subf %63, %66 : vector<4x4x4xf32>
    %68 = math.exp %67 : vector<4x4x4xf32>
    %cst_29 = arith.constant dense<0.000000e+00> : vector<4x4xf32>
    %69 = vector.multi_reduction <add>, %68, %cst_29 [2] : vector<4x4x4xf32> to vector<4x4xf32>
    %70 = vector.shape_cast %69 : vector<4x4xf32> to vector<4x4x1xf32>
    %71 = tpu.reciprocal %70 {approx = true} : vector<4x4x1xf32> -> vector<4x4x1xf32>
    %72 = vector.broadcast %71 : vector<4x4x1xf32> to vector<4x4x4xf32>
    %73 = arith.mulf %68, %72 : vector<4x4x4xf32>
    %74 = arith.truncf %73 : vector<4x4x4xf32> to vector<4x4x4xbf16>
    "tpu.trace_start"() <{level = 10 : i32, message = "bij,bjd->bid"}> : () -> ()
    %cst_30 = arith.constant dense<0.000000e+00> : vector<4x4x16xf32>
    %75 = tpu.matmul %74, %60, %cst_30 {dimension_numbers = #tpu.dot_dimension_numbers<[2], [1], [1], [2], [0, 0, 0, 1, 1, 2], [0], [0]>} : vector<4x4x4xbf16>, vector<4x4x16xbf16>, vector<4x4x16xf32> -> vector<4x4x16xf32>
    "tpu.trace_stop"() : () -> ()
    %76 = arith.mulf %62, %75 : vector<4x4x16xf32>
    %77 = arith.truncf %76 : vector<4x4x16xf32> to vector<4x4x16xbf16>
    %78 = vector.extract_strided_slice %34 {offsets = [0, 16], sizes = [16, 16], strides = [1, 1]} : vector<16x32xbf16> to vector<16x16xbf16>
    %79 = vector.shape_cast %78 : vector<16x16xbf16> to vector<4x4x16xbf16>
    %80 = vector.extract_strided_slice %38 {offsets = [0, 16], sizes = [16, 16], strides = [1, 1]} : vector<16x32xbf16> to vector<16x16xbf16>
    %81 = vector.shape_cast %80 : vector<16x16xbf16> to vector<4x4x16xbf16>
    %82 = vector.extract_strided_slice %42 {offsets = [0, 16], sizes = [16, 16], strides = [1, 1]} : vector<16x32xbf16> to vector<16x16xbf16>
    %83 = vector.shape_cast %82 : vector<16x16xbf16> to vector<4x4x16xbf16>
    %84 = vector.extract_strided_slice %54 {offsets = [0, 16], sizes = [16, 16], strides = [1, 1]} : vector<16x32xf32> to vector<16x16xf32>
    %85 = vector.shape_cast %84 : vector<16x16xf32> to vector<4x4x16xf32>
    "tpu.trace_start"() <{level = 10 : i32, message = "bid,bjd->bij"}> : () -> ()
    %cst_31 = arith.constant dense<0.000000e+00> : vector<4x4x4xf32>
    %86 = tpu.matmul %79, %81, %cst_31 {dimension_numbers = #tpu.dot_dimension_numbers<[2], [2], [1], [1], [0, 0, 0, 1, 1, 1], [0], [0]>} : vector<4x4x16xbf16>, vector<4x4x16xbf16>, vector<4x4x4xf32> -> vector<4x4x4xf32>
    "tpu.trace_stop"() : () -> ()
    %cst_32 = arith.constant dense<0xFF800000> : vector<4x4xf32>
    %87 = vector.multi_reduction <maximumf>, %86, %cst_32 [2] : vector<4x4x4xf32> to vector<4x4xf32>
    %88 = vector.shape_cast %87 : vector<4x4xf32> to vector<4x4x1xf32>
    %89 = vector.broadcast %88 : vector<4x4x1xf32> to vector<4x4x4xf32>
    %90 = arith.subf %86, %89 : vector<4x4x4xf32>
    %91 = math.exp %90 : vector<4x4x4xf32>
    %cst_33 = arith.constant dense<0.000000e+00> : vector<4x4xf32>
    %92 = vector.multi_reduction <add>, %91, %cst_33 [2] : vector<4x4x4xf32> to vector<4x4xf32>
    %93 = vector.shape_cast %92 : vector<4x4xf32> to vector<4x4x1xf32>
    %94 = tpu.reciprocal %93 {approx = true} : vector<4x4x1xf32> -> vector<4x4x1xf32>
    %95 = vector.broadcast %94 : vector<4x4x1xf32> to vector<4x4x4xf32>
    %96 = arith.mulf %91, %95 : vector<4x4x4xf32>
    %97 = arith.truncf %96 : vector<4x4x4xf32> to vector<4x4x4xbf16>
    "tpu.trace_start"() <{level = 10 : i32, message = "bij,bjd->bid"}> : () -> ()
    %cst_34 = arith.constant dense<0.000000e+00> : vector<4x4x16xf32>
    %98 = tpu.matmul %97, %83, %cst_34 {dimension_numbers = #tpu.dot_dimension_numbers<[2], [1], [1], [2], [0, 0, 0, 1, 1, 2], [0], [0]>} : vector<4x4x4xbf16>, vector<4x4x16xbf16>, vector<4x4x16xf32> -> vector<4x4x16xf32>
    "tpu.trace_stop"() : () -> ()
    %99 = arith.mulf %85, %98 : vector<4x4x16xf32>
    %100 = arith.truncf %99 : vector<4x4x16xf32> to vector<4x4x16xbf16>
    %101 = tpu.concatenate %77, %100 in 2 : vector<4x4x16xbf16>, vector<4x4x16xbf16> -> vector<4x4x32xbf16>
    %102 = vector.shape_cast %101 : vector<4x4x32xbf16> to vector<16x32xbf16>
    %c0_35 = arith.constant 0 : index
    %c0_36 = arith.constant 0 : index
    %103 = vector.load %arg9[%c0_35, %c0_36] : memref<32x32xf32, #tpu.memory_space<vmem>>, vector<32x32xf32>
    %104 = arith.truncf %103 : vector<32x32xf32> to vector<32x32xbf16>
    %cst_37 = arith.constant dense<0.000000e+00> : vector<16x32xf32>
    %105 = tpu.matmul %102, %104, %cst_37 {dimension_numbers = #tpu.dot_dimension_numbers<[1], [0], [0], [1], [0, 0, 1, 1], [], []>} : vector<16x32xbf16>, vector<32x32xbf16>, vector<16x32xf32> -> vector<16x32xf32>
    %c0_38 = arith.constant 0 : index
    %c0_39 = arith.constant 0 : index
    %106 = vector.load %arg10[%c0_38, %c0_39] : memref<1x32xf32, #tpu.memory_space<vmem>>, vector<1x32xf32>
    %107 = vector.shape_cast %106 : vector<1x32xf32> to vector<1x1x32xf32>
    %108 = vector.broadcast %107 : vector<1x1x32xf32> to vector<4x4x32xf32>
    %109 = arith.addf %0, %108 : vector<4x4x32xf32>
    %110 = vector.shape_cast %105 : vector<16x32xf32> to vector<4x4x32xf32>
    %111 = arith.addf %109, %110 : vector<4x4x32xf32>
    %c0_40 = arith.constant 0 : index
    %c0_41 = arith.constant 0 : index
    %c0_42 = arith.constant 0 : index
    %112 = vector.load %arg11[%c0_40, %c0_41, %c0_42] : memref<4x4x32xf32, #tpu.memory_space<vmem>>, vector<4x4x32xf32>
    tpu.vector_store %arg11[%c0_40, %c0_41, %c0_42], %111 {strides = array<i32>} : memref<4x4x32xf32, #tpu.memory_space<vmem>>, vector<4x4x32xf32>,
    return
  }
  func.func @transform_0(%arg0: i32) -> (i32, i32, i32) {
    %c0_i32 = arith.constant 0 : i32
    %c0_i32_0 = arith.constant 0 : i32
    %c0_i32_1 = arith.constant 0 : i32
    return %arg0, %c0_i32, %c0_i32_0 : i32, i32, i32
  }
  func.func @transform_1(%arg0: i32) -> (i32, i32) {
    %c0_i32 = arith.constant 0 : i32
    %c0_i32_0 = arith.constant 0 : i32
    %c0_i32_1 = arith.constant 0 : i32
    return %c0_i32, %c0_i32_0 : i32, i32
  }
  func.func @transform_2(%arg0: i32) -> (i32, i32) {
    %c0_i32 = arith.constant 0 : i32
    %c0_i32_0 = arith.constant 0 : i32
    %c0_i32_1 = arith.constant 0 : i32
    return %c0_i32, %c0_i32_0 : i32, i32
  }
  func.func @transform_3(%arg0: i32) -> (i32, i32) {
    %c0_i32 = arith.constant 0 : i32
    %c0_i32_0 = arith.constant 0 : i32
    %c0_i32_1 = arith.constant 0 : i32
    return %c0_i32, %c0_i32_0 : i32, i32
  }
  func.func @transform_4(%arg0: i32) -> (i32, i32) {
    %c0_i32 = arith.constant 0 : i32
    %c0_i32_0 = arith.constant 0 : i32
    %c0_i32_1 = arith.constant 0 : i32
    return %c0_i32, %c0_i32_0 : i32, i32
  }
  func.func @transform_5(%arg0: i32) -> (i32, i32) {
    %c0_i32 = arith.constant 0 : i32
    %c0_i32_0 = arith.constant 0 : i32
    %c0_i32_1 = arith.constant 0 : i32
    return %c0_i32, %c0_i32_0 : i32, i32
  }
  func.func @transform_6(%arg0: i32) -> (i32, i32) {
    %c0_i32 = arith.constant 0 : i32
    %c0_i32_0 = arith.constant 0 : i32
    %c0_i32_1 = arith.constant 0 : i32
    return %c0_i32, %c0_i32_0 : i32, i32
  }
  func.func @transform_7(%arg0: i32) -> (i32, i32) {
    %c0_i32 = arith.constant 0 : i32
    %c0_i32_0 = arith.constant 0 : i32
    %c0_i32_1 = arith.constant 0 : i32
    return %c0_i32, %c0_i32_0 : i32, i32
  }
  func.func @transform_8(%arg0: i32) -> (i32, i32) {
    %c0_i32 = arith.constant 0 : i32
    %c0_i32_0 = arith.constant 0 : i32
    %c0_i32_1 = arith.constant 0 : i32
    return %c0_i32, %c0_i32_0 : i32, i32
  }
  func.func @transform_9(%arg0: i32) -> (i32, i32) {
    %c0_i32 = arith.constant 0 : i32
    %c0_i32_0 = arith.constant 0 : i32
    %c0_i32_1 = arith.constant 0 : i32
    return %c0_i32, %c0_i32_0 : i32, i32
  }
  func.func @transform_10(%arg0: i32) -> (i32, i32, i32) {
    %c0_i32 = arith.constant 0 : i32
    %c0_i32_0 = arith.constant 0 : i32
    %c0_i32_1 = arith.constant 0 : i32
    return %arg0, %c0_i32, %c0_i32_0 : i32, i32, i32
  }
}

module attributes {stable_mosaic.version = 11 : i64} {
  func.func @_transition_kernel(%arg0: i32, %arg1: memref<16x32xf32, #tpu.memory_space<vmem>>, %arg2: memref<1x32xf32, #tpu.memory_space<vmem>>, %arg3: memref<1x32xf32, #tpu.memory_space<vmem>>, %arg4: memref<32x128xf32, #tpu.memory_space<vmem>>, %arg5: memref<1x128xf32, #tpu.memory_space<vmem>>, %arg6: memref<128x32xf32, #tpu.memory_space<vmem>>, %arg7: memref<1x32xf32, #tpu.memory_space<vmem>>, %arg8: memref<16x32xf32, #tpu.memory_space<vmem>>) attributes {dimension_semantics = [#tpu.dimension_semantics<parallel>], iteration_bounds = array<i64: 2>, scalar_prefetch = 0 : i64, scratch_operands = 0 : i64, tpu.core_type = #tpu.core_type<tc>, window_params = [{transform_indices = @transform_0, window_bounds = array<i64: 16, 32>}, {pipeline_mode = #tpu.pipeline_mode<synchronous>, transform_indices = @transform_1, window_bounds = array<i64: 1, 32>}, {pipeline_mode = #tpu.pipeline_mode<synchronous>, transform_indices = @transform_2, window_bounds = array<i64: 1, 32>}, {pipeline_mode = #tpu.pipeline_mode<synchronous>, transform_indices = @transform_3, window_bounds = array<i64: 32, 128>}, {pipeline_mode = #tpu.pipeline_mode<synchronous>, transform_indices = @transform_4, window_bounds = array<i64: 1, 128>}, {pipeline_mode = #tpu.pipeline_mode<synchronous>, transform_indices = @transform_5, window_bounds = array<i64: 128, 32>}, {pipeline_mode = #tpu.pipeline_mode<synchronous>, transform_indices = @transform_6, window_bounds = array<i64: 1, 32>}, {transform_indices = @transform_7, window_bounds = array<i64: 16, 32>}]} {
    %c0 = arith.constant 0 : index
    %c0_0 = arith.constant 0 : index
    %0 = vector.load %arg1[%c0, %c0_0] : memref<16x32xf32, #tpu.memory_space<vmem>>, vector<16x32xf32>
    %c0_1 = arith.constant 0 : index
    %c0_2 = arith.constant 0 : index
    %1 = vector.load %arg2[%c0_1, %c0_2] : memref<1x32xf32, #tpu.memory_space<vmem>>, vector<1x32xf32>
    %c0_3 = arith.constant 0 : index
    %c0_4 = arith.constant 0 : index
    %2 = vector.load %arg3[%c0_3, %c0_4] : memref<1x32xf32, #tpu.memory_space<vmem>>, vector<1x32xf32>
    %cst = arith.constant dense<0.000000e+00> : vector<16xf32>
    %3 = vector.multi_reduction <add>, %0, %cst [1] : vector<16x32xf32> to vector<16xf32>
    %4 = vector.shape_cast %3 : vector<16xf32> to vector<16x1xf32>
    %cst_5 = arith.constant 3.200000e+01 : f32
    %5 = vector.broadcast %cst_5 : f32 to vector<16x1xf32>
    %6 = arith.divf %4, %5 : vector<16x1xf32>
    %7 = vector.broadcast %6 : vector<16x1xf32> to vector<16x32xf32>
    %8 = arith.subf %0, %7 : vector<16x32xf32>
    %9 = arith.mulf %8, %8 : vector<16x32xf32>
    %cst_6 = arith.constant dense<0.000000e+00> : vector<16xf32>
    %10 = vector.multi_reduction <add>, %9, %cst_6 [1] : vector<16x32xf32> to vector<16xf32>
    %11 = vector.shape_cast %10 : vector<16xf32> to vector<16x1xf32>
    %cst_7 = arith.constant 3.200000e+01 : f32
    %12 = vector.broadcast %cst_7 : f32 to vector<16x1xf32>
    %13 = arith.divf %11, %12 : vector<16x1xf32>
    %14 = vector.broadcast %6 : vector<16x1xf32> to vector<16x32xf32>
    %15 = arith.subf %0, %14 : vector<16x32xf32>
    %cst_8 = arith.constant 9.99999974E-6 : f32
    %16 = vector.broadcast %cst_8 : f32 to vector<16x1xf32>
    %17 = arith.addf %13, %16 : vector<16x1xf32>
    %18 = math.rsqrt %17 : vector<16x1xf32>
    %19 = vector.broadcast %18 : vector<16x1xf32> to vector<16x32xf32>
    %20 = arith.mulf %15, %19 : vector<16x32xf32>
    %21 = vector.broadcast %1 : vector<1x32xf32> to vector<16x32xf32>
    %22 = arith.mulf %20, %21 : vector<16x32xf32>
    %23 = vector.broadcast %2 : vector<1x32xf32> to vector<16x32xf32>
    %24 = arith.addf %22, %23 : vector<16x32xf32>
    %25 = arith.truncf %24 : vector<16x32xf32> to vector<16x32xbf16>
    %c0_9 = arith.constant 0 : index
    %c0_10 = arith.constant 0 : index
    %26 = vector.load %arg4[%c0_9, %c0_10] : memref<32x128xf32, #tpu.memory_space<vmem>>, vector<32x128xf32>
    %27 = arith.truncf %26 : vector<32x128xf32> to vector<32x128xbf16>
    %cst_11 = arith.constant dense<0.000000e+00> : vector<16x128xf32>
    %28 = tpu.matmul %25, %27, %cst_11 {dimension_numbers = #tpu.dot_dimension_numbers<[1], [0], [0], [1], [0, 0, 1, 1], [], []>} : vector<16x32xbf16>, vector<32x128xbf16>, vector<16x128xf32> -> vector<16x128xf32>
    %c0_12 = arith.constant 0 : index
    %c0_13 = arith.constant 0 : index
    %29 = vector.load %arg5[%c0_12, %c0_13] : memref<1x128xf32, #tpu.memory_space<vmem>>, vector<1x128xf32>
    %30 = vector.broadcast %29 : vector<1x128xf32> to vector<16x128xf32>
    %31 = arith.addf %28, %30 : vector<16x128xf32>
    %cst_14 = arith.constant 0.000000e+00 : f32
    %32 = vector.broadcast %cst_14 : f32 to vector<16x128xf32>
    %33 = arith.maximumf %31, %32 : vector<16x128xf32>
    %34 = arith.truncf %33 : vector<16x128xf32> to vector<16x128xbf16>
    %c0_15 = arith.constant 0 : index
    %c0_16 = arith.constant 0 : index
    %35 = vector.load %arg6[%c0_15, %c0_16] : memref<128x32xf32, #tpu.memory_space<vmem>>, vector<128x32xf32>
    %36 = arith.truncf %35 : vector<128x32xf32> to vector<128x32xbf16>
    %cst_17 = arith.constant dense<0.000000e+00> : vector<16x32xf32>
    %37 = tpu.matmul %34, %36, %cst_17 {dimension_numbers = #tpu.dot_dimension_numbers<[1], [0], [0], [1], [0, 0, 1, 1], [], []>} : vector<16x128xbf16>, vector<128x32xbf16>, vector<16x32xf32> -> vector<16x32xf32>
    %c0_18 = arith.constant 0 : index
    %c0_19 = arith.constant 0 : index
    %38 = vector.load %arg7[%c0_18, %c0_19] : memref<1x32xf32, #tpu.memory_space<vmem>>, vector<1x32xf32>
    %39 = vector.broadcast %38 : vector<1x32xf32> to vector<16x32xf32>
    %40 = arith.addf %37, %39 : vector<16x32xf32>
    %41 = arith.addf %0, %40 : vector<16x32xf32>
    %c0_20 = arith.constant 0 : index
    %c0_21 = arith.constant 0 : index
    %42 = vector.load %arg8[%c0_20, %c0_21] : memref<16x32xf32, #tpu.memory_space<vmem>>, vector<16x32xf32>
    tpu.vector_store %arg8[%c0_20, %c0_21], %41 {strides = array<i32>} : memref<16x32xf32, #tpu.memory_space<vmem>>, vector<16x32xf32>,
    return
  }
  func.func @transform_0(%arg0: i32) -> (i32, i32) {
    %c0_i32 = arith.constant 0 : i32
    %c0_i32_0 = arith.constant 0 : i32
    return %arg0, %c0_i32 : i32, i32
  }
  func.func @transform_1(%arg0: i32) -> (i32, i32) {
    %c0_i32 = arith.constant 0 : i32
    %c0_i32_0 = arith.constant 0 : i32
    %c0_i32_1 = arith.constant 0 : i32
    return %c0_i32, %c0_i32_0 : i32, i32
  }
  func.func @transform_2(%arg0: i32) -> (i32, i32) {
    %c0_i32 = arith.constant 0 : i32
    %c0_i32_0 = arith.constant 0 : i32
    %c0_i32_1 = arith.constant 0 : i32
    return %c0_i32, %c0_i32_0 : i32, i32
  }
  func.func @transform_3(%arg0: i32) -> (i32, i32) {
    %c0_i32 = arith.constant 0 : i32
    %c0_i32_0 = arith.constant 0 : i32
    %c0_i32_1 = arith.constant 0 : i32
    return %c0_i32, %c0_i32_0 : i32, i32
  }
  func.func @transform_4(%arg0: i32) -> (i32, i32) {
    %c0_i32 = arith.constant 0 : i32
    %c0_i32_0 = arith.constant 0 : i32
    %c0_i32_1 = arith.constant 0 : i32
    return %c0_i32, %c0_i32_0 : i32, i32
  }
  func.func @transform_5(%arg0: i32) -> (i32, i32) {
    %c0_i32 = arith.constant 0 : i32
    %c0_i32_0 = arith.constant 0 : i32
    %c0_i32_1 = arith.constant 0 : i32
    return %c0_i32, %c0_i32_0 : i32, i32
  }
  func.func @transform_6(%arg0: i32) -> (i32, i32) {
    %c0_i32 = arith.constant 0 : i32
    %c0_i32_0 = arith.constant 0 : i32
    %c0_i32_1 = arith.constant 0 : i32
    return %c0_i32, %c0_i32_0 : i32, i32
  }
  func.func @transform_7(%arg0: i32) -> (i32, i32) {
    %c0_i32 = arith.constant 0 : i32
    %c0_i32_0 = arith.constant 0 : i32
    return %arg0, %c0_i32 : i32, i32
  }
}

</mosaic_0001>

<bundles_post_ra>
// kernel: evoblock_apply.17
= control target key start
LH: loop header
LB: loop body
LE: loop exit
PB: predicated region body
PF: predicated region fallthrough
CT: control target
= control target key end

     0   :  { %vm51_vm0 = vcmask 261120   ;;  %v803_v62 = vmov 0   ;;  %vm411_vm1 = vcmask 519168   ;;  %s1117_s0 = inlined_call_operand.vmem [shape: f32[64,32], index: 0, kind: input, shape index: {}]   ;;  %s1118_s3 = inlined_call_operand.vmem [shape: f32[32,32], index: 3, kind: input, shape index: {}]   ;;  %s1119_s5 = inlined_call_operand.vmem [shape: f32[32,32], index: 5, kind: input, shape index: {}]   ;;  %s1120_s4 = inlined_call_operand.vmem [shape: f32[32,1], index: 4, kind: input, shape index: {}]   ;;  %s1121_s6 = inlined_call_operand.vmem [shape: f32[32,1], index: 6, kind: input, shape index: {}]   ;;  %s1122_s8 = inlined_call_operand.vmem [shape: f32[32,1], index: 8, kind: input, shape index: {}]   ;;  %s1123_s10 = inlined_call_operand.vmem [shape: f32[32,1], index: 10, kind: input, shape index: {}]   ;;  %s1124_s1 = inlined_call_operand.vmem [shape: f32[1,32], index: 1, kind: input, shape index: {}]   ;;  %s1125_s2 = inlined_call_operand.vmem [shape: f32[1,32], index: 2, kind: input, shape index: {}]   ;;  %s1126_s7 = inlined_call_operand.vmem [shape: f32[32,32], index: 7, kind: input, shape index: {}]   ;;  %s1127_s9 = inlined_call_operand.vmem [shape: f32[32,32], index: 9, kind: input, shape index: {}]   ;;  %s1128_s11 = inlined_call_operand.vmem [shape: bf16[32,64], index: 11, kind: output, shape index: {0}]   ;;  %s1129_s12 = inlined_call_operand.vmem [shape: bf16[32,64], index: 12, kind: output, shape index: {1}]  }
   0x1   :  { %v41_v0 = vld [vmem:[%s1117_s0] sm:$0xff]  ;;  %v43_v1 = vld [vmem:[%s1117_s0 + $0x10] sm:$0xff]  ;;  %v42_v2 = vld [vmem:[%s1117_s0 + $0x8] sm:$0xff]  ;;  %754 = vset.pattern.permute.xlu1 %v803_v62  ;;  %753 = vset.pattern.permute.xlu0 %v803_v62 }
   0x2   :  { %v52_v3 = vsel %vm51_vm0, %v41_v0, 0.0  ;;  %v58_v4 = vsel %vm51_vm0, %v43_v1, 0.0  ;;  %v44_v5 = vld [vmem:[%s1117_s0 + $0x18] sm:$0xff]  ;;  %v55_v6 = vsel %vm51_vm0, %v42_v2, 0.0  ;;  %v45_v8 = vld [vmem:[%s1117_s0 + $0x20] sm:$0xff]  ;;  %v46_v9 = vld [vmem:[%s1117_s0 + $0x28] sm:$0xff] }
   0x3   :  { %53 = vadd.xlane.f32.xlu0 %v52_v3  ;;  %59 = vadd.xlane.f32.xlu1 %v58_v4  ;;  %v61_v7 = vsel %vm51_vm0, %v44_v5, 0.0  ;;  %v64_v10 = vsel %vm51_vm0, %v45_v8, 0.0  ;;  %v67_v11 = vsel %vm51_vm0, %v46_v9, 0.0  ;;  %v47_v12 = vld [vmem:[%s1117_s0 + $0x30] sm:$0xff]  ;;  %v48_v13 = vld [vmem:[%s1117_s0 + $0x38] sm:$0xff]  ;;  %v189_v56 = vld [vmem:[%s1118_s3] sm:$0xff] }
   0x4   :  { %v70_v14 = vsel %vm51_vm0, %v47_v12, 0.0  ;;  %v73_v15 = vsel %vm51_vm0, %v48_v13, 0.0  ;;  %v190_v57 = vld [vmem:[%s1118_s3 + $0x8] sm:$0xff]  ;;  %v306_v59 = vld [vmem:[%s1119_s5] sm:$0xff]  ;;  %v198_v3 = vld [vmem:[%s1120_s4 + $0x18] sm:$0xff] }
   0x5   :  { %v193_v58 = vpack.c.bf16 %v190_v57, %v189_v56  ;;  %v307_v60 = vld [vmem:[%s1119_s5 + $0x8] sm:$0xff]  ;;  %v315_v4 = vld [vmem:[%s1121_s6 + $0x18] sm:$0xff] }
   0x6   :  { %v310_v61 = vpack.c.bf16 %v307_v60, %v306_v59  ;;  %v196_v63 = vld [vmem:[%s1120_s4 + $0x8] sm:$0xff] }
   0x7   :  { %56 = vadd.xlane.f32.xlu0 %v55_v6  ;;  %62 = vadd.xlane.f32.xlu1 %v61_v7  ;;  %v528_v6 = vld [vmem:[%s1123_s10 + $0x8] sm:$0xff] }
   0x8   :  { %696 = vmatprep.mubr.msk.bf16.mxu0 %vm51_vm0, %v193_v58  ;;  %708 = vmatprep.mubr.msk.bf16.mxu1 %vm51_vm0, %v310_v61  ;;  %v423_v7 = vld [vmem:[%s1122_s8 + $0x8] sm:$0xff] }
   0xb   :  { %65 = vadd.xlane.f32.xlu0 %v64_v10  ;;  %68 = vadd.xlane.f32.xlu1 %v67_v11  ;;  %v425_v10 = vld [vmem:[%s1122_s8 + $0x18] sm:$0xff]  ;;  %v312_v11 = vld [vmem:[%s1121_s6] sm:$0xff] }
   0xf   :  { %71 = vadd.xlane.f32.xlu0 %v70_v14  ;;  %74 = vadd.xlane.f32.xlu1 %v73_v15 }
  0x90   :  { %v54_v16 = vpop.xlane.xlu0 %53  ;;  %v60_v17 = vpop.xlane.xlu1 %59 }
  0x91   :  { %v77_v18 = vmul.f32 0.03125, %v54_v16  ;;  %v79_v19 = vmul.f32 0.03125, %v60_v17  ;;  %v529_v17 = vld [vmem:[%s1123_s10 + $0x10] sm:$0xff] }
  0x93   :  { %v901_v20 = vsub.f32 %v41_v0, %v77_v18  ;;  %v903_v21 = vsub.f32 %v43_v1, %v79_v19  ;;  %v197_v0 = vld [vmem:[%s1120_s4 + $0x10] sm:$0xff]  ;;  %v195_v1 = vld [vmem:[%s1120_s4] sm:$0xff] }
  0x94   :  { %v57_v22 = vpop.xlane.xlu0 %56  ;;  %v63_v23 = vpop.xlane.xlu1 %62 }
  0x95   :  { %v78_v24 = vmul.f32 0.03125, %v57_v22  ;;  %v80_v25 = vmul.f32 0.03125, %v63_v23  ;;  %v93_v26 = vmul.f32 %v901_v20, %v901_v20  ;;  %v95_v27 = vmul.f32 %v903_v21, %v903_v21 }
  0x97   :  { %v909_v28 = vsub.f32 %v42_v2, %v78_v24  ;;  %v911_v29 = vsub.f32 %v44_v5, %v80_v25  ;;  %v101_v30 = vsel %vm51_vm0, %v93_v26, 0.0  ;;  %v107_v33 = vsel %vm51_vm0, %v95_v27, 0.0  ;;  %v313_v2 = vld [vmem:[%s1121_s6 + $0x8] sm:$0xff]  ;;  %v422_v5 = vld [vmem:[%s1122_s8] sm:$0xff] }
  0x98   :  { %102 = vadd.xlane.f32.xlu0 %v101_v30  ;;  %v66_v31 = vpop.xlane.xlu0 %65  ;;  %v69_v32 = vpop.xlane.xlu1 %68 }
  0x99   :  { %v81_v34 = vmul.f32 0.03125, %v66_v31  ;;  %v82_v35 = vmul.f32 0.03125, %v69_v32  ;;  %v94_v36 = vmul.f32 %v909_v28, %v909_v28  ;;  %v96_v37 = vmul.f32 %v911_v29, %v911_v29 }
  0x9b   :  { %v919_v38 = vsub.f32 %v45_v8, %v81_v34  ;;  %v921_v39 = vsub.f32 %v46_v9, %v82_v35  ;;  %v104_v40 = vsel %vm51_vm0, %v94_v36, 0.0  ;;  %v110_v43 = vsel %vm51_vm0, %v96_v37, 0.0  ;;  %v530_v8 = vld [vmem:[%s1123_s10 + $0x18] sm:$0xff]  ;;  %v424_v9 = vld [vmem:[%s1122_s8 + $0x10] sm:$0xff] }
  0x9c   :  { %108 = vadd.xlane.f32.xlu0 %v107_v33  ;;  %105 = vadd.xlane.f32.xlu1 %v104_v40  ;;  %v72_v41 = vpop.xlane.xlu0 %71  ;;  %v75_v42 = vpop.xlane.xlu1 %74 }
  0x9d   :  { %v83_v44 = vmul.f32 0.03125, %v72_v41  ;;  %v84_v45 = vmul.f32 0.03125, %v75_v42  ;;  %v97_v46 = vmul.f32 %v919_v38, %v919_v38  ;;  %v98_v47 = vmul.f32 %v921_v39, %v921_v39 }
  0x9f   :  { %v929_v48 = vsub.f32 %v47_v12, %v83_v44  ;;  %v931_v49 = vsub.f32 %v48_v13, %v84_v45  ;;  %v113_v50 = vsel %vm51_vm0, %v97_v46, 0.0  ;;  %v116_v51 = vsel %vm51_vm0, %v98_v47, 0.0  ;;  %v314_v12 = vld [vmem:[%s1121_s6 + $0x10] sm:$0xff]  ;;  %v527_v13 = vld [vmem:[%s1123_s10] sm:$0xff] }
  0xa0   :  { %111 = vadd.xlane.f32.xlu1 %v110_v43  ;;  %114 = vadd.xlane.f32.xlu0 %v113_v50  ;;  %v638_v45 = vld [vmem:[%s1124_s1] ss:$0 sm:$0xff] }
  0xa1   :  { %v99_v52 = vmul.f32 %v929_v48, %v929_v48  ;;  %v100_v53 = vmul.f32 %v931_v49, %v931_v49 }
  0xa3   :  { %v119_v54 = vsel %vm51_vm0, %v99_v52, 0.0  ;;  %v122_v55 = vsel %vm51_vm0, %v100_v53, 0.0 }
  0xa4   :  { %117 = vadd.xlane.f32.xlu1 %v116_v51  ;;  %120 = vadd.xlane.f32.xlu0 %v119_v54 }
  0xa8   :  { %123 = vadd.xlane.f32.xlu1 %v122_v55 }
  0xb9   :  { %206 = vperm.xlu1 %754, %v196_v63  }
  0xba   :  { %201 = vperm.xlu0 %753, %v195_v1  }
  0xbd   :  { %211 = vperm.xlu1 %754, %v197_v0  }
  0xbe   :  { %323 = vperm.xlu0 %753, %v313_v2  }
  0xc1   :  { %216 = vperm.xlu1 %754, %v198_v3  }
  0xc2   :  { %333 = vperm.xlu0 %753, %v315_v4  }
  0xc5   :  { %428 = vperm.xlu1 %754, %v422_v5  }
  0xc6   :  { %538 = vperm.xlu0 %753, %v528_v6  }
  0xc9   :  { %433 = vperm.xlu1 %754, %v423_v7  }
  0xca   :  { %548 = vperm.xlu0 %753, %v530_v8  }
  0xcd   :  { %438 = vperm.xlu1 %754, %v424_v9  }
  0xd1   :  { %443 = vperm.xlu1 %754, %v425_v10  }
  0xd5   :  { %318 = vperm.xlu1 %754, %v312_v11  }
  0xd9   :  { %328 = vperm.xlu1 %754, %v314_v12  }
  0xdd   :  { %533 = vperm.xlu1 %754, %v527_v13  }
  0xe1   :  { %543 = vperm.xlu1 %754, %v529_v17   ;;  %v191_v17 = vld [vmem:[%s1118_s3 + $0x10] sm:$0xff] }
 0x125   :  { %v103_v14 = vpop.xlane.xlu0 %102 }
 0x126   :  { %v125_v15 = vmul.f32 0.03125, %v103_v14 }
 0x128   :  { %v133_v16 = vadd.f32 1e-05, %v125_v15 }
 0x129   :  { %v106_v18 = vpop.xlane.xlu1 %105  ;;  %v109_v19 = vpop.xlane.xlu0 %108 }
 0x12a   :  { %755 = vrsqrt.f32 %v133_v16  ;;  %v126_v22 = vmul.f32 0.03125, %v106_v18  ;;  %v127_v23 = vmul.f32 0.03125, %v109_v19  ;;  %v192_v18 = vld [vmem:[%s1118_s3 + $0x18] sm:$0xff]  ;;  %v308_v19 = vld [vmem:[%s1119_s5 + $0x10] sm:$0xff] }
 0x12c   :  { %v134_v24 = vadd.f32 1e-05, %v126_v22  ;;  %v135_v25 = vadd.f32 1e-05, %v127_v23  ;;  %v309_v22 = vld [vmem:[%s1119_s5 + $0x18] sm:$0xff]  ;;  %v416_v23 = vld [vmem:[%s1126_s7] sm:$0xff] }
 0x12d   :  { %v112_v26 = vpop.xlane.xlu1 %111  ;;  %v115_v27 = vpop.xlane.xlu0 %114 }
 0x12e   :  { %757 = vrsqrt.f32 %v134_v24  ;;  %v128_v30 = vmul.f32 0.03125, %v112_v26  ;;  %v129_v31 = vmul.f32 0.03125, %v115_v27  ;;  %v194_v24 = vpack.c.bf16 %v192_v18, %v191_v17  ;;  %v417_v26 = vld [vmem:[%s1126_s7 + $0x8] sm:$0xff]  ;;  %v521_v27 = vld [vmem:[%s1127_s9] sm:$0xff] }
 0x12f   :  { %759 = vrsqrt.f32 %v135_v25  ;;  %v311_v25 = vpack.c.bf16 %v309_v22, %v308_v19 }
 0x130   :  { %v136_v32 = vadd.f32 1e-05, %v128_v30  ;;  %v137_v33 = vadd.f32 1e-05, %v129_v31  ;;  %v522_v30 = vld [vmem:[%s1127_s9 + $0x8] sm:$0xff]  ;;  %v420_v31 = vpack.c.bf16 %v417_v26, %v416_v23 }
 0x131   :  { %v118_v34 = vpop.xlane.xlu1 %117  ;;  %v121_v35 = vpop.xlane.xlu0 %120 }
 0x132   :  { %761 = vrsqrt.f32 %v136_v32  ;;  %v130_v36 = vmul.f32 0.03125, %v118_v34  ;;  %v131_v37 = vmul.f32 0.03125, %v121_v35  ;;  %v525_v32 = vpack.c.bf16 %v522_v30, %v521_v27  ;;  %v419_v34 = vld [vmem:[%s1126_s7 + $0x18] sm:$0xff]  ;;  %v523_v35 = vld [vmem:[%s1127_s9 + $0x10] sm:$0xff] }
 0x133   :  { %763 = vrsqrt.f32 %v137_v33  ;;  %v418_v33 = vld [vmem:[%s1126_s7 + $0x10] sm:$0xff] }
 0x134   :  { %v756_v40 = vpop.eup %755  ;;  %v138_v41 = vadd.f32 1e-05, %v130_v36  ;;  %v139_v43 = vadd.f32 1e-05, %v131_v37  ;;  %v524_v36 = vld [vmem:[%s1127_s9 + $0x18] sm:$0xff]  ;;  %v421_v37 = vpack.c.bf16 %v419_v34, %v418_v33 }
 0x135   :  { %v149_v42 = vmul.f32 %v756_v40, %v901_v20  ;;  %v124_v44 = vpop.xlane.xlu1 %123  ;;  %v639_v20 = vld [vmem:[%s1125_s2] ss:$0 sm:$0xff]  ;;  %v526_v40 = vpack.c.bf16 %v524_v36, %v523_v35 }
 0x136   :  { %765 = vrsqrt.f32 %v138_v41  ;;  %v132_v46 = vmul.f32 0.03125, %v124_v44 }
 0x137   :  { %v163_v52 = vmul.f32 %v638_v45, %v149_v42  ;;  %767 = vrsqrt.f32 %v139_v43 }
 0x138   :  { %v758_v47 = vpop.eup %757  ;;  %v140_v50 = vadd.f32 1e-05, %v132_v46 }
 0x139   :  { %v760_v51 = vpop.eup %759  ;;  %v150_v53 = vmul.f32 %v758_v47, %v909_v28  ;;  %v177_v60 = vadd.f32 %v639_v20, %v163_v52  ;;  %v207_v41 = vpop.permute.xlu1 %206 }
 0x13a   :  { %v151_v54 = vmul.f32 %v760_v51, %v903_v21  ;;  %769 = vrsqrt.f32 %v140_v50 }
 0x13b   :  { %v164_v55 = vmul.f32 %v638_v45, %v150_v53 }
 0x13c   :  { %v762_v56 = vpop.eup %761  ;;  %v165_v58 = vmul.f32 %v638_v45, %v151_v54 }
 0x13d   :  { %v764_v57 = vpop.eup %763  ;;  %v152_v59 = vmul.f32 %v762_v56, %v911_v29  ;;  %v178_v61 = vadd.f32 %v639_v20, %v164_v55  ;;  %v212_v42 = vpop.permute.xlu1 %211 }
 0x13e   :  { %v153_v63 = vmul.f32 %v764_v57, %v919_v38  ;;  %v179_v2 = vadd.f32 %v639_v20, %v165_v58 }
 0x13f   :  { %v166_v62 = vmul.f32 %v638_v45, %v152_v59  ;;  %v185_v28 = vpack.c.bf16 %v178_v61, %v177_v60 }
 0x140   :  { %v766_v0 = vpop.eup %765  ;;  %v167_v4 = vmul.f32 %v638_v45, %v153_v63 }
 0x141   :  { %v154_v21 = vmul.f32 %v766_v0, %v921_v39  ;;  %736 = vmatprep.subr.msk.bf16.mxu0 %vm51_vm0, %v185_v28  ;;  %740 = vmatprep.subr.msk.bf16.mxu1 %vm51_vm0, %v185_v28  ;;  %v226_v1 = vsel %vm51_vm0, %v185_v28, 0  ;;  %v180_v3 = vadd.f32 %v639_v20, %v166_v62  ;;  %v768_v29 = vpop.eup %767  ;;  %v217_v43 = vpop.permute.xlu1 %216 }
 0x142   :  { %689 = vmatpush3.bf16.xpose.msra.mxu0 %v226_v1  ;;  %701 = vmatpush3.bf16.xpose.msra.mxu1 %v226_v1  ;;  %v155_v8 = vmul.f32 %v768_v29, %v929_v48  ;;  %v181_v9 = vadd.f32 %v639_v20, %v167_v4 }
 0x143   :  { %v168_v5 = vmul.f32 %v638_v45, %v154_v21  ;;  %v186_v6 = vpack.c.bf16 %v180_v3, %v179_v2 }
 0x144   :  { %v770_v7 = vpop.eup %769  ;;  %v169_v13 = vmul.f32 %v638_v45, %v155_v8 }
 0x145   :  { %v156_v38 = vmul.f32 %v770_v7, %v931_v49  ;;  %737 = vmatprep.subr.msk.bf16.mxu0 %vm51_vm0, %v186_v6  ;;  %741 = vmatprep.subr.msk.bf16.mxu1 %vm51_vm0, %v186_v6  ;;  %v182_v39 = vadd.f32 %v639_v20, %v168_v5  ;;  %v229_v11 = vsel %vm51_vm0, %v186_v6, 0  ;;  %v1079_v44 = vpop.permute.xlu1 %428 }
 0x146   :  { %v183_v14 = vadd.f32 %v639_v20, %v169_v13 }
 0x147   :  { %v170_v10 = vmul.f32 %v638_v45, %v156_v38  ;;  %v187_v12 = vpack.c.bf16 %v182_v39, %v181_v9  ;;  %v202_v45 = vpop.permute.xlu0 %201 }
 0x149   :  { %v184_v49 = vadd.f32 %v639_v20, %v170_v10  ;;  %v232_v15 = vsel %vm51_vm0, %v187_v12, 0  ;;  %v1081_v59 = vpop.permute.xlu1 %433 }
 0x14a   :  { %691 = vmatpush3.bf16.xpose.msra.mxu0 %v229_v11  ;;  %703 = vmatpush3.bf16.xpose.msra.mxu1 %v229_v11 }
 0x14b   :  { %738 = vmatprep.subr.msk.bf16.mxu0 %vm51_vm0, %v187_v12  ;;  %742 = vmatprep.subr.msk.bf16.mxu1 %vm51_vm0, %v187_v12  ;;  %v188_v16 = vpack.c.bf16 %v184_v49, %v183_v14  ;;  %v324_v10 = vpop.permute.xlu0 %323 }
 0x14d   :  { %v235_v48 = vsel %vm51_vm0, %v188_v16, 0  ;;  %v439_v2 = vpop.permute.xlu1 %438 }
 0x151   :  { %v444_v3 = vpop.permute.xlu1 %443 }
 0x152   :  { %693 = vmatpush3.bf16.xpose.msra.mxu0 %v232_v15  ;;  %705 = vmatpush3.bf16.xpose.msra.mxu1 %v232_v15 }
 0x153   :  { %739 = vmatprep.subr.msk.bf16.mxu0 %vm51_vm0, %v188_v16  ;;  %743 = vmatprep.subr.msk.bf16.mxu1 %vm51_vm0, %v188_v16 }
 0x155   :  { %v319_v9 = vpop.permute.xlu1 %318 }
 0x15a   :  { %695 = vmatpush3.bf16.xpose.msra.mxu0 %v235_v48  ;;  %707 = vmatpush3.bf16.xpose.msra.mxu1 %v235_v48 }
 0x15b   :  { %744 = vmatprep.subr.msk.bf16.mxu0 %vm51_vm0, %v185_v28  ;;  %748 = vmatprep.subr.msk.bf16.mxu1 %vm51_vm0, %v185_v28 }
 0x161   :  { %697 = vmatmul.mubr.msk.bf16.vlgmr.msra.gmra.mrb[0].mxu0 %vm51_vm0, %v194_v24  ;;  %709 = vmatmul.mubr.msk.bf16.vlgmr.msra.gmra.mrb[0].mxu1 %vm51_vm0, %v311_v25 }
 0x162   :  { %713 = vmatpush3.bf16.xpose.msra.mxu0 %v226_v1  ;;  %725 = vmatpush3.bf16.xpose.msra.mxu1 %v226_v1 }
 0x163   :  { %745 = vmatprep.subr.msk.bf16.mxu0 %vm51_vm0, %v186_v6  ;;  %749 = vmatprep.subr.msk.bf16.mxu1 %vm51_vm0, %v186_v6 }
 0x164   :  { %720 = vmatprep.mubr.msk.bf16.mxu0 %vm51_vm0, %v420_v31  ;;  %732 = vmatprep.mubr.msk.bf16.mxu1 %vm51_vm0, %v525_v32 }
 0x16a   :  { %715 = vmatpush3.bf16.xpose.msra.mxu0 %v229_v11  ;;  %727 = vmatpush3.bf16.xpose.msra.mxu1 %v229_v11  ;;  %v329_v11 = vpop.permute.xlu1 %328 }
 0x16b   :  { %746 = vmatprep.subr.msk.bf16.mxu0 %vm51_vm0, %v187_v12  ;;  %750 = vmatprep.subr.msk.bf16.mxu1 %vm51_vm0, %v187_v12  ;;  %v334_v12 = vpop.permute.xlu0 %333 }
 0x172   :  { %717 = vmatpush3.bf16.xpose.msra.mxu0 %v232_v15  ;;  %729 = vmatpush3.bf16.xpose.msra.mxu1 %v232_v15 }
 0x173   :  { %747 = vmatprep.subr.msk.bf16.mxu0 %vm51_vm0, %v188_v16  ;;  %751 = vmatprep.subr.msk.bf16.mxu1 %vm51_vm0, %v188_v16 }
 0x17a   :  { %719 = vmatpush3.bf16.xpose.msra.mxu0 %v235_v48  ;;  %731 = vmatpush3.bf16.xpose.msra.mxu1 %v235_v48 }
 0x181   :  { %721 = vmatmul.mubr.msk.bf16.vlgmr.msra.gmra.mrb[4].mxu0 %vm51_vm0, %v421_v37  ;;  %733 = vmatmul.mubr.msk.bf16.vlgmr.msra.gmra.mrb[4].mxu1 %vm51_vm0, %v526_v40 }
 0x234   :  { %v698_v46 = vpop.f32.mrb[0].mxu0  ;;  %v710_v47 = vpop.f32.mrb[0].mxu1 }
 0x235   :  { %v280_v50 = vadd.f32 %v698_v46, %v212_v42  ;;  %v271_v51 = vpop.f32.mrb[1].mxu0  ;;  %v376_v52 = vpop.f32.mrb[1].mxu1  ;;  %v385_v13 = vadd.f32 %v710_v47, %v329_v11 }
 0x236   :  { %v272_v53 = vadd.f32 %v271_v51, %v202_v45  ;;  %v699_v54 = vpop.f32.mrb[2].mxu0  ;;  %v711_v20 = vpop.f32.mrb[2].mxu1  ;;  %v377_v15 = vadd.f32 %v376_v52, %v319_v9 }
 0x237   :  { %v288_v55 = vsub.f32 0.0, %v280_v50  ;;  %v283_v56 = vadd.f32 %v699_v54, %v217_v43  ;;  %v274_v57 = vpop.f32.mrb[3].mxu0  ;;  %v379_v58 = vpop.f32.mrb[3].mxu1  ;;  %v388_v49 = vadd.f32 %v711_v20, %v334_v12 }
 0x238   :  { %v286_v60 = vsub.f32 0.0, %v272_v53  ;;  %v275_v61 = vadd.f32 %v274_v57, %v207_v41  ;;  %v380_v19 = vadd.f32 %v379_v58, %v324_v10 }
 0x239   :  { %v294_v62 = vmul.f32 1.442695, %v288_v55  ;;  %v289_v63 = vsub.f32 0.0, %v283_v56 }
 0x23a   :  { %v290_v28 = vmul.f32 1.442695, %v286_v60  ;;  %v287_v0 = vsub.f32 0.0, %v275_v61 }
 0x23b   :  { %771 = vpow2.f32 %v294_v62  ;;  %v296_v21 = vmul.f32 1.442695, %v289_v63  ;;  %v534_v62 = vpop.permute.xlu1 %533  ;;  %v539_v63 = vpop.permute.xlu0 %538 }
 0x23c   :  { %773 = vpow2.f32 %v290_v28  ;;  %v292_v1 = vmul.f32 1.442695, %v287_v0 }
 0x23d   :  { %775 = vpow2.f32 %v296_v21 }
 0x23e   :  { %777 = vpow2.f32 %v292_v1 }
 0x23f   :  { %v544_v28 = vpop.permute.xlu1 %543  ;;  %v549_v0 = vpop.permute.xlu0 %548 }
 0x245   :  { %v772_v29 = vpop.eup %771 }
 0x246   :  { %v774_v4 = vpop.eup %773  ;;  %v300_v5 = vadd.f32 1.0, %v772_v29 }
 0x247   :  { %v776_v6 = vpop.eup %775  ;;  %v298_v7 = vadd.f32 1.0, %v774_v4 }
 0x248   :  { %v778_v38 = vpop.eup %777  ;;  %779 = vrcp.f32 %v300_v5  ;;  %v301_v39 = vadd.f32 1.0, %v776_v6 }
 0x249   :  { %781 = vrcp.f32 %v298_v7  ;;  %v299_v8 = vadd.f32 1.0, %v778_v38 }
 0x24a   :  { %783 = vrcp.f32 %v301_v39 }
 0x24b   :  { %785 = vrcp.f32 %v299_v8 }
 0x252   :  { %v780_v14 = vpop.eup %779 }
 0x253   :  { %v782_v16 = vpop.eup %781  ;;  %v393_v48 = vmul.f32 %v780_v14, %v385_v13 }
 0x254   :  { %v784_v17 = vpop.eup %783  ;;  %v391_v18 = vmul.f32 %v782_v16, %v377_v15  ;;  %v722_v22 = vpop.f32.mrb[4].mxu0 }
 0x255   :  { %v734_v23 = vpop.f32.mrb[4].mxu1  ;;  %v786_v24 = vpop.eup %785  ;;  %v658_v25 = vpack.c.bf16 %v393_v48, %v393_v48  ;;  %v394_v26 = vmul.f32 %v784_v17, %v388_v49  ;;  %v495_v27 = vadd.f32 %v722_v22, %v439_v2 }
 0x256   :  { %v486_v30 = vpop.f32.mrb[5].mxu0  ;;  %v591_v31 = vpop.f32.mrb[5].mxu1  ;;  %v656_v32 = vpack.c.bf16 %v391_v18, %v391_v18  ;;  %v392_v33 = vmul.f32 %v786_v24, %v380_v19  ;;  %v600_v21 = vadd.f32 %v734_v23, %v544_v28 }
 0x257   :  { %v487_v34 = vadd.f32 %v486_v30, %v1079_v44  ;;  %v723_v35 = vpop.f32.mrb[6].mxu0  ;;  %v735_v36 = vpop.f32.mrb[6].mxu1  ;;  %414 = vst.msk [vmem:[%s1128_s11 + $0x8] sm:$0xf] %vm411_vm1, %v658_v25  ;;  %v659_v37 = vpack.c.bf16 %v394_v26, %v394_v26  ;;  %v503_v40 = vsub.f32 0.0, %v495_v27  ;;  %v592_v2 = vadd.f32 %v591_v31, %v534_v62 }
 0x258   :  { %v498_v41 = vadd.f32 %v723_v35, %v444_v3  ;;  %v489_v42 = vpop.f32.mrb[7].mxu0  ;;  %v594_v43 = vpop.f32.mrb[7].mxu1  ;;  %412 = vst.msk [vmem:[%s1128_s11] sm:$0xf] %vm411_vm1, %v656_v32  ;;  %v657_v45 = vpack.c.bf16 %v392_v33, %v392_v33  ;;  %v603_v4 = vadd.f32 %v735_v36, %v549_v0 }
 0x259   :  { %v501_v46 = vsub.f32 0.0, %v487_v34  ;;  %v490_v44 = vadd.f32 %v489_v42, %v1081_v59  ;;  %415 = vst.msk [vmem:[%s1128_s11 + $0xc] sm:$0xf] %vm411_vm1, %v659_v37  ;;  %v509_v47 = vmul.f32 1.442695, %v503_v40  ;;  %v595_v7 = vadd.f32 %v594_v43, %v539_v63 }
 0x25a   :  { %v504_v50 = vsub.f32 0.0, %v498_v41  ;;  %413 = vst.msk [vmem:[%s1128_s11 + $0x4] sm:$0xf] %vm411_vm1, %v657_v45 }
 0x25b   :  { %v505_v51 = vmul.f32 1.442695, %v501_v46  ;;  %v502_v52 = vsub.f32 0.0, %v490_v44  ;;  %787 = vpow2.f32 %v509_v47 }
 0x25c   :  { %v511_v53 = vmul.f32 1.442695, %v504_v50 }
 0x25d   :  { %789 = vpow2.f32 %v505_v51  ;;  %v507_v54 = vmul.f32 1.442695, %v502_v52 }
 0x25e   :  { %791 = vpow2.f32 %v511_v53 }
 0x25f   :  { %793 = vpow2.f32 %v507_v54 }
 0x265   :  { %v788_v20 = vpop.eup %787 }
 0x266   :  { %v515_v56 = vadd.f32 1.0, %v788_v20 }
 0x267   :  { %v790_v55 = vpop.eup %789 }
 0x268   :  { %v792_v57 = vpop.eup %791  ;;  %v513_v58 = vadd.f32 1.0, %v790_v55  ;;  %795 = vrcp.f32 %v515_v56 }
 0x269   :  { %v794_v59 = vpop.eup %793  ;;  %v516_v60 = vadd.f32 1.0, %v792_v57 }
 0x26a   :  { %797 = vrcp.f32 %v513_v58  ;;  %v514_v61 = vadd.f32 1.0, %v794_v59 }
 0x26b   :  { %799 = vrcp.f32 %v516_v60 }
 0x26c   :  { %801 = vrcp.f32 %v514_v61 }
 0x272   :  { %v796_v1 = vpop.eup %795 }
 0x273   :  { %v608_v29 = vmul.f32 %v796_v1, %v600_v21 }
 0x274   :  { %v798_v3 = vpop.eup %797 }
 0x275   :  { %v800_v5 = vpop.eup %799  ;;  %v606_v6 = vmul.f32 %v798_v3, %v592_v2  ;;  %v662_v39 = vpack.c.bf16 %v608_v29, %v608_v29 }
 0x276   :  { %v802_v38 = vpop.eup %801  ;;  %v609_v8 = vmul.f32 %v800_v5, %v603_v4 }
 0x277   :  { %v660_v9 = vpack.c.bf16 %v606_v6, %v606_v6  ;;  %v607_v10 = vmul.f32 %v802_v38, %v595_v7  ;;  %628 = vst.msk [vmem:[%s1129_s12 + $0x8] sm:$0xf] %vm411_vm1, %v662_v39 }
 0x278   :  { %v663_v11 = vpack.c.bf16 %v609_v8, %v609_v8 }
 0x279   :  { %626 = vst.msk [vmem:[%s1129_s12] sm:$0xf] %vm411_vm1, %v660_v9  ;;  %v661_v12 = vpack.c.bf16 %v607_v10, %v607_v10 }
 0x27a   :  { %629 = vst.msk [vmem:[%s1129_s12 + $0xc] sm:$0xf] %vm411_vm1, %v663_v11 }
 0x27b   :  { %627 = vst.msk [vmem:[%s1129_s12 + $0x4] sm:$0xf] %vm411_vm1, %v661_v12 }

// kernel: evoblock_apply.16
= control target key start
LH: loop header
LB: loop body
LE: loop exit
PB: predicated region body
PF: predicated region fallthrough
CT: control target
= control target key end

     0   :  { %s3220_s30 = smov 0   ;;  %s3222_s10 = smov 0   ;;  %s4071_s0 = inlined_call_operand.vmem [shape: f32[4,8,32], index: 0, kind: input, shape index: {}, may-alias: {0,1}]   ;;  %s4072_s1 = inlined_call_operand.vmem [shape: f32[4,8,32], index: 1, kind: input, shape index: {}, may-alias: {0,1}]   ;;  %s4073_s2 = inlined_call_operand.vmem [shape: f32[8,8,32], index: 2, kind: input, shape index: {}]   ;;  %s4074_s3 = inlined_call_operand.vmem [shape: f32[1,32], index: 3, kind: input, shape index: {}]   ;;  %s4075_s4 = inlined_call_operand.vmem [shape: f32[1,32], index: 4, kind: input, shape index: {}]   ;;  %s4076_s5 = inlined_call_operand.vmem [shape: f32[32,4], index: 5, kind: input, shape index: {}]   ;;  %s4077_s6 = inlined_call_operand.vmem [shape: f32[32,4], index: 6, kind: input, shape index: {}]   ;;  %s4078_s7 = inlined_call_operand.vmem [shape: f32[4,4,32], index: 7, kind: input, shape index: {}]   ;;  %s4079_s8 = inlined_call_operand.vmem [shape: f32[1,32], index: 8, kind: input, shape index: {}]   ;;  %s4080_s9 = inlined_call_operand.vmem [shape: f32[8,8,32], index: 9, kind: output, shape index: {}]  }
   0x1   :  { %s3224_s11 = smov 0  }
   0x2 LB: > { %s31_s12 = sadd.s32 1, %s3158_s10  ;;  %p2907_p0 = scmp.ge.s32.totalorder %s3162_s11, 1  ;;  %s3162_s11 = sphi %s3224_s11, %s19_s11   ;;  %s3158_s10 = sphi %s3222_s10, %s4105_s10   ;;  %s3154_s30 = sphi %s3220_s30, %s4104_s30  }
   0x3   : > { %p32_p1 = scmp.ge.s32.totalorder %s31_s12, 2  ;;  %p346_p2 = scmp.lt.s32.totalorder %s3162_s11, 3 }
   0x5   : > { %s4107_s12 = smov (%p32_p1, %s31_s12), 0  ;;  %p347_p3 = pnand %p2907_p0, %p346_p2 }
   0x7   : > { %350 = sbr.rel (%p347_p3) target bundleno = 1395 (0x573), region = 56 }
   0xe   : > { %s2908_s13 = sshll.u32 %s3154_s30, 1  ;;  %p2912_p5 = scmp.ne.s32.totalorder %s3154_s30, 0 }
   0xf   : > { %p405_p4 = scmp.lt.s32.totalorder %s2908_s13, 3  ;;  %v445_v0 = vld [vmem:[%s4073_s2] sm:$0xff] (!%p2912_p5)  ;;  %vm468_vm0 = vcmask (!%p2912_p5), 261120   ;;  %v446_v2 = vld [vmem:[%s4073_s2 + $0x8] sm:$0xff] (!%p2912_p5)  ;;  %v447_v5 = vld [vmem:[%s4073_s2 + $0x10] sm:$0xff] (!%p2912_p5) }
  0x10   : > { %444 = sbr.rel (%p2912_p5) target bundleno = 23 (0x17), region = 60  ;;  %v2913_v1 = vld [vmem:[%s4079_s8] ss:$0 sm:$0xff] (!%p2912_p5)  ;;  %v448_v6 = vld [vmem:[%s4073_s2 + $0x18] sm:$0xff] (!%p2912_p5)  ;;  %v450_v11 = vld [vmem:[%s4073_s2 + $0x28] sm:$0xff] (!%p2912_p5) }
  0x11   : > { %s4109_s13 = smov (!%p405_p4, %s2908_s13), 3  ;;  %v460_v3 = vadd.f32 (!%p2912_p5), %v2913_v1, %v445_v0  ;;  %v461_v4 = vadd.f32 (!%p2912_p5), %v2913_v1, %v446_v2  ;;  %v449_v7 = vld [vmem:[%s4073_s2 + $0x20] sm:$0xff] (!%p2912_p5)  ;;  %v462_v8 = vadd.f32 (!%p2912_p5), %v2913_v1, %v447_v5  ;;  %v463_v9 = vadd.f32 (!%p2912_p5), %v2913_v1, %v448_v6  ;;  %v451_v12 = vld [vmem:[%s4073_s2 + $0x30] sm:$0xff] (!%p2912_p5)  ;;  %v452_v13 = vld [vmem:[%s4073_s2 + $0x38] sm:$0xff] (!%p2912_p5) }
  0x12   : > { %s2909_s14 = sshll.u32 %s4109_s13, 3  ;;  %v464_v10 = vadd.f32 (!%p2912_p5), %v2913_v1, %v449_v7  ;;  %v465_v14 = vadd.f32 (!%p2912_p5), %v2913_v1, %v450_v11  ;;  %v466_v15 = vadd.f32 (!%p2912_p5), %v2913_v1, %v451_v12  ;;  %v467_v16 = vadd.f32 (!%p2912_p5), %v2913_v1, %v452_v13 }
  0x13   : > { %s3241_s17 = scalar_lea.vmem %s4071_s0, %s2909_s14  ;;  %s3246_s20 = scalar_lea.vmem %s4072_s1, %s2909_s14  ;;  %469 = vst.msk [vmem:[%s4080_s9] sm:$0xff] (!%p2912_p5), %vm468_vm0, %v460_v3  ;;  %470 = vst.msk [vmem:[%s4080_s9 + $0x8] sm:$0xff] (!%p2912_p5), %vm468_vm0, %v461_v4 }
  0x14   : > { %471 = vst.msk [vmem:[%s4080_s9 + $0x10] sm:$0xff] (!%p2912_p5), %vm468_vm0, %v462_v8  ;;  %472 = vst.msk [vmem:[%s4080_s9 + $0x18] sm:$0xff] (!%p2912_p5), %vm468_vm0, %v463_v9 }
  0x15   : > { %473 = vst.msk [vmem:[%s4080_s9 + $0x20] sm:$0xff] (!%p2912_p5), %vm468_vm0, %v464_v10  ;;  %474 = vst.msk [vmem:[%s4080_s9 + $0x28] sm:$0xff] (!%p2912_p5), %vm468_vm0, %v465_v14 }
  0x16   : > { %475 = vst.msk [vmem:[%s4080_s9 + $0x30] sm:$0xff] (!%p2912_p5), %vm468_vm0, %v466_v15  ;;  %476 = vst.msk [vmem:[%s4080_s9 + $0x38] sm:$0xff] (!%p2912_p5), %vm468_vm0, %v467_v16 }
  0x17 PF: > { %v477_v17 = vld [vmem:[%s3241_s17] sm:$0xff]  ;;  %vm481_vm1 = vcmask 261120   ;;  %v478_v19 = vld [vmem:[%s3241_s17 + $0x8] sm:$0xff]  ;;  %v560_v47 = vld [vmem:[%s4076_s5 + $0x10] sm:$0xff]  ;;  %v3164_v48 = vmov 0.0   ;;  %vm3165_vm2 = vmmov 0  }
  0x18   : > { %v525_v18 = vld [vmem:[%s3246_s20] sm:$0xff]  ;;  %v482_v20 = vsel %vm481_vm1, %v477_v17, 0.0  ;;  %v526_v22 = vld [vmem:[%s3246_s20 + $0x8] sm:$0xff]  ;;  %v485_v23 = vsel %vm481_vm1, %v478_v19, 0.0  ;;  %2976 = vmatprep.subr.bf16.mxu0 %v3164_v48  ;;  %2984 = vmatprep.subr.bf16.mxu1 %v3164_v48  ;;  %v561_v50 = vld [vmem:[%s4076_s5 + $0x18] sm:$0xff]  ;;  %vm691_vm3 = vcmask 1041409  }
  0x19   : > { %v527_v21 = vsel %vm481_vm1, %v525_v18, 0.0  ;;  %483 = vadd.xlane.f32.xlu0 %v482_v20  ;;  %v530_v24 = vsel %vm481_vm1, %v526_v22, 0.0  ;;  %v558_v45 = vld [vmem:[%s4076_s5] sm:$0xff]  ;;  %v559_v46 = vld [vmem:[%s4076_s5 + $0x8] sm:$0xff]  ;;  %2980 = vmatprep.mubr.msk.bf16.mxu0 %vm3165_vm2, %v3164_v48  ;;  %v563_v54 = vpack.c.bf16 %v561_v50, %v560_v47  ;;  %v611_v55 = vld [vmem:[%s4077_s6 + $0x10] sm:$0xff]  ;;  %vm735_vm4 = vcmask 1040384  }
  0x1a   : > { %528 = vadd.xlane.f32.xlu1 %v527_v21  ;;  %v562_v49 = vpack.c.bf16 %v559_v46, %v558_v45  ;;  %v609_v51 = vld [vmem:[%s4077_s6] sm:$0xff]  ;;  %v610_v52 = vld [vmem:[%s4077_s6 + $0x8] sm:$0xff]  ;;  %2988 = vmatprep.mubr.msk.bf16.mxu1 %vm3165_vm2, %v3164_v48  ;;  %v612_v56 = vld [vmem:[%s4077_s6 + $0x18] sm:$0xff]  ;;  %v3169_v45 = vmov 3   ;;  %v681_v46 = vlaneseq  ;;  %vm731_vm5 = vcmask 15360  }
  0x1b   : > { %v613_v53 = vpack.c.bf16 %v610_v52, %v609_v51  ;;  %v614_v57 = vpack.c.bf16 %v612_v56, %v611_v55  ;;  %v2914_v8 = vld [vmem:[%s4074_s3] ss:$0 sm:$0xff] }
  0x1c   : > { %2977 = vmatpush3.bf16.msra.mxu0 %v562_v49  ;;  %v2915_v13 = vld [vmem:[%s4075_s4] ss:$0 sm:$0xff]  ;;  %v682_v49 = vand.u32 127, %v681_v46  ;;  %v3380_v50 = vshrl.u32 %v681_v46, 7 }
  0x1d   : > { %486 = vadd.xlane.f32.xlu0 %v485_v23  ;;  %2978 = vmatprep.subr.bf16.mxu0 %v3164_v48 }
  0x1e   : > { %531 = vadd.xlane.f32.xlu1 %v530_v24  ;;  %2985 = vmatpush3.bf16.msra.mxu1 %v613_v53  ;;  %v685_v52 = vsub.s32 %v682_v49, %v3380_v50  ;;  %v3477_v49 = vsub.s32 3, %v3380_v50 }
  0x1f   : > { %2986 = vmatprep.subr.bf16.mxu1 %v3164_v48 }
  0x20   : > { %2979 = vmatpush3.bf16.msra.mxu0 %v563_v54 }
  0x21   : > { %2992 = vmatprep.subr.bf16.mxu0 %v3164_v48 }
  0x22   : > { %2987 = vmatpush3.bf16.msra.mxu1 %v614_v57 }
  0x23   : > { %2998 = vmatprep.subr.bf16.mxu1 %v3164_v48 }
  0xa6   : > { %v484_v25 = vpop.xlane.xlu0 %483 }
  0xa7   : > { %v529_v26 = vpop.xlane.xlu1 %528  ;;  %v489_v27 = vmul.f32 0.03125, %v484_v25 }
  0xa8   : > { %v533_v28 = vmul.f32 0.03125, %v529_v26  ;;  %v3166_v26 = vmov 1  }
  0xa9   : > { %v3315_v29 = vsub.f32 %v477_v17, %v489_v27  ;;  %3119 = vset.pattern.permute.xlu1 %v3166_v26  ;;  %v3167_v27 = vmov 0  }
  0xaa   : > { %v3317_v30 = vsub.f32 %v525_v18, %v533_v28  ;;  %v487_v31 = vpop.xlane.xlu0 %486  ;;  %3118 = vset.pattern.permute.xlu0 %v3167_v27 }
  0xab   : > { %v532_v32 = vpop.xlane.xlu1 %531  ;;  %v490_v33 = vmul.f32 0.03125, %v487_v31  ;;  %v493_v35 = vmul.f32 %v3315_v29, %v3315_v29 }
  0xac   : > { %v534_v34 = vmul.f32 0.03125, %v532_v32  ;;  %v537_v36 = vmul.f32 %v3317_v30, %v3317_v30 }
  0xad   : > { %v492_v37 = vsub.f32 %v478_v19, %v490_v33  ;;  %v495_v39 = vsel %vm481_vm1, %v493_v35, 0.0 }
  0xae   : > { %v3323_v38 = vsub.f32 %v526_v22, %v534_v34  ;;  %496 = vadd.xlane.f32.xlu0 %v495_v39  ;;  %v539_v40 = vsel %vm481_vm1, %v537_v36, 0.0 }
  0xaf   : > { %v494_v41 = vmul.f32 %v492_v37, %v492_v37 }
  0xb0   : > { %v538_v42 = vmul.f32 %v3323_v38, %v3323_v38 }
  0xb1   : > { %v498_v43 = vsel %vm481_vm1, %v494_v41, 0.0  ;;  %v3168_v41 = vmov 2  }
  0xb2   : > { %540 = vadd.xlane.f32.xlu0 %v539_v40  ;;  %499 = vadd.xlane.f32.xlu1 %v498_v43  ;;  %v542_v44 = vsel %vm481_vm1, %v538_v42, 0.0 }
  0xb6   : > { %543 = vadd.xlane.f32.xlu1 %v542_v44 }
 0x13b   : > { %v497_v58 = vpop.xlane.xlu0 %496 }
 0x13c   : > { %v501_v59 = vmul.f32 0.03125, %v497_v58 }
 0x13e   : > { %v503_v60 = vadd.f32 1e-05, %v501_v59 }
 0x13f   : > { %v500_v61 = vpop.xlane.xlu1 %499  ;;  %v541_v62 = vpop.xlane.xlu0 %540 }
 0x140   : > { %3132 = vrsqrt.f32 %v503_v60  ;;  %v502_v63 = vmul.f32 0.03125, %v500_v61  ;;  %v545_v0 = vmul.f32 0.03125, %v541_v62 }
 0x142   : > { %v504_v1 = vadd.f32 1e-05, %v502_v63  ;;  %v547_v2 = vadd.f32 1e-05, %v545_v0 }
 0x143   : > { %v544_v3 = vpop.xlane.xlu1 %543 }
 0x144   : > { %3134 = vrsqrt.f32 %v504_v1  ;;  %v546_v4 = vmul.f32 0.03125, %v544_v3 }
 0x145   : > { %3136 = vrsqrt.f32 %v547_v2 }
 0x146   : > { %v548_v5 = vadd.f32 1e-05, %v546_v4 }
 0x148   : > { %3138 = vrsqrt.f32 %v548_v5 }
 0x14a   : > { %v3133_v6 = vpop.eup %3132 }
 0x14b   : > { %v507_v7 = vmul.f32 %v3133_v6, %v3315_v29 }
 0x14d   : > { %v515_v12 = vmul.f32 %v2914_v8, %v507_v7 }
 0x14e   : > { %v3135_v9 = vpop.eup %3134 }
 0x14f   : > { %v3137_v10 = vpop.eup %3136  ;;  %v508_v11 = vmul.f32 %v3135_v9, %v492_v37  ;;  %v523_v17 = vadd.f32 %v2915_v13, %v515_v12 }
 0x150   : > { %v551_v14 = vmul.f32 %v3137_v10, %v3317_v30 }
 0x151   : > { %v516_v15 = vmul.f32 %v2914_v8, %v508_v11 }
 0x152   : > { %v3139_v16 = vpop.eup %3138  ;;  %v553_v20 = vmul.f32 %v2914_v8, %v551_v14 }
 0x153   : > { %v524_v18 = vadd.f32 %v2915_v13, %v516_v15  ;;  %v552_v19 = vmul.f32 %v3139_v16, %v3323_v38 }
 0x154   : > { %v555_v23 = vadd.f32 %v2915_v13, %v553_v20 }
 0x155   : > { %v557_v21 = vpack.c.bf16 %v524_v18, %v523_v17  ;;  %v554_v22 = vmul.f32 %v2914_v8, %v552_v19 }
 0x157   : > { %2981 = vmatmul.mubr.msk.bf16.vlgmr.msra.gmra.mrb[0].mxu0 %vm481_vm1, %v557_v21  ;;  %v556_v24 = vadd.f32 %v2915_v13, %v554_v22 }
 0x158   : > { %2994 = vmatprep.mubr.msk.bf16.mxu0 %vm3165_vm2, %v3164_v48 }
 0x159   : > { %v608_v25 = vpack.c.bf16 %v556_v24, %v555_v23 }
 0x15b   : > { %2989 = vmatmul.mubr.msk.bf16.vlgmr.msra.gmra.mrb[0].mxu1 %vm481_vm1, %v608_v25 }
 0x15c   : > { %3000 = vmatprep.mubr.msk.bf16.mxu1 %vm3165_vm2, %v3164_v48 }
 0x22a   : > { %v601_v28 = vpop.f32.mrb[0].mxu0 }
 0x22b   : > { %v665_v29 = vpack.c.bf16 %v601_v28, %v601_v28  ;;  %v2982_v30 = vpop.f32.mrb[1].mxu0 }
 0x22c   : > { %v604_v31 = vpop.f32.mrb[2].mxu0 }
 0x22d   : > { %v673_v32 = vunpack.c.l.b16 %v665_v29  ;;  %v2983_v33 = vpop.f32.mrb[3].mxu0  ;;  %v666_v39 = vpack.c.bf16 %v604_v31, %v604_v31 }
 0x22e   : > { %v652_v34 = vpop.f32.mrb[0].mxu1 }
 0x22f   : > { %1261 = vperm.xlu1 %3119, %v673_v32   ;;  %676 = vperm.xlu0 %3118, %v673_v32   ;;  %v2990_v35 = vpop.f32.mrb[1].mxu1  ;;  %v669_v42 = vpack.c.bf16 %v652_v34, %v652_v34  ;;  %v674_v43 = vunpack.c.l.b16 %v666_v39 }
 0x230   : > { %v655_v36 = vpop.f32.mrb[2].mxu1 }
 0x231   : > { %v670_v37 = vpack.c.bf16 %v655_v36, %v655_v36  ;;  %v2991_v38 = vpop.f32.mrb[3].mxu1  ;;  %v713_v44 = vunpack.c.l.b16 %v669_v42 }
 0x233   : > { %v714_v40 = vunpack.c.l.b16 %v670_v37  ;;  %3120 = vset.pattern.permute.xlu1 %v3168_v41  ;;  %3127 = vset.pattern.permute.xlu0 %v3166_v26 }
 0x234   : > { %1761 = vperm.xlu1 %3120, %v673_v32  }
 0x235   : > { %859 = vperm.xlu0 %3127, %v714_v40  }
 0x238   : > { %3121 = vset.pattern.permute.xlu1 %v3167_v27 }
 0x239   : > { %679 = vperm.xlu1 %3121, %v674_v43   ;;  %3128 = vset.pattern.permute.xlu0 %v3169_v45 }
 0x23a   : > { %1126 = vperm.xlu0 %3128, %v713_v44  }
 0x23d   : > { %716 = vperm.xlu1 %3121, %v713_v44  }
 0x23e   : > { %2264 = vperm.xlu0 %3128, %v674_v43  }
 0x241   : > { %3122 = vset.pattern.permute.xlu1 %v3166_v26 }
 0x242   : > { %856 = vperm.xlu1 %3122, %v713_v44  }
 0x246   : > { %3123 = vset.pattern.permute.xlu1 %v3168_v41 }
 0x247   : > { %991 = vperm.xlu1 %3123, %v713_v44   ;;  %v3469_v44 = vsub.s32 1, %v3380_v50 }
 0x24b   : > { %3124 = vset.pattern.permute.xlu1 %v3166_v26 }
 0x24c   : > { %1264 = vperm.xlu1 %3124, %v674_v43  }
 0x250   : > { %3125 = vset.pattern.permute.xlu1 %v3168_v41 }
 0x251   : > { %1764 = vperm.xlu1 %3125, %v674_v43   ;;  %v3466_v43 = vsub.s32 0, %v3380_v50 }
 0x255   : > { %3126 = vset.pattern.permute.xlu1 %v3167_v27 }
 0x256   : > { %719 = vperm.xlu1 %3126, %v714_v40  }
 0x25a   : > { %3129 = vset.pattern.permute.xlu1 %v3169_v45 }
 0x25b   : > { %2261 = vperm.xlu1 %3129, %v673_v32  }
 0x25f   : > { %3130 = vset.pattern.permute.xlu1 %v3168_v41 }
 0x260   : > { %994 = vperm.xlu1 %3130, %v714_v40  }
 0x264   : > { %3131 = vset.pattern.permute.xlu1 %v3169_v45 }
 0x265   : > { %1129 = vperm.xlu1 %3131, %v714_v40  }
 0x2ae   : > { %v1262_v47 = vpop.permute.xlu1 %1261  ;;  %v677_v53 = vpop.permute.xlu0 %676 }
 0x2af   : > { %v686_v55 = vrot.slane %v677_v53, %v685_v52  ;;  %v1269_v5 = vrot.slane %v1262_v47, %v685_v52  ;;  %v3474_v47 = vsub.s32 2, %v3380_v50 }
 0x2b3   : > { %v1762_v51 = vpop.permute.xlu1 %1761 }
 0x2b4   : > { %v860_v60 = vpop.permute.xlu0 %859  ;;  %v1769_v10 = vrot.slane %v1762_v51, %v685_v52 }
 0x2b5   : > { %v868_v62 = vrot.slane %v860_v60, %v685_v52  ;;  %v3484_v60 = vsub.s32 5, %v3380_v50 }
 0x2b8   : > { %v680_v54 = vpop.permute.xlu1 %679 }
 0x2b9   : > { %v690_v56 = vrot.slane %v680_v54, %v685_v52  ;;  %v1127_v12 = vpop.permute.xlu0 %1126 }
 0x2ba   : > { %v1134_v33 = vrot.slane %v1127_v12, %v685_v52 }
 0x2bb   : > { %v692_v57 = vsel %vm691_vm3, %v690_v56, %v686_v55 }
 0x2bc   : > { %v717_v58 = vpop.permute.xlu1 %716  ;;  %v693_v59 = vpack.c.b16 %v692_v57, %v692_v57 }
 0x2bd   : > { %v724_v16 = vrot.slane %v717_v58, %v685_v52  ;;  %v2265_v18 = vpop.permute.xlu0 %2264 }
 0x2be   : > { %695 = vxpose.xlu1.c.b16.start.end [1/1] (short) (narrow) %v693_v59, 16  ;;  %v2273_v22 = vrot.slane %v2265_v18, %v685_v52 }
 0x2c1   : > { %v857_v61 = vpop.permute.xlu1 %856 }
 0x2c2   : > { %v864_v63 = vrot.slane %v857_v61, %v685_v52  ;;  %v3487_v61 = vsub.s32 4, %v3380_v50 }
 0x2c4   : > { %v869_v0 = vsel %vm691_vm3, %v868_v62, %v864_v63 }
 0x2c5   : > { %v870_v1 = vpack.c.b16 %v869_v0, %v869_v0 }
 0x2c6   : > { %v992_v2 = vpop.permute.xlu1 %991 }
 0x2c7   : > { %v3386_v3 = vsel %vm735_vm4, %v870_v1, 0  ;;  %v999_v28 = vrot.slane %v992_v2, %v685_v52 }
 0x2c8   : > { %2999 = vmatpush3.bf16.msra.mxu1 %v3386_v3 }
 0x2c9   : > { %3010 = vmatprep.subr.bf16.mxu1 %v3164_v48 }
 0x2cb   : > { %v1265_v4 = vpop.permute.xlu1 %1264 }
 0x2cc   : > { %v1273_v6 = vrot.slane %v1265_v4, %v685_v52  ;;  %v3496_v4 = vsub.s32 7, %v3380_v50 }
 0x2ce   : > { %v1274_v7 = vsel %vm691_vm3, %v1273_v6, %v1269_v5  ;;  %4088 = vst [vmem:[#allocation2_spill] sm:$0xff] %v3496_v4  ;;  %v3499_v5 = vsub.s32 6, %v3380_v50 }
 0x2cf   : > { %v1275_v8 = vpack.c.b16 %v1274_v7, %v1274_v7 }
 0x2d0   : > { %v1765_v9 = vpop.permute.xlu1 %1764 }
 0x2d1   : > { %v1773_v11 = vrot.slane %v1765_v9, %v685_v52  ;;  %1277 = vxpose.xlu0.c.b16.start.end [1/1] (short) (narrow) %v1275_v8, 16 }
 0x2d3   : > { %v1774_v13 = vsel %vm691_vm3, %v1773_v11, %v1769_v10 }
 0x2d4   : > { %v1775_v14 = vpack.c.b16 %v1774_v13, %v1774_v13 }
 0x2d5   : > { %v720_v15 = vpop.permute.xlu1 %719 }
 0x2d6   : > { %v728_v17 = vrot.slane %v720_v15, %v685_v52  ;;  %1777 = vxpose.xlu0.c.b16.start.end [1/1] (short) (narrow) %v1775_v14, 16 }
 0x2d8   : > { %v729_v19 = vsel %vm691_vm3, %v728_v17, %v724_v16 }
 0x2d9   : > { %v730_v20 = vpack.c.b16 %v729_v19, %v729_v19 }
 0x2da   : > { %v2262_v21 = vpop.permute.xlu1 %2261 }
 0x2db   : > { %v2269_v23 = vrot.slane %v2262_v21, %v685_v52  ;;  %v3394_v24 = vsel %vm735_vm4, %v730_v20, 0 }
 0x2dc   : > { %2993 = vmatpush3.bf16.msra.mxu0 %v3394_v24 }
 0x2dd   : > { %v2274_v25 = vsel %vm691_vm3, %v2273_v22, %v2269_v23  ;;  %3004 = vmatprep.subr.bf16.mxu0 %v3164_v48 }
 0x2de   : > { %v2275_v26 = vpack.c.b16 %v2274_v25, %v2274_v25 }
 0x2df   : > { %v995_v27 = vpop.permute.xlu1 %994 }
 0x2e0   : > { %v1003_v29 = vrot.slane %v995_v27, %v685_v52  ;;  %2277 = vxpose.xlu1.c.b16.start.end [1/1] (short) (narrow) %v2275_v26, 16 }
 0x2e2   : > { %v1004_v30 = vsel %vm691_vm3, %v1003_v29, %v999_v28 }
 0x2e3   : > { %v1005_v31 = vpack.c.b16 %v1004_v30, %v1004_v30 }
 0x2e4   : > { %v1130_v32 = vpop.permute.xlu1 %1129 }
 0x2e5   : > { %v1138_v34 = vrot.slane %v1130_v32, %v685_v52  ;;  %v1007_v35 = vsel %vm735_vm4, %v1005_v31, 0 }
 0x2e7   : > { %v1139_v36 = vsel %vm691_vm3, %v1138_v34, %v1134_v33 }
 0x2e8   : > { %v1140_v37 = vpack.c.b16 %v1139_v36, %v1139_v36 }
 0x2ea   : > { %v1142_v38 = vsel %vm735_vm4, %v1140_v37, 0 }
 0x324   : > { %v703_v39 = vpop.trf.xlu1 }
 0x325   : > { %2995 = vmatmul.mubr.msk.bf16.vlgmr.msra.gmra.mrb[4].mxu0 %vm731_vm5, %v703_v39  ;;  %3001 = vmatmul.mubr.msk.bf16.vlgmr.msra.gmra.mrb[4].mxu1 %vm731_vm5, %v703_v39 }
 0x326   : > { %3005 = vmatpush3.bf16.msra.mxu0 %v1007_v35  ;;  %3011 = vmatpush3.bf16.msra.mxu1 %v1142_v38 }
 0x327   : > { %3006 = vmatprep.mubr.msk.bf16.mxu0 %vm3165_vm2, %v3164_v48  ;;  %3012 = vmatprep.mubr.msk.bf16.mxu1 %vm3165_vm2, %v3164_v48 }
 0x328   : > { %3016 = vmatprep.subr.bf16.mxu0 %v3164_v48  ;;  %3022 = vmatprep.subr.bf16.mxu1 %v3164_v48 }
 0x32d   : > { %3007 = vmatmul.mubr.msk.bf16.vlgmr.msra.gmra.mrb[8].mxu0 %vm731_vm5, %v703_v39  ;;  %3013 = vmatmul.mubr.msk.bf16.vlgmr.msra.gmra.mrb[8].mxu1 %vm731_vm5, %v703_v39 }
 0x32e   : > { %3017 = vmatpush3.bf16.msra.mxu0 %v3394_v24  ;;  %3023 = vmatpush3.bf16.msra.mxu1 %v3386_v3 }
 0x32f   : > { %3018 = vmatprep.mubr.msk.bf16.mxu0 %vm3165_vm2, %v3164_v48  ;;  %3024 = vmatprep.mubr.msk.bf16.mxu1 %vm3165_vm2, %v3164_v48 }
 0x330   : > { %3028 = vmatprep.subr.bf16.mxu0 %v3164_v48  ;;  %3034 = vmatprep.subr.bf16.mxu1 %v3164_v48 }
 0x337   : > { %v1285_v40 = vpop.trf.xlu0 }
 0x338   : > { %3019 = vmatmul.mubr.msk.bf16.vlgmr.msra.gmra.mrb[12].mxu0 %vm731_vm5, %v1285_v40  ;;  %3025 = vmatmul.mubr.msk.bf16.vlgmr.msra.gmra.mrb[12].mxu1 %vm731_vm5, %v1285_v40 }
 0x339   : > { %3029 = vmatpush3.bf16.msra.mxu0 %v1007_v35  ;;  %3035 = vmatpush3.bf16.msra.mxu1 %v1142_v38 }
 0x33a   : > { %3030 = vmatprep.mubr.msk.bf16.mxu0 %vm3165_vm2, %v3164_v48  ;;  %3036 = vmatprep.mubr.msk.bf16.mxu1 %vm3165_vm2, %v3164_v48 }
 0x33b   : > { %3040 = vmatprep.subr.bf16.mxu0 %v3164_v48  ;;  %3046 = vmatprep.subr.bf16.mxu1 %v3164_v48 }
 0x33c   : > { %v1785_v41 = vpop.trf.xlu0 }
 0x340   : > { %3031 = vmatmul.mubr.msk.bf16.vlgmr.msra.gmra.mrb[16].mxu0 %vm731_vm5, %v1285_v40  ;;  %3037 = vmatmul.mubr.msk.bf16.vlgmr.msra.gmra.mrb[16].mxu1 %vm731_vm5, %v1285_v40 }
 0x341   : > { %3041 = vmatpush3.bf16.msra.mxu0 %v3394_v24  ;;  %3047 = vmatpush3.bf16.msra.mxu1 %v3386_v3 }
 0x342   : > { %3042 = vmatprep.mubr.msk.bf16.mxu0 %vm3165_vm2, %v3164_v48  ;;  %3048 = vmatprep.mubr.msk.bf16.mxu1 %vm3165_vm2, %v3164_v48 }
 0x343   : > { %3052 = vmatprep.subr.bf16.mxu0 %v3164_v48  ;;  %3058 = vmatprep.subr.bf16.mxu1 %v3164_v48 }
 0x346   : > { %v2285_v42 = vpop.trf.xlu1 }
 0x348   : > { %3043 = vmatmul.mubr.msk.bf16.vlgmr.msra.gmra.mrb[20].mxu0 %vm731_vm5, %v1785_v41  ;;  %3049 = vmatmul.mubr.msk.bf16.vlgmr.msra.gmra.mrb[20].mxu1 %vm731_vm5, %v1785_v41 }
 0x349   : > { %3053 = vmatpush3.bf16.msra.mxu0 %v1007_v35  ;;  %3059 = vmatpush3.bf16.msra.mxu1 %v1142_v38 }
 0x34a   : > { %3054 = vmatprep.mubr.msk.bf16.mxu0 %vm3165_vm2, %v3164_v48  ;;  %3060 = vmatprep.mubr.msk.bf16.mxu1 %vm3165_vm2, %v3164_v48 }
 0x34b   : > { %3064 = vmatprep.subr.bf16.mxu0 %v3164_v48  ;;  %3070 = vmatprep.subr.bf16.mxu1 %v3164_v48 }
 0x350   : > { %3055 = vmatmul.mubr.msk.bf16.vlgmr.msra.gmra.mrb[24].mxu0 %vm731_vm5, %v1785_v41  ;;  %3061 = vmatmul.mubr.msk.bf16.vlgmr.msra.gmra.mrb[24].mxu1 %vm731_vm5, %v1785_v41 }
 0x351   : > { %3065 = vmatpush3.bf16.msra.mxu0 %v3394_v24  ;;  %3071 = vmatpush3.bf16.msra.mxu1 %v3386_v3 }
 0x352   : > { %3066 = vmatprep.mubr.msk.bf16.mxu0 %vm3165_vm2, %v3164_v48  ;;  %3072 = vmatprep.mubr.msk.bf16.mxu1 %vm3165_vm2, %v3164_v48 }
 0x353   : > { %3076 = vmatprep.subr.bf16.mxu0 %v3164_v48  ;;  %3082 = vmatprep.subr.bf16.mxu1 %v3164_v48 }
 0x358   : > { %3067 = vmatmul.mubr.msk.bf16.vlgmr.msra.gmra.mrb[28].mxu0 %vm731_vm5, %v2285_v42  ;;  %3073 = vmatmul.mubr.msk.bf16.vlgmr.msra.gmra.mrb[28].mxu1 %vm731_vm5, %v2285_v42 }
 0x359   : > { %3077 = vmatpush3.bf16.msra.mxu0 %v1007_v35  ;;  %3083 = vmatpush3.bf16.msra.mxu1 %v1142_v38 }
 0x35a   : > { %3078 = vmatprep.mubr.msk.bf16.mxu0 %vm3165_vm2, %v3164_v48  ;;  %3084 = vmatprep.mubr.msk.bf16.mxu1 %vm3165_vm2, %v3164_v48 }
 0x360   : > { %3079 = vmatmul.mubr.msk.bf16.vlgmr.msra.gmra.mrb[32].mxu0 %vm731_vm5, %v2285_v42  ;;  %3085 = vmatmul.mubr.msk.bf16.vlgmr.msra.gmra.mrb[32].mxu1 %vm731_vm5, %v2285_v42 }
 0x3f8   : > { %v773_v45 = vpop.f32.mrb[4].mxu0  ;;  %v3471_v46 = vpop.f32.mrb[4].mxu1 }
 0x3f9   : > { %v2996_v48 = vpop.f32.mrb[5].mxu0  ;;  %v3002_v51 = vpop.f32.mrb[5].mxu1  ;;  %v782_v52 = vrot.slane %v773_v45, %v3466_v43  ;;  %v789_v53 = vrot.slane %v773_v45, %v3469_v44  ;;  %v803_v58 = vrot.slane %v773_v45, %v3477_v49  ;;  %v796_v59 = vrot.slane %v773_v45, %v3474_v47 }
 0x3fa   : > { %v776_v54 = vpop.f32.mrb[6].mxu0  ;;  %v911_v55 = vpop.f32.mrb[6].mxu1  ;;  %v817_v2 = vrot.slane %v773_v45, %v3484_v60  ;;  %v810_v3 = vrot.slane %v773_v45, %v3487_v61  ;;  %v831_v10 = vrot.slane %v773_v45, %v3496_v4  ;;  %v824_v11 = vrot.slane %v773_v45, %v3499_v5 }
 0x3fb   : > { %784 = vbcast.lane.b32.xlu0 %v782_v52, 256  ;;  %v2997_v56 = vpop.f32.mrb[7].mxu0  ;;  %v3003_v57 = vpop.f32.mrb[7].mxu1  ;;  %791 = vbcast.lane.b32.xlu1 %v789_v53, 256  ;;  %v924_v12 = vrot.slane %v3471_v46, %v3469_v44  ;;  %v917_v13 = vrot.slane %v3471_v46, %v3466_v43  ;;  %v938_v17 = vrot.slane %v3471_v46, %v3477_v49 }
 0x3fc   : > { %v931_v18 = vrot.slane %v3471_v46, %v3474_v47  ;;  %v952_v23 = vrot.slane %v3471_v46, %v3484_v60  ;;  %v945_v24 = vrot.slane %v3471_v46, %v3487_v61  ;;  %v966_v29 = vrot.slane %v3471_v46, %v3496_v4 }
 0x3fd   : > { %v959_v30 = vrot.slane %v3471_v46, %v3499_v5 }
 0x3ff   : > { %805 = vbcast.lane.b32.xlu0 %v803_v58, 256  ;;  %798 = vbcast.lane.b32.xlu1 %v796_v59, 256 }
 0x400   : > { %v3489_v62 = vpop.f32.mrb[8].mxu0  ;;  %v3491_v63 = vpop.f32.mrb[8].mxu1 }
 0x401   : > { %v3008_v0 = vpop.f32.mrb[9].mxu0  ;;  %v3014_v1 = vpop.f32.mrb[9].mxu1  ;;  %v1059_v35 = vrot.slane %v3489_v62, %v3469_v44  ;;  %v1052_v36 = vrot.slane %v3489_v62, %v3466_v43  ;;  %v1073_v41 = vrot.slane %v3489_v62, %v3477_v49  ;;  %v1066_v42 = vrot.slane %v3489_v62, %v3474_v47 }
 0x402   : > { %v1046_v6 = vpop.f32.mrb[10].mxu0  ;;  %v1181_v7 = vpop.f32.mrb[10].mxu1  ;;  %v1087_v52 = vrot.slane %v3489_v62, %v3484_v60  ;;  %v1080_v53 = vrot.slane %v3489_v62, %v3487_v61  ;;  %v1101_v58 = vrot.slane %v3489_v62, %v3496_v4  ;;  %v1094_v59 = vrot.slane %v3489_v62, %v3499_v5 }
 0x403   : > { %819 = vbcast.lane.b32.xlu0 %v817_v2, 256  ;;  %v3009_v8 = vpop.f32.mrb[11].mxu0  ;;  %v3015_v9 = vpop.f32.mrb[11].mxu1  ;;  %812 = vbcast.lane.b32.xlu1 %v810_v3, 256  ;;  %v1194_v6 = vrot.slane %v3491_v63, %v3469_v44  ;;  %v1187_v7 = vrot.slane %v3491_v63, %v3466_v43  ;;  %v1201_v62 = vrot.slane %v3491_v63, %v3474_v47 }
 0x404   : > { %v1208_v8 = vrot.slane %v3491_v63, %v3477_v49  ;;  %v1222_v9 = vrot.slane %v3491_v63, %v3484_v60 }
 0x407   : > { %833 = vbcast.lane.b32.xlu0 %v831_v10, 256  ;;  %826 = vbcast.lane.b32.xlu1 %v824_v11, 256  ;;  %v1215_v10 = vrot.slane %v3491_v63, %v3487_v61 }
 0x40b   : > { %926 = vbcast.lane.b32.xlu0 %v924_v12, 256  ;;  %919 = vbcast.lane.b32.xlu1 %v917_v13, 256  ;;  %v3507_v50 = vpop.f32.mrb[12].mxu0  ;;  %v3509_v14 = vpop.f32.mrb[12].mxu1  ;;  %v1236_v13 = vrot.slane %v3491_v63, %v3496_v4 }
 0x40c   : > { %v3020_v15 = vpop.f32.mrb[13].mxu0  ;;  %v3026_v16 = vpop.f32.mrb[13].mxu1 }
 0x40d   : > { %v1333_v19 = vpop.f32.mrb[14].mxu0  ;;  %v1449_v20 = vpop.f32.mrb[14].mxu1  ;;  %v1229_v15 = vrot.slane %v3491_v63, %v3499_v5 }
 0x40e   : > { %v3021_v21 = vpop.f32.mrb[15].mxu0  ;;  %v3027_v22 = vpop.f32.mrb[15].mxu1  ;;  %v1346_v20 = vrot.slane %v3507_v50, %v3469_v44 }
 0x40f   : > { %940 = vbcast.lane.b32.xlu0 %v938_v17, 256  ;;  %933 = vbcast.lane.b32.xlu1 %v931_v18, 256  ;;  %v1339_v21 = vrot.slane %v3507_v50, %v3466_v43 }
 0x413   : > { %954 = vbcast.lane.b32.xlu0 %v952_v23, 256  ;;  %947 = vbcast.lane.b32.xlu1 %v945_v24, 256  ;;  %v3519_v25 = vpop.f32.mrb[16].mxu0  ;;  %v3521_v26 = vpop.f32.mrb[16].mxu1 }
 0x414   : > { %v3032_v27 = vpop.f32.mrb[17].mxu0  ;;  %v3038_v28 = vpop.f32.mrb[17].mxu1 }
 0x415   : > { %v1565_v31 = vpop.f32.mrb[18].mxu0  ;;  %v1681_v32 = vpop.f32.mrb[18].mxu1 }
 0x416   : > { %v3033_v33 = vpop.f32.mrb[19].mxu0  ;;  %v3039_v34 = vpop.f32.mrb[19].mxu1 }
 0x417   : > { %968 = vbcast.lane.b32.xlu0 %v966_v29, 256  ;;  %961 = vbcast.lane.b32.xlu1 %v959_v30, 256  ;;  %v1360_v33 = vrot.slane %v3507_v50, %v3477_v49  ;;  %v1353_v34 = vrot.slane %v3507_v50, %v3474_v47 }
 0x41b   : > { %1061 = vbcast.lane.b32.xlu0 %v1059_v35, 256  ;;  %1054 = vbcast.lane.b32.xlu1 %v1052_v36, 256  ;;  %v3531_v37 = vpop.f32.mrb[20].mxu0  ;;  %v3533_v38 = vpop.f32.mrb[20].mxu1  ;;  %v1374_v35 = vrot.slane %v3507_v50, %v3484_v60  ;;  %v1367_v36 = vrot.slane %v3507_v50, %v3487_v61 }
 0x41c   : > { %v3044_v39 = vpop.f32.mrb[21].mxu0  ;;  %v3050_v40 = vpop.f32.mrb[21].mxu1 }
 0x41d   : > { %v1833_v45 = vpop.f32.mrb[22].mxu0  ;;  %v1949_v46 = vpop.f32.mrb[22].mxu1  ;;  %v1388_v39 = vrot.slane %v3507_v50, %v3496_v4  ;;  %v1381_v40 = vrot.slane %v3507_v50, %v3499_v5  ;;  %v1490_v50 = vrot.slane %v3509_v14, %v3484_v60 }
 0x41e   : > { %v3045_v48 = vpop.f32.mrb[23].mxu0  ;;  %v3051_v51 = vpop.f32.mrb[23].mxu1  ;;  %v1476_v45 = vrot.slane %v3509_v14, %v3477_v49  ;;  %v1469_v46 = vrot.slane %v3509_v14, %v3474_v47 }
 0x41f   : > { %1075 = vbcast.lane.b32.xlu0 %v1073_v41, 256  ;;  %1068 = vbcast.lane.b32.xlu1 %v1066_v42, 256  ;;  %v1462_v41 = vrot.slane %v3509_v14, %v3469_v44  ;;  %v1455_v42 = vrot.slane %v3509_v14, %v3466_v43  ;;  %v1483_v48 = vrot.slane %v3509_v14, %v3487_v61 }
 0x420   : > { %v1504_v51 = vrot.slane %v3509_v14, %v3496_v4 }
 0x423   : > { %1089 = vbcast.lane.b32.xlu0 %v1087_v52, 256  ;;  %1082 = vbcast.lane.b32.xlu1 %v1080_v53, 256  ;;  %v3543_v54 = vpop.f32.mrb[24].mxu0  ;;  %v3545_v55 = vpop.f32.mrb[24].mxu1  ;;  %v1497_v52 = vrot.slane %v3509_v14, %v3499_v5  ;;  %v1578_v53 = vrot.slane %v3519_v25, %v3469_v44  ;;  %v1606_v14 = vrot.slane %v3519_v25, %v3484_v60 }
 0x424   : > { %v3056_v56 = vpop.f32.mrb[25].mxu0  ;;  %v3062_v57 = vpop.f32.mrb[25].mxu1 }
 0x425   : > { %v2065_v0 = vpop.f32.mrb[26].mxu0  ;;  %v2181_v1 = vpop.f32.mrb[26].mxu1  ;;  %v1571_v56 = vrot.slane %v3519_v25, %v3466_v43  ;;  %v1592_v57 = vrot.slane %v3519_v25, %v3477_v49 }
 0x426   : > { %v3057_v2 = vpop.f32.mrb[27].mxu0  ;;  %v3063_v3 = vpop.f32.mrb[27].mxu1  ;;  %v1620_v0 = vrot.slane %v3519_v25, %v3496_v4  ;;  %v1613_v1 = vrot.slane %v3519_v25, %v3499_v5 }
 0x427   : > { %1103 = vbcast.lane.b32.xlu0 %v1101_v58, 256  ;;  %1096 = vbcast.lane.b32.xlu1 %v1094_v59, 256  ;;  %v1585_v58 = vrot.slane %v3519_v25, %v3474_v47  ;;  %v1599_v59 = vrot.slane %v3519_v25, %v3487_v61  ;;  %v1694_v2 = vrot.slane %v3521_v26, %v3469_v44 }
 0x428   : > { %v1687_v3 = vrot.slane %v3521_v26, %v3466_v43  ;;  %v1701_v25 = vrot.slane %v3521_v26, %v3474_v47 }
 0x42b   : > { %1196 = vbcast.lane.b32.xlu0 %v1194_v6, 256  ;;  %1189 = vbcast.lane.b32.xlu1 %v1187_v7, 256  ;;  %v3563_v11 = vpop.f32.mrb[28].mxu0  ;;  %v3565_v12 = vpop.f32.mrb[28].mxu1 }
 0x42c   : > { %4089 = vst [vmem:[#allocation3_spill] sm:$0xff] %v3565_v12  ;;  %v3068_v16 = vpop.f32.mrb[29].mxu0  ;;  %v3074_v17 = vpop.f32.mrb[29].mxu1 }
 0x42d   : > { %v2449_v18 = vpop.f32.mrb[30].mxu1  ;;  %v2333_v19 = vpop.f32.mrb[30].mxu0  ;;  %v1736_v17 = vrot.slane %v3521_v26, %v3496_v4 }
 0x42e   : > { %v3069_v22 = vpop.f32.mrb[31].mxu0  ;;  %v3075_v23 = vpop.f32.mrb[31].mxu1  ;;  %v1729_v18 = vrot.slane %v3521_v26, %v3499_v5  ;;  %v1846_v19 = vrot.slane %v3531_v37, %v3469_v44 }
 0x42f   : > { %1210 = vbcast.lane.b32.xlu0 %v1208_v8, 256  ;;  %1203 = vbcast.lane.b32.xlu1 %v1201_v62, 256  ;;  %v1708_v8 = vrot.slane %v3521_v26, %v3477_v49 }
 0x433   : > { %1224 = vbcast.lane.b32.xlu0 %v1222_v9, 256  ;;  %1217 = vbcast.lane.b32.xlu1 %v1215_v10, 256  ;;  %v3575_v24 = vpop.f32.mrb[32].mxu0  ;;  %v3577_v27 = vpop.f32.mrb[32].mxu1  ;;  %v1722_v10 = vrot.slane %v3521_v26, %v3484_v60 }
 0x434   : > { %4090 = vst [vmem:[#allocation4_spill] sm:$0xff] %v3575_v24  ;;  %4091 = vst [vmem:[#allocation5_spill] sm:$0xff] %v3577_v27  ;;  %v3080_v28 = vpop.f32.mrb[33].mxu0  ;;  %v3086_v63 = vpop.f32.mrb[33].mxu1 }
 0x435   : > { %v2681_v29 = vpop.f32.mrb[34].mxu1  ;;  %v2565_v30 = vpop.f32.mrb[34].mxu0  ;;  %v1853_v63 = vrot.slane %v3531_v37, %v3474_v47 }
 0x436   : > { %v3081_v31 = vpop.f32.mrb[35].mxu0  ;;  %v3087_v32 = vpop.f32.mrb[35].mxu1 }
 0x437   : > { %1238 = vbcast.lane.b32.xlu0 %v1236_v13, 256  ;;  %1231 = vbcast.lane.b32.xlu1 %v1229_v15, 256  ;;  %v1715_v13 = vrot.slane %v3521_v26, %v3487_v61  ;;  %v1860_v26 = vrot.slane %v3531_v37, %v3477_v49  ;;  %v1874_v31 = vrot.slane %v3531_v37, %v3484_v60 }
 0x438   : > { %v1867_v32 = vrot.slane %v3531_v37, %v3487_v61 }
 0x43b   : > { %1348 = vbcast.lane.b32.xlu0 %v1346_v20, 256  ;;  %1341 = vbcast.lane.b32.xlu1 %v1339_v21, 256  ;;  %v1839_v20 = vrot.slane %v3531_v37, %v3466_v43 }
 0x43f   : > { %1362 = vbcast.lane.b32.xlu0 %v1360_v33, 256  ;;  %1355 = vbcast.lane.b32.xlu1 %v1353_v34, 256 }
 0x443   : > { %1376 = vbcast.lane.b32.xlu0 %v1374_v35, 256  ;;  %1369 = vbcast.lane.b32.xlu1 %v1367_v36, 256  ;;  %v1888_v35 = vrot.slane %v3531_v37, %v3496_v4  ;;  %v1881_v36 = vrot.slane %v3531_v37, %v3499_v5  ;;  %v1976_v37 = vrot.slane %v3533_v38, %v3477_v49 }
 0x447   : > { %1390 = vbcast.lane.b32.xlu0 %v1388_v39, 256  ;;  %1383 = vbcast.lane.b32.xlu1 %v1381_v40, 256 }
 0x44b   : > { %1464 = vbcast.lane.b32.xlu0 %v1462_v41, 256  ;;  %1457 = vbcast.lane.b32.xlu1 %v1455_v42, 256  ;;  %v1962_v41 = vrot.slane %v3533_v38, %v3469_v44  ;;  %v1955_v42 = vrot.slane %v3533_v38, %v3466_v43 }
 0x44f   : > { %1478 = vbcast.lane.b32.xlu0 %v1476_v45, 256  ;;  %1471 = vbcast.lane.b32.xlu1 %v1469_v46, 256 }
 0x453   : > { %1492 = vbcast.lane.b32.xlu0 %v1490_v50, 256  ;;  %1485 = vbcast.lane.b32.xlu1 %v1483_v48, 256  ;;  %v1969_v50 = vrot.slane %v3533_v38, %v3474_v47 }
 0x457   : > { %1506 = vbcast.lane.b32.xlu0 %v1504_v51, 256  ;;  %1499 = vbcast.lane.b32.xlu1 %v1497_v52, 256  ;;  %v1990_v52 = vrot.slane %v3533_v38, %v3484_v60 }
 0x45b   : > { %1580 = vbcast.lane.b32.xlu0 %v1578_v53, 256  ;;  %1573 = vbcast.lane.b32.xlu1 %v1571_v56, 256  ;;  %v1983_v53 = vrot.slane %v3533_v38, %v3487_v61 }
 0x45f   : > { %1594 = vbcast.lane.b32.xlu0 %v1592_v57, 256  ;;  %1587 = vbcast.lane.b32.xlu1 %v1585_v58, 256  ;;  %v2004_v58 = vrot.slane %v3533_v38, %v3496_v4 }
 0x463   : > { %1608 = vbcast.lane.b32.xlu0 %v1606_v14, 256  ;;  %1601 = vbcast.lane.b32.xlu1 %v1599_v59, 256  ;;  %v1997_v14 = vrot.slane %v3533_v38, %v3499_v5  ;;  %v2092_v38 = vrot.slane %v3543_v54, %v3477_v49 }
 0x467   : > { %1622 = vbcast.lane.b32.xlu0 %v1620_v0, 256  ;;  %1615 = vbcast.lane.b32.xlu1 %v1613_v1, 256  ;;  %v2078_v1 = vrot.slane %v3543_v54, %v3469_v44 }
 0x46b   : > { %1696 = vbcast.lane.b32.xlu0 %v1694_v2, 256  ;;  %1689 = vbcast.lane.b32.xlu1 %v1687_v3, 256  ;;  %v2071_v2 = vrot.slane %v3543_v54, %v3466_v43 }
 0x46d   : > { %v3627_v6 = vpop.permute.xlu1 %791  ;;  %v3629_v7 = vpop.permute.xlu0 %784 }
 0x46f   : > { %1710 = vbcast.lane.b32.xlu0 %v1708_v8, 256  ;;  %1703 = vbcast.lane.b32.xlu1 %v1701_v25, 256  ;;  %v2085_v25 = vrot.slane %v3543_v54, %v3474_v47 }
 0x471   : > { %v3635_v62 = vpop.permute.xlu1 %798  ;;  %v3637_v9 = vpop.permute.xlu0 %805 }
 0x473   : > { %1724 = vbcast.lane.b32.xlu0 %v1722_v10, 256  ;;  %1717 = vbcast.lane.b32.xlu1 %v1715_v13, 256 }
 0x475   : > { %v3643_v15 = vpop.permute.xlu1 %812  ;;  %v3645_v16 = vpop.permute.xlu0 %819 }
 0x477   : > { %1738 = vbcast.lane.b32.xlu0 %v1736_v17, 256  ;;  %1731 = vbcast.lane.b32.xlu1 %v1729_v18, 256  ;;  %v2106_v17 = vrot.slane %v3543_v54, %v3484_v60  ;;  %v2099_v18 = vrot.slane %v3543_v54, %v3487_v61 }
 0x479   : > { %v3655_v21 = vpop.permute.xlu1 %826  ;;  %v3657_v22 = vpop.permute.xlu0 %833 }
 0x47b   : > { %1848 = vbcast.lane.b32.xlu0 %v1846_v19, 256  ;;  %1841 = vbcast.lane.b32.xlu1 %v1839_v20, 256 }
 0x47d   : > { %v3659_v23 = vpop.permute.xlu1 %919  ;;  %v3661_v28 = vpop.permute.xlu0 %926 }
 0x47f   : > { %1862 = vbcast.lane.b32.xlu0 %v1860_v26, 256  ;;  %1855 = vbcast.lane.b32.xlu1 %v1853_v63, 256  ;;  %v2120_v26 = vrot.slane %v3543_v54, %v3496_v4  ;;  %v2113_v63 = vrot.slane %v3543_v54, %v3499_v5  ;;  %v3759_v54 = vld [vmem:[%s4078_s7 + $0x4] sm:$0xf] }
 0x480   : > { %4092 = vst [vmem:[#allocation6_spill] sm:$0xff] %v3759_v54 }
 0x481   : > { %v3667_v29 = vpop.permute.xlu1 %933  ;;  %v3669_v30 = vpop.permute.xlu0 %940 }
 0x483   : > { %1876 = vbcast.lane.b32.xlu0 %v1874_v31, 256  ;;  %1869 = vbcast.lane.b32.xlu1 %v1867_v32, 256  ;;  %v659_v31 = vld [vmem:[%s4078_s7] sm:$0xf] }
 0x485   : > { %v3675_v33 = vpop.permute.xlu1 %947  ;;  %v3677_v34 = vpop.permute.xlu0 %954 }
 0x487   : > { %1890 = vbcast.lane.b32.xlu0 %v1888_v35, 256  ;;  %1883 = vbcast.lane.b32.xlu1 %v1881_v36, 256  ;;  %v2194_v36 = vrot.slane %v3545_v55, %v3469_v44 }
 0x489   : > { %v3683_v39 = vpop.permute.xlu1 %961  ;;  %v3685_v40 = vpop.permute.xlu0 %968 }
 0x48b   : > { %1964 = vbcast.lane.b32.xlu0 %v1962_v41, 256  ;;  %1957 = vbcast.lane.b32.xlu1 %v1955_v42, 256  ;;  %v2187_v41 = vrot.slane %v3545_v55, %v3466_v43  ;;  %v838_v42 = vrot.slane %v659_v31, %v3466_v43 }
 0x48d   : > { %v3691_v45 = vpop.permute.xlu1 %1054  ;;  %v3693_v46 = vpop.permute.xlu0 %1061  ;;  %v839_v24 = vmul.f32 %v838_v42, %v3629_v7  ;;  %v842_v12 = vmul.f32 %v838_v42, %v3637_v9  ;;  %v843_v27 = vmul.f32 %v838_v42, %v3643_v15 }
 0x48f   : > { %1978 = vbcast.lane.b32.xlu0 %v1976_v37, 256  ;;  %1971 = vbcast.lane.b32.xlu1 %v1969_v50, 256  ;;  %v973_v37 = vrot.slane %v659_v31, %v3469_v44  ;;  %v3762_v50 = vrot.slane %v659_v31, %v3474_v47 }
 0x491   : > { %v3699_v48 = vpop.permute.xlu1 %1068  ;;  %v3701_v51 = vpop.permute.xlu0 %1075  ;;  %v975_v7 = vmul.f32 %v973_v37, %v3661_v28  ;;  %v1110_v28 = vmul.f32 %v3762_v50, %v3693_v46 }
 0x493   : > { %1992 = vbcast.lane.b32.xlu0 %v1990_v52, 256  ;;  %1985 = vbcast.lane.b32.xlu1 %v1983_v53, 256  ;;  %v3765_v52 = vrot.slane %v659_v31, %v3477_v49  ;;  %v2208_v53 = vrot.slane %v3545_v55, %v3477_v49  ;;  %v3789_v31 = vrot.slane %v3759_v54, %v3469_v44 }
 0x495   : > { %v3707_v56 = vpop.permute.xlu1 %1082  ;;  %v3709_v57 = vpop.permute.xlu0 %1089 }
 0x497   : > { %2006 = vbcast.lane.b32.xlu0 %v2004_v58, 256  ;;  %1999 = vbcast.lane.b32.xlu1 %v1997_v14, 256  ;;  %v2201_v58 = vrot.slane %v3545_v55, %v3474_v47  ;;  %v2222_v14 = vrot.slane %v3545_v55, %v3484_v60 }
 0x499   : > { %v3715_v59 = vpop.permute.xlu1 %1096  ;;  %v3717_v0 = vpop.permute.xlu0 %1103 }
 0x49a   : > { %v1115_v9 = vmul.f32 %v3762_v50, %v3715_v59  ;;  %v1116_v15 = vmul.f32 %v3762_v50, %v3717_v0 }
 0x49b   : > { %2080 = vbcast.lane.b32.xlu0 %v2078_v1, 256  ;;  %2073 = vbcast.lane.b32.xlu1 %v2071_v2, 256  ;;  %v2215_v1 = vrot.slane %v3545_v55, %v3487_v61  ;;  %v2236_v2 = vrot.slane %v3545_v55, %v3496_v4 }
 0x49d   : > { %v3723_v3 = vpop.permute.xlu1 %1189  ;;  %v3725_v8 = vpop.permute.xlu0 %1196 }
 0x49f   : > { %2094 = vbcast.lane.b32.xlu0 %v2092_v38, 256  ;;  %2087 = vbcast.lane.b32.xlu1 %v2085_v25, 256  ;;  %v3779_v38 = vrot.slane %v3759_v54, %v3466_v43  ;;  %v841_v54 = vmul.f32 %v838_v42, %v3635_v62  ;;  %v976_v62 = vmul.f32 %v973_v37, %v3667_v29 }
 0x4a1   : > { %v3731_v10 = vpop.permute.xlu1 %1203  ;;  %v3733_v13 = vpop.permute.xlu0 %1210 }
 0x4a3   : > { %2108 = vbcast.lane.b32.xlu0 %v2106_v17, 256  ;;  %2101 = vbcast.lane.b32.xlu1 %v2099_v18, 256  ;;  %v2229_v18 = vrot.slane %v3545_v55, %v3499_v5  ;;  %v840_v55 = vmul.f32 %v838_v42, %v3627_v6  ;;  %v3808_v6 = vmul.f32 %v838_v42, %v3645_v16 }
 0x4a4   : > { %v978_v16 = vmul.f32 %v973_v37, %v3675_v33 }
 0x4a5   : > { %v3739_v19 = vpop.permute.xlu1 %1217  ;;  %v3741_v20 = vpop.permute.xlu0 %1224 }
 0x4a6   : > { %v986_v46 = vadd.f32 %v978_v16, %v843_v27 }
 0x4a7   : > { %2122 = vbcast.lane.b32.xlu0 %v2120_v26, 256  ;;  %2115 = vbcast.lane.b32.xlu1 %v2113_v63, 256  ;;  %v974_v26 = vmul.f32 %v973_v37, %v3659_v23  ;;  %v845_v23 = vmul.f32 %v838_v42, %v3655_v21  ;;  %v846_v63 = vmul.f32 %v838_v42, %v3657_v22 }
 0x4a8   : > { %v1109_v22 = vmul.f32 %v3762_v50, %v3691_v45  ;;  %v983_v42 = vadd.f32 %v975_v7, %v840_v55  ;;  %v1112_v45 = vmul.f32 %v3762_v50, %v3701_v51  ;;  %v4093_v55 = vrot.slane %v3563_v11, %v3469_v44 }
 0x4a9   : > { %v1232_v32 = vpop.permute.xlu1 %1231  ;;  %v1239_v35 = vpop.permute.xlu0 %1238 }
 0x4aa   : > { %v1250_v29 = vmul.f32 %v3765_v52, %v1232_v32  ;;  %v1244_v32 = vmul.f32 %v3765_v52, %v3723_v3  ;;  %v1246_v3 = vmul.f32 %v3765_v52, %v3731_v10  ;;  %v1114_v10 = vmul.f32 %v3762_v50, %v3709_v57 }
 0x4ab   : > { %2196 = vbcast.lane.b32.xlu0 %v2194_v36, 256  ;;  %2189 = vbcast.lane.b32.xlu1 %v2187_v41, 256  ;;  %v980_v36 = vmul.f32 %v973_v37, %v3683_v39  ;;  %v981_v41 = vmul.f32 %v973_v37, %v3685_v40  ;;  %v977_v39 = vmul.f32 %v973_v37, %v3669_v30 }
 0x4ac   : > { %v982_v40 = vadd.f32 %v974_v26, %v839_v24  ;;  %v1111_v24 = vmul.f32 %v3762_v50, %v3699_v48  ;;  %v1251_v30 = vmul.f32 %v3765_v52, %v1239_v35  ;;  %v1245_v35 = vmul.f32 %v3765_v52, %v3725_v8 }
 0x4ad   : > { %v1342_v25 = vpop.permute.xlu1 %1341  ;;  %v1349_v17 = vpop.permute.xlu0 %1348  ;;  %v988_v21 = vadd.f32 %v980_v36, %v845_v23  ;;  %v989_v4 = vadd.f32 %v981_v41, %v846_v63  ;;  %v985_v33 = vadd.f32 %v977_v39, %v842_v12  ;;  %v1118_v36 = vadd.f32 %v1110_v28, %v983_v42 }
 0x4ae   : > { %v1117_v48 = vadd.f32 %v1109_v22, %v982_v40  ;;  %v1396_v51 = vmul.f32 %v3779_v38, %v1342_v25  ;;  %v1247_v8 = vmul.f32 %v3765_v52, %v3733_v13  ;;  %v4094_v25 = vrot.slane %v3563_v11, %v3466_v43 }
 0x4af   : > { %2210 = vbcast.lane.b32.xlu0 %v2208_v53, 256  ;;  %2203 = vbcast.lane.b32.xlu1 %v2201_v58, 256  ;;  %v1123_v26 = vadd.f32 %v1115_v9, %v988_v21  ;;  %v1124_v63 = vadd.f32 %v1116_v15, %v989_v4  ;;  %v1397_v4 = vmul.f32 %v3779_v38, %v1349_v17 }
 0x4b0   : > { %v1252_v17 = vadd.f32 %v1244_v32, %v1117_v48  ;;  %v1253_v23 = vadd.f32 %v1245_v35, %v1118_v36  ;;  %v1113_v39 = vmul.f32 %v3762_v50, %v3707_v56  ;;  %v4095_v56 = vrot.slane %v3563_v11, %v3474_v47 }
 0x4b1   : > { %v1356_v53 = vpop.permute.xlu1 %1355  ;;  %v1363_v58 = vpop.permute.xlu0 %1362  ;;  %v1258_v12 = vadd.f32 %v1250_v29, %v1123_v26  ;;  %v1259_v41 = vadd.f32 %v1251_v30, %v1124_v63  ;;  %v4096_v57 = vrot.slane %v3563_v11, %v3477_v49  ;;  %v1248_v50 = vmul.f32 %v3765_v52, %v3739_v19 }
 0x4b2   : > { %v1398_v13 = vmul.f32 %v3779_v38, %v1356_v53  ;;  %v1399_v40 = vmul.f32 %v3779_v38, %v1363_v58  ;;  %v1404_v16 = vadd.f32 %v1396_v51, %v1252_v17  ;;  %v1405_v21 = vadd.f32 %v1397_v4, %v1253_v23  ;;  %v4101_v23 = vld [vmem:[#allocation6_spill] sm:$0xff] }
 0x4b3   : > { %2224 = vbcast.lane.b32.xlu0 %v2222_v14, 256  ;;  %2217 = vbcast.lane.b32.xlu1 %v2215_v1, 256  ;;  %v984_v14 = vadd.f32 %v976_v62, %v841_v54  ;;  %v979_v1 = vmul.f32 %v973_v37, %v3677_v34  ;;  %v1249_v53 = vmul.f32 %v3765_v52, %v3741_v20 }
 0x4b4   : > { %v4097_v19 = vrot.slane %v3563_v11, %v3487_v61  ;;  %v4098_v20 = vrot.slane %v3563_v11, %v3484_v60 }
 0x4b5   : > { %v1370_v59 = vpop.permute.xlu1 %1369  ;;  %v1377_v0 = vpop.permute.xlu0 %1376  ;;  %v1119_v54 = vadd.f32 %v1111_v24, %v984_v14  ;;  %v987_v24 = vadd.f32 %v979_v1, %v3808_v6  ;;  %v1121_v14 = vadd.f32 %v1113_v39, %v986_v46  ;;  %v1627_v39 = vrot.slane %v4101_v23, %v3474_v47 }
 0x4b6   : > { %v1400_v63 = vmul.f32 %v3779_v38, %v1370_v59  ;;  %v1401_v48 = vmul.f32 %v3779_v38, %v1377_v0  ;;  %v4099_v0 = vld [vmem:[#allocation2_spill] sm:$0xff] }
 0x4b7   : > { %2238 = vbcast.lane.b32.xlu0 %v2236_v2, 256  ;;  %2231 = vbcast.lane.b32.xlu1 %v2229_v18, 256  ;;  %v1120_v18 = vadd.f32 %v1112_v45, %v985_v33  ;;  %v1254_v29 = vadd.f32 %v1246_v3, %v1119_v54  ;;  %v1122_v6 = vadd.f32 %v1114_v10, %v987_v24 }
 0x4b8   : > { %v1256_v52 = vadd.f32 %v1248_v50, %v1121_v14 }
 0x4b9   : > { %v1384_v34 = vpop.permute.xlu1 %1383  ;;  %v1391_v37 = vpop.permute.xlu0 %1390  ;;  %v1255_v30 = vadd.f32 %v1247_v8, %v1120_v18  ;;  %v1406_v33 = vadd.f32 %v1398_v13, %v1254_v29  ;;  %v1257_v46 = vadd.f32 %v1249_v53, %v1122_v6  ;;  %v4100_v8 = vld [vmem:[#allocation3_spill] sm:$0xff] }
 0x4ba   : > { %v1402_v2 = vmul.f32 %v3779_v38, %v1384_v34  ;;  %v1403_v27 = vmul.f32 %v3779_v38, %v1391_v37  ;;  %v2381_v38 = vrot.slane %v3563_v11, %v3499_v5  ;;  %v1408_v34 = vadd.f32 %v1400_v63, %v1256_v52 }
 0x4bb   : > { %2348 = vbcast.lane.b32.xlu0 %v4093_v55, 256  ;;  %2341 = vbcast.lane.b32.xlu1 %v4094_v25, 256  ;;  %v1407_v1 = vadd.f32 %v1399_v40, %v1255_v30  ;;  %v1409_v37 = vadd.f32 %v1401_v48, %v1257_v46  ;;  %v2455_v55 = vrot.slane %v4100_v8, %v3466_v43  ;;  %v4102_v48 = vld [vmem:[#allocation4_spill] sm:$0xff] }
 0x4bc   : > { %v1410_v7 = vadd.f32 %v1402_v2, %v1258_v12  ;;  %v1411_v62 = vadd.f32 %v1403_v27, %v1259_v41  ;;  %v2388_v41 = vrot.slane %v3563_v11, %v4099_v0  ;;  %v2462_v25 = vrot.slane %v4100_v8, %v3469_v44 }
 0x4bd   : > { %v1458_v9 = vpop.permute.xlu1 %1457  ;;  %v1465_v15 = vpop.permute.xlu0 %1464  ;;  %v1743_v52 = vrot.slane %v4101_v23, %v3477_v49  ;;  %v2613_v23 = vrot.slane %v4102_v48, %v3499_v5 }
 0x4be   : > { %v1512_v22 = vmul.f32 %v3789_v31, %v1458_v9  ;;  %v1513_v28 = vmul.f32 %v3789_v31, %v1465_v15  ;;  %v2469_v15 = vrot.slane %v4100_v8, %v3474_v47 }
 0x4bf   : > { %2355 = vbcast.lane.b32.xlu1 %v4095_v56, 256  ;;  %2362 = vbcast.lane.b32.xlu0 %v4096_v57, 256 }
 0x4c0   : > { %v1520_v58 = vadd.f32 %v1512_v22, %v1404_v16  ;;  %v1521_v42 = vadd.f32 %v1513_v28, %v1405_v21  ;;  %v2476_v16 = vrot.slane %v4100_v8, %v3477_v49 }
 0x4c1   : > { %v1472_v45 = vpop.permute.xlu1 %1471  ;;  %v1479_v26 = vpop.permute.xlu0 %1478 }
 0x4c2   : > { %v1514_v32 = vmul.f32 %v3789_v31, %v1472_v45  ;;  %v1515_v35 = vmul.f32 %v3789_v31, %v1479_v26 }
 0x4c3   : > { %2369 = vbcast.lane.b32.xlu1 %v4097_v19, 256  ;;  %2376 = vbcast.lane.b32.xlu0 %v4098_v20, 256 }
 0x4c4   : > { %v1522_v36 = vadd.f32 %v1514_v32, %v1406_v33  ;;  %v1523_v54 = vadd.f32 %v1515_v35, %v1407_v1  ;;  %v2571_v32 = vrot.slane %v4102_v48, %v3466_v43  ;;  %v2578_v35 = vrot.slane %v4102_v48, %v3469_v44 }
 0x4c5   : > { %v1486_v12 = vpop.permute.xlu1 %1485  ;;  %v1493_v59 = vpop.permute.xlu0 %1492 }
 0x4c6   : > { %v1516_v51 = vmul.f32 %v3789_v31, %v1486_v12  ;;  %v1517_v4 = vmul.f32 %v3789_v31, %v1493_v59  ;;  %v2585_v59 = vrot.slane %v4102_v48, %v3474_v47 }
 0x4c7   : > { %2383 = vbcast.lane.b32.xlu1 %v2381_v38, 256  ;;  %2390 = vbcast.lane.b32.xlu0 %v2388_v41, 256  ;;  %v2592_v38 = vrot.slane %v4102_v48, %v3477_v49 }
 0x4c8   : > { %v1524_v2 = vadd.f32 %v1516_v51, %v1408_v34  ;;  %v1525_v27 = vadd.f32 %v1517_v4, %v1409_v37 }
 0x4c9   : > { %v1500_v18 = vpop.permute.xlu1 %1499  ;;  %v1507_v3 = vpop.permute.xlu0 %1506 }
 0x4ca   : > { %v1518_v11 = vmul.f32 %v3789_v31, %v1500_v18  ;;  %v1519_v17 = vmul.f32 %v3789_v31, %v1507_v3  ;;  %v2606_v18 = vrot.slane %v4102_v48, %v3484_v60 }
 0x4cb   : > { %2457 = vbcast.lane.b32.xlu1 %v2455_v55, 256  ;;  %2464 = vbcast.lane.b32.xlu0 %v2462_v25, 256 }
 0x4cc   : > { %v1526_v10 = vadd.f32 %v1518_v11, %v1410_v7  ;;  %v1527_v13 = vadd.f32 %v1519_v17, %v1411_v62  ;;  %v2483_v7 = vrot.slane %v4100_v8, %v3487_v61  ;;  %v2490_v62 = vrot.slane %v4100_v8, %v3484_v60 }
 0x4cd   : > { %v1574_v40 = vpop.permute.xlu1 %1573  ;;  %v1581_v9 = vpop.permute.xlu0 %1580 }
 0x4ce   : > { %v1628_v21 = vmul.f32 %v1627_v39, %v1574_v40  ;;  %v1629_v22 = vmul.f32 %v1627_v39, %v1581_v9  ;;  %v3925_v40 = vld [vmem:[%s4078_s7 + $0x8] sm:$0xf] }
 0x4cf   : > { %2471 = vbcast.lane.b32.xlu1 %v2469_v15, 256  ;;  %2478 = vbcast.lane.b32.xlu0 %v2476_v16, 256 }
 0x4d0   : > { %v1636_v31 = vadd.f32 %v1628_v21, %v1520_v58  ;;  %v1637_v28 = vadd.f32 %v1629_v22, %v1521_v42  ;;  %v2497_v58 = vrot.slane %v4100_v8, %v3499_v5  ;;  %v2504_v42 = vrot.slane %v4100_v8, %v4099_v0  ;;  %v4103_v22 = vld [vmem:[#allocation5_spill] sm:$0xff] }
 0x4d1   : > { %v1588_v24 = vpop.permute.xlu1 %1587  ;;  %v1595_v29 = vpop.permute.xlu0 %1594 }
 0x4d2   : > { %v1630_v30 = vmul.f32 %v1627_v39, %v1588_v24  ;;  %v1631_v56 = vmul.f32 %v1627_v39, %v1595_v29 }
 0x4d3   : > { %2485 = vbcast.lane.b32.xlu1 %v2483_v7, 256  ;;  %2492 = vbcast.lane.b32.xlu0 %v2490_v62, 256  ;;  %v1895_v7 = vrot.slane %v3925_v40, %v3466_v43 }
 0x4d4   : > { %v1638_v57 = vadd.f32 %v1630_v30, %v1522_v36  ;;  %v1639_v50 = vadd.f32 %v1631_v56, %v1523_v54 }
 0x4d5   : > { %v1602_v53 = vpop.permute.xlu1 %1601  ;;  %v1609_v14 = vpop.permute.xlu0 %1608 }
 0x4d6   : > { %v1632_v6 = vmul.f32 %v1627_v39, %v1602_v53  ;;  %v1633_v33 = vmul.f32 %v1627_v39, %v1609_v14  ;;  %v2708_v53 = vrot.slane %v4103_v22, %v3477_v49 }
 0x4d7   : > { %2499 = vbcast.lane.b32.xlu1 %v2497_v58, 256  ;;  %2506 = vbcast.lane.b32.xlu0 %v2504_v42, 256 }
 0x4d8   : > { %v1640_v1 = vadd.f32 %v1632_v6, %v1524_v2  ;;  %v1641_v45 = vadd.f32 %v1633_v33, %v1525_v27  ;;  %v2599_v27 = vrot.slane %v4102_v48, %v3487_v61 }
 0x4d9   : > { %v1616_v26 = vpop.permute.xlu1 %1615  ;;  %v1623_v63 = vpop.permute.xlu0 %1622 }
 0x4da   : > { %v1634_v19 = vmul.f32 %v1627_v39, %v1616_v26  ;;  %v1635_v20 = vmul.f32 %v1627_v39, %v1623_v63  ;;  %v2620_v39 = vrot.slane %v4102_v48, %v4099_v0  ;;  %v2722_v26 = vrot.slane %v4103_v22, %v3484_v60 }
 0x4db   : > { %2573 = vbcast.lane.b32.xlu1 %v2571_v32, 256  ;;  %2580 = vbcast.lane.b32.xlu0 %v2578_v35, 256 }
 0x4dc   : > { %v1642_v46 = vadd.f32 %v1634_v19, %v1526_v10  ;;  %v1643_v36 = vadd.f32 %v1635_v20, %v1527_v13 }
 0x4dd   : > { %v1690_v54 = vpop.permute.xlu1 %1689  ;;  %v1697_v12 = vpop.permute.xlu0 %1696 }
 0x4de   : > { %v1744_v41 = vmul.f32 %v1743_v52, %v1690_v54  ;;  %v1745_v34 = vmul.f32 %v1743_v52, %v1697_v12 }
 0x4df   : > { %2587 = vbcast.lane.b32.xlu1 %v2585_v59, 256  ;;  %2594 = vbcast.lane.b32.xlu0 %v2592_v38, 256 }
 0x4e0   : > { %v1752_v37 = vadd.f32 %v1744_v41, %v1636_v31  ;;  %v1753_v51 = vadd.f32 %v1745_v34, %v1637_v28  ;;  %v2687_v31 = vrot.slane %v4103_v22, %v3466_v43  ;;  %v2694_v28 = vrot.slane %v4103_v22, %v3469_v44 }
 0x4e1   : > { %v1704_v4 = vpop.permute.xlu1 %1703  ;;  %v1711_v2 = vpop.permute.xlu0 %1710  ;;  %v2011_v34 = vrot.slane %v3925_v40, %v3469_v44 }
 0x4e2   : > { %v1746_v3 = vmul.f32 %v1743_v52, %v1704_v4  ;;  %v1747_v8 = vmul.f32 %v1743_v52, %v1711_v2 }
 0x4e3   : > { %2601 = vbcast.lane.b32.xlu1 %v2599_v27, 256  ;;  %2608 = vbcast.lane.b32.xlu0 %v2606_v18, 256 }
 0x4e4   : > { %v1754_v55 = vadd.f32 %v1746_v3, %v1638_v57  ;;  %v1755_v25 = vadd.f32 %v1747_v8, %v1639_v50  ;;  %v2701_v50 = vrot.slane %v4103_v22, %v3474_v47 }
 0x4e5   : > { %v1718_v11 = vpop.permute.xlu1 %1717  ;;  %v1725_v17 = vpop.permute.xlu0 %1724 }
 0x4e6   : > { %v1748_v10 = vmul.f32 %v1743_v52, %v1718_v11  ;;  %v1749_v13 = vmul.f32 %v1743_v52, %v1725_v17 }
 0x4e7   : > { %2615 = vbcast.lane.b32.xlu1 %v2613_v23, 256  ;;  %2622 = vbcast.lane.b32.xlu0 %v2620_v39, 256 }
 0x4e8   : > { %v1756_v9 = vadd.f32 %v1748_v10, %v1640_v1  ;;  %v1757_v15 = vadd.f32 %v1749_v13, %v1641_v45  ;;  %v2715_v45 = vrot.slane %v4103_v22, %v3487_v61 }
 0x4e9   : > { %v1732_v16 = vpop.permute.xlu1 %1731  ;;  %v1739_v21 = vpop.permute.xlu0 %1738 }
 0x4ea   : > { %v1750_v24 = vmul.f32 %v1743_v52, %v1732_v16  ;;  %v1751_v29 = vmul.f32 %v1743_v52, %v1739_v21  ;;  %v2729_v52 = vrot.slane %v4103_v22, %v3499_v5 }
 0x4eb   : > { %2689 = vbcast.lane.b32.xlu1 %v2687_v31, 256  ;;  %2696 = vbcast.lane.b32.xlu0 %v2694_v28, 256  ;;  %v2127_v28 = vrot.slane %v3925_v40, %v3474_v47 }
 0x4ec   : > { %v1758_v62 = vadd.f32 %v1750_v24, %v1642_v46  ;;  %v1759_v30 = vadd.f32 %v1751_v29, %v1643_v36  ;;  %v2736_v46 = vrot.slane %v4103_v22, %v4099_v0 }
 0x4ed   : > { %v1842_v56 = vpop.permute.xlu1 %1841  ;;  %v1849_v57 = vpop.permute.xlu0 %1848 }
 0x4ee   : > { %v1896_v14 = vmul.f32 %v1895_v7, %v1842_v56  ;;  %v1897_v58 = vmul.f32 %v1895_v7, %v1849_v57 }
 0x4ef   : > { %2703 = vbcast.lane.b32.xlu1 %v2701_v50, 256  ;;  %2710 = vbcast.lane.b32.xlu0 %v2708_v53, 256 }
 0x4f0   : > { %v1904_v42 = vadd.f32 %v1896_v14, %v1752_v37  ;;  %v1905_v6 = vadd.f32 %v1897_v58, %v1753_v51 }
 0x4f1   : > { %v1856_v33 = vpop.permute.xlu1 %1855  ;;  %v1863_v1 = vpop.permute.xlu0 %1862 }
 0x4f2   : > { %v1898_v63 = vmul.f32 %v1895_v7, %v1856_v33  ;;  %v1899_v48 = vmul.f32 %v1895_v7, %v1863_v1 }
 0x4f3   : > { %2717 = vbcast.lane.b32.xlu1 %v2715_v45, 256  ;;  %2724 = vbcast.lane.b32.xlu0 %v2722_v26, 256 }
 0x4f4   : > { %v1906_v32 = vadd.f32 %v1898_v63, %v1754_v55  ;;  %v1907_v35 = vadd.f32 %v1899_v48, %v1755_v25 }
 0x4f5   : > { %v1870_v19 = vpop.permute.xlu1 %1869  ;;  %v1877_v20 = vpop.permute.xlu0 %1876 }
 0x4f6   : > { %v1900_v36 = vmul.f32 %v1895_v7, %v1870_v19  ;;  %v1901_v54 = vmul.f32 %v1895_v7, %v1877_v20 }
 0x4f7   : > { %2731 = vbcast.lane.b32.xlu1 %v2729_v52, 256  ;;  %2738 = vbcast.lane.b32.xlu0 %v2736_v46, 256 }
 0x4f8   : > { %v1908_v61 = vadd.f32 %v1900_v36, %v1756_v9  ;;  %v1909_v60 = vadd.f32 %v1901_v54, %v1757_v15 }
 0x4f9   : > { %v1884_v12 = vpop.permute.xlu1 %1883  ;;  %v1891_v59 = vpop.permute.xlu0 %1890 }
 0x4fa   : > { %v1902_v38 = vmul.f32 %v1895_v7, %v1884_v12  ;;  %v1903_v41 = vmul.f32 %v1895_v7, %v1891_v59 }
 0x4fc   : > { %v1910_v37 = vadd.f32 %v1902_v38, %v1758_v62  ;;  %v1911_v51 = vadd.f32 %v1903_v41, %v1759_v30 }
 0x4fd   : > { %v1958_v4 = vpop.permute.xlu1 %1957  ;;  %v1965_v5 = vpop.permute.xlu0 %1964 }
 0x4fe   : > { %v2012_v2 = vmul.f32 %v2011_v34, %v1958_v4  ;;  %v2013_v27 = vmul.f32 %v2011_v34, %v1965_v5 }
 0x500   : > { %v2020_v0 = vadd.f32 %v2012_v2, %v1904_v42  ;;  %v2021_v18 = vadd.f32 %v2013_v27, %v1905_v6 }
 0x501   : > { %v1972_v3 = vpop.permute.xlu1 %1971  ;;  %v1979_v8 = vpop.permute.xlu0 %1978 }
 0x502   : > { %v2014_v55 = vmul.f32 %v2011_v34, %v1972_v3  ;;  %v2015_v25 = vmul.f32 %v2011_v34, %v1979_v8 }
 0x504   : > { %v2022_v11 = vadd.f32 %v2014_v55, %v1906_v32  ;;  %v2023_v17 = vadd.f32 %v2015_v25, %v1907_v35 }
 0x505   : > { %v1986_v23 = vpop.permute.xlu1 %1985  ;;  %v1993_v39 = vpop.permute.xlu0 %1992 }
 0x506   : > { %v2016_v10 = vmul.f32 %v2011_v34, %v1986_v23  ;;  %v2017_v13 = vmul.f32 %v2011_v34, %v1993_v39 }
 0x508   : > { %v2024_v9 = vadd.f32 %v2016_v10, %v1908_v61  ;;  %v2025_v15 = vadd.f32 %v2017_v13, %v1909_v60 }
 0x509   : > { %v2000_v16 = vpop.permute.xlu1 %1999  ;;  %v2007_v21 = vpop.permute.xlu0 %2006 }
 0x50a   : > { %v2018_v22 = vmul.f32 %v2011_v34, %v2000_v16  ;;  %v2019_v31 = vmul.f32 %v2011_v34, %v2007_v21 }
 0x50c   : > { %v2026_v24 = vadd.f32 %v2018_v22, %v1910_v37  ;;  %v2027_v29 = vadd.f32 %v2019_v31, %v1911_v51 }
 0x50d   : > { %v2074_v7 = vpop.permute.xlu1 %2073  ;;  %v2081_v62 = vpop.permute.xlu0 %2080 }
 0x50e   : > { %v2128_v30 = vmul.f32 %v2127_v28, %v2074_v7  ;;  %v2129_v56 = vmul.f32 %v2127_v28, %v2081_v62 }
 0x510   : > { %v3949_v57 = vadd.f32 %v2128_v30, %v2020_v0  ;;  %v3951_v50 = vadd.f32 %v2129_v56, %v2021_v18 }
 0x511   : > { %v2088_v53 = vpop.permute.xlu1 %2087  ;;  %v2095_v14 = vpop.permute.xlu0 %2094 }
 0x512   : > { %v2130_v58 = vmul.f32 %v2127_v28, %v2088_v53  ;;  %v2131_v42 = vmul.f32 %v2127_v28, %v2095_v14 }
 0x514   : > { %v2138_v6 = vadd.f32 %v2130_v58, %v2022_v11  ;;  %v2139_v33 = vadd.f32 %v2131_v42, %v2023_v17 }
 0x515   : > { %v2102_v1 = vpop.permute.xlu1 %2101  ;;  %v2109_v45 = vpop.permute.xlu0 %2108 }
 0x516   : > { %v2132_v26 = vmul.f32 %v2127_v28, %v2102_v1  ;;  %v2133_v63 = vmul.f32 %v2127_v28, %v2109_v45 }
 0x518   : > { %v2140_v48 = vadd.f32 %v2132_v26, %v2024_v9  ;;  %v2141_v32 = vadd.f32 %v2133_v63, %v2025_v15  ;;  %v2243_v9 = vrot.slane %v3925_v40, %v3477_v49  ;;  %v662_v15 = vld [vmem:[%s4078_s7 + $0xc] sm:$0xf] }
 0x519   : > { %v2116_v35 = vpop.permute.xlu1 %2115  ;;  %v2123_v19 = vpop.permute.xlu0 %2122  ;;  %v3968_v30 = vrot.slane %v662_v15, %v3469_v44  ;;  %v3971_v40 = vrot.slane %v662_v15, %v3474_v47  ;;  %v3974_v42 = vrot.slane %v662_v15, %v3477_v49 }
 0x51a   : > { %v2134_v20 = vmul.f32 %v2127_v28, %v2116_v35  ;;  %v2135_v52 = vmul.f32 %v2127_v28, %v2123_v19  ;;  %v2395_v28 = vrot.slane %v662_v15, %v3466_v43 }
 0x51c   : > { %v2142_v46 = vadd.f32 %v2134_v20, %v2026_v24  ;;  %v2143_v36 = vadd.f32 %v2135_v52, %v2027_v29 }
 0x51d   : > { %v2190_v54 = vpop.permute.xlu1 %2189  ;;  %v2197_v61 = vpop.permute.xlu0 %2196 }
 0x51e   : > { %v2244_v22 = vmul.f32 %v2243_v9, %v2190_v54  ;;  %v2245_v31 = vmul.f32 %v2243_v9, %v2197_v61 }
 0x520   : > { %v2252_v1 = vadd.f32 %v2244_v22, %v3949_v57  ;;  %v2253_v43 = vadd.f32 %v2245_v31, %v3951_v50 }
 0x521   : > { %v2204_v60 = vpop.permute.xlu1 %2203  ;;  %v2211_v12 = vpop.permute.xlu0 %2210 }
 0x522   : > { %v2246_v24 = vmul.f32 %v2243_v9, %v2204_v60  ;;  %v2247_v29 = vmul.f32 %v2243_v9, %v2211_v12 }
 0x524   : > { %v2254_v63 = vadd.f32 %v2246_v24, %v2138_v6  ;;  %v2255_v35 = vadd.f32 %v2247_v29, %v2139_v33 }
 0x525   : > { %v2218_v59 = vpop.permute.xlu1 %2217  ;;  %v2225_v38 = vpop.permute.xlu0 %2224 }
 0x526   : > { %v2248_v7 = vmul.f32 %v2243_v9, %v2218_v59  ;;  %v2249_v62 = vmul.f32 %v2243_v9, %v2225_v38 }
 0x528   : > { %v2256_v20 = vadd.f32 %v2248_v7, %v2140_v48  ;;  %v2257_v52 = vadd.f32 %v2249_v62, %v2141_v32  ;;  %v2760_v62 = vld [vmem:[%s4080_s9] sm:$0xff] }
 0x529   : > { %v2232_v41 = vpop.permute.xlu1 %2231  ;;  %v2239_v34 = vpop.permute.xlu0 %2238 }
 0x52a   : > { %v2250_v56 = vmul.f32 %v2243_v9, %v2232_v41  ;;  %v2251_v53 = vmul.f32 %v2243_v9, %v2239_v34 }
 0x52c   : > { %v2258_v61 = vadd.f32 %v2250_v56, %v2142_v46  ;;  %v2259_v60 = vadd.f32 %v2251_v53, %v2143_v36 }
 0x52d   : > { %v2342_v37 = vpop.permute.xlu1 %2341  ;;  %v2349_v51 = vpop.permute.xlu0 %2348 }
 0x52e   : > { %v2396_v45 = vmul.f32 %v2395_v28, %v2342_v37  ;;  %v2397_v26 = vmul.f32 %v2395_v28, %v2349_v51 }
 0x530   : > { %v2404_v38 = vadd.f32 %v2396_v45, %v2252_v1  ;;  %v2405_v50 = vadd.f32 %v2397_v26, %v2253_v43 }
 0x531   : > { %v2356_v4 = vpop.permute.xlu1 %2355  ;;  %v2363_v5 = vpop.permute.xlu0 %2362 }
 0x532   : > { %v2398_v44 = vmul.f32 %v2395_v28, %v2356_v4  ;;  %v2399_v19 = vmul.f32 %v2395_v28, %v2363_v5 }
 0x534   : > { %v2406_v33 = vadd.f32 %v2398_v44, %v2254_v63  ;;  %v2407_v34 = vadd.f32 %v2399_v19, %v2255_v35 }
 0x535   : > { %v2370_v2 = vpop.permute.xlu1 %2369  ;;  %v2377_v27 = vpop.permute.xlu0 %2376 }
 0x536   : > { %v2400_v49 = vmul.f32 %v2395_v28, %v2370_v2  ;;  %v2401_v12 = vmul.f32 %v2395_v28, %v2377_v27 }
 0x538   : > { %v2408_v4 = vadd.f32 %v2400_v49, %v2256_v20  ;;  %v2409_v5 = vadd.f32 %v2401_v12, %v2257_v52 }
 0x539   : > { %v2384_v0 = vpop.permute.xlu1 %2383  ;;  %v2391_v18 = vpop.permute.xlu0 %2390 }
 0x53a   : > { %v2402_v37 = vmul.f32 %v2395_v28, %v2384_v0  ;;  %v2403_v51 = vmul.f32 %v2395_v28, %v2391_v18 }
 0x53c   : > { %v2410_v22 = vadd.f32 %v2402_v37, %v2258_v61  ;;  %v2765_v37 = vld [vmem:[%s4080_s9 + $0x28] sm:$0xff] }
 0x53d   : > { %v2458_v3 = vpop.permute.xlu1 %2457  ;;  %v2465_v8 = vpop.permute.xlu0 %2464 }
 0x53e   : > { %v2512_v47 = vmul.f32 %v3968_v30, %v2458_v3  ;;  %v2513_v54 = vmul.f32 %v3968_v30, %v2465_v8 }
 0x540   : > { %v2520_v46 = vadd.f32 %v2512_v47, %v2404_v38  ;;  %v2521_v36 = vadd.f32 %v2513_v54, %v2405_v50 }
 0x541   : > { %v2472_v55 = vpop.permute.xlu1 %2471  ;;  %v2479_v25 = vpop.permute.xlu0 %2478 }
 0x542   : > { %v2514_v48 = vmul.f32 %v3968_v30, %v2472_v55  ;;  %v2515_v32 = vmul.f32 %v3968_v30, %v2479_v25 }
 0x544   : > { %v2522_v15 = vadd.f32 %v2514_v48, %v2406_v33  ;;  %v2523_v25 = vadd.f32 %v2515_v32, %v2407_v34  ;;  %v2764_v32 = vld [vmem:[%s4080_s9 + $0x20] sm:$0xff] }
 0x545   : > { %v3953_v11 = vpop.permute.xlu1 %2485  ;;  %v3955_v17 = vpop.permute.xlu0 %2492 }
 0x546   : > { %v2516_v0 = vmul.f32 %v3968_v30, %v3953_v11  ;;  %v2517_v18 = vmul.f32 %v3968_v30, %v3955_v17  ;;  %v2761_v11 = vld [vmem:[%s4080_s9 + $0x8] sm:$0xff] }
 0x548   : > { %v2524_v26 = vadd.f32 %v2516_v0, %v2408_v4 }
 0x549   : > { %v3957_v23 = vpop.permute.xlu1 %2499  ;;  %v3959_v39 = vpop.permute.xlu0 %2506 }
 0x54a   : > { %v2519_v63 = vmul.f32 %v3968_v30, %v3959_v39 }
 0x54d   : > { %v2574_v10 = vpop.permute.xlu1 %2573  ;;  %v2581_v13 = vpop.permute.xlu0 %2580 }
 0x54e   : > { %v2628_v41 = vmul.f32 %v3971_v40, %v2574_v10  ;;  %v2629_v6 = vmul.f32 %v3971_v40, %v2581_v13 }
 0x550   : > { %v2636_v10 = vadd.f32 %v2628_v41, %v2520_v46  ;;  %v2637_v13 = vadd.f32 %v2629_v6, %v2521_v36 }
 0x551   : > { %v2588_v16 = vpop.permute.xlu1 %2587  ;;  %v2595_v21 = vpop.permute.xlu0 %2594 }
 0x552   : > { %v2630_v2 = vmul.f32 %v3971_v40, %v2588_v16  ;;  %v2631_v27 = vmul.f32 %v3971_v40, %v2595_v21  ;;  %v2411_v16 = vadd.f32 %v2403_v51, %v2259_v60  ;;  %v2762_v60 = vld [vmem:[%s4080_s9 + $0x10] sm:$0xff] }
 0x554   : > { %v2638_v28 = vadd.f32 %v2630_v2, %v2522_v15  ;;  %v2639_v24 = vadd.f32 %v2631_v27, %v2523_v25  ;;  %v2527_v38 = vadd.f32 %v2519_v63, %v2411_v16 }
 0x555   : > { %v2602_v14 = vpop.permute.xlu1 %2601  ;;  %v2609_v58 = vpop.permute.xlu0 %2608 }
 0x556   : > { %v2632_v29 = vmul.f32 %v3971_v40, %v2602_v14  ;;  %v2633_v7 = vmul.f32 %v3971_v40, %v2609_v58  ;;  %v2525_v14 = vadd.f32 %v2517_v18, %v2409_v5  ;;  %v2518_v58 = vmul.f32 %v3968_v30, %v3957_v23  ;;  %v2763_v23 = vld [vmem:[%s4080_s9 + $0x18] sm:$0xff] }
 0x558   : > { %v2640_v52 = vadd.f32 %v2632_v29, %v2524_v26  ;;  %v2641_v47 = vadd.f32 %v2633_v7, %v2525_v14 }
 0x559   : > { %v2616_v59 = vpop.permute.xlu1 %2615  ;;  %v2623_v57 = vpop.permute.xlu0 %2622 }
 0x55a   : > { %v2634_v54 = vmul.f32 %v3971_v40, %v2616_v59  ;;  %v2635_v61 = vmul.f32 %v3971_v40, %v2623_v57  ;;  %v2526_v57 = vadd.f32 %v2518_v58, %v2410_v22 }
 0x55c   : > { %v2642_v34 = vadd.f32 %v2634_v54, %v2526_v57  ;;  %v2643_v48 = vadd.f32 %v2635_v61, %v2527_v38 }
 0x55d   : > { %v2690_v3 = vpop.permute.xlu1 %2689  ;;  %v2697_v8 = vpop.permute.xlu0 %2696 }
 0x55e   : > { %v2744_v9 = vmul.f32 %v3974_v42, %v2690_v3  ;;  %v2745_v55 = vmul.f32 %v3974_v42, %v2697_v8 }
 0x560   : > { %v2752_v31 = vadd.f32 %v2744_v9, %v2636_v10  ;;  %v2753_v21 = vadd.f32 %v2745_v55, %v2637_v13  ;;  %v2766_v13 = vld [vmem:[%s4080_s9 + $0x30] sm:$0xff]  ;;  %v2767_v9 = vld [vmem:[%s4080_s9 + $0x38] sm:$0xff] }
 0x561   : > { %v2704_v56 = vpop.permute.xlu1 %2703  ;;  %v2711_v17 = vpop.permute.xlu0 %2710 }
 0x562   : > { %v2768_v53 = vmul.f32 0.25, %v2752_v31  ;;  %v2769_v1 = vmul.f32 0.25, %v2753_v21  ;;  %v2746_v43 = vmul.f32 %v3974_v42, %v2704_v56  ;;  %v2747_v45 = vmul.f32 %v3974_v42, %v2711_v17 }
 0x564   : > { %v2776_v35 = vadd.f32 %v2768_v53, %v2760_v62  ;;  %v2777_v44 = vadd.f32 %v2769_v1, %v2761_v11  ;;  %v2754_v19 = vadd.f32 %v2746_v43, %v2638_v28  ;;  %v2755_v20 = vadd.f32 %v2747_v45, %v2639_v24 }
 0x565   : > { %v2718_v49 = vpop.permute.xlu1 %2717  ;;  %v2725_v39 = vpop.permute.xlu0 %2724 }
 0x566   : > { %2784 = vst.msk [vmem:[%s4080_s9] sm:$0xff] %vm481_vm1, %v2776_v35  ;;  %2785 = vst.msk [vmem:[%s4080_s9 + $0x8] sm:$0xff] %vm481_vm1, %v2777_v44  ;;  %v2770_v30 = vmul.f32 0.25, %v2754_v19  ;;  %v2771_v40 = vmul.f32 0.25, %v2755_v20  ;;  %v2748_v12 = vmul.f32 %v3974_v42, %v2718_v49  ;;  %v2749_v59 = vmul.f32 %v3974_v42, %v2725_v39 }
 0x568   : > { %v2778_v50 = vadd.f32 %v2770_v30, %v2762_v60  ;;  %v2779_v41 = vadd.f32 %v2771_v40, %v2763_v23  ;;  %v2756_v6 = vadd.f32 %v2748_v12, %v2640_v52  ;;  %v2757_v33 = vadd.f32 %v2749_v59, %v2641_v47 }
 0x569   : > { %v2732_v51 = vpop.permute.xlu1 %2731  ;;  %v2739_v46 = vpop.permute.xlu0 %2738 }
 0x56a   : > { %2786 = vst.msk [vmem:[%s4080_s9 + $0x10] sm:$0xff] %vm481_vm1, %v2778_v50  ;;  %2787 = vst.msk [vmem:[%s4080_s9 + $0x18] sm:$0xff] %vm481_vm1, %v2779_v41  ;;  %v2772_v36 = vmul.f32 0.25, %v2756_v6  ;;  %v2773_v4 = vmul.f32 0.25, %v2757_v33  ;;  %v2750_v5 = vmul.f32 %v3974_v42, %v2732_v51  ;;  %v2751_v2 = vmul.f32 %v3974_v42, %v2739_v46 }
 0x56c   : > { %v2780_v27 = vadd.f32 %v2772_v36, %v2764_v32  ;;  %v2781_v3 = vadd.f32 %v2773_v4, %v2765_v37  ;;  %v2758_v8 = vadd.f32 %v2750_v5, %v2642_v34  ;;  %v2759_v10 = vadd.f32 %v2751_v2, %v2643_v48 }
 0x56e   : > { %2788 = vst.msk [vmem:[%s4080_s9 + $0x20] sm:$0xff] %vm481_vm1, %v2780_v27  ;;  %2789 = vst.msk [vmem:[%s4080_s9 + $0x28] sm:$0xff] %vm481_vm1, %v2781_v3  ;;  %v2774_v42 = vmul.f32 0.25, %v2758_v8  ;;  %v2775_v55 = vmul.f32 0.25, %v2759_v10 }
 0x570   : > { %v2782_v15 = vadd.f32 %v2774_v42, %v2766_v13  ;;  %v2783_v25 = vadd.f32 %v2775_v55, %v2767_v9 }
 0x572   : > { %2790 = vst.msk [vmem:[%s4080_s9 + $0x30] sm:$0xff] %vm481_vm1, %v2782_v15  ;;  %2791 = vst.msk [vmem:[%s4080_s9 + $0x38] sm:$0xff] %vm481_vm1, %v2783_v25 }
 0x573 PF: > { %s19_s11 = sadd.s32 1, %s3162_s11   ;;  %s4104_s30 = smov %s3158_s10 }
 0x574   : > { %p16_p6 = scmp.ge.s32.totalorder %s19_s11, 4   ;;  %s4105_s10 = smov %s4107_s12 }
 0x576   :  { %18 = sbr.rel (!%p16_p6) target bundleno = 2 (0x2), region = 96 }

// kernel: evoblock_apply.18
= control target key start
LH: loop header
LB: loop body
LE: loop exit
PB: predicated region body
PF: predicated region fallthrough
CT: control target
= control target key end

     0   :  { %s1232_s9 = smov 0   ;;  %s1407_s0 = inlined_call_operand.vmem [shape: bf16[32,8,8], index: 0, kind: input, shape index: {}]   ;;  %s1408_s1 = inlined_call_operand.vmem [shape: bf16[32,8,8], index: 1, kind: input, shape index: {}]   ;;  %s1409_s2 = inlined_call_operand.vmem [shape: bf16[32,8,8], index: 2, kind: output, shape index: {}]  }
   0x1 LB: > { %s1040_s10 = sadd.s32 4294967295, %s1213_s9   ;;  %p1044_p0 = scmp.ge.s32.totalorder %s1213_s9, 1  ;;  %s1213_s9 = sphi %s1232_s9, %s12_s9  }
   0x2   : > { %p124_p1 = scmp.lt.s32.totalorder %s1213_s9, 3 }
   0x4   : > { %p125_p2 = pnand %p1044_p0, %p124_p1 }
   0x5   : > { %s1045_s11 = sshll.u32 (!%p125_p2), %s1040_s10, 4  ;;  %v1215_v0 = vmov (!%p125_p2), 0.0   ;;  %vm1216_vm0 = vmmov (!%p125_p2), 0   ;;  %vm202_vm1 = vcmask (!%p125_p2), 64512   ;;  %vm955_vm2 = vcmask (!%p125_p2), 60416  }
   0x6   : > { %128 = sbr.rel (%p125_p2) target bundleno = 296 (0x128), region = 28  ;;  %1101 = vmatprep.subr.bf16.mxu0 (!%p125_p2), %v1215_v0  ;;  %1107 = vmatprep.subr.bf16.mxu1 (!%p125_p2), %v1215_v0  ;;  %p152_p3 = scmp.lt.s32.totalorder (!%p125_p2), %s1045_s11, 31 }
   0x7   : > { %1103 = vmatprep.mubr.msk.bf16.mxu0 (!%p125_p2), %vm1216_vm0, %v1215_v0  ;;  %1109 = vmatprep.mubr.msk.bf16.mxu1 (!%p125_p2), %vm1216_vm0, %v1215_v0 }
   0xd   : > { %s1411_s11 = smov (!%p152_p3, %s1045_s11), 31 }
   0xe   : > { %s1246_s12 = sshll.u32 %s1411_s11, 2 }
   0xf   : > { %s1252_s15 = scalar_lea.vmem %s1408_s1, %s1246_s12  ;;  %s1262_s18 = scalar_lea.vmem %s1407_s0, %s1246_s12 }
  0x10   : > { %v186_v1 = vld [vmem:[%s1252_s15] sm:$0xf]  ;;  %v187_v2 = vld [vmem:[%s1252_s15 + $0x4] sm:$0xf]  ;;  %v188_v5 = vld [vmem:[%s1252_s15 + $0x8] sm:$0xf]  ;;  %s1370_s21 = scalar_lea.vmem %s1409_s2, %s1246_s12 }
  0x11   : > { %v207_v3 = vsel %vm202_vm1, %v186_v1, 0  ;;  %v253_v4 = vsel %vm202_vm1, %v187_v2, 0  ;;  %v189_v6 = vld [vmem:[%s1252_s15 + $0xc] sm:$0xf]  ;;  %v170_v7 = vld [vmem:[%s1262_s18] sm:$0xf] }
  0x12   : > { %1102 = vmatpush3.bf16.xpose.msra.mxu0 %v207_v3  ;;  %1108 = vmatpush3.bf16.xpose.msra.mxu1 %v253_v4  ;;  %v171_v8 = vld [vmem:[%s1262_s18 + $0x4] sm:$0xf]  ;;  %v299_v9 = vsel %vm202_vm1, %v188_v5, 0  ;;  %v345_v10 = vsel %vm202_vm1, %v189_v6, 0  ;;  %v190_v11 = vld [vmem:[%s1252_s15 + $0x10] sm:$0xf] }
  0x13   : > { %1113 = vmatprep.subr.bf16.mxu0 %v1215_v0  ;;  %1119 = vmatprep.subr.bf16.mxu1 %v1215_v0  ;;  %v191_v12 = vld [vmem:[%s1252_s15 + $0x14] sm:$0xf]  ;;  %v172_v13 = vld [vmem:[%s1262_s18 + $0x8] sm:$0xf]  ;;  %v173_v14 = vld [vmem:[%s1262_s18 + $0xc] sm:$0xf] }
  0x14   : > { %v391_v15 = vsel %vm202_vm1, %v190_v11, 0  ;;  %v437_v16 = vsel %vm202_vm1, %v191_v12, 0  ;;  %v192_v17 = vld [vmem:[%s1252_s15 + $0x18] sm:$0xf]  ;;  %v193_v18 = vld [vmem:[%s1252_s15 + $0x1c] sm:$0xf] }
  0x15   : > { %v174_v19 = vld [vmem:[%s1262_s18 + $0x10] sm:$0xf]  ;;  %v175_v20 = vld [vmem:[%s1262_s18 + $0x14] sm:$0xf]  ;;  %v483_v21 = vsel %vm202_vm1, %v192_v17, 0  ;;  %v529_v22 = vsel %vm202_vm1, %v193_v18, 0 }
  0x16   : > { %v194_v23 = vld [vmem:[%s1252_s15 + $0x20] sm:$0xf]  ;;  %v195_v24 = vld [vmem:[%s1252_s15 + $0x24] sm:$0xf]  ;;  %v176_v25 = vld [vmem:[%s1262_s18 + $0x18] sm:$0xf] }
  0x17   : > { %v177_v26 = vld [vmem:[%s1262_s18 + $0x1c] sm:$0xf]  ;;  %v575_v27 = vsel %vm202_vm1, %v194_v23, 0  ;;  %v621_v28 = vsel %vm202_vm1, %v195_v24, 0  ;;  %v196_v29 = vld [vmem:[%s1252_s15 + $0x28] sm:$0xf] }
  0x18   : > { %v197_v30 = vld [vmem:[%s1252_s15 + $0x2c] sm:$0xf]  ;;  %v178_v31 = vld [vmem:[%s1262_s18 + $0x20] sm:$0xf]  ;;  %v179_v32 = vld [vmem:[%s1262_s18 + $0x24] sm:$0xf] }
  0x19   : > { %1104 = vmatmul.mubr.msk.bf16.vlgmr.msra.gmra.mrb[0].mxu0 %vm202_vm1, %v170_v7  ;;  %1110 = vmatmul.mubr.msk.bf16.vlgmr.msra.gmra.mrb[0].mxu1 %vm202_vm1, %v171_v8  ;;  %v667_v33 = vsel %vm202_vm1, %v196_v29, 0  ;;  %v713_v34 = vsel %vm202_vm1, %v197_v30, 0  ;;  %v198_v35 = vld [vmem:[%s1252_s15 + $0x30] sm:$0xf]  ;;  %v199_v36 = vld [vmem:[%s1252_s15 + $0x34] sm:$0xf] }
  0x1a   : > { %1114 = vmatpush3.bf16.xpose.msra.mxu0 %v299_v9  ;;  %1120 = vmatpush3.bf16.xpose.msra.mxu1 %v345_v10  ;;  %v180_v37 = vld [vmem:[%s1262_s18 + $0x28] sm:$0xf]  ;;  %v181_v38 = vld [vmem:[%s1262_s18 + $0x2c] sm:$0xf]  ;;  %v759_v39 = vsel %vm202_vm1, %v198_v35, 0  ;;  %v805_v40 = vsel %vm202_vm1, %v199_v36, 0 }
  0x1b   : > { %1115 = vmatprep.mubr.msk.bf16.mxu0 %vm1216_vm0, %v1215_v0  ;;  %1121 = vmatprep.mubr.msk.bf16.mxu1 %vm1216_vm0, %v1215_v0  ;;  %v200_v41 = vld [vmem:[%s1252_s15 + $0x38] sm:$0xf]  ;;  %v201_v42 = vld [vmem:[%s1252_s15 + $0x3c] sm:$0xf]  ;;  %v182_v43 = vld [vmem:[%s1262_s18 + $0x30] sm:$0xf] }
  0x1c   : > { %1125 = vmatprep.subr.bf16.mxu0 %v1215_v0  ;;  %1131 = vmatprep.subr.bf16.mxu1 %v1215_v0  ;;  %v183_v44 = vld [vmem:[%s1262_s18 + $0x34] sm:$0xf]  ;;  %v851_v45 = vsel %vm202_vm1, %v200_v41, 0  ;;  %v897_v46 = vsel %vm202_vm1, %v201_v42, 0  ;;  %v184_v47 = vld [vmem:[%s1262_s18 + $0x38] sm:$0xf] }
  0x1d   : > { %v185_v48 = vld [vmem:[%s1262_s18 + $0x3c] sm:$0xf] }
  0x21   : > { %1116 = vmatmul.mubr.msk.bf16.vlgmr.msra.gmra.mrb[4].mxu0 %vm202_vm1, %v172_v13  ;;  %1122 = vmatmul.mubr.msk.bf16.vlgmr.msra.gmra.mrb[4].mxu1 %vm202_vm1, %v173_v14 }
  0x22   : > { %1126 = vmatpush3.bf16.xpose.msra.mxu0 %v391_v15  ;;  %1132 = vmatpush3.bf16.xpose.msra.mxu1 %v437_v16 }
  0x23   : > { %1127 = vmatprep.mubr.msk.bf16.mxu0 %vm1216_vm0, %v1215_v0  ;;  %1133 = vmatprep.mubr.msk.bf16.mxu1 %vm1216_vm0, %v1215_v0 }
  0x24   : > { %1137 = vmatprep.subr.bf16.mxu0 %v1215_v0  ;;  %1143 = vmatprep.subr.bf16.mxu1 %v1215_v0 }
  0x29   : > { %1128 = vmatmul.mubr.msk.bf16.vlgmr.msra.gmra.mrb[8].mxu0 %vm202_vm1, %v174_v19  ;;  %1134 = vmatmul.mubr.msk.bf16.vlgmr.msra.gmra.mrb[8].mxu1 %vm202_vm1, %v175_v20 }
  0x2a   : > { %1138 = vmatpush3.bf16.xpose.msra.mxu0 %v483_v21  ;;  %1144 = vmatpush3.bf16.xpose.msra.mxu1 %v529_v22 }
  0x2b   : > { %1139 = vmatprep.mubr.msk.bf16.mxu0 %vm1216_vm0, %v1215_v0  ;;  %1145 = vmatprep.mubr.msk.bf16.mxu1 %vm1216_vm0, %v1215_v0 }
  0x2c   : > { %1149 = vmatprep.subr.bf16.mxu0 %v1215_v0  ;;  %1155 = vmatprep.subr.bf16.mxu1 %v1215_v0 }
  0x31   : > { %1140 = vmatmul.mubr.msk.bf16.vlgmr.msra.gmra.mrb[12].mxu0 %vm202_vm1, %v176_v25  ;;  %1146 = vmatmul.mubr.msk.bf16.vlgmr.msra.gmra.mrb[12].mxu1 %vm202_vm1, %v177_v26 }
  0x32   : > { %1150 = vmatpush3.bf16.xpose.msra.mxu0 %v575_v27  ;;  %1156 = vmatpush3.bf16.xpose.msra.mxu1 %v621_v28 }
  0x33   : > { %1151 = vmatprep.mubr.msk.bf16.mxu0 %vm1216_vm0, %v1215_v0  ;;  %1157 = vmatprep.mubr.msk.bf16.mxu1 %vm1216_vm0, %v1215_v0 }
  0x34   : > { %1161 = vmatprep.subr.bf16.mxu0 %v1215_v0  ;;  %1167 = vmatprep.subr.bf16.mxu1 %v1215_v0 }
  0x39   : > { %1152 = vmatmul.mubr.msk.bf16.vlgmr.msra.gmra.mrb[16].mxu0 %vm202_vm1, %v178_v31  ;;  %1158 = vmatmul.mubr.msk.bf16.vlgmr.msra.gmra.mrb[16].mxu1 %vm202_vm1, %v179_v32 }
  0x3a   : > { %1162 = vmatpush3.bf16.xpose.msra.mxu0 %v667_v33  ;;  %1168 = vmatpush3.bf16.xpose.msra.mxu1 %v713_v34 }
  0x3b   : > { %1163 = vmatprep.mubr.msk.bf16.mxu0 %vm1216_vm0, %v1215_v0  ;;  %1169 = vmatprep.mubr.msk.bf16.mxu1 %vm1216_vm0, %v1215_v0 }
  0x3c   : > { %1173 = vmatprep.subr.bf16.mxu0 %v1215_v0  ;;  %1179 = vmatprep.subr.bf16.mxu1 %v1215_v0 }
  0x41   : > { %1164 = vmatmul.mubr.msk.bf16.vlgmr.msra.gmra.mrb[20].mxu0 %vm202_vm1, %v180_v37  ;;  %1170 = vmatmul.mubr.msk.bf16.vlgmr.msra.gmra.mrb[20].mxu1 %vm202_vm1, %v181_v38 }
  0x42   : > { %1174 = vmatpush3.bf16.xpose.msra.mxu0 %v759_v39  ;;  %1180 = vmatpush3.bf16.xpose.msra.mxu1 %v805_v40 }
  0x43   : > { %1175 = vmatprep.mubr.msk.bf16.mxu0 %vm1216_vm0, %v1215_v0  ;;  %1181 = vmatprep.mubr.msk.bf16.mxu1 %vm1216_vm0, %v1215_v0 }
  0x44   : > { %1185 = vmatprep.subr.bf16.mxu0 %v1215_v0  ;;  %1191 = vmatprep.subr.bf16.mxu1 %v1215_v0 }
  0x49   : > { %1176 = vmatmul.mubr.msk.bf16.vlgmr.msra.gmra.mrb[24].mxu0 %vm202_vm1, %v182_v43  ;;  %1182 = vmatmul.mubr.msk.bf16.vlgmr.msra.gmra.mrb[24].mxu1 %vm202_vm1, %v183_v44 }
  0x4a   : > { %1186 = vmatpush3.bf16.xpose.msra.mxu0 %v851_v45  ;;  %1192 = vmatpush3.bf16.xpose.msra.mxu1 %v897_v46 }
  0x4b   : > { %1187 = vmatprep.mubr.msk.bf16.mxu0 %vm1216_vm0, %v1215_v0  ;;  %1193 = vmatprep.mubr.msk.bf16.mxu1 %vm1216_vm0, %v1215_v0 }
  0x51   : > { %1188 = vmatmul.mubr.msk.bf16.vlgmr.msra.gmra.mrb[28].mxu0 %vm202_vm1, %v184_v47  ;;  %1194 = vmatmul.mubr.msk.bf16.vlgmr.msra.gmra.mrb[28].mxu1 %vm202_vm1, %v185_v48 }
  0xec   : > { %v243_v49 = vpop.f32.mrb[0].mxu0  ;;  %v289_v50 = vpop.f32.mrb[0].mxu1 }
  0xed   : > { %v939_v51 = vpack.c.bf16 %v243_v49, %v243_v49  ;;  %v940_v52 = vpack.c.bf16 %v289_v50, %v289_v50  ;;  %v1105_v53 = vpop.f32.mrb[1].mxu0  ;;  %v1111_v54 = vpop.f32.mrb[1].mxu1 }
  0xee   : > { %v246_v55 = vpop.f32.mrb[2].mxu0  ;;  %v292_v56 = vpop.f32.mrb[2].mxu1 }
  0xef   : > { %956 = vst.msk [vmem:[%s1370_s21] sm:$0xf] %vm955_vm2, %v939_v51  ;;  %957 = vst.msk [vmem:[%s1370_s21 + $0x4] sm:$0xf] %vm955_vm2, %v940_v52  ;;  %v1106_v57 = vpop.f32.mrb[3].mxu0  ;;  %v1112_v58 = vpop.f32.mrb[3].mxu1 }
  0xf4   : > { %v335_v59 = vpop.f32.mrb[4].mxu0  ;;  %v381_v60 = vpop.f32.mrb[4].mxu1 }
  0xf5   : > { %v941_v61 = vpack.c.bf16 %v335_v59, %v335_v59  ;;  %v942_v62 = vpack.c.bf16 %v381_v60, %v381_v60  ;;  %v1117_v63 = vpop.f32.mrb[5].mxu0  ;;  %v1123_v0 = vpop.f32.mrb[5].mxu1 }
  0xf6   : > { %v338_v1 = vpop.f32.mrb[6].mxu0  ;;  %v384_v2 = vpop.f32.mrb[6].mxu1 }
  0xf7   : > { %958 = vst.msk [vmem:[%s1370_s21 + $0x8] sm:$0xf] %vm955_vm2, %v941_v61  ;;  %959 = vst.msk [vmem:[%s1370_s21 + $0xc] sm:$0xf] %vm955_vm2, %v942_v62  ;;  %v1118_v3 = vpop.f32.mrb[7].mxu0  ;;  %v1124_v4 = vpop.f32.mrb[7].mxu1 }
  0xfc   : > { %v427_v5 = vpop.f32.mrb[8].mxu0  ;;  %v473_v6 = vpop.f32.mrb[8].mxu1 }
  0xfd   : > { %v943_v7 = vpack.c.bf16 %v427_v5, %v427_v5  ;;  %v944_v8 = vpack.c.bf16 %v473_v6, %v473_v6  ;;  %v1129_v9 = vpop.f32.mrb[9].mxu0  ;;  %v1135_v10 = vpop.f32.mrb[9].mxu1 }
  0xfe   : > { %v430_v11 = vpop.f32.mrb[10].mxu0  ;;  %v476_v12 = vpop.f32.mrb[10].mxu1 }
  0xff   : > { %960 = vst.msk [vmem:[%s1370_s21 + $0x10] sm:$0xf] %vm955_vm2, %v943_v7  ;;  %961 = vst.msk [vmem:[%s1370_s21 + $0x14] sm:$0xf] %vm955_vm2, %v944_v8  ;;  %v1130_v13 = vpop.f32.mrb[11].mxu0  ;;  %v1136_v14 = vpop.f32.mrb[11].mxu1 }
 0x104   : > { %v519_v15 = vpop.f32.mrb[12].mxu0  ;;  %v565_v16 = vpop.f32.mrb[12].mxu1 }
 0x105   : > { %v945_v17 = vpack.c.bf16 %v519_v15, %v519_v15  ;;  %v946_v18 = vpack.c.bf16 %v565_v16, %v565_v16  ;;  %v1141_v19 = vpop.f32.mrb[13].mxu0  ;;  %v1147_v20 = vpop.f32.mrb[13].mxu1 }
 0x106   : > { %v522_v21 = vpop.f32.mrb[14].mxu0  ;;  %v568_v22 = vpop.f32.mrb[14].mxu1 }
 0x107   : > { %962 = vst.msk [vmem:[%s1370_s21 + $0x18] sm:$0xf] %vm955_vm2, %v945_v17  ;;  %963 = vst.msk [vmem:[%s1370_s21 + $0x1c] sm:$0xf] %vm955_vm2, %v946_v18  ;;  %v1142_v23 = vpop.f32.mrb[15].mxu0  ;;  %v1148_v24 = vpop.f32.mrb[15].mxu1 }
 0x10c   : > { %v611_v25 = vpop.f32.mrb[16].mxu0  ;;  %v657_v26 = vpop.f32.mrb[16].mxu1 }
 0x10d   : > { %v947_v27 = vpack.c.bf16 %v611_v25, %v611_v25  ;;  %v948_v28 = vpack.c.bf16 %v657_v26, %v657_v26  ;;  %v1153_v29 = vpop.f32.mrb[17].mxu0  ;;  %v1159_v30 = vpop.f32.mrb[17].mxu1 }
 0x10e   : > { %v614_v31 = vpop.f32.mrb[18].mxu0  ;;  %v660_v32 = vpop.f32.mrb[18].mxu1 }
 0x10f   : > { %964 = vst.msk [vmem:[%s1370_s21 + $0x20] sm:$0xf] %vm955_vm2, %v947_v27  ;;  %965 = vst.msk [vmem:[%s1370_s21 + $0x24] sm:$0xf] %vm955_vm2, %v948_v28  ;;  %v1154_v33 = vpop.f32.mrb[19].mxu0  ;;  %v1160_v34 = vpop.f32.mrb[19].mxu1 }
 0x114   : > { %v703_v35 = vpop.f32.mrb[20].mxu0  ;;  %v749_v36 = vpop.f32.mrb[20].mxu1 }
 0x115   : > { %v949_v37 = vpack.c.bf16 %v703_v35, %v703_v35  ;;  %v950_v38 = vpack.c.bf16 %v749_v36, %v749_v36  ;;  %v1165_v39 = vpop.f32.mrb[21].mxu0  ;;  %v1171_v40 = vpop.f32.mrb[21].mxu1 }
 0x116   : > { %v706_v41 = vpop.f32.mrb[22].mxu0  ;;  %v752_v42 = vpop.f32.mrb[22].mxu1 }
 0x117   : > { %966 = vst.msk [vmem:[%s1370_s21 + $0x28] sm:$0xf] %vm955_vm2, %v949_v37  ;;  %967 = vst.msk [vmem:[%s1370_s21 + $0x2c] sm:$0xf] %vm955_vm2, %v950_v38  ;;  %v1166_v43 = vpop.f32.mrb[23].mxu0  ;;  %v1172_v44 = vpop.f32.mrb[23].mxu1 }
 0x11c   : > { %v795_v45 = vpop.f32.mrb[24].mxu0  ;;  %v841_v46 = vpop.f32.mrb[24].mxu1 }
 0x11d   : > { %v951_v47 = vpack.c.bf16 %v795_v45, %v795_v45  ;;  %v952_v48 = vpack.c.bf16 %v841_v46, %v841_v46  ;;  %v1177_v49 = vpop.f32.mrb[25].mxu0  ;;  %v1183_v50 = vpop.f32.mrb[25].mxu1 }
 0x11e   : > { %v798_v51 = vpop.f32.mrb[26].mxu0  ;;  %v844_v52 = vpop.f32.mrb[26].mxu1 }
 0x11f   : > { %968 = vst.msk [vmem:[%s1370_s21 + $0x30] sm:$0xf] %vm955_vm2, %v951_v47  ;;  %969 = vst.msk [vmem:[%s1370_s21 + $0x34] sm:$0xf] %vm955_vm2, %v952_v48  ;;  %v1178_v53 = vpop.f32.mrb[27].mxu0  ;;  %v1184_v54 = vpop.f32.mrb[27].mxu1 }
 0x124   : > { %v887_v55 = vpop.f32.mrb[28].mxu0  ;;  %v933_v56 = vpop.f32.mrb[28].mxu1 }
 0x125   : > { %v953_v57 = vpack.c.bf16 %v887_v55, %v887_v55  ;;  %v954_v58 = vpack.c.bf16 %v933_v56, %v933_v56  ;;  %v1189_v59 = vpop.f32.mrb[29].mxu0  ;;  %v1195_v60 = vpop.f32.mrb[29].mxu1 }
 0x126   : > { %v890_v61 = vpop.f32.mrb[30].mxu0  ;;  %v936_v62 = vpop.f32.mrb[30].mxu1 }
 0x127   : > { %970 = vst.msk [vmem:[%s1370_s21 + $0x38] sm:$0xf] %vm955_vm2, %v953_v57  ;;  %971 = vst.msk [vmem:[%s1370_s21 + $0x3c] sm:$0xf] %vm955_vm2, %v954_v58  ;;  %v1190_v63 = vpop.f32.mrb[31].mxu0  ;;  %v1196_v0 = vpop.f32.mrb[31].mxu1 }
 0x128 PF: > { %s12_s9 = sadd.s32 1, %s1213_s9  }
 0x129   : > { %p9_p4 = scmp.ge.s32.totalorder %s12_s9, 4  }
 0x12b   :  { %11 = sbr.rel (!%p9_p4) target bundleno = 1 (0x1), region = 61 }

// kernel: evoblock_apply.19
= control target key start
LH: loop header
LB: loop body
LE: loop exit
PB: predicated region body
PF: predicated region fallthrough
CT: control target
= control target key end

     0   :  { %vm46_vm0 = vcmask 261120   ;;  %v667_v16 = vmov 0   ;;  %vm322_vm1 = vcmask 523264   ;;  %s1009_s0 = inlined_call_operand.vmem [shape: f32[64,32], index: 0, kind: input, shape index: {}]   ;;  %s1010_s1 = inlined_call_operand.vmem [shape: bf16[32,64], index: 1, kind: input, shape index: {}]   ;;  %s1011_s6 = inlined_call_operand.vmem [shape: f32[32,1], index: 6, kind: input, shape index: {}]   ;;  %s1012_s4 = inlined_call_operand.vmem [shape: f32[32,32], index: 4, kind: input, shape index: {}]   ;;  %s1013_s7 = inlined_call_operand.vmem [shape: f32[32,1], index: 7, kind: input, shape index: {}]   ;;  %s1014_s8 = inlined_call_operand.vmem [shape: f32[32,32], index: 8, kind: input, shape index: {}]   ;;  %s1015_s2 = inlined_call_operand.vmem [shape: f32[1,32], index: 2, kind: input, shape index: {}]   ;;  %s1016_s3 = inlined_call_operand.vmem [shape: f32[1,32], index: 3, kind: input, shape index: {}]   ;;  %s1017_s5 = inlined_call_operand.vmem [shape: f32[1,32], index: 5, kind: input, shape index: {}]   ;;  %s1018_s9 = inlined_call_operand.vmem [shape: f32[1,32], index: 9, kind: input, shape index: {}]   ;;  %s1019_s10 = inlined_call_operand.vmem [shape: f32[64,32], index: 10, kind: output, shape index: {}]  }
   0x1   :  { %v726_v0 = vld [vmem:[%s1009_s0] sm:$0xff]  ;;  %v731_v1 = vld [vmem:[%s1009_s0 + $0x10] sm:$0xff]  ;;  %v736_v2 = vld [vmem:[%s1009_s0 + $0x8] sm:$0xff]  ;;  %616 = vset.pattern.permute.xlu1 %v667_v16  ;;  %615 = vset.pattern.permute.xlu0 %v667_v16 }
   0x2   :  { %v47_v3 = vsel %vm46_vm0, %v726_v0, 0.0  ;;  %v53_v4 = vsel %vm46_vm0, %v731_v1, 0.0  ;;  %v745_v5 = vld [vmem:[%s1009_s0 + $0x18] sm:$0xff]  ;;  %v50_v6 = vsel %vm46_vm0, %v736_v2, 0.0  ;;  %v754_v8 = vld [vmem:[%s1009_s0 + $0x20] sm:$0xff]  ;;  %v759_v9 = vld [vmem:[%s1009_s0 + $0x28] sm:$0xff] }
   0x3   :  { %48 = vadd.xlane.f32.xlu0 %v47_v3  ;;  %54 = vadd.xlane.f32.xlu1 %v53_v4  ;;  %v56_v7 = vsel %vm46_vm0, %v745_v5, 0.0  ;;  %v59_v10 = vsel %vm46_vm0, %v754_v8, 0.0  ;;  %v62_v11 = vsel %vm46_vm0, %v759_v9, 0.0  ;;  %v768_v12 = vld [vmem:[%s1009_s0 + $0x30] sm:$0xff]  ;;  %v773_v13 = vld [vmem:[%s1009_s0 + $0x38] sm:$0xff]  ;;  %v570_v17 = vld [vmem:[%s1010_s1] sm:$0xff]  }
   0x4   :  { %v65_v14 = vsel %vm46_vm0, %v768_v12, 0.0  ;;  %v68_v15 = vsel %vm46_vm0, %v773_v13, 0.0  ;;  %v571_v18 = vunpack.c.l.bf16 %v570_v17  ;;  %v572_v19 = vunpack.c.h.bf16 %v570_v17  ;;  %v577_v20 = vld [vmem:[%s1010_s1 + $0x8] sm:$0xff]  }
   0x5   :  { %v575_v21 = vunpack.c.l.bf16 %v577_v20  ;;  %v576_v25 = vunpack.c.h.bf16 %v577_v20 }
   0x6   :  { %v323_v22 = vsel %vm322_vm1, %v571_v18, 0.0  ;;  %v324_v23 = vsel %vm322_vm1, %v572_v19, 0.0 }
   0x7   :  { %51 = vadd.xlane.f32.xlu0 %v50_v6  ;;  %57 = vadd.xlane.f32.xlu1 %v56_v7  ;;  %v325_v24 = vadd.f32 %v324_v23, %v323_v22  ;;  %v326_v26 = vsel %vm322_vm1, %v575_v21, 0.0  ;;  %v328_v28 = vsel %vm322_vm1, %v576_v25, 0.0 }
   0x9   :  { %v327_v27 = vadd.f32 %v326_v26, %v325_v24 }
   0xb   :  { %60 = vadd.xlane.f32.xlu0 %v59_v10  ;;  %63 = vadd.xlane.f32.xlu1 %v62_v11  ;;  %v329_v29 = vadd.f32 %v328_v28, %v327_v27 }
   0xd   :  { %v330_v30 = vrot.slane %v329_v29, 4 }
   0xf   :  { %66 = vadd.xlane.f32.xlu0 %v65_v14  ;;  %69 = vadd.xlane.f32.xlu1 %v68_v15  ;;  %v331_v31 = vadd.f32 %v330_v30, %v329_v29 }
  0x11   :  { %v332_v32 = vrot.slane %v331_v31, 2 }
  0x13   :  { %v333_v33 = vadd.f32 %v332_v32, %v331_v31 }
  0x15   :  { %v334_v34 = vrot.slane %v333_v33, 1 }
  0x17   :  { %v335_v35 = vadd.f32 %v334_v34, %v333_v33 }
  0x19   :  { %v336_v36 = vmul.f32 0.03125, %v335_v35 }
  0x1b   :  { %v789_v37 = vsub.f32 %v571_v18, %v336_v36  ;;  %v791_v38 = vsub.f32 %v572_v19, %v336_v36  ;;  %v793_v43 = vsub.f32 %v575_v21, %v336_v36  ;;  %v805_v48 = vsub.f32 %v576_v25, %v336_v36 }
  0x1d   :  { %v341_v44 = vmul.f32 %v789_v37, %v789_v37  ;;  %v342_v45 = vmul.f32 %v791_v38, %v791_v38  ;;  %v343_v49 = vmul.f32 %v793_v43, %v793_v43  ;;  %v344_v58 = vmul.f32 %v805_v48, %v805_v48 }
  0x1f   :  { %v345_v52 = vsel %vm322_vm1, %v341_v44, 0.0  ;;  %v346_v53 = vsel %vm322_vm1, %v342_v45, 0.0  ;;  %v348_v60 = vsel %vm322_vm1, %v343_v49, 0.0  ;;  %v350_v10 = vsel %vm322_vm1, %v344_v58, 0.0  ;;  %v365_v44 = vld [vmem:[%s1011_s6] sm:$0xff]  ;;  %v395_v58 = vld [vmem:[%s1013_s7 + $0x10] sm:$0xff] }
  0x20   :  { %v347_v59 = vadd.f32 %v346_v53, %v345_v52  ;;  %v185_v52 = vld [vmem:[%s1012_s4 + $0x8] sm:$0xff] }
  0x22   :  { %v349_v7 = vadd.f32 %v348_v60, %v347_v59 }
  0x24   :  { %v351_v17 = vadd.f32 %v350_v10, %v349_v7  ;;  %v423_v7 = vld [vmem:[%s1014_s8] sm:$0xff]  ;;  %v424_v10 = vld [vmem:[%s1014_s8 + $0x8] sm:$0xff] }
  0x26   :  { %v352_v22 = vrot.slane %v351_v17, 4 }
  0x28   :  { %v353_v27 = vadd.f32 %v352_v22, %v351_v17 }
  0x2a   :  { %v354_v30 = vrot.slane %v353_v27, 2 }
  0x2c   :  { %v355_v33 = vadd.f32 %v354_v30, %v353_v27 }
  0x2e   :  { %v356_v35 = vrot.slane %v355_v33, 1 }
  0x30   :  { %v357_v36 = vadd.f32 %v356_v35, %v355_v33 }
  0x90   :  { %v49_v39 = vpop.xlane.xlu0 %48  ;;  %v55_v40 = vpop.xlane.xlu1 %54 }
  0x91   :  { %v72_v41 = vmul.f32 0.03125, %v49_v39  ;;  %v74_v42 = vmul.f32 0.03125, %v55_v40  ;;  %v358_v39 = vmul.f32 0.03125, %v357_v36 }
  0x93   :  { %v800_v46 = vsub.f32 %v726_v0, %v72_v41  ;;  %v803_v47 = vsub.f32 %v731_v1, %v74_v42  ;;  %v359_v40 = vadd.f32 1e-05, %v358_v39  ;;  %v366_v41 = vld [vmem:[%s1011_s6 + $0x8] sm:$0xff]  ;;  %v367_v42 = vld [vmem:[%s1011_s6 + $0x10] sm:$0xff] }
  0x94   :  { %v52_v50 = vpop.xlane.xlu0 %51  ;;  %v58_v51 = vpop.xlane.xlu1 %57 }
  0x95   :  { %v73_v54 = vmul.f32 0.03125, %v52_v50  ;;  %v75_v55 = vmul.f32 0.03125, %v58_v51  ;;  %v88_v56 = vmul.f32 %v800_v46, %v800_v46  ;;  %v90_v57 = vmul.f32 %v803_v47, %v803_v47  ;;  %v368_v50 = vld [vmem:[%s1011_s6 + $0x18] sm:$0xff]  ;;  %v184_v51 = vld [vmem:[%s1012_s4] sm:$0xff] }
  0x96   :  { %617 = vrsqrt.f32 %v359_v40  ;;  %v188_v53 = vpack.c.bf16 %v185_v52, %v184_v51  ;;  %v913_v40 = vld [vmem:[%s1015_s2] ss:$0 sm:$0xff] }
  0x97   :  { %v819_v61 = vsub.f32 %v736_v2, %v73_v54  ;;  %v822_v62 = vsub.f32 %v745_v5, %v75_v55  ;;  %v96_v63 = vsel %vm46_vm0, %v88_v56, 0.0  ;;  %v102_v6 = vsel %vm46_vm0, %v90_v57, 0.0  ;;  %v186_v55 = vld [vmem:[%s1012_s4 + $0x10] sm:$0xff]  ;;  %v187_v56 = vld [vmem:[%s1012_s4 + $0x18] sm:$0xff] }
  0x98   :  { %97 = vadd.xlane.f32.xlu0 %v96_v63  ;;  %v61_v3 = vpop.xlane.xlu0 %60  ;;  %v64_v4 = vpop.xlane.xlu1 %63  ;;  %590 = vmatprep.subr.bf16.mxu0 %v188_v53  ;;  %v189_v57 = vpack.c.bf16 %v187_v56, %v186_v55 }
  0x99   :  { %v76_v11 = vmul.f32 0.03125, %v61_v3  ;;  %v77_v14 = vmul.f32 0.03125, %v64_v4  ;;  %v89_v15 = vmul.f32 %v819_v61, %v819_v61  ;;  %v91_v16 = vmul.f32 %v822_v62, %v822_v62  ;;  %591 = vmatpush3.bf16.msra.mxu0 %v188_v53 }
  0x9a   :  { %592 = vmatprep.subr.bf16.mxu0 %v189_v57 }
  0x9b   :  { %v832_v18 = vsub.f32 %v754_v8, %v76_v11  ;;  %v835_v19 = vsub.f32 %v759_v9, %v77_v14  ;;  %v99_v20 = vsel %vm46_vm0, %v89_v15, 0.0  ;;  %v105_v24 = vsel %vm46_vm0, %v91_v16, 0.0 }
  0x9c   :  { %103 = vadd.xlane.f32.xlu0 %v102_v6  ;;  %100 = vadd.xlane.f32.xlu1 %v99_v20  ;;  %v67_v21 = vpop.xlane.xlu0 %66  ;;  %v70_v59 = vpop.xlane.xlu1 %69  ;;  %v396_v6 = vld [vmem:[%s1013_s7 + $0x18] sm:$0xff]  ;;  %v427_v11 = vpack.c.bf16 %v424_v10, %v423_v7 }
  0x9d   :  { %v78_v23 = vmul.f32 0.03125, %v67_v21  ;;  %v92_v25 = vmul.f32 %v832_v18, %v832_v18  ;;  %v93_v26 = vmul.f32 %v835_v19, %v835_v19  ;;  %593 = vmatpush3.bf16.msra.mxu0 %v189_v57  ;;  %v79_v60 = vmul.f32 0.03125, %v70_v59 }
  0x9e   :  { %602 = vmatprep.subr.bf16.mxu1 %v427_v11 }
  0x9f   :  { %v844_v28 = vsub.f32 %v768_v12, %v78_v23  ;;  %v108_v29 = vsel %vm46_vm0, %v92_v25, 0.0  ;;  %v111_v31 = vsel %vm46_vm0, %v93_v26, 0.0  ;;  %v895_v63 = vsub.f32 %v773_v13, %v79_v60  ;;  %603 = vmatpush3.bf16.msra.mxu1 %v427_v11 }
  0xa0   :  { %106 = vadd.xlane.f32.xlu1 %v105_v24  ;;  %109 = vadd.xlane.f32.xlu0 %v108_v29  ;;  %v860_v45 = vpop.eup %617 }
  0xa1   :  { %v94_v32 = vmul.f32 %v844_v28, %v844_v28  ;;  %v864_v49 = vmul.f32 %v860_v45, %v793_v43  ;;  %v877_v54 = vmul.f32 %v860_v45, %v805_v48  ;;  %v393_v43 = vld [vmem:[%s1013_s7] sm:$0xff]  ;;  %v394_v48 = vld [vmem:[%s1013_s7 + $0x8] sm:$0xff]  ;;  %v95_v3 = vmul.f32 %v895_v63, %v895_v63 }
  0xa2   :  { %v361_v60 = vmul.f32 %v860_v45, %v789_v37 }
  0xa3   :  { %v114_v34 = vsel %vm46_vm0, %v94_v32, 0.0  ;;  %v117_v4 = vsel %vm46_vm0, %v95_v3, 0.0 }
  0xa4   :  { %112 = vadd.xlane.f32.xlu1 %v111_v31  ;;  %115 = vadd.xlane.f32.xlu0 %v114_v34 }
  0xb5   :  { %376 = vperm.xlu1 %616, %v366_v41  }
  0xb9   :  { %381 = vperm.xlu1 %616, %v367_v42  }
  0xba   :  { %371 = vperm.xlu0 %615, %v365_v44  }
  0xbd   :  { %386 = vperm.xlu1 %616, %v368_v50  }
  0xc1   :  { %399 = vperm.xlu1 %616, %v393_v43  }
  0xc5   :  { %404 = vperm.xlu1 %616, %v394_v48  }
  0xc9   :  { %409 = vperm.xlu1 %616, %v395_v58  }
  0xed   :  { %118 = vadd.xlane.f32.xlu1 %v117_v4 }
  0xfe   :  { %414 = vperm.xlu1 %616, %v396_v6  }
 0x125   :  { %v98_v14 = vpop.xlane.xlu0 %97 }
 0x126   :  { %v120_v15 = vmul.f32 0.03125, %v98_v14 }
 0x128   :  { %v128_v16 = vadd.f32 1e-05, %v120_v15 }
 0x129   :  { %v101_v17 = vpop.xlane.xlu1 %100  ;;  %v104_v20 = vpop.xlane.xlu0 %103 }
 0x12a   :  { %619 = vrsqrt.f32 %v128_v16  ;;  %v121_v21 = vmul.f32 0.03125, %v101_v17  ;;  %v122_v22 = vmul.f32 0.03125, %v104_v20 }
 0x12c   :  { %v129_v23 = vadd.f32 1e-05, %v121_v21  ;;  %v130_v24 = vadd.f32 1e-05, %v122_v22 }
 0x12d   :  { %v107_v25 = vpop.xlane.xlu1 %106  ;;  %v110_v26 = vpop.xlane.xlu0 %109 }
 0x12e   :  { %621 = vrsqrt.f32 %v129_v23  ;;  %v123_v27 = vmul.f32 0.03125, %v107_v25  ;;  %v124_v29 = vmul.f32 0.03125, %v110_v26  ;;  %v425_v25 = vld [vmem:[%s1014_s8 + $0x10] sm:$0xff]  ;;  %v426_v26 = vld [vmem:[%s1014_s8 + $0x18] sm:$0xff] }
 0x12f   :  { %623 = vrsqrt.f32 %v130_v24 }
 0x130   :  { %v131_v30 = vadd.f32 1e-05, %v123_v27  ;;  %v132_v31 = vadd.f32 1e-05, %v124_v29  ;;  %v428_v27 = vpack.c.bf16 %v426_v26, %v425_v25 }
 0x131   :  { %v113_v32 = vpop.xlane.xlu1 %112  ;;  %v116_v43 = vpop.xlane.xlu0 %115 }
 0x132   :  { %625 = vrsqrt.f32 %v131_v30  ;;  %v125_v33 = vmul.f32 0.03125, %v113_v32  ;;  %604 = vmatprep.subr.bf16.mxu1 %v428_v27  ;;  %v126_v29 = vmul.f32 0.03125, %v116_v43 }
 0x133   :  { %627 = vrsqrt.f32 %v132_v31  ;;  %605 = vmatpush3.bf16.msra.mxu1 %v428_v27 }
 0x134   :  { %v620_v34 = vpop.eup %619  ;;  %v133_v35 = vadd.f32 1e-05, %v125_v33  ;;  %v134_v30 = vadd.f32 1e-05, %v126_v29 }
 0x135   :  { %v377_v36 = vpop.permute.xlu1 %376  ;;  %v144_v39 = vmul.f32 %v620_v34, %v800_v46  ;;  %v922_v46 = vld [vmem:[%s1016_s3] ss:$0 sm:$0xff] }
 0x136   :  { %629 = vrsqrt.f32 %v133_v35 }
 0x137   :  { %v158_v51 = vmul.f32 %v913_v40, %v144_v39  ;;  %631 = vrsqrt.f32 %v134_v30 }
 0x138   :  { %v622_v41 = vpop.eup %621 }
 0x139   :  { %v624_v42 = vpop.eup %623  ;;  %v382_v44 = vpop.permute.xlu1 %381  ;;  %v145_v50 = vmul.f32 %v622_v41, %v819_v61  ;;  %v172_v61 = vadd.f32 %v922_v46, %v158_v51 }
 0x13a   :  { %v146_v52 = vmul.f32 %v624_v42, %v803_v47  ;;  %v391_v53 = vmul.f32 %v382_v44, %v864_v49  ;;  %v372_v3 = vpop.permute.xlu0 %371 }
 0x13b   :  { %v159_v55 = vmul.f32 %v913_v40, %v145_v50  ;;  %v389_v37 = vmul.f32 %v372_v3, %v361_v60  ;;  %v559_v3 = vld [vmem:[%s1017_s5] ss:$0 sm:$0xff] }
 0x13c   :  { %v626_v56 = vpop.eup %625  ;;  %v160_v47 = vmul.f32 %v913_v40, %v146_v52 }
 0x13d   :  { %v628_v57 = vpop.eup %627  ;;  %v147_v48 = vmul.f32 %v626_v56, %v822_v62  ;;  %v387_v58 = vpop.permute.xlu1 %386  ;;  %v173_v59 = vadd.f32 %v922_v46, %v159_v55  ;;  %v362_v62 = vmul.f32 %v860_v45, %v791_v38 }
 0x13e   :  { %v148_v49 = vmul.f32 %v628_v57, %v832_v18  ;;  %v174_v14 = vadd.f32 %v922_v46, %v160_v47  ;;  %v392_v34 = vmul.f32 %v387_v58, %v877_v54 }
 0x13f   :  { %v180_v4 = vpack.c.bf16 %v173_v59, %v172_v61  ;;  %v161_v6 = vmul.f32 %v913_v40, %v147_v48  ;;  %v390_v20 = vmul.f32 %v377_v36, %v362_v62 }
 0x140   :  { %v630_v7 = vpop.eup %629  ;;  %v162_v15 = vmul.f32 %v913_v40, %v148_v49 }
 0x141   :  { %v149_v10 = vmul.f32 %v630_v7, %v835_v19  ;;  %v400_v11 = vpop.permute.xlu1 %399  ;;  %594 = vmatprep.mubr.msk.bf16.mxu0 %vm46_vm0, %v180_v4  ;;  %v175_v18 = vadd.f32 %v922_v46, %v161_v6  ;;  %v632_v44 = vpop.eup %631 }
 0x142   :  { %v176_v38 = vadd.f32 %v922_v46, %v162_v15  ;;  %v417_v45 = vadd.f32 %v400_v11, %v389_v37  ;;  %v150_v50 = vmul.f32 %v632_v44, %v844_v28 }
 0x143   :  { %v181_v16 = vpack.c.bf16 %v175_v18, %v174_v14  ;;  %v163_v17 = vmul.f32 %v913_v40, %v149_v10 }
 0x144   :  { %v164_v43 = vmul.f32 %v913_v40, %v150_v50 }
 0x145   :  { %v405_v21 = vpop.permute.xlu1 %404  ;;  %595 = vmatmul.mubr.msk.bf16.vlgmr.msra.gmra.mrb[0].mxu0 %vm46_vm0, %v181_v16  ;;  %v177_v19 = vadd.f32 %v922_v46, %v163_v17 }
 0x146   :  { %v418_v22 = vadd.f32 %v405_v21, %v390_v20  ;;  %v178_v56 = vadd.f32 %v922_v46, %v164_v43 }
 0x147   :  { %v182_v23 = vpack.c.bf16 %v177_v19, %v176_v38 }
 0x148   :  { %v421_v24 = vpack.c.bf16 %v418_v22, %v417_v45 }
 0x149   :  { %598 = vmatprep.mubr.msk.bf16.mxu0 %vm46_vm0, %v182_v23  ;;  %v410_v31 = vpop.permute.xlu1 %409 }
 0x14a   :  { %436 = vxpose.xlu1.c.b16.start [1/2] (short) (narrow) %v421_v24, 64  ;;  %v419_v39 = vadd.f32 %v410_v31, %v391_v53 }
 0x17a   :  { %v119_v32 = vpop.xlane.xlu1 %118 }
 0x17b   :  { %v127_v33 = vmul.f32 0.03125, %v119_v32 }
 0x17d   :  { %v135_v35 = vadd.f32 1e-05, %v127_v33 }
 0x17e   :  { %v415_v36 = vpop.permute.xlu1 %414 }
 0x17f   :  { %633 = vrsqrt.f32 %v135_v35  ;;  %v420_v41 = vadd.f32 %v415_v36, %v392_v34 }
 0x181   :  { %v422_v42 = vpack.c.bf16 %v420_v41, %v419_v39 }
 0x183   :  { %437 = vxpose.xlu1.c.b16.end [2/2] (short) (narrow) %v422_v42, 64 }
 0x189   :  { %v634_v51 = vpop.eup %633 }
 0x18a   :  { %v151_v52 = vmul.f32 %v634_v51, %v895_v63 }
 0x18c   :  { %v165_v55 = vmul.f32 %v913_v40, %v151_v52 }
 0x18e   :  { %v179_v54 = vadd.f32 %v922_v46, %v165_v55  ;;  %v564_v55 = vld [vmem:[%s1018_s9] ss:$0 sm:$0xff] }
 0x190   :  { %v183_v57 = vpack.c.bf16 %v179_v54, %v178_v56 }
 0x192   :  { %599 = vmatmul.mubr.msk.bf16.gmra.mrb[4].mxu0 %vm46_vm0, %v183_v57 }
 0x1e5   :  { %v444_v53 = vpop.trf.xlu1 }
 0x1e6   :  { %606 = vmatprep.mubr.msk.bf16.mxu1 %vm46_vm0, %v444_v53 }
 0x1e9   :  { %v445_v48 = vpop.trf.xlu1 }
 0x1ea   :  { %607 = vmatmul.mubr.msk.bf16.vlgmr.msra.gmra.mrb[0].mxu1 %vm46_vm0, %v445_v48 }
 0x1ed   :  { %v446_v28 = vpop.trf.xlu1 }
 0x1ee   :  { %610 = vmatprep.mubr.msk.bf16.mxu1 %vm46_vm0, %v446_v28 }
 0x1f1   :  { %v447_v63 = vpop.trf.xlu1 }
 0x1f2   :  { %611 = vmatmul.mubr.msk.bf16.gmra.mrb[4].mxu1 %vm46_vm0, %v447_v63 }
 0x218   :  { %v596_v40 = vpop.f32.mrb[0].mxu0 }
 0x219   :  { %v243_v58 = vpop.f32.mrb[1].mxu0  ;;  %v252_v4 = vadd.f32 %v596_v40, %v559_v3 }
 0x21a   :  { %v597_v61 = vpop.f32.mrb[2].mxu0  ;;  %v244_v6 = vadd.f32 %v559_v3, %v243_v58 }
 0x21b   :  { %v246_v59 = vpop.f32.mrb[3].mxu0  ;;  %v255_v7 = vadd.f32 %v597_v61, %v559_v3  ;;  %v276_v10 = vsub.f32 0.0, %v252_v4 }
 0x21c   :  { %v247_v62 = vadd.f32 %v559_v3, %v246_v59  ;;  %v274_v11 = vsub.f32 0.0, %v244_v6 }
 0x21d   :  { %v277_v14 = vsub.f32 0.0, %v255_v7  ;;  %v286_v15 = vmul.f32 1.442695, %v276_v10 }
 0x21e   :  { %v275_v18 = vsub.f32 0.0, %v247_v62  ;;  %v282_v16 = vmul.f32 1.442695, %v274_v11 }
 0x21f   :  { %v288_v20 = vmul.f32 1.442695, %v277_v14  ;;  %635 = vpow2.f32 %v286_v15 }
 0x220   :  { %v284_v38 = vmul.f32 1.442695, %v275_v18  ;;  %637 = vpow2.f32 %v282_v16 }
 0x221   :  { %639 = vpow2.f32 %v288_v20 }
 0x222   :  { %641 = vpow2.f32 %v284_v38 }
 0x229   :  { %v636_v30 = vpop.eup %635 }
 0x22a   :  { %v638_v31 = vpop.eup %637  ;;  %v300_v34 = vadd.f32 1.0, %v636_v30 }
 0x22b   :  { %v640_v32 = vpop.eup %639  ;;  %v298_v35 = vadd.f32 1.0, %v638_v31 }
 0x22c   :  { %v642_v33 = vpop.eup %641  ;;  %v301_v36 = vadd.f32 1.0, %v640_v32 }
 0x22d   :  { %v299_v39 = vadd.f32 1.0, %v642_v33 }
 0x265   :  { %v600_v46 = vpop.f32.mrb[4].mxu0 }
 0x266   :  { %v259_v47 = vpop.f32.mrb[5].mxu0  ;;  %v268_v37 = vadd.f32 %v600_v46, %v559_v3 }
 0x267   :  { %v601_v49 = vpop.f32.mrb[6].mxu0  ;;  %v260_v17 = vadd.f32 %v559_v3, %v259_v47 }
 0x268   :  { %v262_v60 = vpop.f32.mrb[7].mxu0  ;;  %v271_v21 = vadd.f32 %v601_v49, %v559_v3  ;;  %v280_v45 = vsub.f32 0.0, %v268_v37 }
 0x269   :  { %v263_v19 = vadd.f32 %v559_v3, %v262_v60  ;;  %v278_v22 = vsub.f32 0.0, %v260_v17 }
 0x26a   :  { %v281_v23 = vsub.f32 0.0, %v271_v21  ;;  %v294_v25 = vmul.f32 1.442695, %v280_v45 }
 0x26b   :  { %v279_v24 = vsub.f32 0.0, %v263_v19  ;;  %v290_v26 = vmul.f32 1.442695, %v278_v22 }
 0x26c   :  { %v296_v27 = vmul.f32 1.442695, %v281_v23  ;;  %643 = vpow2.f32 %v294_v25 }
 0x26d   :  { %v292_v29 = vmul.f32 1.442695, %v279_v24  ;;  %645 = vpow2.f32 %v290_v26 }
 0x26e   :  { %647 = vpow2.f32 %v296_v27 }
 0x26f   :  { %649 = vpow2.f32 %v292_v29 }
 0x270   :  { %651 = vrcp.f32 %v300_v34 }
 0x271   :  { %653 = vrcp.f32 %v298_v35 }
 0x272   :  { %655 = vrcp.f32 %v301_v36 }
 0x273   :  { %657 = vrcp.f32 %v299_v39 }
 0x276   :  { %v644_v41 = vpop.eup %643 }
 0x277   :  { %v646_v42 = vpop.eup %645  ;;  %v304_v51 = vadd.f32 1.0, %v644_v41 }
 0x278   :  { %v648_v44 = vpop.eup %647  ;;  %v302_v52 = vadd.f32 1.0, %v646_v42 }
 0x279   :  { %v650_v50 = vpop.eup %649  ;;  %v305_v43 = vadd.f32 1.0, %v648_v44  ;;  %659 = vrcp.f32 %v304_v51 }
 0x27a   :  { %v303_v56 = vadd.f32 1.0, %v650_v50  ;;  %661 = vrcp.f32 %v302_v52  ;;  %v652_v48 = vpop.eup %651 }
 0x27b   :  { %663 = vrcp.f32 %v305_v43  ;;  %v654_v40 = vpop.eup %653 }
 0x27c   :  { %665 = vrcp.f32 %v303_v56  ;;  %v656_v46 = vpop.eup %655 }
 0x27d   :  { %v658_v60 = vpop.eup %657 }
 0x283   :  { %v660_v14 = vpop.eup %659 }
 0x284   :  { %v662_v15 = vpop.eup %661 }
 0x285   :  { %v664_v17 = vpop.eup %663 }
 0x286   :  { %v666_v38 = vpop.eup %665 }
 0x2bd   :  { %v608_v54 = vpop.f32.mrb[0].mxu1 }
 0x2be   :  { %v507_v57 = vadd.f32 %v608_v54, %v564_v55  ;;  %v498_v53 = vpop.f32.mrb[1].mxu1 }
 0x2bf   :  { %v499_v28 = vadd.f32 %v564_v55, %v498_v53  ;;  %v609_v63 = vpop.f32.mrb[2].mxu1 }
 0x2c0   :  { %v531_v58 = vmul.f32 %v652_v48, %v507_v57  ;;  %v510_v61 = vadd.f32 %v609_v63, %v564_v55  ;;  %v501_v59 = vpop.f32.mrb[3].mxu1 }
 0x2c1   :  { %v529_v47 = vmul.f32 %v654_v40, %v499_v28  ;;  %v502_v49 = vadd.f32 %v564_v55, %v501_v59 }
 0x2c2   :  { %v539_v3 = vadd.f32 %v531_v58, %v731_v1  ;;  %v532_v4 = vmul.f32 %v656_v46, %v510_v61 }
 0x2c3   :  { %v537_v6 = vadd.f32 %v529_v47, %v726_v0  ;;  %v530_v7 = vmul.f32 %v658_v60, %v502_v49 }
 0x2c4   :  { %547 = vst.msk [vmem:[%s1019_s10 + $0x10] sm:$0xff] %vm46_vm0, %v539_v3  ;;  %v540_v62 = vadd.f32 %v532_v4, %v745_v5 }
 0x2c5   :  { %545 = vst.msk [vmem:[%s1019_s10] sm:$0xff] %vm46_vm0, %v537_v6  ;;  %v538_v10 = vadd.f32 %v530_v7, %v736_v2  ;;  %v612_v11 = vpop.f32.mrb[4].mxu1 }
 0x2c6   :  { %548 = vst.msk [vmem:[%s1019_s10 + $0x18] sm:$0xff] %vm46_vm0, %v540_v62  ;;  %v523_v0 = vadd.f32 %v612_v11, %v564_v55  ;;  %v514_v1 = vpop.f32.mrb[5].mxu1 }
 0x2c7   :  { %546 = vst.msk [vmem:[%s1019_s10 + $0x8] sm:$0xff] %vm46_vm0, %v538_v10  ;;  %v515_v5 = vadd.f32 %v564_v55, %v514_v1  ;;  %v613_v18 = vpop.f32.mrb[6].mxu1 }
 0x2c8   :  { %v535_v37 = vmul.f32 %v660_v14, %v523_v0  ;;  %v526_v16 = vadd.f32 %v613_v18, %v564_v55  ;;  %v517_v2 = vpop.f32.mrb[7].mxu1 }
 0x2c9   :  { %v533_v20 = vmul.f32 %v662_v15, %v515_v5  ;;  %v518_v21 = vadd.f32 %v564_v55, %v517_v2 }
 0x2ca   :  { %v543_v19 = vadd.f32 %v535_v37, %v768_v12  ;;  %v536_v45 = vmul.f32 %v664_v17, %v526_v16 }
 0x2cb   :  { %v541_v22 = vadd.f32 %v533_v20, %v754_v8  ;;  %v534_v23 = vmul.f32 %v666_v38, %v518_v21 }
 0x2cc   :  { %551 = vst.msk [vmem:[%s1019_s10 + $0x30] sm:$0xff] %vm46_vm0, %v543_v19  ;;  %v544_v24 = vadd.f32 %v536_v45, %v773_v13 }
 0x2cd   :  { %549 = vst.msk [vmem:[%s1019_s10 + $0x20] sm:$0xff] %vm46_vm0, %v541_v22  ;;  %v542_v25 = vadd.f32 %v534_v23, %v759_v9 }
 0x2ce   :  { %552 = vst.msk [vmem:[%s1019_s10 + $0x38] sm:$0xff] %vm46_vm0, %v544_v24 }
 0x2cf   :  { %550 = vst.msk [vmem:[%s1019_s10 + $0x28] sm:$0xff] %vm46_vm0, %v542_v25 }

// kernel: evoblock_apply.21
= control target key start
LH: loop header
LB: loop body
LE: loop exit
PB: predicated region body
PF: predicated region fallthrough
CT: control target
= control target key end

     0   :  { %s1490_s9 = smov 0   ;;  %s1689_s0 = inlined_call_operand.vmem [shape: bf16[32,8,8], index: 0, kind: input, shape index: {}]   ;;  %s1690_s1 = inlined_call_operand.vmem [shape: bf16[32,8,8], index: 1, kind: input, shape index: {}]   ;;  %s1691_s2 = inlined_call_operand.vmem [shape: bf16[32,8,8], index: 2, kind: output, shape index: {}]  }
   0x1 LB: > { %s1297_s10 = sadd.s32 4294967295, %s1471_s9   ;;  %p1301_p0 = scmp.ge.s32.totalorder %s1471_s9, 1  ;;  %s1471_s9 = sphi %s1490_s9, %s12_s9  }
   0x2   : > { %p124_p1 = scmp.lt.s32.totalorder %s1471_s9, 3 }
   0x4   : > { %p125_p2 = pnand %p1301_p0, %p124_p1 }
   0x5   : > { %s1302_s11 = sshll.u32 (!%p125_p2), %s1297_s10, 4  ;;  %v1473_v0 = vmov (!%p125_p2), 0.0   ;;  %vm1474_vm0 = vmmov (!%p125_p2), 0   ;;  %vm222_vm1 = vcmask (!%p125_p2), 1043456   ;;  %vm218_vm2 = vcmask (!%p125_p2), 64512  }
   0x6   : > { %128 = sbr.rel (%p125_p2) target bundleno = 395 (0x18b), region = 28  ;;  %p152_p3 = scmp.lt.s32.totalorder (!%p125_p2), %s1302_s11, 31  ;;  %1358 = vmatprep.subr.bf16.mxu0 (!%p125_p2), %v1473_v0  ;;  %1360 = vmatprep.mubr.msk.bf16.mxu0 (!%p125_p2), %vm1474_vm0, %v1473_v0  ;;  %vm1212_vm3 = vcmask (!%p125_p2), 60416  }
   0x7   : > { %1364 = vmatprep.subr.bf16.mxu1 (!%p125_p2), %v1473_v0  ;;  %1366 = vmatprep.mubr.msk.bf16.mxu1 (!%p125_p2), %vm1474_vm0, %v1473_v0 }
   0xd   : > { %s1693_s11 = smov (!%p152_p3, %s1302_s11), 31 }
   0xe   : > { %s1504_s12 = sshll.u32 %s1693_s11, 2 }
   0xf   : > { %s1510_s15 = scalar_lea.vmem %s1689_s0, %s1504_s12  ;;  %s1520_s18 = scalar_lea.vmem %s1690_s1, %s1504_s12 }
  0x10   : > { %v170_v1 = vld [vmem:[%s1510_s15] sm:$0xf]  ;;  %v172_v2 = vld [vmem:[%s1510_s15 + $0x8] sm:$0xf]  ;;  %v171_v3 = vld [vmem:[%s1510_s15 + $0x4] sm:$0xf]  ;;  %s1652_s21 = scalar_lea.vmem %s1691_s2, %s1504_s12 }
  0x11   : > { %202 = vxpose.xlu0.c.b16.start.end [1/1] (short) (narrow) %v170_v1, 16  ;;  %328 = vxpose.xlu1.c.b16.start.end [1/1] (short) (narrow) %v172_v2, 16  ;;  %v173_v4 = vld [vmem:[%s1510_s15 + $0xc] sm:$0xf]  ;;  %v174_v5 = vld [vmem:[%s1510_s15 + $0x10] sm:$0xf] }
  0x12   : > { %v175_v6 = vld [vmem:[%s1510_s15 + $0x14] sm:$0xf]  ;;  %v186_v7 = vld [vmem:[%s1520_s18] sm:$0xf]  ;;  %v187_v8 = vld [vmem:[%s1520_s18 + $0x4] sm:$0xf] }
  0x13   : > { %v188_v9 = vld [vmem:[%s1520_s18 + $0x8] sm:$0xf]  ;;  %v224_v10 = vsel %vm222_vm1, %v186_v7, 0  ;;  %v286_v11 = vsel %vm222_vm1, %v187_v8, 0  ;;  %v189_v13 = vld [vmem:[%s1520_s18 + $0xc] sm:$0xf] }
  0x14   : > { %v348_v12 = vsel %vm222_vm1, %v188_v9, 0  ;;  %v176_v14 = vld [vmem:[%s1510_s15 + $0x18] sm:$0xf]  ;;  %v177_v15 = vld [vmem:[%s1510_s15 + $0x1c] sm:$0xf]  ;;  %1359 = vmatpush3.bf16.msra.mxu0 %v224_v10  ;;  %1365 = vmatpush3.bf16.msra.mxu1 %v286_v11  ;;  %v410_v16 = vsel %vm222_vm1, %v189_v13, 0 }
  0x15   : > { %266 = vxpose.xlu0.c.b16.start.end [1/1] (short) (narrow) %v171_v3, 16  ;;  %390 = vxpose.xlu1.c.b16.start.end [1/1] (short) (narrow) %v173_v4, 16  ;;  %v190_v17 = vld [vmem:[%s1520_s18 + $0x10] sm:$0xf]  ;;  %v191_v18 = vld [vmem:[%s1520_s18 + $0x14] sm:$0xf] }
  0x16   : > { %v472_v19 = vsel %vm222_vm1, %v190_v17, 0  ;;  %v534_v20 = vsel %vm222_vm1, %v191_v18, 0  ;;  %v192_v21 = vld [vmem:[%s1520_s18 + $0x18] sm:$0xf]  ;;  %1370 = vmatprep.subr.bf16.mxu0 %v1473_v0  ;;  %1376 = vmatprep.subr.bf16.mxu1 %v1473_v0  ;;  %v193_v23 = vld [vmem:[%s1520_s18 + $0x1c] sm:$0xf] }
  0x17   : > { %v596_v22 = vsel %vm222_vm1, %v192_v21, 0  ;;  %v194_v24 = vld [vmem:[%s1520_s18 + $0x20] sm:$0xf]  ;;  %v658_v25 = vsel %vm222_vm1, %v193_v23, 0  ;;  %v195_v27 = vld [vmem:[%s1520_s18 + $0x24] sm:$0xf] }
  0x18   : > { %v1546_v26 = vsel %vm222_vm1, %v194_v24, 0  ;;  %v1550_v28 = vsel %vm222_vm1, %v195_v27, 0  ;;  %v196_v29 = vld [vmem:[%s1520_s18 + $0x28] sm:$0xf]  ;;  %v197_v30 = vld [vmem:[%s1520_s18 + $0x2c] sm:$0xf] }
  0x19   : > { %452 = vxpose.xlu0.c.b16.start.end [1/1] (short) (narrow) %v174_v5, 16  ;;  %514 = vxpose.xlu1.c.b16.start.end [1/1] (short) (narrow) %v175_v6, 16  ;;  %v1555_v31 = vsel %vm222_vm1, %v196_v29, 0  ;;  %v1558_v32 = vsel %vm222_vm1, %v197_v30, 0  ;;  %v178_v33 = vld [vmem:[%s1510_s15 + $0x20] sm:$0xf] }
  0x1a   : > { %v179_v34 = vld [vmem:[%s1510_s15 + $0x24] sm:$0xf]  ;;  %v180_v35 = vld [vmem:[%s1510_s15 + $0x28] sm:$0xf]  ;;  %v181_v36 = vld [vmem:[%s1510_s15 + $0x2c] sm:$0xf] }
  0x1b   : > { %v198_v37 = vld [vmem:[%s1520_s18 + $0x30] sm:$0xf]  ;;  %v199_v38 = vld [vmem:[%s1520_s18 + $0x34] sm:$0xf]  ;;  %v184_v43 = vld [vmem:[%s1510_s15 + $0x38] sm:$0xf] }
  0x1c   : > { %v1567_v39 = vsel %vm222_vm1, %v198_v37, 0  ;;  %v1570_v40 = vsel %vm222_vm1, %v199_v38, 0  ;;  %v182_v41 = vld [vmem:[%s1510_s15 + $0x30] sm:$0xf]  ;;  %v183_v42 = vld [vmem:[%s1510_s15 + $0x34] sm:$0xf] }
  0x1d   : > { %576 = vxpose.xlu0.c.b16.start.end [1/1] (short) (narrow) %v176_v14, 16  ;;  %638 = vxpose.xlu1.c.b16.start.end [1/1] (short) (narrow) %v177_v15, 16  ;;  %v185_v44 = vld [vmem:[%s1510_s15 + $0x3c] sm:$0xf]  ;;  %v200_v45 = vld [vmem:[%s1520_s18 + $0x38] sm:$0xf] }
  0x1e   : > { %v201_v46 = vld [vmem:[%s1520_s18 + $0x3c] sm:$0xf]  ;;  %v1579_v47 = vsel %vm222_vm1, %v200_v45, 0 }
  0x1f   : > { %v1582_v48 = vsel %vm222_vm1, %v201_v46, 0 }
  0x21   : > { %700 = vxpose.xlu0.c.b16.start.end [1/1] (short) (narrow) %v178_v33, 16  ;;  %762 = vxpose.xlu1.c.b16.start.end [1/1] (short) (narrow) %v179_v34, 16 }
  0x25   : > { %824 = vxpose.xlu0.c.b16.start.end [1/1] (short) (narrow) %v180_v35, 16  ;;  %886 = vxpose.xlu1.c.b16.start.end [1/1] (short) (narrow) %v181_v36, 16 }
  0x29   : > { %948 = vxpose.xlu0.c.b16.start.end [1/1] (short) (narrow) %v182_v41, 16  ;;  %1010 = vxpose.xlu1.c.b16.start.end [1/1] (short) (narrow) %v183_v42, 16 }
  0x2d   : > { %1072 = vxpose.xlu0.c.b16.start.end [1/1] (short) (narrow) %v184_v43, 16  ;;  %1134 = vxpose.xlu1.c.b16.start.end [1/1] (short) (narrow) %v185_v44, 16 }
  0x77   : > { %v210_v49 = vpop.trf.xlu0  ;;  %v336_v51 = vpop.trf.xlu1 }
  0x78   : > { %1361 = vmatmul.mubr.msk.bf16.vlgmr.msra.gmra.mrb[0].mxu0 %vm218_vm2, %v210_v49 }
  0x79   : > { %1371 = vmatpush3.bf16.msra.mxu0 %v348_v12  ;;  %1372 = vmatprep.mubr.msk.bf16.mxu0 %vm1474_vm0, %v1473_v0 }
  0x7a   : > { %1382 = vmatprep.subr.bf16.mxu0 %v1473_v0 }
  0x7b   : > { %v274_v50 = vpop.trf.xlu0  ;;  %v398_v52 = vpop.trf.xlu1 }
  0x7c   : > { %1367 = vmatmul.mubr.msk.bf16.vlgmr.msra.gmra.mrb[0].mxu1 %vm218_vm2, %v274_v50 }
  0x7d   : > { %1377 = vmatpush3.bf16.msra.mxu1 %v410_v16  ;;  %1378 = vmatprep.mubr.msk.bf16.mxu1 %vm1474_vm0, %v1473_v0 }
  0x7e   : > { %1388 = vmatprep.subr.bf16.mxu1 %v1473_v0 }
  0x7f   : > { %v460_v53 = vpop.trf.xlu0  ;;  %v522_v54 = vpop.trf.xlu1 }
  0x80   : > { %1373 = vmatmul.mubr.msk.bf16.vlgmr.msra.gmra.mrb[4].mxu0 %vm218_vm2, %v336_v51 }
  0x81   : > { %1383 = vmatpush3.bf16.msra.mxu0 %v472_v19  ;;  %1384 = vmatprep.mubr.msk.bf16.mxu0 %vm1474_vm0, %v1473_v0 }
  0x82   : > { %1394 = vmatprep.subr.bf16.mxu0 %v1473_v0 }
  0x83   : > { %v584_v55 = vpop.trf.xlu0  ;;  %v646_v56 = vpop.trf.xlu1 }
  0x84   : > { %1379 = vmatmul.mubr.msk.bf16.vlgmr.msra.gmra.mrb[4].mxu1 %vm218_vm2, %v398_v52 }
  0x85   : > { %1389 = vmatpush3.bf16.msra.mxu1 %v534_v20  ;;  %1390 = vmatprep.mubr.msk.bf16.mxu1 %vm1474_vm0, %v1473_v0 }
  0x86   : > { %1400 = vmatprep.subr.bf16.mxu1 %v1473_v0 }
  0x87   : > { %v708_v57 = vpop.trf.xlu0  ;;  %v770_v58 = vpop.trf.xlu1 }
  0x88   : > { %1385 = vmatmul.mubr.msk.bf16.vlgmr.msra.gmra.mrb[8].mxu0 %vm218_vm2, %v460_v53 }
  0x89   : > { %1395 = vmatpush3.bf16.msra.mxu0 %v596_v22  ;;  %1396 = vmatprep.mubr.msk.bf16.mxu0 %vm1474_vm0, %v1473_v0 }
  0x8a   : > { %1406 = vmatprep.subr.bf16.mxu0 %v1473_v0 }
  0x8b   : > { %v832_v59 = vpop.trf.xlu0  ;;  %v894_v60 = vpop.trf.xlu1 }
  0x8c   : > { %1391 = vmatmul.mubr.msk.bf16.vlgmr.msra.gmra.mrb[8].mxu1 %vm218_vm2, %v522_v54 }
  0x8d   : > { %1401 = vmatpush3.bf16.msra.mxu1 %v658_v25  ;;  %1402 = vmatprep.mubr.msk.bf16.mxu1 %vm1474_vm0, %v1473_v0 }
  0x8e   : > { %1412 = vmatprep.subr.bf16.mxu1 %v1473_v0 }
  0x8f   : > { %v956_v61 = vpop.trf.xlu0  ;;  %v1018_v62 = vpop.trf.xlu1 }
  0x90   : > { %1397 = vmatmul.mubr.msk.bf16.vlgmr.msra.gmra.mrb[12].mxu0 %vm218_vm2, %v584_v55 }
  0x91   : > { %1407 = vmatpush3.bf16.msra.mxu0 %v1546_v26  ;;  %1408 = vmatprep.mubr.msk.bf16.mxu0 %vm1474_vm0, %v1473_v0 }
  0x92   : > { %1418 = vmatprep.subr.bf16.mxu0 %v1473_v0 }
  0x93   : > { %v1080_v63 = vpop.trf.xlu0  ;;  %v1142_v1 = vpop.trf.xlu1 }
  0x94   : > { %1403 = vmatmul.mubr.msk.bf16.vlgmr.msra.gmra.mrb[12].mxu1 %vm218_vm2, %v646_v56 }
  0x95   : > { %1413 = vmatpush3.bf16.msra.mxu1 %v1550_v28  ;;  %1414 = vmatprep.mubr.msk.bf16.mxu1 %vm1474_vm0, %v1473_v0 }
  0x96   : > { %1424 = vmatprep.subr.bf16.mxu1 %v1473_v0 }
  0x98   : > { %1409 = vmatmul.mubr.msk.bf16.vlgmr.msra.gmra.mrb[16].mxu0 %vm218_vm2, %v708_v57 }
  0x99   : > { %1419 = vmatpush3.bf16.msra.mxu0 %v1555_v31  ;;  %1420 = vmatprep.mubr.msk.bf16.mxu0 %vm1474_vm0, %v1473_v0 }
  0x9a   : > { %1430 = vmatprep.subr.bf16.mxu0 %v1473_v0 }
  0x9c   : > { %1415 = vmatmul.mubr.msk.bf16.vlgmr.msra.gmra.mrb[16].mxu1 %vm218_vm2, %v770_v58 }
  0x9d   : > { %1425 = vmatpush3.bf16.msra.mxu1 %v1558_v32  ;;  %1426 = vmatprep.mubr.msk.bf16.mxu1 %vm1474_vm0, %v1473_v0 }
  0x9e   : > { %1436 = vmatprep.subr.bf16.mxu1 %v1473_v0 }
  0xa0   : > { %1421 = vmatmul.mubr.msk.bf16.vlgmr.msra.gmra.mrb[20].mxu0 %vm218_vm2, %v832_v59 }
  0xa1   : > { %1431 = vmatpush3.bf16.msra.mxu0 %v1567_v39  ;;  %1432 = vmatprep.mubr.msk.bf16.mxu0 %vm1474_vm0, %v1473_v0 }
  0xa2   : > { %1442 = vmatprep.subr.bf16.mxu0 %v1473_v0 }
  0xa4   : > { %1427 = vmatmul.mubr.msk.bf16.vlgmr.msra.gmra.mrb[20].mxu1 %vm218_vm2, %v894_v60 }
  0xa5   : > { %1437 = vmatpush3.bf16.msra.mxu1 %v1570_v40  ;;  %1438 = vmatprep.mubr.msk.bf16.mxu1 %vm1474_vm0, %v1473_v0 }
  0xa6   : > { %1448 = vmatprep.subr.bf16.mxu1 %v1473_v0 }
  0xa8   : > { %1433 = vmatmul.mubr.msk.bf16.vlgmr.msra.gmra.mrb[24].mxu0 %vm218_vm2, %v956_v61 }
  0xa9   : > { %1443 = vmatpush3.bf16.msra.mxu0 %v1579_v47  ;;  %1444 = vmatprep.mubr.msk.bf16.mxu0 %vm1474_vm0, %v1473_v0 }
  0xac   : > { %1439 = vmatmul.mubr.msk.bf16.vlgmr.msra.gmra.mrb[24].mxu1 %vm218_vm2, %v1018_v62 }
  0xad   : > { %1449 = vmatpush3.bf16.msra.mxu1 %v1582_v48  ;;  %1450 = vmatprep.mubr.msk.bf16.mxu1 %vm1474_vm0, %v1473_v0 }
  0xb0   : > { %1445 = vmatmul.mubr.msk.bf16.vlgmr.msra.gmra.mrb[28].mxu0 %vm218_vm2, %v1080_v63 }
  0xb4   : > { %1451 = vmatmul.mubr.msk.bf16.vlgmr.msra.gmra.mrb[28].mxu1 %vm218_vm2, %v1142_v1 }
 0x14b   : > { %v260_v2 = vpop.f32.mrb[0].mxu0 }
 0x14c   : > { %v1196_v3 = vpack.c.bf16 %v260_v2, %v260_v2  ;;  %v1362_v4 = vpop.f32.mrb[1].mxu0 }
 0x14d   : > { %v263_v5 = vpop.f32.mrb[2].mxu0 }
 0x14e   : > { %1213 = vst.msk [vmem:[%s1652_s21] sm:$0xf] %vm1212_vm3, %v1196_v3  ;;  %v1363_v0 = vpop.f32.mrb[3].mxu0 }
 0x14f   : > { %v322_v6 = vpop.f32.mrb[0].mxu1 }
 0x150   : > { %v1197_v7 = vpack.c.bf16 %v322_v6, %v322_v6  ;;  %v1368_v8 = vpop.f32.mrb[1].mxu1 }
 0x151   : > { %v325_v9 = vpop.f32.mrb[2].mxu1 }
 0x152   : > { %1214 = vst.msk [vmem:[%s1652_s21 + $0x4] sm:$0xf] %vm1212_vm3, %v1197_v7  ;;  %v1369_v10 = vpop.f32.mrb[3].mxu1 }
 0x153   : > { %v384_v11 = vpop.f32.mrb[4].mxu0 }
 0x154   : > { %v1198_v12 = vpack.c.bf16 %v384_v11, %v384_v11  ;;  %v1374_v13 = vpop.f32.mrb[5].mxu0 }
 0x155   : > { %v387_v14 = vpop.f32.mrb[6].mxu0 }
 0x156   : > { %1215 = vst.msk [vmem:[%s1652_s21 + $0x8] sm:$0xf] %vm1212_vm3, %v1198_v12  ;;  %v1375_v15 = vpop.f32.mrb[7].mxu0 }
 0x157   : > { %v446_v16 = vpop.f32.mrb[4].mxu1 }
 0x158   : > { %v1199_v17 = vpack.c.bf16 %v446_v16, %v446_v16  ;;  %v1380_v18 = vpop.f32.mrb[5].mxu1 }
 0x159   : > { %v449_v19 = vpop.f32.mrb[6].mxu1 }
 0x15a   : > { %1216 = vst.msk [vmem:[%s1652_s21 + $0xc] sm:$0xf] %vm1212_vm3, %v1199_v17  ;;  %v1381_v20 = vpop.f32.mrb[7].mxu1 }
 0x15b   : > { %v508_v21 = vpop.f32.mrb[8].mxu0 }
 0x15c   : > { %v1200_v22 = vpack.c.bf16 %v508_v21, %v508_v21  ;;  %v1386_v23 = vpop.f32.mrb[9].mxu0 }
 0x15d   : > { %v511_v24 = vpop.f32.mrb[10].mxu0 }
 0x15e   : > { %1217 = vst.msk [vmem:[%s1652_s21 + $0x10] sm:$0xf] %vm1212_vm3, %v1200_v22  ;;  %v1387_v25 = vpop.f32.mrb[11].mxu0 }
 0x15f   : > { %v570_v26 = vpop.f32.mrb[8].mxu1 }
 0x160   : > { %v1201_v27 = vpack.c.bf16 %v570_v26, %v570_v26  ;;  %v1392_v28 = vpop.f32.mrb[9].mxu1 }
 0x161   : > { %v573_v29 = vpop.f32.mrb[10].mxu1 }
 0x162   : > { %1218 = vst.msk [vmem:[%s1652_s21 + $0x14] sm:$0xf] %vm1212_vm3, %v1201_v27  ;;  %v1393_v30 = vpop.f32.mrb[11].mxu1 }
 0x163   : > { %v632_v31 = vpop.f32.mrb[12].mxu0 }
 0x164   : > { %v1202_v32 = vpack.c.bf16 %v632_v31, %v632_v31  ;;  %v1398_v33 = vpop.f32.mrb[13].mxu0 }
 0x165   : > { %v635_v34 = vpop.f32.mrb[14].mxu0 }
 0x166   : > { %1219 = vst.msk [vmem:[%s1652_s21 + $0x18] sm:$0xf] %vm1212_vm3, %v1202_v32  ;;  %v1399_v35 = vpop.f32.mrb[15].mxu0 }
 0x167   : > { %v694_v36 = vpop.f32.mrb[12].mxu1 }
 0x168   : > { %v1203_v37 = vpack.c.bf16 %v694_v36, %v694_v36  ;;  %v1404_v38 = vpop.f32.mrb[13].mxu1 }
 0x169   : > { %v697_v39 = vpop.f32.mrb[14].mxu1 }
 0x16a   : > { %1220 = vst.msk [vmem:[%s1652_s21 + $0x1c] sm:$0xf] %vm1212_vm3, %v1203_v37  ;;  %v1405_v40 = vpop.f32.mrb[15].mxu1 }
 0x16b   : > { %v756_v41 = vpop.f32.mrb[16].mxu0 }
 0x16c   : > { %v1204_v42 = vpack.c.bf16 %v756_v41, %v756_v41  ;;  %v1410_v43 = vpop.f32.mrb[17].mxu0 }
 0x16d   : > { %v759_v44 = vpop.f32.mrb[18].mxu0 }
 0x16e   : > { %1221 = vst.msk [vmem:[%s1652_s21 + $0x20] sm:$0xf] %vm1212_vm3, %v1204_v42  ;;  %v1411_v45 = vpop.f32.mrb[19].mxu0 }
 0x16f   : > { %v818_v46 = vpop.f32.mrb[16].mxu1 }
 0x170   : > { %v1205_v47 = vpack.c.bf16 %v818_v46, %v818_v46  ;;  %v1416_v48 = vpop.f32.mrb[17].mxu1 }
 0x171   : > { %v821_v49 = vpop.f32.mrb[18].mxu1 }
 0x172   : > { %1222 = vst.msk [vmem:[%s1652_s21 + $0x24] sm:$0xf] %vm1212_vm3, %v1205_v47  ;;  %v1417_v50 = vpop.f32.mrb[19].mxu1 }
 0x173   : > { %v880_v51 = vpop.f32.mrb[20].mxu0 }
 0x174   : > { %v1206_v52 = vpack.c.bf16 %v880_v51, %v880_v51  ;;  %v1422_v53 = vpop.f32.mrb[21].mxu0 }
 0x175   : > { %v883_v54 = vpop.f32.mrb[22].mxu0 }
 0x176   : > { %1223 = vst.msk [vmem:[%s1652_s21 + $0x28] sm:$0xf] %vm1212_vm3, %v1206_v52  ;;  %v1423_v55 = vpop.f32.mrb[23].mxu0 }
 0x177   : > { %v942_v56 = vpop.f32.mrb[20].mxu1 }
 0x178   : > { %v1207_v57 = vpack.c.bf16 %v942_v56, %v942_v56  ;;  %v1428_v58 = vpop.f32.mrb[21].mxu1 }
 0x179   : > { %v945_v59 = vpop.f32.mrb[22].mxu1 }
 0x17a   : > { %1224 = vst.msk [vmem:[%s1652_s21 + $0x2c] sm:$0xf] %vm1212_vm3, %v1207_v57  ;;  %v1429_v60 = vpop.f32.mrb[23].mxu1 }
 0x17b   : > { %v1004_v61 = vpop.f32.mrb[24].mxu0 }
 0x17c   : > { %v1208_v62 = vpack.c.bf16 %v1004_v61, %v1004_v61  ;;  %v1434_v63 = vpop.f32.mrb[25].mxu0 }
 0x17d   : > { %v1007_v1 = vpop.f32.mrb[26].mxu0 }
 0x17e   : > { %1225 = vst.msk [vmem:[%s1652_s21 + $0x30] sm:$0xf] %vm1212_vm3, %v1208_v62  ;;  %v1435_v2 = vpop.f32.mrb[27].mxu0 }
 0x17f   : > { %v1066_v3 = vpop.f32.mrb[24].mxu1 }
 0x180   : > { %v1209_v4 = vpack.c.bf16 %v1066_v3, %v1066_v3  ;;  %v1440_v5 = vpop.f32.mrb[25].mxu1 }
 0x181   : > { %v1069_v0 = vpop.f32.mrb[26].mxu1 }
 0x182   : > { %1226 = vst.msk [vmem:[%s1652_s21 + $0x34] sm:$0xf] %vm1212_vm3, %v1209_v4  ;;  %v1441_v6 = vpop.f32.mrb[27].mxu1 }
 0x183   : > { %v1128_v7 = vpop.f32.mrb[28].mxu0 }
 0x184   : > { %v1210_v8 = vpack.c.bf16 %v1128_v7, %v1128_v7  ;;  %v1446_v9 = vpop.f32.mrb[29].mxu0 }
 0x185   : > { %v1131_v10 = vpop.f32.mrb[30].mxu0 }
 0x186   : > { %1227 = vst.msk [vmem:[%s1652_s21 + $0x38] sm:$0xf] %vm1212_vm3, %v1210_v8  ;;  %v1447_v11 = vpop.f32.mrb[31].mxu0 }
 0x187   : > { %v1190_v12 = vpop.f32.mrb[28].mxu1 }
 0x188   : > { %v1211_v13 = vpack.c.bf16 %v1190_v12, %v1190_v12  ;;  %v1452_v14 = vpop.f32.mrb[29].mxu1 }
 0x189   : > { %v1193_v15 = vpop.f32.mrb[30].mxu1 }
 0x18a   : > { %1228 = vst.msk [vmem:[%s1652_s21 + $0x3c] sm:$0xf] %vm1212_vm3, %v1211_v13  ;;  %v1453_v16 = vpop.f32.mrb[31].mxu1 }
 0x18b PF: > { %s12_s9 = sadd.s32 1, %s1471_s9  }
 0x18c   : > { %p9_p4 = scmp.ge.s32.totalorder %s12_s9, 4  }
 0x18e   :  { %11 = sbr.rel (!%p9_p4) target bundleno = 1 (0x1), region = 61 }

// kernel: evoblock_apply.25
= control target key start
LH: loop header
LB: loop body
LE: loop exit
PB: predicated region body
PF: predicated region fallthrough
CT: control target
= control target key end

     0   :  { %12 = vsyncpa [#allocation3], 0  ;;  %s1046_s0 = inlined_call_operand.vmem [shape: f32[64,32], index: 0, kind: input, shape index: {}]   ;;  %s1047_s1 = inlined_call_operand.vmem [shape: f32[1,32], index: 1, kind: input, shape index: {}]   ;;  %s1048_s2 = inlined_call_operand.vmem [shape: f32[1,32], index: 2, kind: input, shape index: {}]   ;;  %s1049_s3 = inlined_call_operand.vmem [shape: f32[32,128], index: 3, kind: input, shape index: {}]   ;;  %s1050_s4 = inlined_call_operand.vmem [shape: f32[1,128], index: 4, kind: input, shape index: {}]   ;;  %s1051_s5 = inlined_call_operand.vmem [shape: f32[128,32], index: 5, kind: input, shape index: {}]   ;;  %s1052_s6 = inlined_call_operand.vmem [shape: f32[1,32], index: 6, kind: input, shape index: {}]   ;;  %s1053_s7 = inlined_call_operand.hbm [shape: f32[64,32], index: 7, kind: output, shape index: {}]  }
   0x1   :  { %14 = vsyncpa [#allocation3 + $0x1], 0  ;;  %s818_s24 = smov 0   ;;  %s820_s25 = smov 0  }
   0x2   :  { %s822_s26 = smov 0   ;;  %s824_s27 = smov 0  }
   0x3 LB: > { %s839_s28 = sadd.s32 4294967295, %s773_s27   ;;  %s601_s29 = sadd.s32 4294967294, %s773_s27   ;;  %s773_s27 = sphi %s824_s27, %s1059_s27   ;;  %s769_s26 = sphi %s822_s26, %s1058_s26   ;;  %s765_s25 = sphi %s820_s25, %s1057_s25   ;;  %s761_s24 = sphi %s818_s24, %s1056_s24  }
   0x4   : > { %s843_s30 = sadd.s32 1, %s773_s27   ;;  %s179_s8 = sadd.s32 1, %s769_s26 }
   0x5   : > { %s176_s9 = ssub.s32 %s773_s27, %s843_s30  ;;  %p189_p0 = scmp.ne.s32.totalorder %s769_s26, %s765_s25 }
   0x6   : > { %p177_p1 = scmp.eq.s32.totalorder %s176_s9, 0  ;;  %p190_p2 = scmp.eq.s32.totalorder %s839_s28, 1 }
   0x7   : > { %p195_p3 = scmp.ne.s32.totalorder %s765_s25, %s761_s24  ;;  %p196_p4 = scmp.eq.s32.totalorder %s601_s29, 1 }
   0x8   : > { %s854_s10 = scalar_select %p177_p1, %s769_s26, %s179_s8  }
   0x9   : > { %p856_p5 = por %p190_p2, %p189_p0  ;;  %p860_p6 = por %p196_p4, %p195_p3 }
   0xa   : > { %p604_p7 = scmp.ge.s32.totalorder %s773_s27, 1  ;;  %p241_p8 = scmp.lt.s32.totalorder %s773_s27, 3 }
   0xc   : > { %p242_p9 = pnand %p604_p7, %p241_p8 }
   0xd   : > { %s606_s13 = sshll.u32 (!%p242_p9), %s839_s28, 2  ;;  %vm287_vm0 = vcmask (!%p242_p9), 261120   ;;  %v363_v28 = vld [vmem:[%s1049_s3] sm:$0xff] (!%p242_p9)  ;;  %v364_v29 = vld [vmem:[%s1049_s3 + $0x8] sm:$0xff] (!%p242_p9)  ;;  %v365_v31 = vld [vmem:[%s1049_s3 + $0x10] sm:$0xff] (!%p242_p9)  ;;  %s270_s22 = sand.u32 (!%p242_p9), 1, %s765_s25  }
   0xe   : > { %245 = sbr.rel (%p242_p9) target bundleno = 804 (0x324), region = 48  ;;  %p274_p10 = scmp.lt.s32.totalorder (!%p242_p9), %s606_s13, 7  ;;  %v367_v30 = vpack.c.bf16 (!%p242_p9), %v364_v29, %v363_v28  ;;  %v366_v32 = vld [vmem:[%s1049_s3 + $0x18] sm:$0xff] (!%p242_p9)  ;;  %v437_v34 = vld [vmem:[%s1051_s5] sm:$0xff] (!%p242_p9)  ;;  %v438_v35 = vld [vmem:[%s1051_s5 + $0x8] sm:$0xff] (!%p242_p9) }
   0xf   : > { %v368_v33 = vpack.c.bf16 (!%p242_p9), %v366_v32, %v365_v31  ;;  %v439_v36 = vld [vmem:[%s1051_s5 + $0x10] sm:$0xff] (!%p242_p9)  ;;  %v453_v37 = vpack.c.bf16 (!%p242_p9), %v438_v35, %v437_v34  ;;  %v440_v38 = vld [vmem:[%s1051_s5 + $0x18] sm:$0xff] (!%p242_p9)  ;;  %v441_v40 = vld [vmem:[%s1051_s5 + $0x20] sm:$0xff] (!%p242_p9)  ;;  %s605_s23 = sshll.u32 (!%p242_p9), %s270_s22, 5  ;;  %s775_s19 = smov (!%p242_p9), [#allocation2]  }
  0x10   : > { %634 = vmatprep.subr.bf16.mxu0 (!%p242_p9), %v367_v30  ;;  %v454_v39 = vpack.c.bf16 (!%p242_p9), %v440_v38, %v439_v36  ;;  %v442_v41 = vld [vmem:[%s1051_s5 + $0x28] sm:$0xff] (!%p242_p9)  ;;  %v443_v43 = vld [vmem:[%s1051_s5 + $0x30] sm:$0xff] (!%p242_p9)  ;;  %v444_v44 = vld [vmem:[%s1051_s5 + $0x38] sm:$0xff] (!%p242_p9)  ;;  %s272_s9 = scalar_lea.vmem (!%p242_p9), [#allocation2], %s605_s23  ;;  %s715_s20 = sshll.u32 (!%p242_p9), %s775_s19, 4  ;;  %s716_s20 = int_to_ptr.vmem [resolvable:$false] %s715_s20 }
  0x11   : > { %635 = vmatpush3.bf16.msra.mxu0 (!%p242_p9), %v367_v30  ;;  %642 = vmatprep.subr.bf16.mxu1 (!%p242_p9), %v453_v37  ;;  %v455_v42 = vpack.c.bf16 (!%p242_p9), %v442_v41, %v441_v40  ;;  %v456_v45 = vpack.c.bf16 (!%p242_p9), %v444_v44, %v443_v43  ;;  %v445_v46 = vld [vmem:[%s1051_s5 + $0x40] sm:$0xff] (!%p242_p9)  ;;  %v446_v47 = vld [vmem:[%s1051_s5 + $0x48] sm:$0xff] (!%p242_p9)  ;;  %v447_v49 = vld [vmem:[%s1051_s5 + $0x50] sm:$0xff] (!%p242_p9)  ;;  %s717_s21 = scalar_lea.vmem (!%p242_p9), %s716_s20, 1024 }
  0x12   : > { %636 = vmatprep.subr.bf16.mxu0 (!%p242_p9), %v368_v33  ;;  %643 = vmatpush3.bf16.msra.mxu1 (!%p242_p9), %v453_v37  ;;  %v457_v48 = vpack.c.bf16 (!%p242_p9), %v446_v47, %v445_v46  ;;  %v448_v50 = vld [vmem:[%s1051_s5 + $0x58] sm:$0xff] (!%p242_p9)  ;;  %v610_v30 = vld [vmem:[%s1050_s4] ss:$0 sm:$0xff] (!%p242_p9) }
  0x13   : > { %644 = vmatprep.subr.bf16.mxu1 (!%p242_p9), %v454_v39  ;;  %v458_v51 = vpack.c.bf16 (!%p242_p9), %v448_v50, %v447_v49  ;;  %v452_v28 = vld [vmem:[%s1051_s5 + $0x78] sm:$0xff] (!%p242_p9) }
  0x15   : > { %s1061_s13 = smov (!%p274_p10, %s606_s13), 7  ;;  %637 = vmatpush3.bf16.msra.mxu0 %v368_v33 }
  0x16   : > { %s607_s14 = sshll.u32 %s1061_s13, 3  ;;  %645 = vmatpush3.bf16.msra.mxu1 %v454_v39  ;;  %s539_s13 = sshll.u32 %s272_s9, 4  ;;  %s999_s13 = int_to_ptr.vmem [resolvable:$true] %s539_s13 }
  0x17   : > { %s277_s17 = scalar_lea.vmem %s1046_s0, %s607_s14  ;;  %646 = vmatprep.subr.bf16.mxu1 %v455_v42  ;;  %s619_s14 = sshll.u32 %s839_s28, 9 }
  0x18   : > { %v870_v0 = vld [vmem:[%s277_s17] sm:$0xff]  ;;  %v872_v1 = vld [vmem:[%s277_s17 + $0x10] sm:$0xff]  ;;  %v874_v2 = vld [vmem:[%s277_s17 + $0x8] sm:$0xff]  ;;  %s1005_s28 = scalar_lea.sflag [#allocation3], %s270_s22  ;;  %s711_s18 = scalar_lea.vmem %s999_s13, 512 }
  0x19   : > { %v288_v3 = vsel %vm287_vm0, %v870_v0, 0.0  ;;  %v294_v4 = vsel %vm287_vm0, %v872_v1, 0.0  ;;  %v880_v5 = vld [vmem:[%s277_s17 + $0x18] sm:$0xff]  ;;  %v291_v6 = vsel %vm287_vm0, %v874_v2, 0.0  ;;  %s997_s17 = scalar_lea.hbm %s1053_s7, %s619_s14  ;;  %p712_p11 = scmp.ne.s32.totalorder %s999_s13, %s711_s18 }
  0x1a   : > { %289 = vadd.xlane.f32.xlu0 %v288_v3  ;;  %295 = vadd.xlane.f32.xlu1 %v294_v4  ;;  %v297_v7 = vsel %vm287_vm0, %v880_v5, 0.0  ;;  %p718_p0 = scmp.lt.s32.totalorder %s999_s13, %s716_s20  ;;  %p719_p1 = scmp.lt.s32.totalorder %s717_s21, %s711_s18 }
  0x1b   : > { %647 = vmatpush3.bf16.msra.mxu1 %v455_v42  ;;  %p713_p12 = pnand %p712_p11, %p856_p5 }
  0x1c   : > { %648 = vmatprep.subr.bf16.mxu1 %v456_v45  ;;  %p720_p2 = por %p719_p1, %p718_p0 }
  0x1d   : > { %p714_p13 = pneg %p713_p12 }
  0x1e   : > { %292 = vadd.xlane.f32.xlu0 %v291_v6  ;;  %298 = vadd.xlane.f32.xlu1 %v297_v7  ;;  %v608_v6 = vld [vmem:[%s1047_s1] ss:$0 sm:$0xff] }
  0x1f   : > { %649 = vmatpush3.bf16.msra.mxu1 %v456_v45  ;;  %v613_v45 = vld [vmem:[%s1052_s6] ss:$0 sm:$0xff]  ;;  %p721_p3 = pnand %p720_p2, %p714_p13 }
  0x20   : > { %650 = vmatprep.subr.bf16.mxu1 %v457_v48 }
  0x23   : > { %651 = vmatpush3.bf16.msra.mxu1 %v457_v48 }
  0x24   : > { %652 = vmatprep.subr.bf16.mxu1 %v458_v51 }
  0x27   : > { %653 = vmatpush3.bf16.msra.mxu1 %v458_v51 }
  0xa7   : > { %v290_v8 = vpop.xlane.xlu0 %289  ;;  %v296_v9 = vpop.xlane.xlu1 %295 }
  0xa8   : > { %v301_v10 = vmul.f32 0.03125, %v290_v8  ;;  %v303_v11 = vmul.f32 0.03125, %v296_v9 }
  0xaa   : > { %v887_v12 = vsub.f32 %v870_v0, %v301_v10  ;;  %v890_v13 = vsub.f32 %v872_v1, %v303_v11 }
  0xab   : > { %v293_v14 = vpop.xlane.xlu0 %292  ;;  %v299_v15 = vpop.xlane.xlu1 %298 }
  0xac   : > { %v302_v16 = vmul.f32 0.03125, %v293_v14  ;;  %v304_v17 = vmul.f32 0.03125, %v299_v15  ;;  %v309_v18 = vmul.f32 %v887_v12, %v887_v12  ;;  %v311_v19 = vmul.f32 %v890_v13, %v890_v13  ;;  %v609_v14 = vld [vmem:[%s1048_s2] ss:$0 sm:$0xff] }
  0xae   : > { %v897_v20 = vsub.f32 %v874_v2, %v302_v16  ;;  %v900_v21 = vsub.f32 %v880_v5, %v304_v17  ;;  %v313_v22 = vsel %vm287_vm0, %v309_v18, 0.0  ;;  %v319_v23 = vsel %vm287_vm0, %v311_v19, 0.0 }
  0xaf   : > { %314 = vadd.xlane.f32.xlu0 %v313_v22 }
  0xb0   : > { %v310_v24 = vmul.f32 %v897_v20, %v897_v20  ;;  %v312_v25 = vmul.f32 %v900_v21, %v900_v21 }
  0xb2   : > { %v316_v26 = vsel %vm287_vm0, %v310_v24, 0.0  ;;  %v322_v27 = vsel %vm287_vm0, %v312_v25, 0.0 }
  0xb3   : > { %320 = vadd.xlane.f32.xlu0 %v319_v23  ;;  %317 = vadd.xlane.f32.xlu1 %v316_v26 }
  0xb7   : > { %323 = vadd.xlane.f32.xlu1 %v322_v27  ;;  %v451_v27 = vld [vmem:[%s1051_s5 + $0x70] sm:$0xff] }
  0xb8   : > { %v460_v29 = vpack.c.bf16 %v452_v28, %v451_v27 }
 0x13c   : > { %v315_v52 = vpop.xlane.xlu0 %314 }
 0x13d   : > { %v325_v53 = vmul.f32 0.03125, %v315_v52 }
 0x13f   : > { %v329_v54 = vadd.f32 1e-05, %v325_v53 }
 0x140   : > { %v318_v55 = vpop.xlane.xlu1 %317  ;;  %v321_v56 = vpop.xlane.xlu0 %320 }
 0x141   : > { %703 = vrsqrt.f32 %v329_v54  ;;  %v326_v57 = vmul.f32 0.03125, %v318_v55  ;;  %v327_v58 = vmul.f32 0.03125, %v321_v56 }
 0x143   : > { %v330_v59 = vadd.f32 1e-05, %v326_v57  ;;  %v331_v60 = vadd.f32 1e-05, %v327_v58 }
 0x144   : > { %v324_v61 = vpop.xlane.xlu1 %323 }
 0x145   : > { %705 = vrsqrt.f32 %v330_v59  ;;  %v328_v62 = vmul.f32 0.03125, %v324_v61 }
 0x146   : > { %707 = vrsqrt.f32 %v331_v60 }
 0x147   : > { %v332_v63 = vadd.f32 1e-05, %v328_v62 }
 0x149   : > { %709 = vrsqrt.f32 %v332_v63 }
 0x14b   : > { %v704_v3 = vpop.eup %703 }
 0x14c   : > { %v337_v4 = vmul.f32 %v704_v3, %v887_v12 }
 0x14e   : > { %v347_v10 = vmul.f32 %v608_v6, %v337_v4 }
 0x14f   : > { %v706_v7 = vpop.eup %705 }
 0x150   : > { %v708_v8 = vpop.eup %707  ;;  %v338_v9 = vmul.f32 %v706_v7, %v897_v20  ;;  %v357_v12 = vadd.f32 %v609_v14, %v347_v10 }
 0x151   : > { %v339_v11 = vmul.f32 %v708_v8, %v890_v13  ;;  %v449_v13 = vld [vmem:[%s1051_s5 + $0x60] sm:$0xff] }
 0x152   : > { %v348_v15 = vmul.f32 %v608_v6, %v338_v9 }
 0x153   : > { %v710_v16 = vpop.eup %709  ;;  %v349_v19 = vmul.f32 %v608_v6, %v339_v11 }
 0x154   : > { %v340_v17 = vmul.f32 %v710_v16, %v900_v21  ;;  %v358_v18 = vadd.f32 %v609_v14, %v348_v15  ;;  %v450_v21 = vld [vmem:[%s1051_s5 + $0x68] sm:$0xff] }
 0x155   : > { %v359_v24 = vadd.f32 %v609_v14, %v349_v19  ;;  %v459_v26 = vpack.c.bf16 %v450_v21, %v449_v13 }
 0x156   : > { %v361_v22 = vpack.c.bf16 %v358_v18, %v357_v12  ;;  %v350_v23 = vmul.f32 %v608_v6, %v340_v17 }
 0x157   : > { %654 = vmatprep.subr.bf16.mxu1 %v459_v26 }
 0x158   : > { %638 = vmatprep.mubr.msk.bf16.mxu0 %vm287_vm0, %v361_v22  ;;  %v360_v20 = vadd.f32 %v609_v14, %v350_v23  ;;  %655 = vmatpush3.bf16.msra.mxu1 %v459_v26 }
 0x159   : > { %656 = vmatprep.subr.bf16.mxu1 %v460_v29 }
 0x15a   : > { %v362_v25 = vpack.c.bf16 %v360_v20, %v359_v24 }
 0x15c   : > { %639 = vmatmul.mubr.msk.bf16.vlgmr.msra.gmra.mrb[0].mxu0 %vm287_vm0, %v362_v25  ;;  %657 = vmatpush3.bf16.msra.mxu1 %v460_v29 }
 0x22f   : > { %v640_v31 = vpop.f32.mrb[0].mxu0 }
 0x230   : > { %v425_v32 = vadd.f32 %v640_v31, %v610_v30  ;;  %v416_v33 = vpop.f32.mrb[1].mxu0 }
 0x231   : > { %v417_v34 = vadd.f32 %v610_v30, %v416_v33  ;;  %v641_v35 = vpop.f32.mrb[2].mxu0 }
 0x232   : > { %v428_v36 = vadd.f32 %v641_v35, %v610_v30  ;;  %v419_v37 = vpop.f32.mrb[3].mxu0  ;;  %v433_v39 = vmax.f32 %v425_v32, 0.0 }
 0x233   : > { %v420_v38 = vadd.f32 %v610_v30, %v419_v37  ;;  %v431_v41 = vmax.f32 %v417_v34, 0.0 }
 0x234   : > { %v434_v40 = vmax.f32 %v428_v36, 0.0 }
 0x235   : > { %v432_v42 = vmax.f32 %v420_v38, 0.0 }
 0x236   : > { %v436_v43 = vpack.c.bf16 %v434_v40, %v433_v39 }
 0x237   : > { %v435_v44 = vpack.c.bf16 %v432_v42, %v431_v41 }
 0x239   : > { %658 = vmatprep.mubr.bf16.mxu1 %v435_v44 }
 0x23a   : > { %659 = vmatmul.mubr.bf16.vlgmr.msra.gmra.mrb[0].mxu1 %v436_v43 }
 0x30d   : > { %v660_v46 = vpop.f32.mrb[0].mxu1 }
 0x30e   : > { %v511_v47 = vadd.f32 %v660_v46, %v613_v45  ;;  %v502_v48 = vpop.f32.mrb[1].mxu1 }
 0x30f   : > { %v503_v49 = vadd.f32 %v613_v45, %v502_v48  ;;  %v661_v50 = vpop.f32.mrb[2].mxu1 }
 0x310   : > { %v519_v51 = vadd.f32 %v511_v47, %v872_v1  ;;  %v514_v52 = vadd.f32 %v661_v50, %v613_v45  ;;  %v505_v53 = vpop.f32.mrb[3].mxu1 }
 0x311   : > { %v517_v54 = vadd.f32 %v503_v49, %v870_v0  ;;  %v506_v55 = vadd.f32 %v613_v45, %v505_v53 }
 0x312   : > { %523 = vst.msk [vmem:[%s272_s9 + $0x10] sm:$0xff] %vm287_vm0, %v519_v51  ;;  %v520_v56 = vadd.f32 %v514_v52, %v880_v5 }
 0x313   : > { %521 = vst.msk [vmem:[%s272_s9] sm:$0xff] %vm287_vm0, %v517_v54  ;;  %v518_v1 = vadd.f32 %v506_v55, %v874_v2 }
 0x314   : > { %524 = vst.msk [vmem:[%s272_s9 + $0x18] sm:$0xff] %vm287_vm0, %v520_v56 }
 0x315   : > { %522 = vst.msk [vmem:[%s272_s9 + $0x8] sm:$0xff] %vm287_vm0, %v518_v1 }
 0x316   : > { %724 = shalt.err (!%p721_p3)
}
 0x317   : > { %s725_s22 = scalar_lea.hbm %s997_s17, 512  ;;  %s729_s8 = scalar_lea.hbm %s1053_s7, 1024 }
 0x318   : > { %p726_p4 = scmp.ne.s32.totalorder %s997_s17, %s725_s22  ;;  %p730_p9 = scmp.lt.u32.totalorder %s997_s17, %s1053_s7 }
 0x319   : > { %p731_p10 = scmp.lt.u32.totalorder %s729_s8, %s725_s22  ;;  %p733_p12 = scmp.lt.u32.totalorder %s725_s22, %s997_s17 }
 0x31a   : > { %p727_p7 = pnand %p726_p4, %p856_p5 }
 0x31b   : > { %p732_p11 = por %p731_p10, %p730_p9 }
 0x31c   : > { %p728_p8 = pneg %p727_p7 }
 0x31d   : > { %p734_p13 = por %p733_p12, %p732_p11 }
 0x31f   : > { %p735_p0 = pnand %p734_p13, %p728_p8 }
 0x321   : > { %738 = shalt.err (!%p735_p0)
}
 0x322   : > { %s776_s15 = smov 128   ;;  %s777_s16 = smov 8  }
 0x323   : > { %662 = dma.vmem_to_hbm [thread:$0]  (%p856_p5), %s999_s13, 512, %s997_s17, %s1005_s28, %s776_s15, %s776_s15, %s777_s16  }
 0x324 PF: > { %p668_p1 = scmp.ge.s32.totalorder %s773_s27, 2  ;;  %s554_s18 = sand.u32 1, %s761_s24  }
 0x325   : > { %s555_s19 = scalar_lea.sflag [#allocation3], %s554_s18 }
 0x326   : > { %p665_p2 = pnand %p668_p1, %p860_p6 }
 0x328   : > { %756 = dma.done.wait (!%p665_p2), %s555_s19, 512  }
 0x329   : > { %758 = vsyncadd (!%p665_p2), %s555_s19, 4294966784  ;;  %p17_p3 = scmp.ge.s32.totalorder %s843_s30, 4   ;;  %s1056_s24 = smov %s765_s25 }
 0x32a   : > { %s1057_s25 = smov %s769_s26  ;;  %s1058_s26 = smov %s854_s10 }
 0x32b   : > { %s1059_s27 = smov %s843_s30  ;;  %19 = sbr.rel (!%p17_p3) target bundleno = 3 (0x3), region = 83 }
 0x332   :  { %560 = vsyncpa [#allocation3], 1 }
 0x333   :  { %562 = vsyncpa [#allocation3 + $0x1], 1 }

// kernel: evoblock_apply.15
= control target key start
LH: loop header
LB: loop body
LE: loop exit
PB: predicated region body
PF: predicated region fallthrough
CT: control target
= control target key end

     0   :  { %12 = vsyncpa [#allocation3], 0  ;;  %s969_s0 = inlined_call_operand.vmem [shape: f32[32,32], index: 0, kind: input, shape index: {}]   ;;  %s970_s1 = inlined_call_operand.vmem [shape: f32[1,32], index: 1, kind: input, shape index: {}]   ;;  %s971_s2 = inlined_call_operand.vmem [shape: f32[1,32], index: 2, kind: input, shape index: {}]   ;;  %s972_s3 = inlined_call_operand.vmem [shape: f32[32,128], index: 3, kind: input, shape index: {}]   ;;  %s973_s4 = inlined_call_operand.vmem [shape: f32[1,128], index: 4, kind: input, shape index: {}]   ;;  %s974_s5 = inlined_call_operand.vmem [shape: f32[128,32], index: 5, kind: input, shape index: {}]   ;;  %s975_s6 = inlined_call_operand.vmem [shape: f32[1,32], index: 6, kind: input, shape index: {}]   ;;  %s976_s7 = inlined_call_operand.hbm [shape: f32[32,32], index: 7, kind: output, shape index: {}]  }
   0x1   :  { %14 = vsyncpa [#allocation3 + $0x1], 0  ;;  %s756_s24 = smov 0   ;;  %s758_s25 = smov 0  }
   0x2   :  { %s760_s26 = smov 0   ;;  %s762_s27 = smov 0  }
   0x3 LB: > { %s777_s28 = sadd.s32 4294967295, %s709_s27   ;;  %s542_s29 = sadd.s32 4294967294, %s709_s27   ;;  %s709_s27 = sphi %s762_s27, %s982_s27   ;;  %s705_s26 = sphi %s760_s26, %s981_s26   ;;  %s701_s25 = sphi %s758_s25, %s980_s25   ;;  %s697_s24 = sphi %s756_s24, %s979_s24  }
   0x4   : > { %s781_s30 = sadd.s32 1, %s709_s27   ;;  %s179_s8 = sadd.s32 1, %s705_s26 }
   0x5   : > { %s176_s9 = ssub.s32 %s709_s27, %s781_s30  ;;  %p189_p0 = scmp.ne.s32.totalorder %s705_s26, %s701_s25 }
   0x6   : > { %p177_p1 = scmp.eq.s32.totalorder %s176_s9, 0  ;;  %p190_p2 = scmp.eq.s32.totalorder %s777_s28, 1 }
   0x7   : > { %p195_p3 = scmp.ne.s32.totalorder %s701_s25, %s697_s24  ;;  %p196_p4 = scmp.eq.s32.totalorder %s542_s29, 1 }
   0x8   : > { %s792_s10 = scalar_select %p177_p1, %s705_s26, %s179_s8  }
   0x9   : > { %p794_p5 = por %p190_p2, %p189_p0  ;;  %p798_p6 = por %p196_p4, %p195_p3 }
   0xa   : > { %p545_p7 = scmp.ge.s32.totalorder %s709_s27, 1  ;;  %p241_p8 = scmp.lt.s32.totalorder %s709_s27, 3 }
   0xc   : > { %p242_p9 = pnand %p545_p7, %p241_p8 }
   0xd   : > { %s547_s13 = sshll.u32 (!%p242_p9), %s777_s28, 1  ;;  %vm285_vm0 = vcmask (!%p242_p9), 261120   ;;  %v330_v14 = vld [vmem:[%s972_s3] sm:$0xff] (!%p242_p9)  ;;  %v331_v15 = vld [vmem:[%s972_s3 + $0x8] sm:$0xff] (!%p242_p9)  ;;  %v711_v17 = vmov (!%p242_p9), 0.0   ;;  %v332_v18 = vld [vmem:[%s972_s3 + $0x10] sm:$0xff] (!%p242_p9) }
   0xe   : > { %245 = sbr.rel (%p242_p9) target bundleno = 797 (0x31d), region = 48  ;;  %p274_p10 = scmp.lt.s32.totalorder (!%p242_p9), %s547_s13, 3  ;;  %v334_v16 = vpack.c.bf16 (!%p242_p9), %v331_v15, %v330_v14  ;;  %572 = vmatprep.subr.bf16.mxu0 (!%p242_p9), %v711_v17  ;;  %v333_v19 = vld [vmem:[%s972_s3 + $0x18] sm:$0xff] (!%p242_p9)  ;;  %580 = vmatprep.subr.bf16.mxu1 (!%p242_p9), %v711_v17  ;;  %vm712_vm1 = vmmov (!%p242_p9), 0   ;;  %v390_v21 = vld [vmem:[%s974_s5] sm:$0xff] (!%p242_p9)  ;;  %v391_v22 = vld [vmem:[%s974_s5 + $0x8] sm:$0xff] (!%p242_p9) }
   0xf   : > { %v335_v20 = vpack.c.bf16 (!%p242_p9), %v333_v19, %v332_v18  ;;  %576 = vmatprep.mubr.msk.bf16.mxu0 (!%p242_p9), %vm712_vm1, %v711_v17  ;;  %596 = vmatprep.mubr.msk.bf16.mxu1 (!%p242_p9), %vm712_vm1, %v711_v17  ;;  %v392_v23 = vld [vmem:[%s974_s5 + $0x10] sm:$0xff] (!%p242_p9)  ;;  %v406_v24 = vpack.c.bf16 (!%p242_p9), %v391_v22, %v390_v21  ;;  %v393_v25 = vld [vmem:[%s974_s5 + $0x18] sm:$0xff] (!%p242_p9)  ;;  %v394_v27 = vld [vmem:[%s974_s5 + $0x20] sm:$0xff] (!%p242_p9)  ;;  %s270_s22 = sand.u32 (!%p242_p9), 1, %s701_s25   ;;  %s713_s19 = smov (!%p242_p9), [#allocation2]  }
  0x10   : > { %573 = vmatpush3.bf16.msra.mxu0 (!%p242_p9), %v334_v16  ;;  %v407_v26 = vpack.c.bf16 (!%p242_p9), %v393_v25, %v392_v23  ;;  %v395_v28 = vld [vmem:[%s974_s5 + $0x28] sm:$0xff] (!%p242_p9)  ;;  %v396_v30 = vld [vmem:[%s974_s5 + $0x30] sm:$0xff] (!%p242_p9)  ;;  %v397_v31 = vld [vmem:[%s974_s5 + $0x38] sm:$0xff] (!%p242_p9)  ;;  %s546_s23 = sshll.u32 (!%p242_p9), %s270_s22, 4  ;;  %s651_s20 = sshll.u32 (!%p242_p9), %s713_s19, 4  ;;  %s652_s20 = int_to_ptr.vmem [resolvable:$false] %s651_s20 }
  0x11   : > { %574 = vmatprep.subr.bf16.mxu0 (!%p242_p9), %v711_v17  ;;  %581 = vmatpush3.bf16.msra.mxu1 (!%p242_p9), %v406_v24  ;;  %v408_v29 = vpack.c.bf16 (!%p242_p9), %v395_v28, %v394_v27  ;;  %v409_v32 = vpack.c.bf16 (!%p242_p9), %v397_v31, %v396_v30  ;;  %v398_v33 = vld [vmem:[%s974_s5 + $0x40] sm:$0xff] (!%p242_p9)  ;;  %v399_v34 = vld [vmem:[%s974_s5 + $0x48] sm:$0xff] (!%p242_p9)  ;;  %v400_v36 = vld [vmem:[%s974_s5 + $0x50] sm:$0xff] (!%p242_p9)  ;;  %s272_s9 = scalar_lea.vmem (!%p242_p9), [#allocation2], %s546_s23  ;;  %s653_s21 = scalar_lea.vmem (!%p242_p9), %s652_s20, 512 }
  0x12   : > { %582 = vmatprep.subr.bf16.mxu1 (!%p242_p9), %v711_v17  ;;  %v410_v35 = vpack.c.bf16 (!%p242_p9), %v399_v34, %v398_v33  ;;  %v401_v37 = vld [vmem:[%s974_s5 + $0x58] sm:$0xff] (!%p242_p9)  ;;  %v549_v47 = vld [vmem:[%s970_s1] ss:$0 sm:$0xff] (!%p242_p9)  ;;  %v403_v57 = vld [vmem:[%s974_s5 + $0x68] sm:$0xff] (!%p242_p9) }
  0x13   : > { %v411_v38 = vpack.c.bf16 (!%p242_p9), %v401_v37, %v400_v36  ;;  %v550_v51 = vld [vmem:[%s971_s2] ss:$0 sm:$0xff] (!%p242_p9)  ;;  %v404_v59 = vld [vmem:[%s974_s5 + $0x70] sm:$0xff] (!%p242_p9)  ;;  %v405_v60 = vld [vmem:[%s974_s5 + $0x78] sm:$0xff] (!%p242_p9) }
  0x14   : > { %575 = vmatpush3.bf16.msra.mxu0 (!%p242_p9), %v335_v20  ;;  %v402_v56 = vld [vmem:[%s974_s5 + $0x60] sm:$0xff] (!%p242_p9)  ;;  %v413_v61 = vpack.c.bf16 (!%p242_p9), %v405_v60, %v404_v59 }
  0x15   : > { %s984_s13 = smov (!%p274_p10, %s547_s13), 3  ;;  %583 = vmatpush3.bf16.msra.mxu1 %v407_v26  ;;  %v412_v58 = vpack.c.bf16 %v403_v57, %v402_v56  ;;  %v551_v62 = vld [vmem:[%s973_s4] ss:$0 sm:$0xff] }
  0x16   : > { %s548_s14 = sshll.u32 %s984_s13, 3  ;;  %584 = vmatprep.subr.bf16.mxu1 %v711_v17  ;;  %s480_s13 = sshll.u32 %s272_s9, 4  ;;  %s923_s13 = int_to_ptr.vmem [resolvable:$true] %s480_s13 }
  0x17   : > { %s277_s17 = scalar_lea.vmem %s969_s0, %s548_s14  ;;  %s559_s14 = sshll.u32 %s777_s28, 8 }
  0x18   : > { %v808_v0 = vld [vmem:[%s277_s17] sm:$0xff]  ;;  %v810_v1 = vld [vmem:[%s277_s17 + $0x8] sm:$0xff]  ;;  %s921_s17 = scalar_lea.hbm %s976_s7, %s559_s14  ;;  %s928_s28 = scalar_lea.sflag [#allocation3], %s270_s22 }
  0x19   : > { %v286_v2 = vsel %vm285_vm0, %v808_v0, 0.0  ;;  %v289_v3 = vsel %vm285_vm0, %v810_v1, 0.0  ;;  %585 = vmatpush3.bf16.msra.mxu1 %v408_v29  ;;  %s647_s18 = scalar_lea.vmem %s923_s13, 256  ;;  %p654_p0 = scmp.lt.s32.totalorder %s923_s13, %s652_s20 }
  0x1a   : > { %287 = vadd.xlane.f32.xlu0 %v286_v2  ;;  %586 = vmatprep.subr.bf16.mxu1 %v711_v17  ;;  %p648_p11 = scmp.ne.s32.totalorder %s923_s13, %s647_s18  ;;  %p655_p1 = scmp.lt.s32.totalorder %s653_s21, %s647_s18 }
  0x1c   : > { %p649_p12 = pnand %p648_p11, %p794_p5  ;;  %p656_p2 = por %p655_p1, %p654_p0 }
  0x1d   : > { %587 = vmatpush3.bf16.msra.mxu1 %v409_v32 }
  0x1e   : > { %290 = vadd.xlane.f32.xlu0 %v289_v3  ;;  %588 = vmatprep.subr.bf16.mxu1 %v711_v17  ;;  %p650_p13 = pneg %p649_p12 }
  0x20   : > { %p657_p3 = pnand %p656_p2, %p650_p13 }
  0x21   : > { %589 = vmatpush3.bf16.msra.mxu1 %v410_v35 }
  0x22   : > { %590 = vmatprep.subr.bf16.mxu1 %v711_v17 }
  0x25   : > { %591 = vmatpush3.bf16.msra.mxu1 %v411_v38 }
  0x26   : > { %592 = vmatprep.subr.bf16.mxu1 %v711_v17 }
  0x29   : > { %593 = vmatpush3.bf16.msra.mxu1 %v412_v58 }
  0x2a   : > { %594 = vmatprep.subr.bf16.mxu1 %v711_v17 }
  0x2d   : > { %595 = vmatpush3.bf16.msra.mxu1 %v413_v61 }
  0xa7   : > { %v288_v4 = vpop.xlane.xlu0 %287 }
  0xa8   : > { %v293_v5 = vmul.f32 0.03125, %v288_v4 }
  0xaa   : > { %v817_v6 = vsub.f32 %v808_v0, %v293_v5 }
  0xab   : > { %v291_v7 = vpop.xlane.xlu0 %290 }
  0xac   : > { %v294_v8 = vmul.f32 0.03125, %v291_v7  ;;  %v297_v9 = vmul.f32 %v817_v6, %v817_v6 }
  0xae   : > { %v822_v10 = vsub.f32 %v810_v1, %v294_v8  ;;  %v299_v11 = vsel %vm285_vm0, %v297_v9, 0.0 }
  0xaf   : > { %300 = vadd.xlane.f32.xlu1 %v299_v11 }
  0xb0   : > { %v298_v12 = vmul.f32 %v822_v10, %v822_v10 }
  0xb2   : > { %v302_v13 = vsel %vm285_vm0, %v298_v12, 0.0 }
  0xb3   : > { %303 = vadd.xlane.f32.xlu1 %v302_v13 }
 0x13c   : > { %v301_v39 = vpop.xlane.xlu1 %300 }
 0x13d   : > { %v305_v40 = vmul.f32 0.03125, %v301_v39 }
 0x13f   : > { %v307_v41 = vadd.f32 1e-05, %v305_v40 }
 0x140   : > { %v304_v42 = vpop.xlane.xlu1 %303 }
 0x141   : > { %643 = vrsqrt.f32 %v307_v41  ;;  %v306_v43 = vmul.f32 0.03125, %v304_v42 }
 0x143   : > { %v308_v44 = vadd.f32 1e-05, %v306_v43 }
 0x145   : > { %645 = vrsqrt.f32 %v308_v44 }
 0x14b   : > { %v644_v45 = vpop.eup %643 }
 0x14c   : > { %v311_v46 = vmul.f32 %v644_v45, %v817_v6 }
 0x14e   : > { %v319_v50 = vmul.f32 %v549_v47, %v311_v46 }
 0x14f   : > { %v646_v48 = vpop.eup %645 }
 0x150   : > { %v312_v49 = vmul.f32 %v646_v48, %v822_v10  ;;  %v327_v53 = vadd.f32 %v550_v51, %v319_v50  ;;  %v553_v10 = vld [vmem:[%s975_s6] ss:$0 sm:$0xff] }
 0x152   : > { %v320_v52 = vmul.f32 %v549_v47, %v312_v49 }
 0x154   : > { %v328_v54 = vadd.f32 %v550_v51, %v320_v52 }
 0x156   : > { %v329_v55 = vpack.c.bf16 %v328_v54, %v327_v53 }
 0x158   : > { %577 = vmatmul.mubr.msk.bf16.vlgmr.msra.gmra.mrb[0].mxu0 %vm285_vm0, %v329_v55 }
 0x22b   : > { %v380_v63 = vpop.f32.mrb[0].mxu0 }
 0x22c   : > { %v381_v2 = vadd.f32 %v551_v62, %v380_v63  ;;  %v578_v3 = vpop.f32.mrb[1].mxu0 }
 0x22d   : > { %v383_v4 = vpop.f32.mrb[2].mxu0 }
 0x22e   : > { %v384_v5 = vadd.f32 %v551_v62, %v383_v4  ;;  %v579_v6 = vpop.f32.mrb[3].mxu0  ;;  %v387_v7 = vmax.f32 %v381_v2, 0.0 }
 0x230   : > { %v388_v8 = vmax.f32 %v384_v5, 0.0 }
 0x232   : > { %v389_v9 = vpack.c.bf16 %v388_v8, %v387_v7 }
 0x234   : > { %597 = vmatmul.mubr.bf16.vlgmr.msra.gmra.mrb[0].mxu1 %v389_v9 }
 0x307   : > { %v455_v11 = vpop.f32.mrb[0].mxu1 }
 0x308   : > { %v456_v12 = vadd.f32 %v553_v10, %v455_v11  ;;  %v598_v13 = vpop.f32.mrb[1].mxu1 }
 0x309   : > { %v458_v14 = vpop.f32.mrb[2].mxu1 }
 0x30a   : > { %v462_v15 = vadd.f32 %v456_v12, %v808_v0  ;;  %v459_v16 = vadd.f32 %v553_v10, %v458_v14  ;;  %v599_v17 = vpop.f32.mrb[3].mxu1 }
 0x30c   : > { %464 = vst.msk [vmem:[%s272_s9] sm:$0xff] %vm285_vm0, %v462_v15  ;;  %v463_v18 = vadd.f32 %v459_v16, %v810_v1 }
 0x30e   : > { %465 = vst.msk [vmem:[%s272_s9 + $0x8] sm:$0xff] %vm285_vm0, %v463_v18 }
 0x30f   : > { %660 = shalt.err (!%p657_p3)
}
 0x310   : > { %s661_s22 = scalar_lea.hbm %s921_s17, 256  ;;  %s665_s8 = scalar_lea.hbm %s976_s7, 512 }
 0x311   : > { %p662_p4 = scmp.ne.s32.totalorder %s921_s17, %s661_s22  ;;  %p666_p9 = scmp.lt.u32.totalorder %s921_s17, %s976_s7 }
 0x312   : > { %p667_p10 = scmp.lt.u32.totalorder %s665_s8, %s661_s22  ;;  %p669_p12 = scmp.lt.u32.totalorder %s661_s22, %s921_s17 }
 0x313   : > { %p663_p7 = pnand %p662_p4, %p794_p5 }
 0x314   : > { %p668_p11 = por %p667_p10, %p666_p9 }
 0x315   : > { %p664_p8 = pneg %p663_p7 }
 0x316   : > { %p670_p13 = por %p669_p12, %p668_p11 }
 0x318   : > { %p671_p0 = pnand %p670_p13, %p664_p8 }
 0x31a   : > { %674 = shalt.err (!%p671_p0)
}
 0x31b   : > { %s714_s15 = smov 128   ;;  %s715_s16 = smov 8  }
 0x31c   : > { %600 = dma.vmem_to_hbm [thread:$0]  (%p794_p5), %s923_s13, 256, %s921_s17, %s928_s28, %s714_s15, %s714_s15, %s715_s16  }
 0x31d PF: > { %p606_p1 = scmp.ge.s32.totalorder %s709_s27, 2  ;;  %s495_s18 = sand.u32 1, %s697_s24  }
 0x31e   : > { %s496_s19 = scalar_lea.sflag [#allocation3], %s495_s18 }
 0x31f   : > { %p603_p2 = pnand %p606_p1, %p798_p6 }
 0x321   : > { %692 = dma.done.wait (!%p603_p2), %s496_s19, 256  }
 0x322   : > { %694 = vsyncadd (!%p603_p2), %s496_s19, 4294967040  ;;  %p17_p3 = scmp.ge.s32.totalorder %s781_s30, 4   ;;  %s979_s24 = smov %s701_s25 }
 0x323   : > { %s980_s25 = smov %s705_s26  ;;  %s981_s26 = smov %s792_s10 }
 0x324   : > { %s982_s27 = smov %s781_s30  ;;  %19 = sbr.rel (!%p17_p3) target bundleno = 3 (0x3), region = 83 }
 0x32b   :  { %501 = vsyncpa [#allocation3], 1 }
 0x32c   :  { %503 = vsyncpa [#allocation3 + $0x1], 1 }

// kernel: evoblock_apply.13
= control target key start
LH: loop header
LB: loop body
LE: loop exit
PB: predicated region body
PF: predicated region fallthrough
CT: control target
= control target key end

     0   :  { %s2045_s29 = smov 0   ;;  %s2472_s0 = inlined_call_operand.vmem [shape: f32[4,8,32], index: 0, kind: input, shape index: {}]   ;;  %s2473_s1 = inlined_call_operand.vmem [shape: f32[8,8,32], index: 1, kind: input, shape index: {}]   ;;  %s2474_s2 = inlined_call_operand.vmem [shape: f32[1,32], index: 2, kind: input, shape index: {}]   ;;  %s2475_s3 = inlined_call_operand.vmem [shape: f32[1,32], index: 3, kind: input, shape index: {}]   ;;  %s2476_s4 = inlined_call_operand.vmem [shape: f32[1,32], index: 4, kind: input, shape index: {}]   ;;  %s2477_s5 = inlined_call_operand.vmem [shape: f32[1,32], index: 5, kind: input, shape index: {}]   ;;  %s2478_s6 = inlined_call_operand.vmem [shape: f32[32,32], index: 6, kind: input, shape index: {}]   ;;  %s2479_s7 = inlined_call_operand.vmem [shape: f32[32,32], index: 7, kind: input, shape index: {}]   ;;  %s2480_s8 = inlined_call_operand.vmem [shape: f32[32,32], index: 8, kind: input, shape index: {}]   ;;  %s2481_s9 = inlined_call_operand.vmem [shape: f32[32,32], index: 9, kind: input, shape index: {}]   ;;  %s2482_s10 = inlined_call_operand.vmem [shape: f32[1,32], index: 10, kind: input, shape index: {}]   ;;  %s2483_s11 = inlined_call_operand.vmem [shape: f32[32,2], index: 11, kind: input, shape index: {}]   ;;  %s2484_s12 = inlined_call_operand.vmem [shape: f32[32,32], index: 12, kind: input, shape index: {}]   ;;  %s2485_s13 = inlined_call_operand.vmem [shape: f32[1,32], index: 13, kind: input, shape index: {}]   ;;  %s2486_s14 = inlined_call_operand.vmem [shape: f32[4,8,32], index: 14, kind: output, shape index: {}]  }
   0x1 LB: > { %s1708_s30 = sadd.s32 4294967295, %s1962_s29   ;;  %p1712_p0 = scmp.ge.s32.totalorder %s1962_s29, 1  ;;  %s1962_s29 = sphi %s2045_s29, %s24_s29  }
   0x2   : > { %p413_p1 = scmp.lt.s32.totalorder %s1962_s29, 3 }
   0x4   : > { %p414_p2 = pnand %p1712_p0, %p413_p1 }
   0x5   : > { %s1713_s15 = sshll.u32 (!%p414_p2), %s1708_s30, 1  ;;  %vm476_vm0 = vcmask (!%p414_p2), 261120   ;;  %v734_v4 = vld [vmem:[%s2473_s1] sm:$0xff] (!%p414_p2)  ;;  %v736_v6 = vld [vmem:[%s2473_s1 + $0x10] sm:$0xff] (!%p414_p2)  ;;  %v2095_v23 = vld [vmem:[%s2473_s1 + $0x8] sm:$0xff] (!%p414_p2)  ;;  %v1964_v55 = vmov (!%p414_p2), 0.0  }
   0x6   : > { %417 = sbr.rel (%p414_p2) target bundleno = 2272 (0x8e0), region = 76  ;;  %p460_p3 = scmp.lt.s32.totalorder (!%p414_p2), %s1713_s15, 3  ;;  %v744_v5 = vsel (!%p414_p2), %vm476_vm0, %v734_v4, 0.0  ;;  %v750_v7 = vsel (!%p414_p2), %vm476_vm0, %v736_v6, 0.0  ;;  %v738_v8 = vld [vmem:[%s2473_s1 + $0x20] sm:$0xff] (!%p414_p2)  ;;  %v740_v10 = vld [vmem:[%s2473_s1 + $0x30] sm:$0xff] (!%p414_p2)  ;;  %1792 = vmatprep.subr.bf16.mxu0 (!%p414_p2), %v1964_v55  ;;  %1800 = vmatprep.subr.bf16.mxu1 (!%p414_p2), %v1964_v55 }
   0x7   : > { %v756_v9 = vsel (!%p414_p2), %vm476_vm0, %v738_v8, 0.0  ;;  %v762_v11 = vsel (!%p414_p2), %vm476_vm0, %v740_v10, 0.0  ;;  %v747_v28 = vsel (!%p414_p2), %vm476_vm0, %v2095_v23, 0.0  ;;  %v2107_v30 = vld [vmem:[%s2473_s1 + $0x18] sm:$0xff] (!%p414_p2)  ;;  %v2119_v37 = vld [vmem:[%s2473_s1 + $0x28] sm:$0xff] (!%p414_p2)  ;;  %v521_v50 = vld [vmem:[%s2478_s6] sm:$0xff] (!%p414_p2) }
   0x8   : > { %v753_v35 = vsel (!%p414_p2), %vm476_vm0, %v2107_v30, 0.0  ;;  %v759_v42 = vsel (!%p414_p2), %vm476_vm0, %v2119_v37, 0.0  ;;  %v2131_v44 = vld [vmem:[%s2473_s1 + $0x38] sm:$0xff] (!%p414_p2)  ;;  %v522_v51 = vld [vmem:[%s2478_s6 + $0x8] sm:$0xff] (!%p414_p2)  ;;  %v574_v52 = vld [vmem:[%s2479_s7] sm:$0xff] (!%p414_p2)  ;;  %vm1965_vm1 = vmmov (!%p414_p2), 0  }
   0x9   : > { %v765_v47 = vsel (!%p414_p2), %vm476_vm0, %v2131_v44, 0.0  ;;  %v525_v53 = vpack.c.bf16 (!%p414_p2), %v522_v51, %v521_v50  ;;  %v575_v54 = vld [vmem:[%s2479_s7 + $0x8] sm:$0xff] (!%p414_p2)  ;;  %v523_v57 = vld [vmem:[%s2478_s6 + $0x10] sm:$0xff] (!%p414_p2)  ;;  %v524_v58 = vld [vmem:[%s2478_s6 + $0x18] sm:$0xff] (!%p414_p2)  ;;  %1796 = vmatprep.mubr.msk.bf16.mxu0 (!%p414_p2), %vm1965_vm1, %v1964_v55  ;;  %1804 = vmatprep.mubr.msk.bf16.mxu1 (!%p414_p2), %vm1965_vm1, %v1964_v55  ;;  %vm1067_vm2 = vcmask (!%p414_p2), 130048   ;;  %vm1188_vm3 = vcmask (!%p414_p2), 1043456  }
   0xa   : > { %v578_v56 = vpack.c.bf16 (!%p414_p2), %v575_v54, %v574_v52  ;;  %v576_v59 = vld [vmem:[%s2479_s7 + $0x10] sm:$0xff] (!%p414_p2)  ;;  %v526_v60 = vpack.c.bf16 (!%p414_p2), %v524_v58, %v523_v57  ;;  %v577_v61 = vld [vmem:[%s2479_s7 + $0x18] sm:$0xff] (!%p414_p2)  ;;  %v880_v52 = vld [vmem:[%s2483_s11] sm:$0xff] (!%p414_p2)  ;;  %vm1052_vm4 = vcmask (!%p414_p2), 1041409   ;;  %vm1054_vm5 = vcmask (!%p414_p2), 1042434   ;;  %s1968_s24 = smov (!%p414_p2), 112  }
   0xb   : > { %1793 = vmatpush3.bf16.msra.mxu0 (!%p414_p2), %v525_v53  ;;  %v579_v62 = vpack.c.bf16 (!%p414_p2), %v577_v61, %v576_v59  ;;  %v881_v53 = vld [vmem:[%s2483_s11 + $0x8] sm:$0xff] (!%p414_p2)  ;;  %v883_v57 = vld [vmem:[%s2483_s11 + $0x18] sm:$0xff] (!%p414_p2)  ;;  %vm1056_vm6 = vcmask (!%p414_p2), 1043459   ;;  %vm1058_vm7 = vcmask (!%p414_p2), 1044484   ;;  %vm1060_vm8 = vcmask (!%p414_p2), 1045509   ;;  %s1969_s23 = smov (!%p414_p2), 16  }
   0xc   : > { %1801 = vmatpush3.bf16.msra.mxu1 (!%p414_p2), %v578_v56  ;;  %1794 = vmatprep.subr.bf16.mxu0 (!%p414_p2), %v1964_v55  ;;  %v884_v54 = vpack.c.bf16 (!%p414_p2), %v881_v53, %v880_v52  ;;  %v882_v56 = vld [vmem:[%s2483_s11 + $0x10] sm:$0xff] (!%p414_p2)  ;;  %vm1062_vm9 = vcmask (!%p414_p2), 1046534   ;;  %vm1064_vm10 = vcmask (!%p414_p2), 1047559   ;;  %vm1160_vm11 = vcmask (!%p414_p2), 64512  }
   0xd   : > { %s2488_s15 = smov (!%p460_p3, %s1713_s15), 3  ;;  %1802 = vmatprep.subr.bf16.mxu1 %v1964_v55  ;;  %v885_v58 = vpack.c.bf16 %v883_v57, %v882_v56 }
   0xe   : > { %s1714_s16 = sshll.u32 %s2488_s15, 3 }
   0xf   : > { %s2061_s19 = scalar_lea.vmem %s2472_s0, %s1714_s16  ;;  %1795 = vmatpush3.bf16.msra.mxu0 %v526_v60  ;;  %v1966_v60 = vmov 0   ;;  %s469_s28 = scalar_lea.vmem %s2486_s14, %s1714_s16 }
  0x10   : > { %v472_v0 = vld [vmem:[%s2061_s19] sm:$0xff]  ;;  %v473_v1 = vld [vmem:[%s2061_s19 + $0x8] sm:$0xff]  ;;  %1803 = vmatpush3.bf16.msra.mxu1 %v579_v62  ;;  %1808 = vmatprep.subr.bf16.mxu0 %v1964_v55 }
  0x11   : > { %v477_v2 = vsel %vm476_vm0, %v472_v0, 0.0  ;;  %v480_v3 = vsel %vm476_vm0, %v473_v1, 0.0  ;;  %1816 = vmatprep.subr.bf16.mxu1 %v1964_v55  ;;  %1907 = vset.pattern.permute.xlu1 %v1966_v60 }
  0x12   : > { %478 = vadd.xlane.f32.xlu0 %v477_v2 }
  0x13   : > { %1906 = vset.pattern.permute.xlu0 %v1966_v60 }
  0x16   : > { %481 = vadd.xlane.f32.xlu0 %v480_v3 }
  0x1a   : > { %745 = vadd.xlane.f32.xlu0 %v744_v5 }
  0x1e   : > { %751 = vadd.xlane.f32.xlu0 %v750_v7 }
  0x22   : > { %757 = vadd.xlane.f32.xlu0 %v756_v9 }
  0x26   : > { %763 = vadd.xlane.f32.xlu0 %v762_v11 }
  0x9f   : > { %v479_v12 = vpop.xlane.xlu0 %478 }
  0xa0   : > { %v484_v13 = vmul.f32 0.03125, %v479_v12 }
  0xa2   : > { %v2083_v14 = vsub.f32 %v472_v0, %v484_v13 }
  0xa3   : > { %v482_v15 = vpop.xlane.xlu0 %481 }
  0xa4   : > { %v485_v16 = vmul.f32 0.03125, %v482_v15  ;;  %v488_v17 = vmul.f32 %v2083_v14, %v2083_v14 }
  0xa6   : > { %v2087_v18 = vsub.f32 %v473_v1, %v485_v16  ;;  %v490_v19 = vsel %vm476_vm0, %v488_v17, 0.0 }
  0xa7   : > { %491 = vadd.xlane.f32.xlu1 %v490_v19  ;;  %v746_v20 = vpop.xlane.xlu0 %745 }
  0xa8   : > { %v768_v21 = vmul.f32 0.03125, %v746_v20  ;;  %v489_v22 = vmul.f32 %v2087_v18, %v2087_v18  ;;  %v1717_v20 = vld [vmem:[%s2474_s2] ss:$0 sm:$0xff] }
  0xaa   : > { %v2097_v24 = vsub.f32 %v734_v4, %v768_v21  ;;  %v493_v25 = vsel %vm476_vm0, %v489_v22, 0.0 }
  0xab   : > { %494 = vadd.xlane.f32.xlu1 %v493_v25  ;;  %v752_v26 = vpop.xlane.xlu0 %751 }
  0xac   : > { %v770_v27 = vmul.f32 0.03125, %v752_v26  ;;  %v784_v29 = vmul.f32 %v2097_v24, %v2097_v24 }
  0xae   : > { %v2109_v31 = vsub.f32 %v736_v6, %v770_v27  ;;  %v792_v32 = vsel %vm476_vm0, %v784_v29, 0.0  ;;  %v1718_v29 = vld [vmem:[%s2475_s3] ss:$0 sm:$0xff] }
  0xaf   : > { %748 = vadd.xlane.f32.xlu1 %v747_v28  ;;  %793 = vadd.xlane.f32.xlu0 %v792_v32  ;;  %v758_v33 = vpop.xlane.xlu0 %757  ;;  %v622_v32 = vld [vmem:[%s2480_s8] sm:$0xff] }
  0xb0   : > { %v772_v34 = vmul.f32 0.03125, %v758_v33  ;;  %v786_v36 = vmul.f32 %v2109_v31, %v2109_v31 }
  0xb2   : > { %v2121_v38 = vsub.f32 %v738_v8, %v772_v34  ;;  %v798_v39 = vsel %vm476_vm0, %v786_v36, 0.0  ;;  %v671_v36 = vld [vmem:[%s2481_s9 + $0x8] sm:$0xff] }
  0xb3   : > { %754 = vadd.xlane.f32.xlu1 %v753_v35  ;;  %799 = vadd.xlane.f32.xlu0 %v798_v39  ;;  %v764_v40 = vpop.xlane.xlu0 %763  ;;  %v670_v35 = vld [vmem:[%s2481_s9] sm:$0xff] }
  0xb4   : > { %v774_v41 = vmul.f32 0.03125, %v764_v40  ;;  %v788_v43 = vmul.f32 %v2121_v38, %v2121_v38 }
  0xb6   : > { %v2133_v45 = vsub.f32 %v740_v10, %v774_v41  ;;  %v804_v46 = vsel %vm476_vm0, %v788_v43, 0.0  ;;  %v674_v43 = vpack.c.bf16 %v671_v36, %v670_v35 }
  0xb7   : > { %760 = vadd.xlane.f32.xlu1 %v759_v42  ;;  %805 = vadd.xlane.f32.xlu0 %v804_v46  ;;  %v625_v46 = vld [vmem:[%s2480_s8 + $0x18] sm:$0xff] }
  0xb8   : > { %v790_v48 = vmul.f32 %v2133_v45, %v2133_v45 }
  0xba   : > { %v810_v49 = vsel %vm476_vm0, %v790_v48, 0.0  ;;  %v672_v48 = vld [vmem:[%s2481_s9 + $0x10] sm:$0xff] }
  0xbb   : > { %766 = vadd.xlane.f32.xlu1 %v765_v47  ;;  %811 = vadd.xlane.f32.xlu0 %v810_v49  ;;  %v673_v49 = vld [vmem:[%s2481_s9 + $0x18] sm:$0xff] }
  0xbc   : > { %v675_v51 = vpack.c.bf16 %v673_v49, %v672_v48 }
 0x134   : > { %v492_v63 = vpop.xlane.xlu1 %491 }
 0x135   : > { %v496_v0 = vmul.f32 0.03125, %v492_v63 }
 0x137   : > { %v498_v1 = vadd.f32 1e-05, %v496_v0 }
 0x138   : > { %v495_v2 = vpop.xlane.xlu1 %494 }
 0x139   : > { %1910 = vrsqrt.f32 %v498_v1  ;;  %v497_v3 = vmul.f32 0.03125, %v495_v2 }
 0x13b   : > { %v499_v4 = vadd.f32 1e-05, %v497_v3 }
 0x13c   : > { %v749_v5 = vpop.xlane.xlu1 %748  ;;  %v794_v59 = vpop.xlane.xlu0 %793 }
 0x13d   : > { %1912 = vrsqrt.f32 %v499_v4  ;;  %v769_v6 = vmul.f32 0.03125, %v749_v5  ;;  %v816_v62 = vmul.f32 0.03125, %v794_v59 }
 0x13f   : > { %v2176_v7 = vsub.f32 %v2095_v23, %v769_v6  ;;  %v824_v63 = vadd.f32 1e-05, %v816_v62 }
 0x140   : > { %v755_v8 = vpop.xlane.xlu1 %754  ;;  %v800_v61 = vpop.xlane.xlu0 %799 }
 0x141   : > { %v771_v9 = vmul.f32 0.03125, %v755_v8  ;;  %v785_v10 = vmul.f32 %v2176_v7, %v2176_v7  ;;  %v818_v0 = vmul.f32 0.03125, %v800_v61  ;;  %1914 = vrsqrt.f32 %v824_v63 }
 0x143   : > { %v1911_v11 = vpop.eup %1910  ;;  %v2181_v12 = vsub.f32 %v2107_v30, %v771_v9  ;;  %v795_v13 = vsel %vm476_vm0, %v785_v10, 0.0  ;;  %v826_v2 = vadd.f32 1e-05, %v818_v0 }
 0x144   : > { %v502_v15 = vmul.f32 %v1911_v11, %v2083_v14  ;;  %796 = vadd.xlane.f32.xlu1 %v795_v13  ;;  %v761_v16 = vpop.xlane.xlu1 %760  ;;  %v806_v1 = vpop.xlane.xlu0 %805 }
 0x145   : > { %v773_v17 = vmul.f32 0.03125, %v761_v16  ;;  %v787_v19 = vmul.f32 %v2181_v12, %v2181_v12  ;;  %v820_v3 = vmul.f32 0.03125, %v806_v1  ;;  %1916 = vrsqrt.f32 %v826_v2 }
 0x146   : > { %v510_v26 = vmul.f32 %v1717_v20, %v502_v15 }
 0x147   : > { %v1913_v21 = vpop.eup %1912  ;;  %v2191_v22 = vsub.f32 %v2119_v37, %v773_v17  ;;  %v801_v23 = vsel %vm476_vm0, %v787_v19, 0.0  ;;  %v828_v8 = vadd.f32 1e-05, %v820_v3 }
 0x148   : > { %v503_v25 = vmul.f32 %v1913_v21, %v2087_v18  ;;  %802 = vadd.xlane.f32.xlu1 %v801_v23  ;;  %v767_v14 = vpop.xlane.xlu1 %766  ;;  %v623_v18 = vld [vmem:[%s2480_s8 + $0x8] sm:$0xff]  ;;  %v518_v37 = vadd.f32 %v1718_v29, %v510_v26  ;;  %v812_v5 = vpop.xlane.xlu0 %811 }
 0x149   : > { %v775_v27 = vmul.f32 0.03125, %v767_v14  ;;  %v789_v28 = vmul.f32 %v2191_v22, %v2191_v22  ;;  %v626_v41 = vpack.c.bf16 %v623_v18, %v622_v32  ;;  %v822_v10 = vmul.f32 0.03125, %v812_v5 }
 0x14a   : > { %v511_v30 = vmul.f32 %v1717_v20, %v503_v25  ;;  %v1724_v25 = vld [vmem:[%s2476_s4] ss:$0 sm:$0xff] }
 0x14b   : > { %v2207_v33 = vsub.f32 %v2131_v44, %v775_v27  ;;  %v807_v34 = vsel %vm476_vm0, %v789_v28, 0.0  ;;  %v624_v44 = vld [vmem:[%s2480_s8 + $0x10] sm:$0xff]  ;;  %v1915_v16 = vpop.eup %1914  ;;  %v830_v17 = vadd.f32 1e-05, %v822_v10 }
 0x14c   : > { %808 = vadd.xlane.f32.xlu1 %v807_v34  ;;  %v519_v39 = vadd.f32 %v1718_v29, %v511_v30  ;;  %v627_v50 = vpack.c.bf16 %v625_v46, %v624_v44  ;;  %v840_v21 = vmul.f32 %v1915_v16, %v2097_v24  ;;  %v1725_v24 = vld [vmem:[%s2477_s5] ss:$0 sm:$0xff] }
 0x14d   : > { %v791_v40 = vmul.f32 %v2207_v33, %v2207_v33 }
 0x14e   : > { %v520_v42 = vpack.c.bf16 %v519_v39, %v518_v37  ;;  %v854_v29 = vmul.f32 %v1724_v25, %v840_v21 }
 0x14f   : > { %v813_v47 = vsel %vm476_vm0, %v791_v40, 0.0  ;;  %v1917_v14 = vpop.eup %1916 }
 0x150   : > { %1797 = vmatmul.mubr.msk.bf16.vlgmr.msra.gmra.mrb[0].mxu0 %vm476_vm0, %v520_v42  ;;  %1805 = vmatmul.mubr.msk.bf16.vlgmr.msra.gmra.mrb[0].mxu1 %vm476_vm0, %v520_v42  ;;  %v842_v30 = vmul.f32 %v1917_v14, %v2109_v31  ;;  %v868_v37 = vadd.f32 %v1725_v24, %v854_v29 }
 0x151   : > { %814 = vadd.xlane.f32.xlu1 %v813_v47  ;;  %1809 = vmatpush3.bf16.msra.mxu0 %v626_v41 }
 0x152   : > { %1817 = vmatpush3.bf16.msra.mxu1 %v674_v43  ;;  %1810 = vmatprep.subr.bf16.mxu0 %v1964_v55  ;;  %v856_v39 = vmul.f32 %v1724_v25, %v842_v30 }
 0x153   : > { %1818 = vmatprep.subr.bf16.mxu1 %v1964_v55  ;;  %1812 = vmatprep.mubr.msk.bf16.mxu0 %vm1965_vm1, %v1964_v55 }
 0x154   : > { %1820 = vmatprep.mubr.msk.bf16.mxu1 %vm1965_vm1, %v1964_v55  ;;  %v870_v47 = vadd.f32 %v1725_v24, %v856_v39 }
 0x155   : > { %1811 = vmatpush3.bf16.msra.mxu0 %v627_v50 }
 0x156   : > { %1819 = vmatpush3.bf16.msra.mxu1 %v675_v51  ;;  %1824 = vmatprep.subr.bf16.mxu0 %v884_v54 }
 0x157   : > { %1836 = vmatprep.subr.bf16.mxu1 %v1964_v55 }
 0x158   : > { %1813 = vmatmul.mubr.msk.bf16.vlgmr.msra.gmra.mrb[4].mxu0 %vm476_vm0, %v520_v42 }
 0x159   : > { %1821 = vmatmul.mubr.msk.bf16.vlgmr.msra.gmra.mrb[4].mxu1 %vm476_vm0, %v520_v42  ;;  %1825 = vmatpush3.bf16.msra.mxu0 %v884_v54 }
 0x15a   : > { %1838 = vmatprep.mubr.msk.bf16.mxu1 %vm1965_vm1, %v1964_v55  ;;  %1826 = vmatprep.subr.bf16.mxu0 %v885_v58 }
 0x15d   : > { %1827 = vmatpush3.bf16.msra.mxu0 %v885_v58 }
 0x15e   : > { %1848 = vmatprep.subr.bf16.mxu0 %v1964_v55 }
 0x1d1   : > { %v797_v4 = vpop.xlane.xlu1 %796 }
 0x1d2   : > { %v817_v6 = vmul.f32 0.03125, %v797_v4 }
 0x1d4   : > { %v825_v9 = vadd.f32 1e-05, %v817_v6 }
 0x1d5   : > { %v803_v11 = vpop.xlane.xlu1 %802 }
 0x1d6   : > { %1918 = vrsqrt.f32 %v825_v9  ;;  %v819_v13 = vmul.f32 0.03125, %v803_v11 }
 0x1d7   : > { %1920 = vrsqrt.f32 %v828_v8 }
 0x1d8   : > { %v827_v15 = vadd.f32 1e-05, %v819_v13 }
 0x1d9   : > { %v809_v19 = vpop.xlane.xlu1 %808 }
 0x1da   : > { %1922 = vrsqrt.f32 %v827_v15  ;;  %v821_v20 = vmul.f32 0.03125, %v809_v19 }
 0x1db   : > { %1924 = vrsqrt.f32 %v830_v17 }
 0x1dc   : > { %v829_v23 = vadd.f32 1e-05, %v821_v20 }
 0x1de   : > { %1926 = vrsqrt.f32 %v829_v23  ;;  %v815_v26 = vpop.xlane.xlu1 %814 }
 0x1df   : > { %v823_v27 = vmul.f32 0.03125, %v815_v26 }
 0x1e0   : > { %v1919_v28 = vpop.eup %1918 }
 0x1e1   : > { %v841_v32 = vmul.f32 %v1919_v28, %v2176_v7  ;;  %v831_v18 = vadd.f32 1e-05, %v823_v27  ;;  %v1921_v34 = vpop.eup %1920 }
 0x1e2   : > { %v844_v40 = vmul.f32 %v1921_v34, %v2121_v38 }
 0x1e3   : > { %1928 = vrsqrt.f32 %v831_v18  ;;  %v855_v35 = vmul.f32 %v1724_v25, %v841_v32 }
 0x1e4   : > { %v1923_v36 = vpop.eup %1922  ;;  %v858_v49 = vmul.f32 %v1724_v25, %v844_v40 }
 0x1e5   : > { %v843_v41 = vmul.f32 %v1923_v36, %v2181_v12  ;;  %v869_v42 = vadd.f32 %v1725_v24, %v855_v35  ;;  %v1925_v43 = vpop.eup %1924 }
 0x1e6   : > { %v846_v50 = vmul.f32 %v1925_v43, %v2133_v45  ;;  %v872_v38 = vadd.f32 %v1725_v24, %v858_v49 }
 0x1e7   : > { %v857_v31 = vmul.f32 %v1724_v25, %v843_v41  ;;  %v876_v44 = vpack.c.bf16 %v869_v42, %v868_v37 }
 0x1e8   : > { %v1927_v7 = vpop.eup %1926  ;;  %v860_v56 = vmul.f32 %v1724_v25, %v846_v50 }
 0x1e9   : > { %v845_v46 = vmul.f32 %v1927_v7, %v2191_v22  ;;  %1828 = vmatprep.mubr.msk.bf16.mxu0 %vm476_vm0, %v876_v44  ;;  %v871_v48 = vadd.f32 %v1725_v24, %v857_v31  ;;  %v1018_v7 = vlaneseq }
 0x1ea   : > { %v874_v22 = vadd.f32 %v1725_v24, %v860_v56 }
 0x1eb   : > { %v877_v51 = vpack.c.bf16 %v871_v48, %v870_v47  ;;  %v859_v52 = vmul.f32 %v1724_v25, %v845_v46  ;;  %v1019_v47 = vand.u32 127, %v1018_v7  ;;  %v1021_v48 = vshrl.u32 %v1018_v7, 7 }
 0x1ed   : > { %v1929_v53 = vpop.eup %1928  ;;  %1829 = vmatmul.mubr.msk.bf16.vlgmr.msra.gmra.mrb[8].mxu0 %vm476_vm0, %v877_v51  ;;  %v873_v12 = vadd.f32 %v1725_v24, %v859_v52  ;;  %v2337_v50 = vsub.s32 %v1019_v47, %v1021_v48 }
 0x1ee   : > { %v847_v54 = vmul.f32 %v1929_v53, %v2207_v33 }
 0x1ef   : > { %v878_v57 = vpack.c.bf16 %v873_v12, %v872_v38 }
 0x1f0   : > { %v861_v58 = vmul.f32 %v1724_v25, %v847_v54 }
 0x1f1   : > { %1832 = vmatprep.mubr.msk.bf16.mxu0 %vm476_vm0, %v878_v57 }
 0x1f2   : > { %v875_v59 = vadd.f32 %v1725_v24, %v861_v58 }
 0x1f4   : > { %v879_v60 = vpack.c.bf16 %v875_v59, %v874_v22 }
 0x1f6   : > { %1833 = vmatmul.mubr.msk.bf16.gmra.mrb[12].mxu0 %vm476_vm0, %v879_v60 }
 0x1f7   : > { %1850 = vmatprep.mubr.msk.bf16.mxu0 %vm1965_vm1, %v1964_v55 }
 0x223   : > { %v564_v45 = vpop.f32.mrb[0].mxu0  ;;  %v614_v61 = vpop.f32.mrb[0].mxu1 }
 0x224   : > { %v2277_v62 = vpack.c.bf16 %v614_v61, %v614_v61  ;;  %v1798_v63 = vpop.f32.mrb[1].mxu0  ;;  %v1806_v33 = vpop.f32.mrb[1].mxu1  ;;  %v571_v5 = vmul.f32 0.25, %v564_v45 }
 0x225   : > { %v567_v0 = vpop.f32.mrb[2].mxu0  ;;  %v617_v1 = vpop.f32.mrb[2].mxu1 }
 0x226   : > { %v1072_v2 = vsel %vm1067_vm2, %v2277_v62, 0  ;;  %v1799_v3 = vpop.f32.mrb[3].mxu0  ;;  %v1807_v4 = vpop.f32.mrb[3].mxu1  ;;  %v2282_v6 = vpack.c.bf16 %v617_v1, %v617_v1  ;;  %v2284_v9 = vpack.c.bf16 %v571_v5, %v571_v5  ;;  %v572_v25 = vmul.f32 0.25, %v567_v0 }
 0x227   : > { %1837 = vmatpush3.bf16.xpose.msra.mxu1 %v1072_v2 }
 0x228   : > { %1842 = vmatprep.subr.bf16.mxu1 %v1964_v55  ;;  %v1118_v17 = vsel %vm1067_vm2, %v2282_v6, 0  ;;  %v2304_v26 = vpack.c.bf16 %v572_v25, %v572_v25 }
 0x22b   : > { %v662_v8 = vpop.f32.mrb[4].mxu0 }
 0x22c   : > { %v2286_v10 = vpack.c.bf16 %v662_v8, %v662_v8  ;;  %v2288_v11 = vpop.f32.mrb[4].mxu1  ;;  %v1814_v13 = vpop.f32.mrb[5].mxu0 }
 0x22d   : > { %v1822_v15 = vpop.f32.mrb[5].mxu1  ;;  %v665_v16 = vpop.f32.mrb[6].mxu0 }
 0x22e   : > { %v1190_v19 = vsel %vm1188_vm3, %v2286_v10, 0  ;;  %v2294_v20 = vpop.f32.mrb[6].mxu1  ;;  %v1815_v21 = vpop.f32.mrb[7].mxu0  ;;  %1839 = vmatmul.mubr.msk.bf16.vlgmr.msra.gmra.mrb[8].mxu1 %vm1067_vm2, %v2284_v9  ;;  %v2302_v14 = vpack.c.bf16 %v665_v16, %v665_v16  ;;  %v1967_v15 = vmov 1  }
 0x22f   : > { %v1823_v23 = vpop.f32.mrb[7].mxu1  ;;  %1843 = vmatpush3.bf16.xpose.msra.mxu1 %v1118_v17  ;;  %1849 = vmatpush3.bf16.msra.mxu0 %v1190_v19 }
 0x230   : > { %1844 = vmatprep.mubr.msk.bf16.mxu1 %vm1965_vm1, %v1964_v55  ;;  %1854 = vmatprep.subr.bf16.mxu1 %v1964_v55  ;;  %v1236_v27 = vsel %vm1188_vm3, %v2302_v14, 0 }
 0x231   : > { %1860 = vmatprep.subr.bf16.mxu0 %v1964_v55 }
 0x236   : > { %1845 = vmatmul.mubr.msk.bf16.vlgmr.msra.gmra.mrb[12].mxu1 %vm1067_vm2, %v2304_v26 }
 0x237   : > { %1855 = vmatpush3.bf16.msra.mxu1 %v1236_v27  ;;  %1856 = vmatprep.mubr.msk.bf16.mxu1 %vm1965_vm1, %v1964_v55 }
 0x238   : > { %1866 = vmatprep.subr.bf16.mxu1 %v1964_v55 }
 0x2c0   : > { %v2313_v28 = vpop.f32.mrb[8].mxu0 }
 0x2c1   : > { %1001 = vperm.xlu1 %1907, %v2313_v28   ;;  %v2316_v29 = vpop.f32.mrb[9].mxu0 }
 0x2c2   : > { %995 = vperm.xlu0 %1906, %v2316_v29   ;;  %v2319_v30 = vpop.f32.mrb[10].mxu0 }
 0x2c3   : > { %v2321_v32 = vpop.f32.mrb[11].mxu0 }
 0x2c5   : > { %1004 = vperm.xlu1 %1907, %v2319_v30  }
 0x2c6   : > { %1909 = vset.pattern.permute.xlu0 %v1967_v15 }
 0x2c9   : > { %v2324_v18 = vpop.f32.mrb[12].mxu0  ;;  %998 = vperm.xlu1 %1907, %v2321_v32  }
 0x2ca   : > { %v2327_v24 = vpop.f32.mrb[13].mxu0 }
 0x2cb   : > { %v2329_v34 = vpop.f32.mrb[14].mxu0 }
 0x2cc   : > { %v2331_v35 = vpop.f32.mrb[15].mxu0 }
 0x2cd   : > { %1013 = vperm.xlu1 %1907, %v2324_v18  }
 0x2d1   : > { %1007 = vperm.xlu1 %1907, %v2327_v24  }
 0x2d5   : > { %1010 = vperm.xlu1 %1907, %v2331_v35  }
 0x2d9   : > { %1016 = vperm.xlu1 %1907, %v2329_v34  }
 0x2dd   : > { %1908 = vset.pattern.permute.xlu1 %v1967_v15 }
 0x301   : > { %v1108_v36 = vpop.f32.mrb[8].mxu1 }
 0x302   : > { %v1840_v37 = vpop.f32.mrb[9].mxu1 }
 0x303   : > { %v1111_v39 = vpop.f32.mrb[10].mxu1 }
 0x304   : > { %v1841_v40 = vpop.f32.mrb[11].mxu1 }
 0x309   : > { %v1154_v41 = vpop.f32.mrb[12].mxu1 }
 0x30a   : > { %v1846_v42 = vpop.f32.mrb[13].mxu1 }
 0x30b   : > { %v1157_v43 = vpop.f32.mrb[14].mxu1  ;;  %v1722_v42 = vld [vmem:[%s2482_s10] ss:$0 sm:$0xff] }
 0x30c   : > { %v1847_v31 = vpop.f32.mrb[15].mxu1  ;;  %v721_v43 = vadd.f32 %v1722_v42, %v2294_v20 }
 0x30d   : > { %v718_v31 = vadd.f32 %v1722_v42, %v2288_v11 }
 0x30f   : > { %v724_v7 = vsub.f32 0.0, %v718_v31 }
 0x311   : > { %v726_v47 = vmul.f32 1.442695, %v724_v7 }
 0x340   : > { %v1002_v44 = vpop.permute.xlu1 %1001 }
 0x341   : > { %v996_v51 = vpop.permute.xlu0 %995  ;;  %v1031_v54 = vrot.slane %v1002_v44, %v2337_v50  ;;  %v725_v44 = vsub.f32 0.0, %v721_v43 }
 0x342   : > { %v1023_v38 = vrot.slane %v996_v51, %v2337_v50 }
 0x344   : > { %v1005_v46 = vpop.permute.xlu1 %1004 }
 0x345   : > { %v1035_v22 = vrot.slane %v1005_v46, %v2337_v50  ;;  %v728_v46 = vmul.f32 1.442695, %v725_v44 }
 0x348   : > { %v999_v49 = vpop.permute.xlu1 %998 }
 0x349   : > { %v1027_v52 = vrot.slane %v999_v49, %v2337_v50 }
 0x34b   : > { %v1053_v12 = vsel %vm1052_vm4, %v1027_v52, %v1023_v38 }
 0x34c   : > { %v1014_v53 = vpop.permute.xlu1 %1013  ;;  %v1055_v57 = vsel %vm1054_vm5, %v1031_v54, %v1053_v12 }
 0x34d   : > { %v1057_v60 = vsel %vm1056_vm6, %v1035_v22, %v1055_v57  ;;  %v1047_v33 = vrot.slane %v1014_v53, %v2337_v50 }
 0x350   : > { %v1008_v56 = vpop.permute.xlu1 %1007 }
 0x351   : > { %v1039_v58 = vrot.slane %v1008_v56, %v2337_v50 }
 0x353   : > { %v1059_v61 = vsel %vm1058_vm7, %v1039_v58, %v1057_v60 }
 0x354   : > { %v1011_v59 = vpop.permute.xlu1 %1010 }
 0x355   : > { %v1043_v45 = vrot.slane %v1011_v59, %v2337_v50 }
 0x357   : > { %v1061_v63 = vsel %vm1060_vm8, %v1043_v45, %v1059_v61 }
 0x358   : > { %v1017_v0 = vpop.permute.xlu1 %1016  ;;  %v1063_v2 = vsel %vm1062_vm9, %v1047_v33, %v1061_v63 }
 0x359   : > { %v1051_v1 = vrot.slane %v1017_v0, %v2337_v50 }
 0x35b   : > { %v1065_v3 = vsel %vm1064_vm10, %v1051_v1, %v1063_v2 }
 0x35c   : > { %v1155_v4 = vadd.f32 %v1154_v41, %v1065_v3  ;;  %v1109_v5 = vadd.f32 %v1108_v36, %v1065_v3 }
 0x35e   : > { %v1164_v8 = vsel %vm1160_vm11, %v1155_v4, -inf  ;;  %v1161_v13 = vsel %vm1160_vm11, %v1109_v5, -inf }
 0x35f   : > { %1165 = vmax.xlane.f32.xlu0 %v1164_v8  ;;  %1162 = vmax.xlane.f32.xlu1 %v1161_v13 }
 0x3ec   : > { %v1166_v16 = vpop.xlane.xlu0 %1165  ;;  %v1163_v17 = vpop.xlane.xlu1 %1162 }
 0x3ed   : > { %v1168_v19 = vsub.f32 %v1155_v4, %v1166_v16  ;;  %v1167_v21 = vsub.f32 %v1109_v5, %v1163_v17 }
 0x3ef   : > { %v1171_v23 = vmul.f32 1.442695, %v1168_v19  ;;  %v1169_v25 = vmul.f32 1.442695, %v1167_v21 }
 0x3f1   : > { %1930 = vpow2.f32 %v1171_v23 }
 0x3f2   : > { %1932 = vpow2.f32 %v1169_v25 }
 0x3fb   : > { %v1931_v27 = vpop.eup %1930 }
 0x3fc   : > { %v1933_v37 = vpop.eup %1932  ;;  %v1176_v36 = vsel %vm1160_vm11, %v1931_v27, 0.0 }
 0x3fd   : > { %1177 = vadd.xlane.f32.xlu1 %v1176_v36  ;;  %v1173_v39 = vsel %vm1160_vm11, %v1933_v37, 0.0 }
 0x3fe   : > { %1174 = vadd.xlane.f32.xlu0 %v1173_v39 }
 0x40e   : > { %1398 = vrot.lane.b32.xlu1 %v2282_v6, %s1968_s24 }
 0x412   : > { %1282 = vrot.lane.b32.xlu1 %v2284_v9, %s1968_s24 }
 0x414   : > { %1284 = vrot.lane.b32.xlu0 %v2277_v62, %s1968_s24 }
 0x416   : > { %1287 = vperm.xlu1 %1908, %v2316_v29  }
 0x418   : > { %1396 = vrot.lane.b32.xlu0 %v2304_v26, %s1968_s24 }
 0x41a   : > { %1293 = vperm.xlu1 %1908, %v2313_v28  }
 0x41c   : > { %1290 = vperm.xlu0 %1909, %v2321_v32  }
 0x41e   : > { %1296 = vperm.xlu1 %1908, %v2319_v30  }
 0x420   : > { %1299 = vperm.xlu0 %1909, %v2327_v24  }
 0x422   : > { %1302 = vperm.xlu1 %1908, %v2331_v35  }
 0x424   : > { %1305 = vperm.xlu0 %1909, %v2324_v18  }
 0x426   : > { %1308 = vperm.xlu1 %1908, %v2329_v34  }
 0x48a   : > { %v1178_v62 = vpop.xlane.xlu1 %1177 }
 0x48b   : > { %v1175_v6 = vpop.xlane.xlu0 %1174  ;;  %1934 = vrcp.f32 %v1178_v62 }
 0x48c   : > { %1936 = vrcp.f32 %v1175_v6 }
 0x48d   : > { %1938 = vpow2.f32 %v728_v46 }
 0x48e   : > { %v1399_v40 = vpop.permute.xlu1 %1398  ;;  %1940 = vpow2.f32 %v726_v47 }
 0x48f   : > { %v1285_v32 = vpop.permute.xlu0 %1284  ;;  %v1404_v24 = vsel %vm1067_vm2, %v1399_v40, 0 }
 0x490   : > { %v1354_v18 = vsel %vm1067_vm2, %v1285_v32, 0 }
 0x492   : > { %v1283_v35 = vpop.permute.xlu1 %1282 }
 0x493   : > { %v1397_v34 = vpop.permute.xlu0 %1396 }
 0x495   : > { %v1935_v9 = vpop.eup %1934 }
 0x496   : > { %v1937_v26 = vpop.eup %1936  ;;  %v1182_v29 = vmul.f32 %v1935_v9, %v1931_v27  ;;  %v1288_v48 = vpop.permute.xlu1 %1287 }
 0x497   : > { %v1181_v28 = vmul.f32 %v1937_v26, %v1933_v37  ;;  %v1939_v51 = vpop.eup %1938  ;;  %v1313_v11 = vrot.slane %v1288_v48, %v2337_v50 }
 0x498   : > { %v1184_v41 = vpack.c.bf16 %v1182_v29, %v1182_v29  ;;  %v1941_v52 = vpop.eup %1940  ;;  %v731_v53 = vadd.f32 1.0, %v1939_v51 }
 0x499   : > { %v1183_v30 = vpack.c.bf16 %v1181_v28, %v1181_v28  ;;  %v730_v38 = vadd.f32 1.0, %v1941_v52 }
 0x49a   : > { %1857 = vmatmul.mubr.msk.bf16.vlgmr.msra.gmra.mrb[16].mxu1 %vm1160_vm11, %v1184_v41  ;;  %v1294_v49 = vpop.permute.xlu1 %1293  ;;  %1942 = vrcp.f32 %v731_v53 }
 0x49b   : > { %1851 = vmatmul.mubr.msk.bf16.vlgmr.msra.gmra.mrb[16].mxu0 %vm1160_vm11, %v1183_v30  ;;  %1867 = vmatpush3.bf16.xpose.msra.mxu1 %v1404_v24  ;;  %v1291_v12 = vpop.permute.xlu0 %1290  ;;  %1944 = vrcp.f32 %v730_v38  ;;  %v1321_v58 = vrot.slane %v1294_v49, %v2337_v50 }
 0x49c   : > { %1861 = vmatpush3.bf16.xpose.msra.mxu0 %v1354_v18  ;;  %1862 = vmatprep.mubr.msk.bf16.mxu0 %vm1965_vm1, %v1964_v55  ;;  %v1317_v20 = vrot.slane %v1291_v12, %v2337_v50 }
 0x49d   : > { %1868 = vmatprep.mubr.msk.bf16.mxu1 %vm1965_vm1, %v1964_v55  ;;  %1872 = vmatprep.subr.bf16.mxu0 %v1964_v55 }
 0x49e   : > { %1878 = vmatprep.subr.bf16.mxu1 %v1964_v55  ;;  %v1297_v54 = vpop.permute.xlu1 %1296  ;;  %v1342_v22 = vsel %vm1052_vm4, %v1317_v20, %v1313_v11 }
 0x49f   : > { %v1300_v56 = vpop.permute.xlu0 %1299  ;;  %v1325_v59 = vrot.slane %v1297_v54, %v2337_v50  ;;  %v1343_v60 = vsel %vm1054_vm5, %v1321_v58, %v1342_v22  ;;  %v1586_v22 = vld [vmem:[%s2484_s12 + $0x10] sm:$0xff] }
 0x4a0   : > { %v1329_v45 = vrot.slane %v1300_v56, %v2337_v50 }
 0x4a1   : > { %v1344_v33 = vsel %vm1056_vm6, %v1325_v59, %v1343_v60  ;;  %v1587_v59 = vld [vmem:[%s2484_s12 + $0x18] sm:$0xff] }
 0x4a2   : > { %1869 = vmatmul.mubr.msk.bf16.vlgmr.msra.gmra.mrb[20].mxu1 %vm1067_vm2, %v1397_v34  ;;  %v1303_v57 = vpop.permute.xlu1 %1302  ;;  %v1345_v19 = vsel %vm1058_vm7, %v1329_v45, %v1344_v33  ;;  %v1589_v60 = vpack.c.bf16 %v1587_v59, %v1586_v22 }
 0x4a3   : > { %1863 = vmatmul.mubr.msk.bf16.vlgmr.msra.gmra.mrb[20].mxu0 %vm1067_vm2, %v1283_v35  ;;  %1880 = vmatprep.mubr.msk.bf16.mxu1 %vm1965_vm1, %v1964_v55  ;;  %v1306_v61 = vpop.permute.xlu0 %1305  ;;  %v1333_v0 = vrot.slane %v1303_v57, %v2337_v50  ;;  %v1585_v57 = vld [vmem:[%s2484_s12 + $0x8] sm:$0xff] }
 0x4a4   : > { %1874 = vmatprep.mubr.msk.bf16.mxu0 %vm1965_vm1, %v1964_v55  ;;  %v2402_v63 = vpop.eup %1942  ;;  %v1337_v17 = vrot.slane %v1306_v61, %v2337_v50 }
 0x4a5   : > { %v2406_v3 = vpop.eup %1944  ;;  %v1346_v25 = vsel %vm1060_vm8, %v1333_v0, %v1345_v19 }
 0x4a6   : > { %v1309_v1 = vpop.permute.xlu1 %1308  ;;  %v1347_v36 = vsel %vm1062_vm9, %v1337_v17, %v1346_v25 }
 0x4a7   : > { %v1341_v27 = vrot.slane %v1309_v1, %v2337_v50 }
 0x4a9   : > { %v1348_v39 = vsel %vm1064_vm10, %v1341_v27, %v1347_v36 }
 0x56d   : > { %v1272_v2 = vpop.f32.mrb[16].mxu1 }
 0x56e   : > { %v1226_v4 = vpop.f32.mrb[16].mxu0  ;;  %v2409_v5 = vmul.f32 %v2402_v63, %v1272_v2  ;;  %v1858_v8 = vpop.f32.mrb[17].mxu1 }
 0x56f   : > { %v2412_v13 = vmul.f32 %v2406_v3, %v1226_v4  ;;  %v1852_v15 = vpop.f32.mrb[17].mxu0  ;;  %v1275_v16 = vpop.f32.mrb[18].mxu1 }
 0x570   : > { %v1229_v21 = vpop.f32.mrb[18].mxu0  ;;  %v1859_v23 = vpop.f32.mrb[19].mxu1  ;;  %v1281_v25 = vpack.c.bf16 %v2409_v5, %v2409_v5 }
 0x571   : > { %v1853_v37 = vpop.f32.mrb[19].mxu0  ;;  %v1280_v16 = vpack.c.bf16 %v2412_v13, %v2412_v13  ;;  %v1954_v13 = vld [vmem:[%s2061_s19] sm:$0xff] }
 0x575   : > { %v1440_v62 = vpop.f32.mrb[20].mxu1 }
 0x576   : > { %v1390_v6 = vpop.f32.mrb[20].mxu0  ;;  %v1441_v9 = vadd.f32 %v1440_v62, %v1348_v39  ;;  %v1870_v26 = vpop.f32.mrb[21].mxu1  ;;  %v1955_v62 = vld [vmem:[%s2061_s19 + $0x8] sm:$0xff] }
 0x577   : > { %v1391_v29 = vadd.f32 %v1390_v6, %v1348_v39  ;;  %v1864_v28 = vpop.f32.mrb[21].mxu0  ;;  %v1443_v40 = vpop.f32.mrb[22].mxu1 }
 0x578   : > { %v1393_v32 = vpop.f32.mrb[22].mxu0  ;;  %v1871_v41 = vpop.f32.mrb[23].mxu1  ;;  %v1449_v30 = vsel %vm1160_vm11, %v1441_v9, -inf }
 0x579   : > { %v1865_v24 = vpop.f32.mrb[23].mxu0  ;;  %1450 = vmax.xlane.f32.xlu1 %v1449_v30  ;;  %v1446_v50 = vsel %vm1160_vm11, %v1391_v29, -inf }
 0x57a   : > { %1447 = vmax.xlane.f32.xlu0 %v1446_v50 }
 0x58a   : > { %1470 = vrot.lane.b32.xlu1 %v2286_v10, %s1968_s24 }
 0x606   : > { %v1451_v18 = vpop.xlane.xlu1 %1450 }
 0x607   : > { %v1453_v34 = vsub.f32 %v1441_v9, %v1451_v18  ;;  %v1448_v35 = vpop.xlane.xlu0 %1447 }
 0x608   : > { %v1452_v42 = vsub.f32 %v1391_v29, %v1448_v35 }
 0x609   : > { %v1456_v43 = vmul.f32 1.442695, %v1453_v34 }
 0x60a   : > { %v1454_v31 = vmul.f32 1.442695, %v1452_v42  ;;  %v1471_v44 = vpop.permute.xlu1 %1470 }
 0x60b   : > { %v1476_v7 = vsel %vm1188_vm3, %v1471_v44, 0 }
 0x60c   : > { %1946 = vpow2.f32 %v1454_v31  ;;  %1873 = vmatpush3.bf16.msra.mxu0 %v1476_v7 }
 0x60d   : > { %1884 = vmatprep.subr.bf16.mxu0 %v1964_v55  ;;  %1948 = vpow2.f32 %v1456_v43 }
 0x616   : > { %v1947_v46 = vpop.eup %1946 }
 0x617   : > { %v1458_v47 = vsel %vm1160_vm11, %v1947_v46, 0.0  ;;  %v1949_v48 = vpop.eup %1948 }
 0x618   : > { %1459 = vadd.xlane.f32.xlu0 %v1458_v47  ;;  %v1461_v10 = vsel %vm1160_vm11, %v1949_v48, 0.0 }
 0x61c   : > { %1462 = vadd.xlane.f32.xlu0 %v1461_v10 }
 0x632   : > { %1518 = vrot.lane.b32.xlu0 %v2302_v14, %s1968_s24  ;;  %v1584_v14 = vld [vmem:[%s2484_s12] sm:$0xff] }
 0x633   : > { %v1588_v58 = vpack.c.bf16 %v1585_v57, %v1584_v14 }
 0x6a5   : > { %v1460_v49 = vpop.xlane.xlu0 %1459 }
 0x6a6   : > { %1950 = vrcp.f32 %v1460_v49 }
 0x6a9   : > { %v1463_v51 = vpop.xlane.xlu0 %1462 }
 0x6aa   : > { %1952 = vrcp.f32 %v1463_v51 }
 0x6ad   : > { %v1519_v52 = vpop.permute.xlu0 %1518 }
 0x6ae   : > { %v1524_v53 = vsel %vm1188_vm3, %v1519_v52, 0 }
 0x6af   : > { %1879 = vmatpush3.bf16.msra.mxu1 %v1524_v53 }
 0x6b0   : > { %v1951_v38 = vpop.eup %1950 }
 0x6b1   : > { %v1466_v12 = vmul.f32 %v1951_v38, %v1947_v46 }
 0x6b3   : > { %v1468_v54 = vpack.c.bf16 %v1466_v12, %v1466_v12 }
 0x6b4   : > { %v1953_v20 = vpop.eup %1952 }
 0x6b5   : > { %v1467_v56 = vmul.f32 %v1953_v20, %v1949_v48  ;;  %1875 = vmatmul.mubr.msk.bf16.vlgmr.msra.gmra.mrb[24].mxu0 %vm1160_vm11, %v1468_v54 }
 0x6b6   : > { %1888 = vmatprep.mubr.msk.bf16.mxu0 %vm1965_vm1, %v1964_v55  ;;  %1885 = vmatpush3.bf16.msra.mxu0 %v1588_v58 }
 0x6b7   : > { %v1469_v11 = vpack.c.bf16 %v1467_v56, %v1467_v56  ;;  %1886 = vmatprep.subr.bf16.mxu0 %v1964_v55 }
 0x6b9   : > { %1881 = vmatmul.mubr.msk.bf16.vlgmr.msra.gmra.mrb[24].mxu1 %vm1160_vm11, %v1469_v11 }
 0x6ba   : > { %1887 = vmatpush3.bf16.msra.mxu0 %v1589_v60 }
 0x788   : > { %v1512_v45 = vpop.f32.mrb[24].mxu0 }
 0x789   : > { %1568 = vrot.lane.b32.xlu1 %v1512_v45, %s1969_s23  ;;  %v1876_v61 = vpop.f32.mrb[25].mxu0 }
 0x78a   : > { %v1515_v33 = vpop.f32.mrb[26].mxu0 }
 0x78b   : > { %v1877_v0 = vpop.f32.mrb[27].mxu0 }
 0x78c   : > { %v1560_v1 = vpop.f32.mrb[24].mxu1 }
 0x78d   : > { %1570 = vrot.lane.b32.xlu1 %v1560_v1, %s1969_s23  ;;  %v1882_v2 = vpop.f32.mrb[25].mxu1 }
 0x78e   : > { %v1563_v55 = vpop.f32.mrb[26].mxu1 }
 0x78f   : > { %v1883_v4 = vpop.f32.mrb[27].mxu1 }
 0x7fb   : > { %v1569_v8 = vpop.permute.xlu1 %1568 }
 0x7fc   : > { %v1574_v15 = vmul.f32 %v2406_v3, %v1569_v8  ;;  %v1746_v3 = vld [vmem:[%s2485_s13] ss:$0 sm:$0xff] }
 0x7fd   : > { %v1646_v39 = vadd.f32 %v1954_v13, %v1746_v3  ;;  %v1647_v6 = vadd.f32 %v1955_v62, %v1746_v3 }
 0x7fe   : > { %v1576_v17 = vpack.c.bf16 %v1574_v15, %v1574_v15 }
 0x7ff   : > { %v1571_v19 = vpop.permute.xlu1 %1570 }
 0x800   : > { %v1580_v21 = vsel %vm1067_vm2, %v1280_v16, %v1576_v17  ;;  %v1575_v23 = vmul.f32 %v2402_v63, %v1571_v19 }
 0x802   : > { %v1577_v27 = vpack.c.bf16 %v1575_v23, %v1575_v23 }
 0x804   : > { %v1583_v37 = vsel %vm1067_vm2, %v1281_v25, %v1577_v27 }
 0x805   : > { %v1744_v36 = vcombine.low %v1580_v21, %v1583_v37 }
 0x807   : > { %1889 = vmatmul.mubr.msk.bf16.vlgmr.msra.gmra.mrb[28].mxu0 %vm476_vm0, %v1744_v36 }
 0x8da   : > { %v1632_v63 = vpop.f32.mrb[28].mxu0 }
 0x8db   : > { %v1648_v5 = vadd.f32 %v1646_v39, %v1632_v63  ;;  %v1890_v9 = vpop.f32.mrb[29].mxu0 }
 0x8dc   : > { %v1635_v26 = vpop.f32.mrb[30].mxu0 }
 0x8dd   : > { %1650 = vst.msk [vmem:[%s469_s28] sm:$0xff] %vm476_vm0, %v1648_v5  ;;  %v1649_v29 = vadd.f32 %v1647_v6, %v1635_v26  ;;  %v1891_v28 = vpop.f32.mrb[31].mxu0 }
 0x8df   : > { %1651 = vst.msk [vmem:[%s469_s28 + $0x8] sm:$0xff] %vm476_vm0, %v1649_v29 }
 0x8e0 PF: > { %s24_s29 = sadd.s32 1, %s1962_s29  }
 0x8e1   : > { %p21_p4 = scmp.ge.s32.totalorder %s24_s29, 4  }
 0x8e3   :  { %23 = sbr.rel (!%p21_p4) target bundleno = 1 (0x1), region = 106 }

// kernel: evoblock_apply.14
= control target key start
LH: loop header
LB: loop body
LE: loop exit
PB: predicated region body
PF: predicated region fallthrough
CT: control target
= control target key end

     0   :  { %s2222_s13 = smov 0   ;;  %s2616_s0 = inlined_call_operand.vmem [shape: f32[8,4,32], index: 0, kind: input, shape index: {}]   ;;  %s2617_s1 = inlined_call_operand.vmem [shape: f32[1,32], index: 1, kind: input, shape index: {}]   ;;  %s2618_s2 = inlined_call_operand.vmem [shape: f32[1,32], index: 2, kind: input, shape index: {}]   ;;  %s2619_s3 = inlined_call_operand.vmem [shape: f32[32,32], index: 3, kind: input, shape index: {}]   ;;  %s2620_s4 = inlined_call_operand.vmem [shape: f32[32,32], index: 4, kind: input, shape index: {}]   ;;  %s2621_s5 = inlined_call_operand.vmem [shape: f32[32,32], index: 5, kind: input, shape index: {}]   ;;  %s2622_s6 = inlined_call_operand.vmem [shape: f32[32,32], index: 6, kind: input, shape index: {}]   ;;  %s2623_s7 = inlined_call_operand.vmem [shape: f32[1,32], index: 7, kind: input, shape index: {}]   ;;  %s2624_s8 = inlined_call_operand.vmem [shape: f32[32,32], index: 8, kind: input, shape index: {}]   ;;  %s2625_s9 = inlined_call_operand.vmem [shape: f32[1,32], index: 9, kind: input, shape index: {}]   ;;  %s2626_s10 = inlined_call_operand.vmem [shape: f32[8,4,32], index: 10, kind: output, shape index: {}]  }
   0x1 LB: > { %s1867_s14 = sadd.s32 4294967295, %s2160_s13   ;;  %p1871_p0 = scmp.ge.s32.totalorder %s2160_s13, 1  ;;  %s2160_s13 = sphi %s2222_s13, %s20_s13  }
   0x2   : > { %p313_p1 = scmp.lt.s32.totalorder %s2160_s13, 3 }
   0x4   : > { %p314_p2 = pnand %p1871_p0, %p313_p1 }
   0x5   : > { %s1872_s15 = sshll.u32 (!%p314_p2), %s1867_s14, 2  ;;  %vm370_vm0 = vcmask (!%p314_p2), 257024   ;;  %v453_v28 = vld [vmem:[%s2619_s3] sm:$0xff] (!%p314_p2)  ;;  %v454_v29 = vld [vmem:[%s2619_s3 + $0x8] sm:$0xff] (!%p314_p2)  ;;  %v2162_v31 = vmov (!%p314_p2), 0.0   ;;  %v455_v34 = vld [vmem:[%s2619_s3 + $0x10] sm:$0xff] (!%p314_p2) }
   0x6   : > { %317 = sbr.rel (%p314_p2) target bundleno = 2305 (0x901), region = 60  ;;  %p352_p3 = scmp.lt.s32.totalorder (!%p314_p2), %s1872_s15, 7  ;;  %v507_v30 = vld [vmem:[%s2620_s4] sm:$0xff] (!%p314_p2)  ;;  %1953 = vmatprep.subr.bf16.mxu0 (!%p314_p2), %v2162_v31  ;;  %1961 = vmatprep.subr.bf16.mxu1 (!%p314_p2), %v2162_v31  ;;  %v457_v32 = vpack.c.bf16 (!%p314_p2), %v454_v29, %v453_v28  ;;  %v508_v33 = vld [vmem:[%s2620_s4 + $0x8] sm:$0xff] (!%p314_p2)  ;;  %v456_v35 = vld [vmem:[%s2619_s3 + $0x18] sm:$0xff] (!%p314_p2)  ;;  %vm2163_vm1 = vmmov (!%p314_p2), 0  }
   0x7   : > { %v511_v36 = vpack.c.bf16 (!%p314_p2), %v508_v33, %v507_v30  ;;  %v509_v37 = vld [vmem:[%s2620_s4 + $0x10] sm:$0xff] (!%p314_p2)  ;;  %v510_v38 = vld [vmem:[%s2620_s4 + $0x18] sm:$0xff] (!%p314_p2)  ;;  %1957 = vmatprep.mubr.msk.bf16.mxu0 (!%p314_p2), %vm2163_vm1, %v2162_v31  ;;  %1965 = vmatprep.mubr.msk.bf16.mxu1 (!%p314_p2), %vm2163_vm1, %v2162_v31  ;;  %v458_v39 = vpack.c.bf16 (!%p314_p2), %v456_v35, %v455_v34  ;;  %v1876_v59 = vld [vmem:[%s2617_s1] ss:$0 sm:$0xff] (!%p314_p2)  ;;  %vm459_vm2 = vcmask (!%p314_p2), 261120   ;;  %vm727_vm3 = vcmask (!%p314_p2), 130048  }
   0x8   : > { %1954 = vmatpush3.bf16.msra.mxu0 (!%p314_p2), %v457_v32  ;;  %v512_v40 = vpack.c.bf16 (!%p314_p2), %v510_v38, %v509_v37  ;;  %vm965_vm4 = vcmask (!%p314_p2), 1041408   ;;  %vm912_vm5 = vcmask (!%p314_p2), 27648   ;;  %s2165_s24 = smov (!%p314_p2), 112   ;;  %vm961_vm6 = vcmask (!%p314_p2), 31744   ;;  %s2166_s27 = smov (!%p314_p2), 16  }
   0x9   : > { %1962 = vmatpush3.bf16.msra.mxu1 (!%p314_p2), %v511_v36  ;;  %1955 = vmatprep.subr.bf16.mxu0 (!%p314_p2), %v2162_v31 }
   0xa   : > { %1963 = vmatprep.subr.bf16.mxu1 (!%p314_p2), %v2162_v31 }
   0xc   : > { %1956 = vmatpush3.bf16.msra.mxu0 (!%p314_p2), %v458_v39 }
   0xd   : > { %s2628_s15 = smov (!%p352_p3, %s1872_s15), 7  ;;  %1964 = vmatpush3.bf16.msra.mxu1 %v512_v40  ;;  %1969 = vmatprep.subr.bf16.mxu0 %v2162_v31 }
   0xe   : > { %s1873_s16 = sshll.u32 %s2628_s15, 2  ;;  %1977 = vmatprep.subr.bf16.mxu1 %v2162_v31 }
   0xf   : > { %s2238_s19 = scalar_lea.vmem %s2616_s0, %s1873_s16 }
  0x10   : > { %v364_v0 = vld [vmem:[%s2238_s19] sm:$0xf]  ;;  %v366_v1 = vld [vmem:[%s2238_s19 + $0x8] sm:$0xf]  ;;  %v365_v2 = vld [vmem:[%s2238_s19 + $0x4] sm:$0xf] }
  0x11   : > { %v371_v3 = vsel %vm370_vm0, %v364_v0, 0.0  ;;  %v377_v4 = vsel %vm370_vm0, %v366_v1, 0.0  ;;  %v367_v5 = vld [vmem:[%s2238_s19 + $0xc] sm:$0xf]  ;;  %v374_v6 = vsel %vm370_vm0, %v365_v2, 0.0 }
  0x12   : > { %372 = vadd.xlane.f32.xlu0 %v371_v3  ;;  %378 = vadd.xlane.f32.xlu1 %v377_v4  ;;  %v380_v7 = vsel %vm370_vm0, %v367_v5, 0.0  ;;  %v555_v4 = vld [vmem:[%s2621_s5] sm:$0xff] }
  0x16   : > { %375 = vadd.xlane.f32.xlu0 %v374_v6  ;;  %381 = vadd.xlane.f32.xlu1 %v380_v7 }
  0x9f   : > { %v373_v8 = vpop.xlane.xlu0 %372  ;;  %v379_v9 = vpop.xlane.xlu1 %378 }
  0xa0   : > { %v384_v10 = vmul.f32 0.03125, %v373_v8  ;;  %v386_v11 = vmul.f32 0.03125, %v379_v9  ;;  %v556_v8 = vld [vmem:[%s2621_s5 + $0x8] sm:$0xff]  ;;  %v603_v9 = vld [vmem:[%s2622_s6] sm:$0xff] }
  0xa2   : > { %v2248_v12 = vsub.f32 %v364_v0, %v384_v10  ;;  %v2250_v13 = vsub.f32 %v366_v1, %v386_v11  ;;  %v1877_v1 = vld [vmem:[%s2618_s2] ss:$0 sm:$0xff]  ;;  %v604_v10 = vld [vmem:[%s2622_s6 + $0x8] sm:$0xff] }
  0xa3   : > { %v376_v14 = vpop.xlane.xlu0 %375  ;;  %v382_v15 = vpop.xlane.xlu1 %381 }
  0xa4   : > { %v385_v16 = vmul.f32 0.03125, %v376_v14  ;;  %v387_v17 = vmul.f32 0.03125, %v382_v15  ;;  %v392_v18 = vmul.f32 %v2248_v12, %v2248_v12  ;;  %v394_v19 = vmul.f32 %v2250_v13, %v2250_v13  ;;  %v557_v15 = vld [vmem:[%s2621_s5 + $0x10] sm:$0xff] }
  0xa5   : > { %v607_v14 = vpack.c.bf16 %v604_v10, %v603_v9 }
  0xa6   : > { %v389_v20 = vsub.f32 %v365_v2, %v385_v16  ;;  %v391_v21 = vsub.f32 %v367_v5, %v387_v17  ;;  %v396_v22 = vsel %vm370_vm0, %v392_v18, 0.0  ;;  %v402_v23 = vsel %vm370_vm0, %v394_v19, 0.0  ;;  %v558_v17 = vld [vmem:[%s2621_s5 + $0x18] sm:$0xff]  ;;  %v605_v18 = vld [vmem:[%s2622_s6 + $0x10] sm:$0xff] }
  0xa7   : > { %397 = vadd.xlane.f32.xlu0 %v396_v22  ;;  %v606_v19 = vld [vmem:[%s2622_s6 + $0x18] sm:$0xff]  ;;  %v2164_v22 = vmov 1983009808  }
  0xa8   : > { %v393_v24 = vmul.f32 %v389_v20, %v389_v20  ;;  %v395_v25 = vmul.f32 %v391_v21, %v391_v21 }
  0xaa   : > { %v399_v26 = vsel %vm370_vm0, %v393_v24, 0.0  ;;  %v405_v27 = vsel %vm370_vm0, %v395_v25, 0.0  ;;  %v672_v24 = vlaneseq }
  0xab   : > { %403 = vadd.xlane.f32.xlu0 %v402_v23  ;;  %400 = vadd.xlane.f32.xlu1 %v399_v26  ;;  %v670_v23 = vunpack.c.l.s4 %v2164_v22 }
  0xac   : > { %v673_v26 = vshrl.u32 %v672_v24, 7 }
  0xad   : > { %v671_v25 = vunpack.c.0.s8 %v670_v23 }
  0xaf   : > { %406 = vadd.xlane.f32.xlu1 %v405_v27  ;;  %v2342_v32 = vsub.s32 %v671_v25, %v673_v26 }
 0x134   : > { %v398_v41 = vpop.xlane.xlu0 %397 }
 0x135   : > { %v408_v42 = vmul.f32 0.03125, %v398_v41 }
 0x137   : > { %v412_v43 = vadd.f32 1e-05, %v408_v42 }
 0x138   : > { %v401_v44 = vpop.xlane.xlu1 %400  ;;  %v404_v45 = vpop.xlane.xlu0 %403 }
 0x139   : > { %v409_v46 = vmul.f32 0.03125, %v401_v44  ;;  %v410_v47 = vmul.f32 0.03125, %v404_v45  ;;  %2102 = vrsqrt.f32 %v412_v43 }
 0x13b   : > { %v413_v48 = vadd.f32 1e-05, %v409_v46  ;;  %v414_v49 = vadd.f32 1e-05, %v410_v47 }
 0x13c   : > { %v407_v50 = vpop.xlane.xlu1 %406 }
 0x13d   : > { %2104 = vrsqrt.f32 %v413_v48  ;;  %v411_v51 = vmul.f32 0.03125, %v407_v50 }
 0x13e   : > { %2106 = vrsqrt.f32 %v414_v49 }
 0x13f   : > { %v415_v52 = vadd.f32 1e-05, %v411_v51 }
 0x141   : > { %2108 = vrsqrt.f32 %v415_v52 }
 0x143   : > { %v2103_v53 = vpop.eup %2102 }
 0x144   : > { %v420_v56 = vmul.f32 %v2103_v53, %v2248_v12 }
 0x146   : > { %v430_v63 = vmul.f32 %v1876_v59, %v420_v56 }
 0x147   : > { %v2105_v54 = vpop.eup %2104 }
 0x148   : > { %v2107_v55 = vpop.eup %2106  ;;  %v421_v57 = vmul.f32 %v2105_v54, %v389_v20  ;;  %v440_v5 = vadd.f32 %v1877_v1, %v430_v63  ;;  %v560_v20 = vpack.c.bf16 %v558_v17, %v557_v15 }
 0x149   : > { %v422_v58 = vmul.f32 %v2107_v55, %v2250_v13  ;;  %v559_v13 = vpack.c.bf16 %v556_v8, %v555_v4 }
 0x14a   : > { %v431_v60 = vmul.f32 %v1876_v59, %v421_v57 }
 0x14b   : > { %v2109_v61 = vpop.eup %2108  ;;  %v432_v0 = vmul.f32 %v1876_v59, %v422_v58 }
 0x14c   : > { %v423_v62 = vmul.f32 %v2109_v61, %v391_v21  ;;  %v441_v3 = vadd.f32 %v1877_v1, %v431_v60  ;;  %v608_v21 = vpack.c.bf16 %v606_v19, %v605_v18 }
 0x14d   : > { %v442_v6 = vadd.f32 %v1877_v1, %v432_v0 }
 0x14e   : > { %v433_v2 = vmul.f32 %v1876_v59, %v423_v62  ;;  %v448_v11 = vcombine.low %v440_v5, %v441_v3 }
 0x150   : > { %v443_v7 = vadd.f32 %v1877_v1, %v433_v2 }
 0x152   : > { %v449_v12 = vcombine.low %v442_v6, %v443_v7 }
 0x154   : > { %v452_v16 = vpack.c.bf16 %v449_v12, %v448_v11 }
 0x156   : > { %1958 = vmatmul.mubr.msk.bf16.vlgmr.msra.gmra.mrb[0].mxu0 %vm459_vm2, %v452_v16  ;;  %1966 = vmatmul.mubr.msk.bf16.vlgmr.msra.gmra.mrb[0].mxu1 %vm459_vm2, %v452_v16 }
 0x157   : > { %1970 = vmatpush3.bf16.msra.mxu0 %v559_v13  ;;  %1978 = vmatpush3.bf16.msra.mxu1 %v607_v14 }
 0x158   : > { %1971 = vmatprep.subr.bf16.mxu0 %v2162_v31  ;;  %1979 = vmatprep.subr.bf16.mxu1 %v2162_v31 }
 0x159   : > { %1973 = vmatprep.mubr.msk.bf16.mxu0 %vm2163_vm1, %v2162_v31  ;;  %1981 = vmatprep.mubr.msk.bf16.mxu1 %vm2163_vm1, %v2162_v31 }
 0x15b   : > { %1972 = vmatpush3.bf16.msra.mxu0 %v560_v20  ;;  %1980 = vmatpush3.bf16.msra.mxu1 %v608_v21 }
 0x15c   : > { %1985 = vmatprep.subr.bf16.mxu0 %v2162_v31  ;;  %1991 = vmatprep.subr.bf16.mxu1 %v2162_v31 }
 0x15e   : > { %1974 = vmatmul.mubr.msk.bf16.vlgmr.msra.gmra.mrb[4].mxu0 %vm459_vm2, %v452_v16  ;;  %1982 = vmatmul.mubr.msk.bf16.vlgmr.msra.gmra.mrb[4].mxu1 %vm459_vm2, %v452_v16 }
 0x15f   : > { %1987 = vmatprep.mubr.msk.bf16.mxu0 %vm2163_vm1, %v2162_v31  ;;  %1993 = vmatprep.mubr.msk.bf16.mxu1 %vm2163_vm1, %v2162_v31 }
 0x229   : > { %v497_v27 = vpop.f32.mrb[0].mxu0  ;;  %v547_v28 = vpop.f32.mrb[0].mxu1 }
 0x22a   : > { %v1959_v29 = vpop.f32.mrb[1].mxu0  ;;  %v1967_v30 = vpop.f32.mrb[1].mxu1  ;;  %v504_v35 = vmul.f32 0.25, %v497_v27 }
 0x22b   : > { %v500_v33 = vpop.f32.mrb[2].mxu0  ;;  %v550_v34 = vpop.f32.mrb[2].mxu1 }
 0x22c   : > { %v505_v36 = vmul.f32 0.25, %v500_v33  ;;  %v554_v37 = vpack.c.bf16 %v550_v34, %v547_v28  ;;  %v1960_v38 = vpop.f32.mrb[3].mxu0  ;;  %v1968_v39 = vpop.f32.mrb[3].mxu1  ;;  %v1884_v41 = vpack.c.bf16 %v550_v34, %v550_v34 }
 0x22e   : > { %v506_v40 = vpack.c.bf16 %v505_v36, %v504_v35  ;;  %v2345_v42 = vrot.slane %v554_v37, %v2342_v32  ;;  %v2356_v47 = vrot.slane %v1884_v41, %v2342_v32  ;;  %v1883_v58 = vpack.c.bf16 %v505_v36, %v505_v36 }
 0x230   : > { %v732_v43 = vsel %vm727_vm3, %v2345_v42, 0  ;;  %v2351_v44 = vcombine.high %v2345_v42, %v2345_v42  ;;  %v2366_v53 = vrot.slane %v506_v40, %v2342_v32  ;;  %v2372_v57 = vcombine.high %v2356_v47, %v2356_v47 }
 0x231   : > { %v595_v45 = vpop.f32.mrb[4].mxu0  ;;  %v2353_v46 = vpop.f32.mrb[4].mxu1  ;;  %1986 = vmatpush3.bf16.xpose.msra.mxu0 %v732_v43  ;;  %v824_v60 = vsel %vm727_vm3, %v2356_v47, 0  ;;  %v2395_v63 = vrot.slane %v1883_v58, %v2342_v32 }
 0x232   : > { %v1975_v48 = vpop.f32.mrb[5].mxu0  ;;  %v1983_v49 = vpop.f32.mrb[5].mxu1  ;;  %v778_v50 = vsel %vm727_vm3, %v2351_v44, 0  ;;  %1997 = vmatprep.subr.bf16.mxu0 %v2162_v31  ;;  %v2376_v59 = vcombine.high %v2366_v53, %v2366_v53  ;;  %v870_v62 = vsel %vm727_vm3, %v2372_v57, 0  ;;  %v1234_v41 = vrot.slane %v2351_v44, %v2342_v32 }
 0x233   : > { %v2361_v51 = vpop.f32.mrb[6].mxu0  ;;  %v2363_v52 = vpop.f32.mrb[6].mxu1  ;;  %1992 = vmatpush3.bf16.xpose.msra.mxu1 %v778_v50  ;;  %v2404_v1 = vcombine.high %v2395_v63, %v2395_v63  ;;  %v1161_v43 = vrot.slane %v2366_v53, %v2342_v32  ;;  %v1298_v48 = vrot.slane %v2356_v47, %v2342_v32  ;;  %v1289_v44 = vrot.slane %v2395_v63, %v2342_v32 }
 0x234   : > { %v602_v54 = vpack.c.bf16 %v2361_v51, %v595_v45  ;;  %v1976_v55 = vpop.f32.mrb[7].mxu0  ;;  %v1984_v56 = vpop.f32.mrb[7].mxu1  ;;  %2003 = vmatprep.subr.bf16.mxu1 %v2162_v31  ;;  %v1170_v45 = vrot.slane %v2345_v42, %v2342_v32  ;;  %v1225_v42 = vrot.slane %v2376_v59, %v2342_v32  ;;  %v1362_v47 = vrot.slane %v2372_v57, %v2342_v32 }
 0x235   : > { %v1353_v56 = vrot.slane %v2404_v1, %v2342_v32 }
 0x236   : > { %v2385_v61 = vrot.slane %v602_v54, %v2342_v32 }
 0x238   : > { %1988 = vmatmul.mubr.msk.bf16.vlgmr.msra.gmra.mrb[8].mxu0 %vm727_vm3, %v2366_v53  ;;  %v2400_v0 = vcombine.high %v2385_v61, %v2385_v61  ;;  %v967_v2 = vsel %vm965_vm4, %v2385_v61, 0 }
 0x239   : > { %1998 = vmatpush3.bf16.xpose.msra.mxu0 %v824_v60  ;;  %1999 = vmatprep.mubr.msk.bf16.mxu0 %vm2163_vm1, %v2162_v31 }
 0x23a   : > { %1994 = vmatmul.mubr.msk.bf16.vlgmr.msra.gmra.mrb[8].mxu1 %vm727_vm3, %v2376_v59  ;;  %2009 = vmatprep.subr.bf16.mxu0 %v2162_v31  ;;  %v1013_v3 = vsel %vm965_vm4, %v2400_v0, 0 }
 0x23b   : > { %2004 = vmatpush3.bf16.xpose.msra.mxu1 %v870_v62  ;;  %2005 = vmatprep.mubr.msk.bf16.mxu1 %vm2163_vm1, %v2162_v31  ;;  %v1885_v62 = vpack.c.bf16 %v2361_v51, %v2361_v51 }
 0x23c   : > { %2015 = vmatprep.subr.bf16.mxu1 %v2162_v31 }
 0x240   : > { %2000 = vmatmul.mubr.msk.bf16.vlgmr.msra.gmra.mrb[12].mxu0 %vm727_vm3, %v2395_v63  ;;  %v2455_v63 = vrot.slane %v1885_v62, %v2342_v32 }
 0x241   : > { %2010 = vmatpush3.bf16.msra.mxu0 %v967_v2  ;;  %2011 = vmatprep.mubr.msk.bf16.mxu0 %vm2163_vm1, %v2162_v31 }
 0x242   : > { %2006 = vmatmul.mubr.msk.bf16.vlgmr.msra.gmra.mrb[12].mxu1 %vm727_vm3, %v2404_v1  ;;  %2021 = vmatprep.subr.bf16.mxu0 %v2162_v31  ;;  %v1059_v51 = vsel %vm965_vm4, %v2455_v63, 0 }
 0x243   : > { %2016 = vmatpush3.bf16.msra.mxu1 %v1013_v3  ;;  %2017 = vmatprep.mubr.msk.bf16.mxu1 %vm2163_vm1, %v2162_v31 }
 0x244   : > { %2027 = vmatprep.subr.bf16.mxu1 %v2162_v31 }
 0x30b   : > { %v768_v4 = vpop.f32.mrb[8].mxu0 }
 0x30c   : > { %v1989_v5 = vpop.f32.mrb[9].mxu0  ;;  %v913_v6 = vsel %vm912_vm5, %v768_v4, -inf }
 0x30d   : > { %v814_v7 = vpop.f32.mrb[8].mxu1  ;;  %914 = vmax.xlane.f32.xlu0 %v913_v6  ;;  %v771_v8 = vpop.f32.mrb[10].mxu0  ;;  %v2459_v5 = vcombine.high %v2455_v63, %v2455_v63 }
 0x30e   : > { %v1990_v9 = vpop.f32.mrb[11].mxu0  ;;  %v1995_v10 = vpop.f32.mrb[9].mxu1  ;;  %v916_v11 = vsel %vm912_vm5, %v814_v7, -inf }
 0x30f   : > { %917 = vmax.xlane.f32.xlu1 %v916_v11  ;;  %v817_v12 = vpop.f32.mrb[10].mxu1 }
 0x310   : > { %v1996_v13 = vpop.f32.mrb[11].mxu1 }
 0x313   : > { %v860_v14 = vpop.f32.mrb[12].mxu0 }
 0x314   : > { %v2001_v15 = vpop.f32.mrb[13].mxu0  ;;  %v919_v16 = vsel %vm912_vm5, %v860_v14, -inf }
 0x315   : > { %v906_v17 = vpop.f32.mrb[12].mxu1  ;;  %920 = vmax.xlane.f32.xlu0 %v919_v16  ;;  %v863_v18 = vpop.f32.mrb[14].mxu0 }
 0x316   : > { %v2002_v19 = vpop.f32.mrb[15].mxu0  ;;  %v2007_v20 = vpop.f32.mrb[13].mxu1  ;;  %v922_v21 = vsel %vm912_vm5, %v906_v17, -inf }
 0x317   : > { %923 = vmax.xlane.f32.xlu1 %v922_v21  ;;  %v909_v22 = vpop.f32.mrb[14].mxu1 }
 0x318   : > { %v2008_v23 = vpop.f32.mrb[15].mxu1 }
 0x39a   : > { %v915_v24 = vpop.xlane.xlu0 %914 }
 0x39b   : > { %v925_v25 = vsub.f32 %v768_v4, %v915_v24 }
 0x39c   : > { %v918_v26 = vpop.xlane.xlu1 %917 }
 0x39d   : > { %v929_v27 = vmul.f32 1.442695, %v925_v25  ;;  %v926_v28 = vsub.f32 %v814_v7, %v918_v26  ;;  %v1105_v7 = vsel %vm965_vm4, %v2459_v5, 0 }
 0x39f   : > { %2110 = vpow2.f32 %v929_v27  ;;  %v931_v29 = vmul.f32 1.442695, %v926_v28  ;;  %v1881_v27 = vld [vmem:[%s2623_s7] ss:$0 sm:$0xff] }
 0x3a0   : > { %v651_v28 = vadd.f32 %v1881_v27, %v2353_v46 }
 0x3a1   : > { %2112 = vpow2.f32 %v931_v29 }
 0x3a2   : > { %v921_v30 = vpop.xlane.xlu0 %920  ;;  %v657_v29 = vsub.f32 0.0, %v651_v28 }
 0x3a3   : > { %v927_v33 = vsub.f32 %v860_v14, %v921_v30 }
 0x3a4   : > { %v924_v49 = vpop.xlane.xlu1 %923  ;;  %v659_v30 = vmul.f32 1.442695, %v657_v29 }
 0x3a5   : > { %v933_v34 = vmul.f32 1.442695, %v927_v33  ;;  %v928_v50 = vsub.f32 %v906_v17, %v924_v49  ;;  %v654_v33 = vadd.f32 %v1881_v27, %v2363_v52 }
 0x3a7   : > { %2114 = vpow2.f32 %v933_v34  ;;  %v935_v53 = vmul.f32 1.442695, %v928_v50  ;;  %v658_v34 = vsub.f32 0.0, %v654_v33 }
 0x3a9   : > { %v2111_v35 = vpop.eup %2110  ;;  %2116 = vpow2.f32 %v935_v53 }
 0x3aa   : > { %v937_v36 = vsel %vm912_vm5, %v2111_v35, 0.0 }
 0x3ab   : > { %v2113_v37 = vpop.eup %2112  ;;  %938 = vadd.xlane.f32.xlu0 %v937_v36 }
 0x3ac   : > { %v940_v38 = vsel %vm912_vm5, %v2113_v37, 0.0 }
 0x3ad   : > { %941 = vadd.xlane.f32.xlu1 %v940_v38 }
 0x3b1   : > { %v2115_v39 = vpop.eup %2114 }
 0x3b2   : > { %v943_v40 = vsel %vm912_vm5, %v2115_v39, 0.0 }
 0x3b3   : > { %944 = vadd.xlane.f32.xlu0 %v943_v40  ;;  %v2117_v54 = vpop.eup %2116 }
 0x3b4   : > { %v946_v55 = vsel %vm912_vm5, %v2117_v54, 0.0 }
 0x3be   : > { %1235 = vrot.lane.b32.xlu1 %v1234_v41, %s2165_s24 }
 0x3c2   : > { %1162 = vrot.lane.b32.xlu1 %v1161_v43, %s2165_s24 }
 0x3c9   : > { %1171 = vrot.lane.b32.xlu0 %v1170_v45, %s2165_s24 }
 0x3cd   : > { %1299 = vrot.lane.b32.xlu0 %v1298_v48, %s2165_s24 }
 0x3d1   : > { %1290 = vrot.lane.b32.xlu0 %v1289_v44, %s2165_s24 }
 0x3e6   : > { %947 = vadd.xlane.f32.xlu1 %v946_v55 }
 0x3f7   : > { %1226 = vrot.lane.b32.xlu1 %v1225_v42, %s2165_s24 }
 0x3fb   : > { %1363 = vrot.lane.b32.xlu1 %v1362_v47, %s2165_s24 }
 0x3ff   : > { %1354 = vrot.lane.b32.xlu1 %v1353_v56, %s2165_s24 }
 0x438   : > { %v939_v58 = vpop.xlane.xlu0 %938 }
 0x439   : > { %2118 = vrcp.f32 %v939_v58 }
 0x43a   : > { %v942_v60 = vpop.xlane.xlu1 %941 }
 0x43b   : > { %2120 = vrcp.f32 %v942_v60 }
 0x43e   : > { %v1236_v13 = vpop.permute.xlu1 %1235 }
 0x43f   : > { %v1241_v23 = vsel %vm727_vm3, %v1236_v13, 0 }
 0x440   : > { %v945_v59 = vpop.xlane.xlu0 %944 }
 0x441   : > { %2122 = vrcp.f32 %v945_v59 }
 0x442   : > { %v1163_v15 = vpop.permute.xlu1 %1162 }
 0x443   : > { %v2119_v57 = vpop.eup %2118 }
 0x444   : > { %v953_v2 = vmul.f32 %v2119_v57, %v2111_v35  ;;  %v1172_v10 = vpop.permute.xlu0 %1171  ;;  %v661_v35 = vmul.f32 1.442695, %v658_v34 }
 0x445   : > { %v2121_v3 = vpop.eup %2120  ;;  %v1177_v12 = vsel %vm727_vm3, %v1172_v10, 0 }
 0x446   : > { %v954_v4 = vmul.f32 %v2121_v3, %v2113_v37  ;;  %v957_v1 = vpack.c.bf16 %v953_v2, %v953_v2 }
 0x448   : > { %2012 = vmatmul.mubr.msk.bf16.vlgmr.msra.gmra.mrb[16].mxu0 %vm961_vm6, %v957_v1  ;;  %v958_v6 = vpack.c.bf16 %v954_v4, %v954_v4  ;;  %v1300_v14 = vpop.permute.xlu0 %1299 }
 0x449   : > { %2022 = vmatpush3.bf16.msra.mxu0 %v1059_v51  ;;  %2023 = vmatprep.mubr.msk.bf16.mxu0 %vm2163_vm1, %v2162_v31  ;;  %v1305_v16 = vsel %vm727_vm3, %v1300_v14, 0 }
 0x44a   : > { %2018 = vmatmul.mubr.msk.bf16.vlgmr.msra.gmra.mrb[16].mxu1 %vm961_vm6, %v958_v6  ;;  %2033 = vmatprep.subr.bf16.mxu0 %v2162_v31 }
 0x44b   : > { %v2123_v8 = vpop.eup %2122  ;;  %2028 = vmatpush3.bf16.msra.mxu1 %v1105_v7  ;;  %2029 = vmatprep.mubr.msk.bf16.mxu1 %vm2163_vm1, %v2162_v31 }
 0x44c   : > { %v955_v9 = vmul.f32 %v2123_v8, %v2115_v39  ;;  %2039 = vmatprep.subr.bf16.mxu1 %v2162_v31  ;;  %v1291_v17 = vpop.permute.xlu0 %1290 }
 0x44e   : > { %v959_v11 = vpack.c.bf16 %v955_v9, %v955_v9 }
 0x450   : > { %2024 = vmatmul.mubr.msk.bf16.vlgmr.msra.gmra.mrb[20].mxu0 %vm961_vm6, %v959_v11 }
 0x451   : > { %2035 = vmatprep.mubr.msk.bf16.mxu0 %vm2163_vm1, %v2162_v31 }
 0x452   : > { %2034 = vmatpush3.bf16.xpose.msra.mxu0 %v1177_v12 }
 0x453   : > { %2045 = vmatprep.subr.bf16.mxu0 %v2162_v31 }
 0x459   : > { %2036 = vmatmul.mubr.msk.bf16.vlgmr.msra.gmra.mrb[24].mxu0 %vm727_vm3, %v1163_v15 }
 0x45a   : > { %2046 = vmatpush3.bf16.xpose.msra.mxu0 %v1305_v16  ;;  %2047 = vmatprep.mubr.msk.bf16.mxu0 %vm2163_vm1, %v2162_v31 }
 0x45b   : > { %2057 = vmatprep.subr.bf16.mxu0 %v2162_v31 }
 0x461   : > { %2048 = vmatmul.mubr.msk.bf16.vlgmr.msra.gmra.mrb[28].mxu0 %vm727_vm3, %v1291_v17 }
 0x462   : > { %2059 = vmatprep.mubr.msk.bf16.mxu0 %vm2163_vm1, %v2162_v31 }
 0x473   : > { %v948_v18 = vpop.xlane.xlu1 %947 }
 0x474   : > { %2124 = vrcp.f32 %v948_v18 }
 0x475   : > { %2126 = vpow2.f32 %v659_v30 }
 0x476   : > { %2128 = vpow2.f32 %v661_v35 }
 0x477   : > { %v1227_v22 = vpop.permute.xlu1 %1226 }
 0x47b   : > { %v1364_v24 = vpop.permute.xlu1 %1363 }
 0x47c   : > { %v1369_v25 = vsel %vm727_vm3, %v1364_v24, 0 }
 0x47e   : > { %v2125_v19 = vpop.eup %2124 }
 0x47f   : > { %v956_v20 = vmul.f32 %v2125_v19, %v2117_v54  ;;  %v1355_v26 = vpop.permute.xlu1 %1354  ;;  %v2127_v36 = vpop.eup %2126 }
 0x480   : > { %v663_v37 = vadd.f32 1.0, %v2127_v36  ;;  %v2129_v38 = vpop.eup %2128  ;;  %v1465_v36 = vrot.slane %v2385_v61, %v2342_v32 }
 0x481   : > { %v960_v21 = vpack.c.bf16 %v956_v20, %v956_v20  ;;  %v664_v39 = vadd.f32 1.0, %v2129_v38 }
 0x482   : > { %2130 = vrcp.f32 %v663_v37 }
 0x483   : > { %2030 = vmatmul.mubr.msk.bf16.vlgmr.msra.gmra.mrb[20].mxu1 %vm961_vm6, %v960_v21  ;;  %2132 = vrcp.f32 %v664_v39 }
 0x484   : > { %2040 = vmatpush3.bf16.xpose.msra.mxu1 %v1241_v23  ;;  %2041 = vmatprep.mubr.msk.bf16.mxu1 %vm2163_vm1, %v2162_v31 }
 0x485   : > { %2051 = vmatprep.subr.bf16.mxu1 %v2162_v31 }
 0x48b   : > { %2042 = vmatmul.mubr.msk.bf16.vlgmr.msra.gmra.mrb[24].mxu1 %vm727_vm3, %v1227_v22 }
 0x48c   : > { %2052 = vmatpush3.bf16.xpose.msra.mxu1 %v1369_v25  ;;  %2053 = vmatprep.mubr.msk.bf16.mxu1 %vm2163_vm1, %v2162_v31  ;;  %v2504_v40 = vpop.eup %2130 }
 0x48d   : > { %2063 = vmatprep.subr.bf16.mxu1 %v2162_v31  ;;  %v2511_v52 = vcombine.high %v2504_v40, %v2504_v40  ;;  %v2516_v55 = vpop.eup %2132 }
 0x48e   : > { %v2525_v8 = vcombine.high %v2516_v55, %v2516_v55 }
 0x493   : > { %2054 = vmatmul.mubr.msk.bf16.vlgmr.msra.gmra.mrb[28].mxu1 %vm727_vm3, %v1355_v26 }
 0x494   : > { %2065 = vmatprep.mubr.msk.bf16.mxu1 %vm2163_vm1, %v2162_v31 }
 0x51b   : > { %v1003_v41 = vpop.f32.mrb[16].mxu0 }
 0x51c   : > { %v2507_v43 = vmul.f32 %v2504_v40, %v1003_v41  ;;  %v2013_v46 = vpop.f32.mrb[17].mxu0 }
 0x51d   : > { %v1006_v45 = vpop.f32.mrb[18].mxu0  ;;  %v1049_v48 = vpop.f32.mrb[16].mxu1 }
 0x51e   : > { %v2514_v49 = vmul.f32 %v1049_v48, %v2511_v52  ;;  %v2014_v44 = vpop.f32.mrb[19].mxu0  ;;  %v2019_v50 = vpop.f32.mrb[17].mxu1  ;;  %v1520_v45 = vrot.slane %v2400_v0, %v2342_v32  ;;  %v1575_v48 = vrot.slane %v2455_v63, %v2342_v32 }
 0x51f   : > { %v1052_v53 = vpop.f32.mrb[18].mxu1 }
 0x520   : > { %v2020_v54 = vpop.f32.mrb[19].mxu1 }
 0x523   : > { %v1095_v42 = vpop.f32.mrb[20].mxu0 }
 0x524   : > { %v2519_v47 = vmul.f32 %v2516_v55, %v1095_v42  ;;  %v2025_v56 = vpop.f32.mrb[21].mxu0  ;;  %v1630_v42 = vrot.slane %v2459_v5, %v2342_v32 }
 0x525   : > { %v1098_v58 = vpop.f32.mrb[22].mxu0 }
 0x526   : > { %v2026_v60 = vpop.f32.mrb[23].mxu0 }
 0x52c   : > { %v1213_v62 = vpop.f32.mrb[24].mxu0 }
 0x52d   : > { %v2037_v59 = vpop.f32.mrb[25].mxu0  ;;  %v1411_v57 = vsel %vm912_vm5, %v1213_v62, -inf }
 0x52e   : > { %1412 = vmax.xlane.f32.xlu0 %v1411_v57  ;;  %v1216_v2 = vpop.f32.mrb[26].mxu0 }
 0x52f   : > { %v2038_v3 = vpop.f32.mrb[27].mxu0 }
 0x534   : > { %v1341_v4 = vpop.f32.mrb[28].mxu0 }
 0x535   : > { %v2049_v1 = vpop.f32.mrb[29].mxu0  ;;  %v1417_v51 = vsel %vm912_vm5, %v1341_v4, -inf }
 0x536   : > { %1418 = vmax.xlane.f32.xlu0 %v1417_v51  ;;  %v1344_v6 = vpop.f32.mrb[30].mxu0 }
 0x537   : > { %v2050_v7 = vpop.f32.mrb[31].mxu0 }
 0x556   : > { %v1141_v9 = vpop.f32.mrb[20].mxu1 }
 0x557   : > { %v2528_v10 = vmul.f32 %v1141_v9, %v2525_v8  ;;  %v2031_v11 = vpop.f32.mrb[21].mxu1 }
 0x558   : > { %v1144_v12 = vpop.f32.mrb[22].mxu1 }
 0x559   : > { %v2032_v13 = vpop.f32.mrb[23].mxu1 }
 0x55e   : > { %v1277_v14 = vpop.f32.mrb[24].mxu1 }
 0x55f   : > { %v2043_v15 = vpop.f32.mrb[25].mxu1  ;;  %v1414_v16 = vsel %vm912_vm5, %v1277_v14, -inf }
 0x560   : > { %1415 = vmax.xlane.f32.xlu1 %v1414_v16  ;;  %v1280_v17 = vpop.f32.mrb[26].mxu1 }
 0x561   : > { %v2044_v18 = vpop.f32.mrb[27].mxu1 }
 0x566   : > { %v1405_v19 = vpop.f32.mrb[28].mxu1 }
 0x567   : > { %v2055_v20 = vpop.f32.mrb[29].mxu1  ;;  %v1420_v21 = vsel %vm912_vm5, %v1405_v19, -inf }
 0x568   : > { %v1408_v22 = vpop.f32.mrb[30].mxu1  ;;  %1421 = vmax.xlane.f32.xlu0 %v1420_v21 }
 0x569   : > { %v2056_v23 = vpop.f32.mrb[31].mxu1 }
 0x5bb   : > { %v1413_v24 = vpop.xlane.xlu0 %1412 }
 0x5bc   : > { %v1423_v25 = vsub.f32 %v1213_v62, %v1413_v24 }
 0x5be   : > { %v1427_v26 = vmul.f32 1.442695, %v1423_v25 }
 0x5c0   : > { %2134 = vpow2.f32 %v1427_v26 }
 0x5c3   : > { %v1419_v27 = vpop.xlane.xlu0 %1418 }
 0x5c4   : > { %v1425_v28 = vsub.f32 %v1341_v4, %v1419_v27 }
 0x5c6   : > { %v1431_v29 = vmul.f32 1.442695, %v1425_v28 }
 0x5c8   : > { %2136 = vpow2.f32 %v1431_v29 }
 0x5ca   : > { %v2135_v30 = vpop.eup %2134 }
 0x5cb   : > { %v1435_v33 = vsel %vm912_vm5, %v2135_v30, 0.0 }
 0x5cc   : > { %1436 = vadd.xlane.f32.xlu0 %v1435_v33  ;;  %v1716_v33 = vld [vmem:[%s2624_s8 + $0x8] sm:$0xff] }
 0x5d2   : > { %v2137_v34 = vpop.eup %2136 }
 0x5d3   : > { %v1441_v35 = vsel %vm912_vm5, %v2137_v34, 0.0 }
 0x5d4   : > { %1442 = vadd.xlane.f32.xlu0 %v1441_v35  ;;  %v1717_v35 = vld [vmem:[%s2624_s8 + $0x10] sm:$0xff] }
 0x5ea   : > { %1466 = vrot.lane.b32.xlu0 %v1465_v36, %s2165_s24  ;;  %v1718_v36 = vld [vmem:[%s2624_s8 + $0x18] sm:$0xff] }
 0x5ed   : > { %v1416_v37 = vpop.xlane.xlu1 %1415 }
 0x5ee   : > { %v1424_v38 = vsub.f32 %v1277_v14, %v1416_v37  ;;  %v1720_v37 = vpack.c.bf16 %v1718_v36, %v1717_v35 }
 0x5f0   : > { %v1429_v39 = vmul.f32 1.442695, %v1424_v38 }
 0x5f2   : > { %2138 = vpow2.f32 %v1429_v39 }
 0x5f5   : > { %v1422_v61 = vpop.xlane.xlu0 %1421 }
 0x5f6   : > { %v1426_v44 = vsub.f32 %v1405_v19, %v1422_v61 }
 0x5f8   : > { %v1433_v50 = vmul.f32 1.442695, %v1426_v44 }
 0x5fa   : > { %2140 = vpow2.f32 %v1433_v50 }
 0x5fc   : > { %v2139_v41 = vpop.eup %2138 }
 0x5fd   : > { %v1438_v46 = vsel %vm912_vm5, %v2139_v41, 0.0 }
 0x5fe   : > { %1439 = vadd.xlane.f32.xlu1 %v1438_v46 }
 0x604   : > { %v2141_v53 = vpop.eup %2140 }
 0x605   : > { %v1444_v54 = vsel %vm912_vm5, %v2141_v53, 0.0 }
 0x60f   : > { %1521 = vrot.lane.b32.xlu1 %v1520_v45, %s2165_s24 }
 0x613   : > { %1576 = vrot.lane.b32.xlu1 %v1575_v48, %s2165_s24 }
 0x637   : > { %1445 = vadd.xlane.f32.xlu1 %v1444_v54  ;;  %v1153_v54 = vpack.c.bf16 %v2519_v47, %v2519_v47  ;;  %v1154_v47 = vpack.c.bf16 %v2528_v10, %v2528_v10 }
 0x648   : > { %1631 = vrot.lane.b32.xlu1 %v1630_v42, %s2165_s24  ;;  %s361_s24 = scalar_lea.vmem %s2626_s10, %s1873_s16 }
 0x659   : > { %v1437_v0 = vpop.xlane.xlu0 %1436 }
 0x65a   : > { %2142 = vrcp.f32 %v1437_v0 }
 0x661   : > { %v1443_v56 = vpop.xlane.xlu0 %1442 }
 0x662   : > { %2144 = vrcp.f32 %v1443_v56 }
 0x664   : > { %v2143_v58 = vpop.eup %2142 }
 0x665   : > { %v1451_v63 = vmul.f32 %v2143_v58, %v2135_v30  ;;  %v1467_v60 = vpop.permute.xlu0 %1466  ;;  %v1715_v30 = vld [vmem:[%s2624_s8] sm:$0xff] }
 0x666   : > { %v1472_v62 = vsel %vm965_vm4, %v1467_v60, 0 }
 0x667   : > { %2058 = vmatpush3.bf16.msra.mxu0 %v1472_v62  ;;  %v1455_v59 = vpack.c.bf16 %v1451_v63, %v1451_v63 }
 0x668   : > { %2069 = vmatprep.subr.bf16.mxu0 %v2162_v31 }
 0x66a   : > { %2060 = vmatmul.mubr.msk.bf16.vlgmr.msra.gmra.mrb[32].mxu0 %vm961_vm6, %v1455_v59 }
 0x66b   : > { %2071 = vmatprep.mubr.msk.bf16.mxu0 %vm2163_vm1, %v2162_v31 }
 0x66c   : > { %v2145_v57 = vpop.eup %2144 }
 0x66d   : > { %v1453_v4 = vmul.f32 %v2145_v57, %v2137_v34  ;;  %v1719_v34 = vpack.c.bf16 %v1716_v33, %v1715_v30 }
 0x66f   : > { %v1457_v7 = vpack.c.bf16 %v1453_v4, %v1453_v4 }
 0x68b   : > { %v1440_v5 = vpop.xlane.xlu1 %1439 }
 0x68c   : > { %2146 = vrcp.f32 %v1440_v5 }
 0x68f   : > { %v1522_v2 = vpop.permute.xlu1 %1521 }
 0x690   : > { %v1527_v3 = vsel %vm965_vm4, %v1522_v2, 0 }
 0x691   : > { %2064 = vmatpush3.bf16.msra.mxu1 %v1527_v3  ;;  %v2150_v3 = vld [vmem:[%s2238_s19] sm:$0xf] }
 0x692   : > { %2075 = vmatprep.subr.bf16.mxu1 %v2162_v31 }
 0x693   : > { %v1577_v1 = vpop.permute.xlu1 %1576 }
 0x694   : > { %v1582_v51 = vsel %vm965_vm4, %v1577_v1, 0  ;;  %v2151_v1 = vld [vmem:[%s2238_s19 + $0x4] sm:$0xf] }
 0x695   : > { %2070 = vmatpush3.bf16.msra.mxu0 %v1582_v51  ;;  %v2152_v51 = vld [vmem:[%s2238_s19 + $0x8] sm:$0xf] }
 0x696   : > { %v2147_v6 = vpop.eup %2146  ;;  %2081 = vmatprep.subr.bf16.mxu0 %v2162_v31 }
 0x697   : > { %v1452_v9 = vmul.f32 %v2147_v6, %v2139_v41 }
 0x698   : > { %2072 = vmatmul.mubr.msk.bf16.vlgmr.msra.gmra.mrb[36].mxu0 %vm961_vm6, %v1457_v7 }
 0x699   : > { %v1456_v11 = vpack.c.bf16 %v1452_v9, %v1452_v9  ;;  %2085 = vmatprep.mubr.msk.bf16.mxu0 %vm2163_vm1, %v2162_v31  ;;  %2082 = vmatpush3.bf16.msra.mxu0 %v1719_v34 }
 0x69a   : > { %2083 = vmatprep.subr.bf16.mxu0 %v2162_v31 }
 0x69b   : > { %2066 = vmatmul.mubr.msk.bf16.vlgmr.msra.gmra.mrb[32].mxu1 %vm961_vm6, %v1456_v11 }
 0x69c   : > { %2077 = vmatprep.mubr.msk.bf16.mxu1 %vm2163_vm1, %v2162_v31  ;;  %v1151_v31 = vpack.c.bf16 %v2507_v43, %v2507_v43 }
 0x69d   : > { %2084 = vmatpush3.bf16.msra.mxu0 %v1720_v37 }
 0x6c4   : > { %v1446_v12 = vpop.xlane.xlu1 %1445 }
 0x6c5   : > { %2148 = vrcp.f32 %v1446_v12 }
 0x6c8   : > { %v1632_v13 = vpop.permute.xlu1 %1631 }
 0x6c9   : > { %v1637_v14 = vsel %vm965_vm4, %v1632_v13, 0 }
 0x6ca   : > { %2076 = vmatpush3.bf16.msra.mxu1 %v1637_v14 }
 0x6cf   : > { %v2149_v15 = vpop.eup %2148 }
 0x6d0   : > { %v1454_v16 = vmul.f32 %v2149_v15, %v2141_v53 }
 0x6d2   : > { %v1458_v17 = vpack.c.bf16 %v1454_v16, %v1454_v16 }
 0x6d4   : > { %2078 = vmatmul.mubr.msk.bf16.vlgmr.msra.gmra.mrb[36].mxu1 %vm961_vm6, %v1458_v17 }
 0x73d   : > { %v1508_v18 = vpop.f32.mrb[32].mxu0 }
 0x73e   : > { %1683 = vrot.lane.b32.xlu0 %v1508_v18, %s2166_s27  ;;  %v2061_v19 = vpop.f32.mrb[33].mxu0 }
 0x73f   : > { %v1511_v20 = vpop.f32.mrb[34].mxu0 }
 0x740   : > { %v2062_v21 = vpop.f32.mrb[35].mxu0 }
 0x76b   : > { %v1618_v22 = vpop.f32.mrb[36].mxu0 }
 0x76c   : > { %1687 = vrot.lane.b32.xlu0 %v1618_v22, %s2166_s27  ;;  %v2073_v23 = vpop.f32.mrb[37].mxu0 }
 0x76d   : > { %v1621_v24 = vpop.f32.mrb[38].mxu0 }
 0x76e   : > { %v1563_v25 = vpop.f32.mrb[32].mxu1  ;;  %v2074_v26 = vpop.f32.mrb[39].mxu0 }
 0x76f   : > { %v2067_v27 = vpop.f32.mrb[33].mxu1  ;;  %1685 = vrot.lane.b32.xlu1 %v1563_v25, %s2166_s27 }
 0x770   : > { %v1566_v28 = vpop.f32.mrb[34].mxu1 }
 0x771   : > { %v2068_v29 = vpop.f32.mrb[35].mxu1 }
 0x7a7   : > { %v1673_v38 = vpop.f32.mrb[36].mxu1 }
 0x7a8   : > { %1689 = vrot.lane.b32.xlu1 %v1673_v38, %s2166_s27  ;;  %v2079_v39 = vpop.f32.mrb[37].mxu1 }
 0x7a9   : > { %v1676_v41 = vpop.f32.mrb[38].mxu1 }
 0x7aa   : > { %v2080_v46 = vpop.f32.mrb[39].mxu1 }
 0x7b0   : > { %v1684_v45 = vpop.permute.xlu0 %1683 }
 0x7b1   : > { %v1695_v48 = vmul.f32 %v2504_v40, %v1684_v45  ;;  %v1152_v40 = vpack.c.bf16 %v2514_v49, %v2514_v49 }
 0x7b3   : > { %v1699_v61 = vpack.c.bf16 %v1695_v48, %v1695_v48 }
 0x7b5   : > { %v1705_v44 = vsel %vm727_vm3, %v1151_v31, %v1699_v61 }
 0x7de   : > { %v1688_v50 = vpop.permute.xlu0 %1687 }
 0x7df   : > { %v1697_v53 = vmul.f32 %v2516_v55, %v1688_v50 }
 0x7e1   : > { %v1701_v42 = vpack.c.bf16 %v1697_v53, %v1697_v53  ;;  %v1686_v0 = vpop.permute.xlu1 %1685 }
 0x7e2   : > { %v1696_v56 = vmul.f32 %v1686_v0, %v2511_v52 }
 0x7e3   : > { %v1711_v58 = vsel %vm727_vm3, %v1153_v54, %v1701_v42 }
 0x7e4   : > { %v1700_v43 = vpack.c.bf16 %v1696_v56, %v1696_v56 }
 0x7e6   : > { %v1708_v63 = vsel %vm727_vm3, %v1152_v40, %v1700_v43 }
 0x7e7   : > { %v1725_v60 = vcombine.low %v1705_v44, %v1708_v63 }
 0x7e9   : > { %v1733_v49 = vrot.slane %v1725_v60, %v2342_v32 }
 0x81a   : > { %v1690_v55 = vpop.permute.xlu1 %1689 }
 0x81b   : > { %v1698_v62 = vmul.f32 %v1690_v55, %v2525_v8  ;;  %v1903_v8 = vld [vmem:[%s2625_s9] ss:$0 sm:$0xff] }
 0x81c   : > { %v1793_v4 = vadd.f32 %v2150_v3, %v1903_v8  ;;  %v1794_v10 = vadd.f32 %v2151_v1, %v1903_v8  ;;  %v1795_v6 = vadd.f32 %v2152_v51, %v1903_v8 }
 0x81d   : > { %v1702_v52 = vpack.c.bf16 %v1698_v62, %v1698_v62 }
 0x81f   : > { %v1714_v59 = vsel %vm727_vm3, %v1154_v47, %v1702_v52 }
 0x820   : > { %v1726_v5 = vcombine.low %v1711_v58, %v1714_v59 }
 0x822   : > { %v1740_v57 = vrot.slane %v1726_v5, %v2342_v32  ;;  %v2153_v32 = vld [vmem:[%s2238_s19 + $0xc] sm:$0xf] }
 0x823   : > { %v1796_v9 = vadd.f32 %v2153_v32, %v1903_v8 }
 0x824   : > { %v1741_v2 = vcombine.low %v1733_v49, %v1740_v57 }
 0x826   : > { %2086 = vmatmul.mubr.msk.bf16.vlgmr.msra.gmra.mrb[40].mxu0 %vm459_vm2, %v1741_v2 }
 0x8f9   : > { %v1779_v7 = vpop.f32.mrb[40].mxu0 }
 0x8fa   : > { %v1799_v11 = vcombine.high %v1779_v7, %v1779_v7  ;;  %v1803_v12 = vadd.f32 %v1793_v4, %v1779_v7  ;;  %v2087_v13 = vpop.f32.mrb[41].mxu0 }
 0x8fb   : > { %v1782_v14 = vpop.f32.mrb[42].mxu0 }
 0x8fc   : > { %v1804_v15 = vadd.f32 %v1799_v11, %v1794_v10  ;;  %1807 = vst.msk [vmem:[%s361_s24] sm:$0xf] %vm370_vm0, %v1803_v12  ;;  %v1800_v16 = vcombine.high %v1782_v14, %v1782_v14  ;;  %v1805_v17 = vadd.f32 %v1795_v6, %v1782_v14  ;;  %v2088_v18 = vpop.f32.mrb[43].mxu0 }
 0x8fe   : > { %1808 = vst.msk [vmem:[%s361_s24 + $0x4] sm:$0xf] %vm370_vm0, %v1804_v15  ;;  %v1806_v19 = vadd.f32 %v1800_v16, %v1796_v9  ;;  %1809 = vst.msk [vmem:[%s361_s24 + $0x8] sm:$0xf] %vm370_vm0, %v1805_v17 }
 0x900   : > { %1810 = vst.msk [vmem:[%s361_s24 + $0xc] sm:$0xf] %vm370_vm0, %v1806_v19 }
 0x901 PF: > { %s20_s13 = sadd.s32 1, %s2160_s13  }
 0x902   : > { %p17_p4 = scmp.ge.s32.totalorder %s20_s13, 4  }
 0x904   :  { %19 = sbr.rel (!%p17_p4) target bundleno = 1 (0x1), region = 90 }

// kernel: evoblock_apply.23
= control target key start
LH: loop header
LB: loop body
LE: loop exit
PB: predicated region body
PF: predicated region fallthrough
CT: control target
= control target key end

     0   :  { %s2740_s29 = smov 0   ;;  %s3306_s0 = inlined_call_operand.vmem [shape: f32[8,8,32], index: 0, kind: input, shape index: {}, may-alias: {0,1}]   ;;  %s3307_s1 = inlined_call_operand.vmem [shape: f32[8,8,32], index: 1, kind: input, shape index: {}, may-alias: {0,1}]   ;;  %s3308_s2 = inlined_call_operand.vmem [shape: f32[1,32], index: 2, kind: input, shape index: {}]   ;;  %s3309_s3 = inlined_call_operand.vmem [shape: f32[1,32], index: 3, kind: input, shape index: {}]   ;;  %s3310_s4 = inlined_call_operand.vmem [shape: f32[1,32], index: 4, kind: input, shape index: {}]   ;;  %s3311_s5 = inlined_call_operand.vmem [shape: f32[1,32], index: 5, kind: input, shape index: {}]   ;;  %s3312_s6 = inlined_call_operand.vmem [shape: f32[32,32], index: 6, kind: input, shape index: {}]   ;;  %s3313_s7 = inlined_call_operand.vmem [shape: f32[32,32], index: 7, kind: input, shape index: {}]   ;;  %s3314_s8 = inlined_call_operand.vmem [shape: f32[32,32], index: 8, kind: input, shape index: {}]   ;;  %s3315_s9 = inlined_call_operand.vmem [shape: f32[32,32], index: 9, kind: input, shape index: {}]   ;;  %s3316_s10 = inlined_call_operand.vmem [shape: f32[1,32], index: 10, kind: input, shape index: {}]   ;;  %s3317_s11 = inlined_call_operand.vmem [shape: f32[32,2], index: 11, kind: input, shape index: {}]   ;;  %s3318_s12 = inlined_call_operand.vmem [shape: f32[32,32], index: 12, kind: input, shape index: {}]   ;;  %s3319_s13 = inlined_call_operand.vmem [shape: f32[1,32], index: 13, kind: input, shape index: {}]   ;;  %s3320_s14 = inlined_call_operand.vmem [shape: f32[8,8,32], index: 14, kind: output, shape index: {}]  }
   0x1 LB: > { %s2278_s30 = sadd.s32 4294967295, %s2657_s29   ;;  %p2282_p0 = scmp.ge.s32.totalorder %s2657_s29, 1  ;;  %s2657_s29 = sphi %s2740_s29, %s24_s29  }
   0x2   : > { %p413_p1 = scmp.lt.s32.totalorder %s2657_s29, 3 }
   0x4   : > { %p414_p2 = pnand %p2282_p0, %p413_p1 }
   0x5   : > { %s2283_s15 = sshll.u32 (!%p414_p2), %s2278_s30, 2  ;;  %vm478_vm0 = vcmask (!%p414_p2), 261120   ;;  %v2787_v26 = vld [vmem:[%s3307_s1] sm:$0xff] (!%p414_p2)  ;;  %v2796_v30 = vld [vmem:[%s3307_s1 + $0x10] sm:$0xff] (!%p414_p2)  ;;  %v2801_v31 = vld [vmem:[%s3307_s1 + $0x8] sm:$0xff] (!%p414_p2)  ;;  %vm2660_vm1 = vmmov (!%p414_p2), 0  }
   0x6   : > { %417 = sbr.rel (%p414_p2) target bundleno = 2334 (0x91e), region = 76  ;;  %p460_p3 = scmp.lt.s32.totalorder (!%p414_p2), %s2283_s15, 7  ;;  %v827_v28 = vsel (!%p414_p2), %vm478_vm0, %v2787_v26, 0.0  ;;  %v833_v32 = vsel (!%p414_p2), %vm478_vm0, %v2796_v30, 0.0  ;;  %v830_v33 = vsel (!%p414_p2), %vm478_vm0, %v2801_v31, 0.0  ;;  %v2810_v34 = vld [vmem:[%s3307_s1 + $0x20] sm:$0xff] (!%p414_p2) }
   0x7   : > { %v2815_v35 = vld [vmem:[%s3307_s1 + $0x18] sm:$0xff] (!%p414_p2)  ;;  %v839_v36 = vsel (!%p414_p2), %vm478_vm0, %v2810_v34, 0.0  ;;  %v2824_v38 = vld [vmem:[%s3307_s1 + $0x30] sm:$0xff] (!%p414_p2)  ;;  %v2829_v39 = vld [vmem:[%s3307_s1 + $0x28] sm:$0xff] (!%p414_p2)  ;;  %vm1165_vm2 = vcmask (!%p414_p2), 130048   ;;  %vm1402_vm3 = vcmask (!%p414_p2), 1043456  }
   0x8   : > { %v836_v37 = vsel (!%p414_p2), %vm478_vm0, %v2815_v35, 0.0  ;;  %v845_v40 = vsel (!%p414_p2), %vm478_vm0, %v2824_v38, 0.0  ;;  %v842_v41 = vsel (!%p414_p2), %vm478_vm0, %v2829_v39, 0.0  ;;  %v2838_v42 = vld [vmem:[%s3307_s1 + $0x38] sm:$0xff] (!%p414_p2)  ;;  %v554_v44 = vld [vmem:[%s3312_s6] sm:$0xff] (!%p414_p2)  ;;  %v555_v45 = vld [vmem:[%s3312_s6 + $0x8] sm:$0xff] (!%p414_p2) }
   0x9   : > { %v848_v43 = vsel (!%p414_p2), %vm478_vm0, %v2838_v42, 0.0  ;;  %v621_v46 = vld [vmem:[%s3313_s7] sm:$0xff] (!%p414_p2)  ;;  %v558_v47 = vpack.c.bf16 (!%p414_p2), %v555_v45, %v554_v44  ;;  %v622_v48 = vld [vmem:[%s3313_s7 + $0x8] sm:$0xff] (!%p414_p2)  ;;  %v556_v50 = vld [vmem:[%s3312_s6 + $0x10] sm:$0xff] (!%p414_p2)  ;;  %vm1150_vm4 = vcmask (!%p414_p2), 1041409   ;;  %vm1152_vm5 = vcmask (!%p414_p2), 1042434  }
   0xa   : > { %v625_v49 = vpack.c.bf16 (!%p414_p2), %v622_v48, %v621_v46  ;;  %v557_v51 = vld [vmem:[%s3312_s6 + $0x18] sm:$0xff] (!%p414_p2)  ;;  %v623_v52 = vld [vmem:[%s3313_s7 + $0x10] sm:$0xff] (!%p414_p2)  ;;  %v678_v56 = vld [vmem:[%s3314_s8] sm:$0xff] (!%p414_p2)  ;;  %vm1154_vm6 = vcmask (!%p414_p2), 1043459   ;;  %vm1156_vm7 = vcmask (!%p414_p2), 1044484   ;;  %vm1158_vm8 = vcmask (!%p414_p2), 1045509  }
   0xb   : > { %2409 = vmatprep.subr.bf16.mxu0 (!%p414_p2), %v558_v47  ;;  %v559_v53 = vpack.c.bf16 (!%p414_p2), %v557_v51, %v556_v50  ;;  %v624_v54 = vld [vmem:[%s3313_s7 + $0x18] sm:$0xff] (!%p414_p2)  ;;  %v679_v57 = vld [vmem:[%s3314_s8 + $0x8] sm:$0xff] (!%p414_p2)  ;;  %v735_v58 = vld [vmem:[%s3315_s9] sm:$0xff] (!%p414_p2)  ;;  %vm1160_vm9 = vcmask (!%p414_p2), 1046534   ;;  %vm1162_vm10 = vcmask (!%p414_p2), 1047559   ;;  %vm1350_vm11 = vcmask (!%p414_p2), 64512  }
   0xc   : > { %2417 = vmatprep.subr.bf16.mxu1 (!%p414_p2), %v625_v49  ;;  %2410 = vmatpush3.bf16.msra.mxu0 (!%p414_p2), %v558_v47  ;;  %v626_v55 = vpack.c.bf16 (!%p414_p2), %v624_v54, %v623_v52  ;;  %v2875_v59 = vpack.c.bf16 (!%p414_p2), %v679_v57, %v678_v56  ;;  %v736_v60 = vld [vmem:[%s3315_s9 + $0x8] sm:$0xff] (!%p414_p2)  ;;  %v2288_v48 = vld [vmem:[%s3309_s3] ss:$0 sm:$0xff] (!%p414_p2)  ;;  %s2663_s24 = smov (!%p414_p2), 112   ;;  %s2664_s27 = smov (!%p414_p2), 16  }
   0xd   : > { %s3322_s15 = smov (!%p460_p3, %s2283_s15), 7  ;;  %2418 = vmatpush3.bf16.msra.mxu1 %v625_v49  ;;  %2411 = vmatprep.subr.bf16.mxu0 %v559_v53  ;;  %v2880_v61 = vpack.c.bf16 %v736_v60, %v735_v58 }
   0xe   : > { %s2284_s16 = sshll.u32 %s3322_s15, 3  ;;  %2419 = vmatprep.subr.bf16.mxu1 %v626_v55 }
   0xf   : > { %s2756_s19 = scalar_lea.vmem %s3306_s0, %s2284_s16  ;;  %s469_s28 = scalar_lea.vmem %s3320_s14, %s2284_s16 }
  0x10   : > { %v472_v0 = vld [vmem:[%s2756_s19] sm:$0xff]  ;;  %v474_v1 = vld [vmem:[%s2756_s19 + $0x10] sm:$0xff]  ;;  %v473_v2 = vld [vmem:[%s2756_s19 + $0x8] sm:$0xff]  ;;  %2412 = vmatpush3.bf16.msra.mxu0 %v559_v53 }
  0x11   : > { %v479_v3 = vsel %vm478_vm0, %v472_v0, 0.0  ;;  %v485_v4 = vsel %vm478_vm0, %v474_v1, 0.0  ;;  %v475_v5 = vld [vmem:[%s2756_s19 + $0x18] sm:$0xff]  ;;  %v482_v6 = vsel %vm478_vm0, %v473_v2, 0.0  ;;  %2420 = vmatpush3.bf16.msra.mxu1 %v626_v55  ;;  %2425 = vmatprep.subr.bf16.mxu0 %v2875_v59 }
  0x12   : > { %480 = vadd.xlane.f32.xlu0 %v479_v3  ;;  %486 = vadd.xlane.f32.xlu1 %v485_v4  ;;  %v488_v7 = vsel %vm478_vm0, %v475_v5, 0.0 }
  0x13   : > { %2433 = vmatprep.subr.bf16.mxu1 %v2880_v61 }
  0x16   : > { %483 = vadd.xlane.f32.xlu0 %v482_v6  ;;  %489 = vadd.xlane.f32.xlu1 %v488_v7 }
  0x9f   : > { %v481_v8 = vpop.xlane.xlu0 %480  ;;  %v487_v9 = vpop.xlane.xlu1 %486 }
  0xa0   : > { %v492_v10 = vmul.f32 0.03125, %v481_v8  ;;  %v494_v11 = vmul.f32 0.03125, %v487_v9 }
  0xa2   : > { %v2766_v12 = vsub.f32 %v472_v0, %v492_v10  ;;  %v2768_v13 = vsub.f32 %v474_v1, %v494_v11 }
  0xa3   : > { %v484_v14 = vpop.xlane.xlu0 %483  ;;  %v490_v15 = vpop.xlane.xlu1 %489 }
  0xa4   : > { %v493_v16 = vmul.f32 0.03125, %v484_v14  ;;  %v495_v17 = vmul.f32 0.03125, %v490_v15  ;;  %v500_v18 = vmul.f32 %v2766_v12, %v2766_v12  ;;  %v502_v19 = vmul.f32 %v2768_v13, %v2768_v13 }
  0xa6   : > { %v2774_v20 = vsub.f32 %v473_v2, %v493_v16  ;;  %v2776_v21 = vsub.f32 %v475_v5, %v495_v17  ;;  %v504_v22 = vsel %vm478_vm0, %v500_v18, 0.0  ;;  %v510_v23 = vsel %vm478_vm0, %v502_v19, 0.0 }
  0xa7   : > { %505 = vadd.xlane.f32.xlu0 %v504_v22 }
  0xa8   : > { %v501_v24 = vmul.f32 %v2774_v20, %v2774_v20  ;;  %v503_v25 = vmul.f32 %v2776_v21, %v2776_v21 }
  0xaa   : > { %v507_v27 = vsel %vm478_vm0, %v501_v24, 0.0  ;;  %v513_v29 = vsel %vm478_vm0, %v503_v25, 0.0 }
  0xab   : > { %511 = vadd.xlane.f32.xlu0 %v510_v23  ;;  %508 = vadd.xlane.f32.xlu1 %v507_v27 }
  0xaf   : > { %828 = vadd.xlane.f32.xlu0 %v827_v28  ;;  %514 = vadd.xlane.f32.xlu1 %v513_v29 }
  0xb3   : > { %834 = vadd.xlane.f32.xlu0 %v833_v32  ;;  %831 = vadd.xlane.f32.xlu1 %v830_v33 }
  0xb7   : > { %840 = vadd.xlane.f32.xlu0 %v839_v36  ;;  %837 = vadd.xlane.f32.xlu1 %v836_v37 }
  0xbb   : > { %846 = vadd.xlane.f32.xlu0 %v845_v40  ;;  %843 = vadd.xlane.f32.xlu1 %v842_v41 }
  0xbf   : > { %849 = vadd.xlane.f32.xlu1 %v848_v43 }
 0x134   : > { %v506_v62 = vpop.xlane.xlu0 %505 }
 0x135   : > { %v516_v63 = vmul.f32 0.03125, %v506_v62 }
 0x137   : > { %v520_v0 = vadd.f32 1e-05, %v516_v63 }
 0x138   : > { %v509_v1 = vpop.xlane.xlu1 %508  ;;  %v512_v2 = vpop.xlane.xlu0 %511 }
 0x139   : > { %2575 = vrsqrt.f32 %v520_v0  ;;  %v517_v3 = vmul.f32 0.03125, %v509_v1  ;;  %v518_v4 = vmul.f32 0.03125, %v512_v2 }
 0x13b   : > { %v521_v5 = vadd.f32 1e-05, %v517_v3  ;;  %v522_v6 = vadd.f32 1e-05, %v518_v4 }
 0x13c   : > { %v515_v7 = vpop.xlane.xlu1 %514  ;;  %v829_v8 = vpop.xlane.xlu0 %828 }
 0x13d   : > { %2577 = vrsqrt.f32 %v521_v5  ;;  %v519_v9 = vmul.f32 0.03125, %v515_v7  ;;  %v851_v10 = vmul.f32 0.03125, %v829_v8  ;;  %v681_v7 = vld [vmem:[%s3314_s8 + $0x18] sm:$0xff]  ;;  %v737_v8 = vld [vmem:[%s3315_s9 + $0x10] sm:$0xff] }
 0x13e   : > { %2579 = vrsqrt.f32 %v522_v6  ;;  %v680_v6 = vld [vmem:[%s3314_s8 + $0x10] sm:$0xff] }
 0x13f   : > { %v523_v11 = vadd.f32 1e-05, %v519_v9  ;;  %v2885_v14 = vsub.f32 %v2787_v26, %v851_v10  ;;  %v2287_v26 = vld [vmem:[%s3308_s2] ss:$0 sm:$0xff]  ;;  %v738_v9 = vld [vmem:[%s3315_s9 + $0x18] sm:$0xff] }
 0x140   : > { %v832_v15 = vpop.xlane.xlu1 %831  ;;  %v835_v16 = vpop.xlane.xlu0 %834 }
 0x141   : > { %2581 = vrsqrt.f32 %v523_v11  ;;  %v852_v17 = vmul.f32 0.03125, %v832_v15  ;;  %v853_v18 = vmul.f32 0.03125, %v835_v16  ;;  %v867_v19 = vmul.f32 %v2885_v14, %v2885_v14 }
 0x142   : > { %v683_v15 = vpack.c.bf16 %v681_v7, %v680_v6  ;;  %v740_v16 = vpack.c.bf16 %v738_v9, %v737_v8 }
 0x143   : > { %v2576_v22 = vpop.eup %2575  ;;  %v2890_v23 = vsub.f32 %v2801_v31, %v852_v17  ;;  %v2893_v24 = vsub.f32 %v2796_v30, %v853_v18  ;;  %v875_v25 = vsel %vm478_vm0, %v867_v19, 0.0  ;;  %v963_v17 = vld [vmem:[%s3317_s11] sm:$0xff]  ;;  %v966_v19 = vld [vmem:[%s3317_s11 + $0x18] sm:$0xff] }
 0x144   : > { %v528_v27 = vmul.f32 %v2576_v22, %v2766_v12  ;;  %v838_v28 = vpop.xlane.xlu1 %837  ;;  %876 = vadd.xlane.f32.xlu0 %v875_v25  ;;  %v841_v29 = vpop.xlane.xlu0 %840  ;;  %v2659_v25 = vmov 0.0  }
 0x145   : > { %v854_v32 = vmul.f32 0.03125, %v838_v28  ;;  %v855_v33 = vmul.f32 0.03125, %v841_v29  ;;  %v868_v31 = vmul.f32 %v2890_v23, %v2890_v23  ;;  %v869_v30 = vmul.f32 %v2893_v24, %v2893_v24 }
 0x146   : > { %v538_v36 = vmul.f32 %v2287_v26, %v528_v27 }
 0x147   : > { %v2578_v37 = vpop.eup %2577  ;;  %v2905_v40 = vsub.f32 %v2815_v35, %v854_v32  ;;  %v2908_v41 = vsub.f32 %v2810_v34, %v855_v33  ;;  %v878_v12 = vsel %vm478_vm0, %v868_v31, 0.0  ;;  %v881_v43 = vsel %vm478_vm0, %v869_v30, 0.0 }
 0x148   : > { %v2580_v44 = vpop.eup %2579  ;;  %v529_v45 = vmul.f32 %v2578_v37, %v2774_v20  ;;  %879 = vadd.xlane.f32.xlu1 %v878_v12  ;;  %v844_v46 = vpop.xlane.xlu1 %843  ;;  %882 = vadd.xlane.f32.xlu0 %v881_v43  ;;  %v548_v56 = vadd.f32 %v2288_v48, %v538_v36 }
 0x149   : > { %v847_v47 = vpop.xlane.xlu0 %846  ;;  %v530_v35 = vmul.f32 %v2580_v44, %v2768_v13  ;;  %v856_v49 = vmul.f32 0.03125, %v844_v46  ;;  %v870_v50 = vmul.f32 %v2905_v40, %v2905_v40  ;;  %v871_v51 = vmul.f32 %v2908_v41, %v2908_v41 }
 0x14a   : > { %v857_v34 = vmul.f32 0.03125, %v847_v47  ;;  %v539_v52 = vmul.f32 %v2287_v26, %v529_v45 }
 0x14b   : > { %v2582_v20 = vpop.eup %2581  ;;  %v2922_v53 = vsub.f32 %v2829_v39, %v856_v49  ;;  %v884_v55 = vsel %vm478_vm0, %v870_v50, 0.0  ;;  %v887_v58 = vsel %vm478_vm0, %v871_v51, 0.0  ;;  %v540_v62 = vmul.f32 %v2287_v26, %v530_v35 }
 0x14c   : > { %v2925_v54 = vsub.f32 %v2824_v38, %v857_v34  ;;  %v531_v13 = vmul.f32 %v2582_v20, %v2776_v21  ;;  %885 = vadd.xlane.f32.xlu1 %v884_v55  ;;  %v850_v57 = vpop.xlane.xlu1 %849  ;;  %v549_v60 = vadd.f32 %v2288_v48, %v539_v52  ;;  %888 = vadd.xlane.f32.xlu0 %v887_v58 }
 0x14d   : > { %v858_v63 = vmul.f32 0.03125, %v850_v57  ;;  %v872_v39 = vmul.f32 %v2922_v53, %v2922_v53  ;;  %v550_v4 = vadd.f32 %v2288_v48, %v540_v62 }
 0x14e   : > { %v873_v38 = vmul.f32 %v2925_v54, %v2925_v54  ;;  %v552_v0 = vpack.c.bf16 %v549_v60, %v548_v56  ;;  %v541_v1 = vmul.f32 %v2287_v26, %v531_v13  ;;  %v2661_v26 = vmov 0   ;;  %v2298_v56 = vld [vmem:[%s3310_s4] ss:$0 sm:$0xff] }
 0x14f   : > { %v2935_v2 = vsub.f32 %v2838_v42, %v858_v63  ;;  %v890_v21 = vsel %vm478_vm0, %v872_v39, 0.0  ;;  %2572 = vset.pattern.permute.xlu1 %v2661_v26  ;;  %2571 = vset.pattern.permute.xlu0 %v2661_v26 }
 0x150   : > { %v893_v3 = vsel %vm478_vm0, %v873_v38, 0.0  ;;  %891 = vadd.xlane.f32.xlu1 %v890_v21  ;;  %2413 = vmatprep.mubr.msk.bf16.mxu0 %vm478_vm0, %v552_v0  ;;  %v551_v5 = vadd.f32 %v2288_v48, %v541_v1 }
 0x151   : > { %2421 = vmatprep.mubr.msk.bf16.mxu1 %vm478_vm0, %v552_v0  ;;  %894 = vadd.xlane.f32.xlu0 %v893_v3  ;;  %v874_v42 = vmul.f32 %v2935_v2, %v2935_v2 }
 0x152   : > { %v553_v10 = vpack.c.bf16 %v551_v5, %v550_v4 }
 0x153   : > { %v896_v11 = vsel %vm478_vm0, %v874_v42, 0.0 }
 0x154   : > { %897 = vadd.xlane.f32.xlu1 %v896_v11  ;;  %2414 = vmatmul.mubr.msk.bf16.vlgmr.msra.gmra.mrb[0].mxu0 %vm478_vm0, %v553_v10 }
 0x155   : > { %2422 = vmatmul.mubr.msk.bf16.vlgmr.msra.gmra.mrb[0].mxu1 %vm478_vm0, %v553_v10  ;;  %2426 = vmatpush3.bf16.msra.mxu0 %v2875_v59  ;;  %v964_v59 = vld [vmem:[%s3317_s11 + $0x8] sm:$0xff] }
 0x156   : > { %2429 = vmatprep.mubr.msk.bf16.mxu0 %vm478_vm0, %v552_v0  ;;  %2434 = vmatpush3.bf16.msra.mxu1 %v2880_v61  ;;  %v967_v18 = vpack.c.bf16 %v964_v59, %v963_v17  ;;  %v965_v61 = vld [vmem:[%s3317_s11 + $0x10] sm:$0xff] }
 0x157   : > { %2437 = vmatprep.mubr.msk.bf16.mxu1 %vm478_vm0, %v552_v0  ;;  %2427 = vmatprep.subr.bf16.mxu0 %v683_v15  ;;  %v968_v22 = vpack.c.bf16 %v966_v19, %v965_v61 }
 0x158   : > { %2435 = vmatprep.subr.bf16.mxu1 %v740_v16 }
 0x159   : > { %2428 = vmatpush3.bf16.msra.mxu0 %v683_v15 }
 0x15a   : > { %2436 = vmatpush3.bf16.msra.mxu1 %v740_v16  ;;  %2441 = vmatprep.subr.bf16.mxu0 %v967_v18 }
 0x15b   : > { %2453 = vmatprep.subr.bf16.mxu1 %v2659_v25 }
 0x15c   : > { %2430 = vmatmul.mubr.msk.bf16.vlgmr.msra.gmra.mrb[4].mxu0 %vm478_vm0, %v553_v10 }
 0x15d   : > { %2438 = vmatmul.mubr.msk.bf16.vlgmr.msra.gmra.mrb[4].mxu1 %vm478_vm0, %v553_v10  ;;  %2442 = vmatpush3.bf16.msra.mxu0 %v967_v18 }
 0x15e   : > { %2443 = vmatprep.subr.bf16.mxu0 %v968_v22  ;;  %2455 = vmatprep.mubr.msk.bf16.mxu1 %vm2660_vm1, %v2659_v25 }
 0x161   : > { %2444 = vmatpush3.bf16.msra.mxu0 %v968_v22 }
 0x162   : > { %2465 = vmatprep.subr.bf16.mxu0 %v2659_v25 }
 0x1d1   : > { %v877_v27 = vpop.xlane.xlu0 %876 }
 0x1d2   : > { %v899_v28 = vmul.f32 0.03125, %v877_v27 }
 0x1d4   : > { %v907_v29 = vadd.f32 1e-05, %v899_v28 }
 0x1d5   : > { %v880_v32 = vpop.xlane.xlu1 %879  ;;  %v883_v33 = vpop.xlane.xlu0 %882 }
 0x1d6   : > { %2583 = vrsqrt.f32 %v907_v29  ;;  %v900_v31 = vmul.f32 0.03125, %v880_v32  ;;  %v901_v30 = vmul.f32 0.03125, %v883_v33 }
 0x1d8   : > { %v908_v36 = vadd.f32 1e-05, %v900_v31  ;;  %v909_v37 = vadd.f32 1e-05, %v901_v30 }
 0x1d9   : > { %v886_v12 = vpop.xlane.xlu1 %885  ;;  %v889_v44 = vpop.xlane.xlu0 %888 }
 0x1da   : > { %2585 = vrsqrt.f32 %v908_v36  ;;  %v902_v43 = vmul.f32 0.03125, %v886_v12  ;;  %v903_v45 = vmul.f32 0.03125, %v889_v44 }
 0x1db   : > { %2587 = vrsqrt.f32 %v909_v37 }
 0x1dc   : > { %v910_v46 = vadd.f32 1e-05, %v902_v43  ;;  %v911_v47 = vadd.f32 1e-05, %v903_v45 }
 0x1dd   : > { %v892_v48 = vpop.xlane.xlu1 %891 }
 0x1de   : > { %2589 = vrsqrt.f32 %v910_v46  ;;  %v904_v35 = vmul.f32 0.03125, %v892_v48  ;;  %v895_v49 = vpop.xlane.xlu0 %894 }
 0x1df   : > { %2591 = vrsqrt.f32 %v911_v47  ;;  %v905_v34 = vmul.f32 0.03125, %v895_v49 }
 0x1e0   : > { %v2584_v50 = vpop.eup %2583  ;;  %v912_v51 = vadd.f32 1e-05, %v904_v35 }
 0x1e1   : > { %v923_v52 = vmul.f32 %v2584_v50, %v2885_v14  ;;  %v913_v20 = vadd.f32 1e-05, %v905_v34  ;;  %v898_v55 = vpop.xlane.xlu1 %897  ;;  %v2299_v14 = vld [vmem:[%s3311_s5] ss:$0 sm:$0xff] }
 0x1e2   : > { %2593 = vrsqrt.f32 %v912_v51  ;;  %v906_v13 = vmul.f32 0.03125, %v898_v55 }
 0x1e3   : > { %2595 = vrsqrt.f32 %v913_v20  ;;  %v937_v63 = vmul.f32 %v2298_v56, %v923_v52 }
 0x1e4   : > { %v2586_v57 = vpop.eup %2585  ;;  %v914_v58 = vadd.f32 1e-05, %v906_v13 }
 0x1e5   : > { %v2588_v60 = vpop.eup %2587  ;;  %v924_v62 = vmul.f32 %v2586_v57, %v2890_v23  ;;  %v951_v4 = vadd.f32 %v2299_v14, %v937_v63 }
 0x1e6   : > { %v925_v39 = vmul.f32 %v2588_v60, %v2893_v24  ;;  %2597 = vrsqrt.f32 %v914_v58 }
 0x1e7   : > { %v938_v38 = vmul.f32 %v2298_v56, %v924_v62 }
 0x1e8   : > { %v2590_v0 = vpop.eup %2589  ;;  %v939_v21 = vmul.f32 %v2298_v56, %v925_v39 }
 0x1e9   : > { %v2592_v1 = vpop.eup %2591  ;;  %v926_v3 = vmul.f32 %v2590_v0, %v2905_v40  ;;  %v952_v5 = vadd.f32 %v2299_v14, %v938_v38 }
 0x1ea   : > { %v927_v6 = vmul.f32 %v2592_v1, %v2908_v41  ;;  %v953_v9 = vadd.f32 %v2299_v14, %v939_v21 }
 0x1eb   : > { %v940_v7 = vmul.f32 %v2298_v56, %v926_v3  ;;  %v959_v23 = vpack.c.bf16 %v952_v5, %v951_v4 }
 0x1ec   : > { %v2594_v42 = vpop.eup %2593  ;;  %v941_v11 = vmul.f32 %v2298_v56, %v927_v6 }
 0x1ed   : > { %v2596_v8 = vpop.eup %2595  ;;  %v928_v24 = vmul.f32 %v2594_v42, %v2922_v53  ;;  %2445 = vmatprep.mubr.msk.bf16.mxu0 %vm478_vm0, %v959_v23  ;;  %v954_v10 = vadd.f32 %v2299_v14, %v940_v7 }
 0x1ee   : > { %v929_v15 = vmul.f32 %v2596_v8, %v2925_v54  ;;  %v955_v41 = vadd.f32 %v2299_v14, %v941_v11 }
 0x1ef   : > { %v960_v16 = vpack.c.bf16 %v954_v10, %v953_v9  ;;  %v942_v17 = vmul.f32 %v2298_v56, %v928_v24 }
 0x1f0   : > { %v2598_v40 = vpop.eup %2597  ;;  %v943_v61 = vmul.f32 %v2298_v56, %v929_v15 }
 0x1f1   : > { %v930_v59 = vmul.f32 %v2598_v40, %v2935_v2  ;;  %2446 = vmatmul.mubr.msk.bf16.vlgmr.msra.gmra.mrb[8].mxu0 %vm478_vm0, %v960_v16  ;;  %v956_v18 = vadd.f32 %v2299_v14, %v942_v17 }
 0x1f2   : > { %v957_v53 = vadd.f32 %v2299_v14, %v943_v61 }
 0x1f3   : > { %v961_v19 = vpack.c.bf16 %v956_v18, %v955_v41  ;;  %v944_v22 = vmul.f32 %v2298_v56, %v930_v59 }
 0x1f5   : > { %2449 = vmatprep.mubr.msk.bf16.mxu0 %vm478_vm0, %v961_v19  ;;  %v958_v26 = vadd.f32 %v2299_v14, %v944_v22 }
 0x1f7   : > { %v962_v27 = vpack.c.bf16 %v958_v26, %v957_v53  ;;  %v1116_v26 = vlaneseq }
 0x1f9   : > { %2450 = vmatmul.mubr.msk.bf16.gmra.mrb[12].mxu0 %vm478_vm0, %v962_v27 }
 0x1fa   : > { %2467 = vmatprep.mubr.msk.bf16.mxu0 %vm2660_vm1, %v2659_v25 }
 0x227   : > { %v2415_v54 = vpop.f32.mrb[0].mxu0 }
 0x228   : > { %v2423_v28 = vpop.f32.mrb[0].mxu1  ;;  %v600_v2 = vpop.f32.mrb[1].mxu0  ;;  %v617_v44 = vmul.f32 0.25, %v2415_v54  ;;  %v1117_v54 = vand.u32 127, %v1116_v26 }
 0x229   : > { %v3000_v29 = vpack.c.bf16 %v2423_v28, %v2423_v28  ;;  %v661_v32 = vpop.f32.mrb[1].mxu1  ;;  %v2416_v33 = vpop.f32.mrb[2].mxu0  ;;  %v615_v45 = vmul.f32 0.25, %v600_v2  ;;  %v1119_v28 = vshrl.u32 %v1116_v26, 7 }
 0x22a   : > { %v3002_v31 = vpack.c.bf16 %v661_v32, %v661_v32  ;;  %v2424_v30 = vpop.f32.mrb[2].mxu1  ;;  %v603_v36 = vpop.f32.mrb[3].mxu0  ;;  %v3016_v49 = vpack.c.bf16 %v617_v44, %v617_v44  ;;  %v618_v39 = vmul.f32 0.25, %v2416_v33 }
 0x22b   : > { %v1262_v37 = vsel %vm1165_vm2, %v3000_v29, 0  ;;  %v664_v12 = vpop.f32.mrb[3].mxu1  ;;  %v3024_v52 = vpack.c.bf16 %v615_v45, %v615_v45  ;;  %v616_v58 = vmul.f32 0.25, %v603_v36  ;;  %v3044_v60 = vpack.c.bf16 %v2424_v30, %v2424_v30 }
 0x22c   : > { %v1170_v43 = vsel %vm1165_vm2, %v3002_v31, 0  ;;  %2466 = vmatpush3.bf16.xpose.msra.mxu0 %v1262_v37  ;;  %v3012_v47 = vpack.c.bf16 %v664_v12, %v664_v12  ;;  %v3057_v38 = vpack.c.bf16 %v618_v39, %v618_v39  ;;  %v3090_v32 = vsub.s32 %v1117_v54, %v1119_v28 }
 0x22d   : > { %2454 = vmatpush3.bf16.xpose.msra.mxu1 %v1170_v43  ;;  %2477 = vmatprep.subr.bf16.mxu0 %v2659_v25  ;;  %v3046_v62 = vpack.c.bf16 %v616_v58, %v616_v58  ;;  %v1308_v63 = vsel %vm1165_vm2, %v3044_v60, 0 }
 0x22e   : > { %2459 = vmatprep.subr.bf16.mxu1 %v2659_v25  ;;  %v1216_v57 = vsel %vm1165_vm2, %v3012_v47, 0 }
 0x22f   : > { %v3010_v46 = vpop.f32.mrb[4].mxu0 }
 0x230   : > { %v3014_v48 = vpop.f32.mrb[4].mxu1  ;;  %v718_v35 = vpop.f32.mrb[5].mxu0 }
 0x231   : > { %v3018_v34 = vpack.c.bf16 %v718_v35, %v718_v35  ;;  %v3020_v50 = vpop.f32.mrb[5].mxu1  ;;  %v3022_v51 = vpop.f32.mrb[6].mxu0 }
 0x232   : > { %v3026_v20 = vpop.f32.mrb[6].mxu1  ;;  %v721_v55 = vpop.f32.mrb[7].mxu0 }
 0x233   : > { %v1404_v56 = vsel %vm1402_vm3, %v3018_v34, 0  ;;  %v3030_v13 = vpop.f32.mrb[7].mxu1  ;;  %2468 = vmatmul.mubr.msk.bf16.vlgmr.msra.gmra.mrb[16].mxu0 %vm1165_vm2, %v3016_v49  ;;  %v3055_v14 = vpack.c.bf16 %v721_v55, %v721_v55 }
 0x234   : > { %2456 = vmatmul.mubr.msk.bf16.vlgmr.msra.gmra.mrb[8].mxu1 %vm1165_vm2, %v3024_v52  ;;  %2478 = vmatpush3.bf16.msra.mxu0 %v1404_v56 }
 0x235   : > { %2460 = vmatpush3.bf16.xpose.msra.mxu1 %v1216_v57  ;;  %2461 = vmatprep.mubr.msk.bf16.mxu1 %vm2660_vm1, %v2659_v25  ;;  %v1450_v0 = vsel %vm1402_vm3, %v3055_v14, 0 }
 0x236   : > { %2471 = vmatprep.subr.bf16.mxu1 %v2659_v25  ;;  %2479 = vmatprep.mubr.msk.bf16.mxu0 %vm2660_vm1, %v2659_v25 }
 0x237   : > { %2489 = vmatprep.subr.bf16.mxu0 %v2659_v25 }
 0x23c   : > { %2462 = vmatmul.mubr.msk.bf16.vlgmr.msra.gmra.mrb[12].mxu1 %vm1165_vm2, %v3046_v62 }
 0x23d   : > { %2472 = vmatpush3.bf16.xpose.msra.mxu1 %v1308_v63  ;;  %2473 = vmatprep.mubr.msk.bf16.mxu1 %vm2660_vm1, %v2659_v25 }
 0x23e   : > { %2483 = vmatprep.subr.bf16.mxu1 %v2659_v25 }
 0x244   : > { %2474 = vmatmul.mubr.msk.bf16.vlgmr.msra.gmra.mrb[16].mxu1 %vm1165_vm2, %v3057_v38 }
 0x245   : > { %2484 = vmatpush3.bf16.msra.mxu1 %v1450_v0  ;;  %2485 = vmatprep.mubr.msk.bf16.mxu1 %vm2660_vm1, %v2659_v25 }
 0x246   : > { %2495 = vmatprep.subr.bf16.mxu1 %v2659_v25 }
 0x2c4   : > { %v3066_v1 = vpop.f32.mrb[8].mxu0 }
 0x2c5   : > { %1099 = vperm.xlu1 %2572, %v3066_v1   ;;  %v3069_v21 = vpop.f32.mrb[9].mxu0 }
 0x2c6   : > { %1093 = vperm.xlu0 %2571, %v3069_v21   ;;  %v3072_v3 = vpop.f32.mrb[10].mxu0 }
 0x2c7   : > { %v3074_v4 = vpop.f32.mrb[11].mxu0 }
 0x2c9   : > { %1102 = vperm.xlu1 %2572, %v3072_v3  }
 0x2cc   : > { %v3077_v5 = vpop.f32.mrb[12].mxu0 }
 0x2cd   : > { %1096 = vperm.xlu1 %2572, %v3074_v4   ;;  %v3080_v6 = vpop.f32.mrb[13].mxu0 }
 0x2ce   : > { %v3082_v7 = vpop.f32.mrb[14].mxu0 }
 0x2cf   : > { %v3084_v23 = vpop.f32.mrb[15].mxu0 }
 0x2d1   : > { %1111 = vperm.xlu1 %2572, %v3077_v5  }
 0x2d5   : > { %1105 = vperm.xlu1 %2572, %v3080_v6  }
 0x2d9   : > { %1108 = vperm.xlu1 %2572, %v3084_v23  }
 0x2dd   : > { %1114 = vperm.xlu1 %2572, %v3082_v7  }
 0x306   : > { %v1298_v42 = vpop.f32.mrb[16].mxu0 }
 0x307   : > { %v1206_v8 = vpop.f32.mrb[8].mxu1  ;;  %v2469_v24 = vpop.f32.mrb[17].mxu0 }
 0x308   : > { %v2457_v9 = vpop.f32.mrb[9].mxu1  ;;  %v1301_v10 = vpop.f32.mrb[18].mxu0 }
 0x309   : > { %v1209_v11 = vpop.f32.mrb[10].mxu1  ;;  %v2470_v15 = vpop.f32.mrb[19].mxu0 }
 0x30a   : > { %v2458_v16 = vpop.f32.mrb[11].mxu1 }
 0x30f   : > { %v1252_v17 = vpop.f32.mrb[12].mxu1 }
 0x310   : > { %v2463_v40 = vpop.f32.mrb[13].mxu1 }
 0x311   : > { %v1255_v59 = vpop.f32.mrb[14].mxu1 }
 0x312   : > { %v2464_v41 = vpop.f32.mrb[15].mxu1 }
 0x317   : > { %v1344_v18 = vpop.f32.mrb[16].mxu1 }
 0x318   : > { %v2475_v61 = vpop.f32.mrb[17].mxu1 }
 0x319   : > { %v1347_v19 = vpop.f32.mrb[18].mxu1 }
 0x31a   : > { %v2476_v22 = vpop.f32.mrb[19].mxu1 }
 0x344   : > { %v1100_v53 = vpop.permute.xlu1 %1099 }
 0x345   : > { %v1094_v33 = vpop.permute.xlu0 %1093  ;;  %v1129_v43 = vrot.slane %v1100_v53, %v3090_v32  ;;  %v2662_v53 = vmov 1  }
 0x346   : > { %v1121_v37 = vrot.slane %v1094_v33, %v3090_v32  ;;  %2574 = vset.pattern.permute.xlu0 %v2662_v53  ;;  %2573 = vset.pattern.permute.xlu1 %v2662_v53 }
 0x348   : > { %v1103_v27 = vpop.permute.xlu1 %1102 }
 0x349   : > { %v1133_v55 = vrot.slane %v1103_v27, %v3090_v32 }
 0x34c   : > { %v1097_v2 = vpop.permute.xlu1 %1096 }
 0x34d   : > { %v1125_v30 = vrot.slane %v1097_v2, %v3090_v32 }
 0x34f   : > { %v1151_v12 = vsel %vm1150_vm4, %v1125_v30, %v1121_v37 }
 0x350   : > { %v1112_v36 = vpop.permute.xlu1 %1111  ;;  %v1153_v45 = vsel %vm1152_vm5, %v1129_v43, %v1151_v12 }
 0x351   : > { %v1155_v57 = vsel %vm1154_vm6, %v1133_v55, %v1153_v45  ;;  %v1145_v0 = vrot.slane %v1112_v36, %v3090_v32 }
 0x354   : > { %v1106_v44 = vpop.permute.xlu1 %1105 }
 0x355   : > { %v1137_v35 = vrot.slane %v1106_v44, %v3090_v32 }
 0x357   : > { %v1157_v63 = vsel %vm1156_vm7, %v1137_v35, %v1155_v57 }
 0x358   : > { %v1109_v56 = vpop.permute.xlu1 %1108 }
 0x359   : > { %v1141_v58 = vrot.slane %v1109_v56, %v3090_v32 }
 0x35b   : > { %v1159_v39 = vsel %vm1158_vm8, %v1141_v58, %v1157_v63 }
 0x35c   : > { %v1115_v24 = vpop.permute.xlu1 %1114  ;;  %v1161_v10 = vsel %vm1160_vm9, %v1145_v0, %v1159_v39 }
 0x35d   : > { %v1149_v9 = vrot.slane %v1115_v24, %v3090_v32 }
 0x35f   : > { %v1163_v11 = vsel %vm1162_vm10, %v1149_v9, %v1161_v10 }
 0x360   : > { %v1253_v15 = vadd.f32 %v1252_v17, %v1163_v11  ;;  %v1207_v16 = vadd.f32 %v1206_v8, %v1163_v11  ;;  %v1299_v41 = vadd.f32 %v1298_v42, %v1163_v11  ;;  %v1345_v61 = vadd.f32 %v1344_v18, %v1163_v11 }
 0x362   : > { %v1354_v40 = vsel %vm1350_vm11, %v1253_v15, -inf  ;;  %v1351_v59 = vsel %vm1350_vm11, %v1207_v16, -inf  ;;  %v1357_v19 = vsel %vm1350_vm11, %v1299_v41, -inf  ;;  %v1360_v22 = vsel %vm1350_vm11, %v1345_v61, -inf }
 0x363   : > { %1355 = vmax.xlane.f32.xlu0 %v1354_v40  ;;  %1352 = vmax.xlane.f32.xlu1 %v1351_v59 }
 0x367   : > { %1358 = vmax.xlane.f32.xlu0 %v1357_v19  ;;  %1361 = vmax.xlane.f32.xlu1 %v1360_v22 }
 0x3f0   : > { %v1356_v26 = vpop.xlane.xlu0 %1355  ;;  %v1353_v17 = vpop.xlane.xlu1 %1352 }
 0x3f1   : > { %v1364_v8 = vsub.f32 %v1253_v15, %v1356_v26  ;;  %v1363_v27 = vsub.f32 %v1207_v16, %v1353_v17 }
 0x3f3   : > { %v1369_v54 = vmul.f32 1.442695, %v1364_v8  ;;  %v1367_v28 = vmul.f32 1.442695, %v1363_v27 }
 0x3f4   : > { %v1359_v2 = vpop.xlane.xlu0 %1358  ;;  %v1362_v44 = vpop.xlane.xlu1 %1361 }
 0x3f5   : > { %2599 = vpow2.f32 %v1369_v54  ;;  %v1365_v42 = vsub.f32 %v1299_v41, %v1359_v2  ;;  %v1366_v45 = vsub.f32 %v1345_v61, %v1362_v44  ;;  %v2295_v61 = vld [vmem:[%s3316_s10] ss:$0 sm:$0xff] }
 0x3f6   : > { %2601 = vpow2.f32 %v1367_v28  ;;  %v786_v19 = vadd.f32 %v2295_v61, %v3030_v13  ;;  %v783_v22 = vadd.f32 %v2295_v61, %v3020_v50  ;;  %v791_v8 = vadd.f32 %v3014_v48, %v2295_v61 }
 0x3f7   : > { %v1371_v18 = vmul.f32 1.442695, %v1365_v42  ;;  %v1373_v35 = vmul.f32 1.442695, %v1366_v45 }
 0x3f8   : > { %v798_v53 = vsub.f32 0.0, %v786_v19  ;;  %v797_v26 = vsub.f32 0.0, %v783_v22  ;;  %v799_v54 = vsub.f32 0.0, %v791_v8 }
 0x3f9   : > { %2603 = vpow2.f32 %v1371_v18 }
 0x3fa   : > { %2605 = vpow2.f32 %v1373_v35  ;;  %v803_v17 = vmul.f32 1.442695, %v798_v53  ;;  %v801_v27 = vmul.f32 1.442695, %v797_v26  ;;  %v805_v28 = vmul.f32 1.442695, %v799_v54 }
 0x3ff   : > { %v2600_v33 = vpop.eup %2599 }
 0x400   : > { %v2602_v30 = vpop.eup %2601  ;;  %v1378_v36 = vsel %vm1350_vm11, %v2600_v33, 0.0 }
 0x401   : > { %1379 = vadd.xlane.f32.xlu1 %v1378_v36  ;;  %v1375_v37 = vsel %vm1350_vm11, %v2602_v30, 0.0 }
 0x402   : > { %1376 = vadd.xlane.f32.xlu0 %v1375_v37 }
 0x403   : > { %v2604_v12 = vpop.eup %2603 }
 0x404   : > { %v1381_v43 = vsel %vm1350_vm11, %v2604_v12, 0.0 }
 0x406   : > { %1382 = vadd.xlane.f32.xlu0 %v1381_v43 }
 0x412   : > { %1708 = vrot.lane.b32.xlu1 %v3012_v47, %s2663_s24  ;;  %v2606_v47 = vpop.eup %2605 }
 0x41c   : > { %1594 = vrot.lane.b32.xlu0 %v3002_v31, %s2663_s24  ;;  %v1384_v31 = vsel %vm1350_vm11, %v2606_v47, 0.0 }
 0x420   : > { %1706 = vrot.lane.b32.xlu0 %v3046_v62, %s2663_s24 }
 0x424   : > { %1808 = vrot.lane.b32.xlu0 %v3044_v60, %s2663_s24 }
 0x428   : > { %1806 = vrot.lane.b32.xlu0 %v3057_v38, %s2663_s24 }
 0x42c   : > { %1600 = vperm.xlu0 %2574, %v3074_v4  }
 0x430   : > { %1609 = vperm.xlu0 %2574, %v3080_v6  }
 0x434   : > { %1615 = vperm.xlu0 %2574, %v3077_v5  }
 0x436   : > { %1385 = vadd.xlane.f32.xlu1 %v1384_v31 }
 0x447   : > { %1592 = vrot.lane.b32.xlu1 %v3024_v52, %s2663_s24 }
 0x44b   : > { %1758 = vrot.lane.b32.xlu1 %v3000_v29, %s2663_s24 }
 0x44f   : > { %1756 = vrot.lane.b32.xlu1 %v3016_v49, %s2663_s24  ;;  %v3141_v49 = vpack.c.bf16 %v3022_v51, %v3022_v51 }
 0x453   : > { %1597 = vperm.xlu1 %2573, %v3069_v21  }
 0x457   : > { %1603 = vperm.xlu1 %2573, %v3066_v1   ;;  %v3145_v1 = vpack.c.bf16 %v3010_v46, %v3010_v46 }
 0x45b   : > { %1606 = vperm.xlu1 %2573, %v3072_v3  }
 0x45f   : > { %1612 = vperm.xlu1 %2573, %v3084_v23   ;;  %v1496_v23 = vsel %vm1402_vm3, %v3145_v1, 0 }
 0x463   : > { %1618 = vperm.xlu1 %2573, %v3082_v7   ;;  %v1542_v7 = vsel %vm1402_vm3, %v3141_v49, 0 }
 0x48e   : > { %v1380_v60 = vpop.xlane.xlu1 %1379 }
 0x48f   : > { %v1377_v62 = vpop.xlane.xlu0 %1376  ;;  %2607 = vrcp.f32 %v1380_v60 }
 0x490   : > { %2609 = vrcp.f32 %v1377_v62 }
 0x492   : > { %v1709_v57 = vpop.permute.xlu1 %1708 }
 0x493   : > { %v1383_v52 = vpop.xlane.xlu0 %1382  ;;  %v1714_v15 = vsel %vm1165_vm2, %v1709_v57, 0 }
 0x494   : > { %2611 = vrcp.f32 %v1383_v52 }
 0x497   : > { %v1595_v51 = vpop.permute.xlu0 %1594 }
 0x498   : > { %v1664_v56 = vsel %vm1165_vm2, %v1595_v51, 0 }
 0x499   : > { %v2608_v29 = vpop.eup %2607 }
 0x49a   : > { %v2610_v38 = vpop.eup %2609  ;;  %v1392_v21 = vmul.f32 %v2608_v29, %v2600_v33 }
 0x49b   : > { %v1391_v3 = vmul.f32 %v2610_v38, %v2602_v30  ;;  %v1707_v11 = vpop.permute.xlu0 %1706 }
 0x49c   : > { %v1396_v4 = vpack.c.bf16 %v1392_v21, %v1392_v21 }
 0x49d   : > { %v1395_v5 = vpack.c.bf16 %v1391_v3, %v1391_v3 }
 0x49e   : > { %v2612_v6 = vpop.eup %2611  ;;  %2486 = vmatmul.mubr.msk.bf16.vlgmr.msra.gmra.mrb[20].mxu1 %vm1350_vm11, %v1396_v4 }
 0x49f   : > { %2480 = vmatmul.mubr.msk.bf16.vlgmr.msra.gmra.mrb[20].mxu0 %vm1350_vm11, %v1395_v5  ;;  %2496 = vmatpush3.bf16.msra.mxu1 %v1542_v7  ;;  %v1393_v46 = vmul.f32 %v2612_v6, %v2604_v12  ;;  %v1809_v40 = vpop.permute.xlu0 %1808  ;;  %v794_v5 = vadd.f32 %v3026_v20, %v2295_v61 }
 0x4a0   : > { %2490 = vmatpush3.bf16.msra.mxu0 %v1496_v23  ;;  %2491 = vmatprep.mubr.msk.bf16.mxu0 %vm2660_vm1, %v2659_v25  ;;  %v1814_v59 = vsel %vm1165_vm2, %v1809_v40, 0 }
 0x4a1   : > { %2501 = vmatprep.subr.bf16.mxu0 %v2659_v25  ;;  %2497 = vmatprep.mubr.msk.bf16.mxu1 %vm2660_vm1, %v2659_v25  ;;  %v1397_v55 = vpack.c.bf16 %v1393_v46, %v1393_v46  ;;  %v800_v7 = vsub.f32 0.0, %v794_v5 }
 0x4a2   : > { %2507 = vmatprep.subr.bf16.mxu1 %v2659_v25 }
 0x4a3   : > { %v1807_v41 = vpop.permute.xlu0 %1806  ;;  %v807_v23 = vmul.f32 1.442695, %v800_v7 }
 0x4a7   : > { %2492 = vmatmul.mubr.msk.bf16.vlgmr.msra.gmra.mrb[24].mxu0 %vm1350_vm11, %v1397_v55 }
 0x4a8   : > { %2503 = vmatprep.mubr.msk.bf16.mxu0 %vm2660_vm1, %v2659_v25 }
 0x4a9   : > { %2502 = vmatpush3.bf16.xpose.msra.mxu0 %v1664_v56 }
 0x4aa   : > { %2513 = vmatprep.subr.bf16.mxu0 %v2659_v25 }
 0x4ab   : > { %v1601_v51 = vpop.permute.xlu0 %1600 }
 0x4c3   : > { %v1386_v58 = vpop.xlane.xlu1 %1385 }
 0x4c4   : > { %2613 = vrcp.f32 %v1386_v58  ;;  %v1627_v58 = vrot.slane %v1601_v51, %v3090_v32 }
 0x4c5   : > { %2615 = vpow2.f32 %v803_v17 }
 0x4c6   : > { %2617 = vpow2.f32 %v801_v27 }
 0x4c7   : > { %v1593_v63 = vpop.permute.xlu1 %1592  ;;  %2619 = vpow2.f32 %v805_v28 }
 0x4c8   : > { %2504 = vmatmul.mubr.msk.bf16.vlgmr.msra.gmra.mrb[28].mxu0 %vm1165_vm2, %v1593_v63  ;;  %v1610_v63 = vpop.permute.xlu0 %1609 }
 0x4c9   : > { %2515 = vmatprep.mubr.msk.bf16.mxu0 %vm2660_vm1, %v2659_v25 }
 0x4cb   : > { %v1759_v39 = vpop.permute.xlu1 %1758 }
 0x4cc   : > { %v1764_v0 = vsel %vm1165_vm2, %v1759_v39, 0 }
 0x4cd   : > { %2514 = vmatpush3.bf16.xpose.msra.mxu0 %v1764_v0 }
 0x4ce   : > { %v2614_v24 = vpop.eup %2613  ;;  %2525 = vmatprep.subr.bf16.mxu0 %v2659_v25 }
 0x4cf   : > { %v1394_v9 = vmul.f32 %v2614_v24, %v2606_v47  ;;  %v1757_v16 = vpop.permute.xlu1 %1756  ;;  %v2616_v2 = vpop.eup %2615 }
 0x4d0   : > { %v2618_v42 = vpop.eup %2617  ;;  %v810_v18 = vadd.f32 1.0, %v2616_v2 }
 0x4d1   : > { %v1398_v10 = vpack.c.bf16 %v1394_v9, %v1394_v9  ;;  %v809_v33 = vadd.f32 1.0, %v2618_v42  ;;  %v2620_v13 = vpop.eup %2619 }
 0x4d2   : > { %2621 = vrcp.f32 %v810_v18  ;;  %v811_v30 = vadd.f32 1.0, %v2620_v13 }
 0x4d3   : > { %2498 = vmatmul.mubr.msk.bf16.vlgmr.msra.gmra.mrb[24].mxu1 %vm1350_vm11, %v1398_v10  ;;  %2623 = vrcp.f32 %v809_v33  ;;  %v1598_v21 = vpop.permute.xlu1 %1597  ;;  %v1639_v10 = vrot.slane %v1610_v63, %v3090_v32 }
 0x4d4   : > { %2508 = vmatpush3.bf16.xpose.msra.mxu1 %v1714_v15  ;;  %2516 = vmatmul.mubr.msk.bf16.vlgmr.msra.gmra.mrb[32].mxu0 %vm1165_vm2, %v1757_v16  ;;  %2625 = vrcp.f32 %v811_v30  ;;  %v1623_v55 = vrot.slane %v1598_v21, %v3090_v32  ;;  %v1616_v16 = vpop.permute.xlu0 %1615 }
 0x4d5   : > { %2509 = vmatprep.mubr.msk.bf16.mxu1 %vm2660_vm1, %v2659_v25  ;;  %2519 = vmatprep.subr.bf16.mxu1 %v2659_v25  ;;  %2627 = vpow2.f32 %v807_v23  ;;  %v1647_v19 = vrot.slane %v1616_v16, %v3090_v32 }
 0x4d6   : > { %2527 = vmatprep.mubr.msk.bf16.mxu0 %vm2660_vm1, %v2659_v25  ;;  %v1652_v0 = vsel %vm1150_vm4, %v1627_v58, %v1623_v55 }
 0x4d7   : > { %v1604_v6 = vpop.permute.xlu1 %1603 }
 0x4d8   : > { %v1631_v56 = vrot.slane %v1604_v6, %v3090_v32 }
 0x4da   : > { %v1653_v20 = vsel %vm1152_vm5, %v1631_v56, %v1652_v0 }
 0x4db   : > { %2510 = vmatmul.mubr.msk.bf16.vlgmr.msra.gmra.mrb[28].mxu1 %vm1165_vm2, %v1707_v11  ;;  %v1607_v46 = vpop.permute.xlu1 %1606 }
 0x4dc   : > { %2520 = vmatpush3.bf16.xpose.msra.mxu1 %v1814_v59  ;;  %2521 = vmatprep.mubr.msk.bf16.mxu1 %vm2660_vm1, %v2659_v25  ;;  %v3191_v50 = vpop.eup %2621  ;;  %v1635_v39 = vrot.slane %v1607_v46, %v3090_v32 }
 0x4dd   : > { %2531 = vmatprep.subr.bf16.mxu1 %v2659_v25  ;;  %v3193_v37 = vpop.eup %2623 }
 0x4de   : > { %v3201_v62 = vpop.eup %2625  ;;  %v1654_v24 = vsel %vm1154_vm6, %v1635_v39, %v1653_v20 }
 0x4df   : > { %v1613_v57 = vpop.permute.xlu1 %1612  ;;  %v2628_v15 = vpop.eup %2627  ;;  %v1655_v40 = vsel %vm1156_vm7, %v1639_v10, %v1654_v24 }
 0x4e0   : > { %v1643_v9 = vrot.slane %v1613_v57, %v3090_v32  ;;  %v812_v61 = vadd.f32 1.0, %v2628_v15 }
 0x4e2   : > { %v1656_v59 = vsel %vm1158_vm8, %v1643_v9, %v1655_v40  ;;  %2629 = vrcp.f32 %v812_v61 }
 0x4e3   : > { %2522 = vmatmul.mubr.msk.bf16.vlgmr.msra.gmra.mrb[32].mxu1 %vm1165_vm2, %v1807_v41  ;;  %v1619_v11 = vpop.permute.xlu1 %1618  ;;  %v1657_v22 = vsel %vm1160_vm9, %v1647_v19, %v1656_v59 }
 0x4e4   : > { %2533 = vmatprep.mubr.msk.bf16.mxu1 %vm2660_vm1, %v2659_v25  ;;  %v1651_v41 = vrot.slane %v1619_v11, %v3090_v32 }
 0x4e6   : > { %v1658_v53 = vsel %vm1162_vm10, %v1651_v41, %v1657_v22 }
 0x4ec   : > { %v3223_v2 = vpop.eup %2629 }
 0x571   : > { %v1486_v36 = vpop.f32.mrb[20].mxu1 }
 0x572   : > { %v1440_v48 = vpop.f32.mrb[20].mxu0  ;;  %v3196_v12 = vmul.f32 %v3191_v50, %v1486_v36  ;;  %v2487_v43 = vpop.f32.mrb[21].mxu1 }
 0x573   : > { %v3199_v44 = vmul.f32 %v3193_v37, %v1440_v48  ;;  %v2481_v45 = vpop.f32.mrb[21].mxu0  ;;  %v1489_v35 = vpop.f32.mrb[22].mxu1 }
 0x574   : > { %v1443_v47 = vpop.f32.mrb[22].mxu0  ;;  %v2488_v31 = vpop.f32.mrb[23].mxu1 }
 0x575   : > { %v2482_v60 = vpop.f32.mrb[23].mxu0 }
 0x57a   : > { %v1532_v52 = vpop.f32.mrb[24].mxu0 }
 0x57b   : > { %v3204_v29 = vmul.f32 %v3201_v62, %v1532_v52  ;;  %v2493_v38 = vpop.f32.mrb[25].mxu0 }
 0x57c   : > { %v1535_v3 = vpop.f32.mrb[26].mxu0 }
 0x57d   : > { %v2494_v4 = vpop.f32.mrb[27].mxu0 }
 0x59b   : > { %v1700_v26 = vpop.f32.mrb[28].mxu0 }
 0x59c   : > { %v1701_v17 = vadd.f32 %v1700_v26, %v1658_v53  ;;  %v2505_v8 = vpop.f32.mrb[29].mxu0 }
 0x59d   : > { %v1703_v27 = vpop.f32.mrb[30].mxu0 }
 0x59e   : > { %v2506_v54 = vpop.f32.mrb[31].mxu0  ;;  %v1856_v28 = vsel %vm1350_vm11, %v1701_v17, -inf }
 0x59f   : > { %1857 = vmax.xlane.f32.xlu0 %v1856_v28 }
 0x5a6   : > { %v1578_v42 = vpop.f32.mrb[24].mxu1 }
 0x5a7   : > { %v3226_v18 = vmul.f32 %v3223_v2, %v1578_v42  ;;  %v2499_v32 = vpop.f32.mrb[25].mxu1  ;;  %v1800_v33 = vpop.f32.mrb[32].mxu0 }
 0x5a8   : > { %v1801_v13 = vadd.f32 %v1800_v33, %v1658_v53  ;;  %v1581_v30 = vpop.f32.mrb[26].mxu1  ;;  %v2517_v36 = vpop.f32.mrb[33].mxu0 }
 0x5a9   : > { %v2500_v48 = vpop.f32.mrb[27].mxu1  ;;  %v1803_v43 = vpop.f32.mrb[34].mxu0 }
 0x5aa   : > { %v2518_v45 = vpop.f32.mrb[35].mxu0  ;;  %v1862_v35 = vsel %vm1350_vm11, %v1801_v13, -inf }
 0x5ab   : > { %1863 = vmax.xlane.f32.xlu0 %v1862_v35 }
 0x5ae   : > { %v1750_v47 = vpop.f32.mrb[28].mxu1 }
 0x5af   : > { %v1751_v31 = vadd.f32 %v1750_v47, %v1658_v53  ;;  %v2511_v60 = vpop.f32.mrb[29].mxu1 }
 0x5b0   : > { %v1753_v52 = vpop.f32.mrb[30].mxu1 }
 0x5b1   : > { %v2512_v38 = vpop.f32.mrb[31].mxu1  ;;  %v1859_v21 = vsel %vm1350_vm11, %v1751_v31, -inf }
 0x5b2   : > { %1860 = vmax.xlane.f32.xlu1 %v1859_v21 }
 0x5b6   : > { %v1850_v3 = vpop.f32.mrb[32].mxu1 }
 0x5b7   : > { %v1851_v4 = vadd.f32 %v1850_v3, %v1658_v53  ;;  %v2523_v5 = vpop.f32.mrb[33].mxu1 }
 0x5b8   : > { %v1853_v6 = vpop.f32.mrb[34].mxu1 }
 0x5b9   : > { %v2524_v7 = vpop.f32.mrb[35].mxu1  ;;  %v1865_v23 = vsel %vm1350_vm11, %v1851_v4, -inf }
 0x5ba   : > { %1866 = vmax.xlane.f32.xlu0 %v1865_v23  ;;  %v2134_v23 = vld [vmem:[%s3318_s12 + $0x10] sm:$0xff] }
 0x5c3   : > { %1904 = vrot.lane.b32.xlu1 %v3018_v34, %s2663_s24 }
 0x62c   : > { %v1858_v46 = vpop.xlane.xlu0 %1857 }
 0x62d   : > { %v1868_v51 = vsub.f32 %v1701_v17, %v1858_v46  ;;  %v2135_v46 = vld [vmem:[%s3318_s12 + $0x18] sm:$0xff] }
 0x62f   : > { %v1872_v55 = vmul.f32 1.442695, %v1868_v51  ;;  %v2137_v51 = vpack.c.bf16 %v2135_v46, %v2134_v23 }
 0x631   : > { %2631 = vpow2.f32 %v1872_v55 }
 0x638   : > { %v1864_v56 = vpop.xlane.xlu0 %1863 }
 0x639   : > { %v1870_v57 = vsub.f32 %v1801_v13, %v1864_v56 }
 0x63b   : > { %v2632_v58 = vpop.eup %2631  ;;  %v1876_v63 = vmul.f32 1.442695, %v1870_v57 }
 0x63c   : > { %v1880_v39 = vsel %vm1350_vm11, %v2632_v58, 0.0 }
 0x63d   : > { %2633 = vpow2.f32 %v1876_v63  ;;  %1881 = vadd.xlane.f32.xlu1 %v1880_v39 }
 0x63f   : > { %v1861_v0 = vpop.xlane.xlu1 %1860 }
 0x640   : > { %v1869_v20 = vsub.f32 %v1751_v31, %v1861_v0 }
 0x642   : > { %v1874_v24 = vmul.f32 1.442695, %v1869_v20 }
 0x643   : > { %v1905_v9 = vpop.permute.xlu1 %1904 }
 0x644   : > { %2635 = vpow2.f32 %v1874_v24  ;;  %v1910_v10 = vsel %vm1402_vm3, %v1905_v9, 0 }
 0x645   : > { %2526 = vmatpush3.bf16.msra.mxu0 %v1910_v10  ;;  %v1588_v10 = vpack.c.bf16 %v3199_v44, %v3199_v44 }
 0x646   : > { %2537 = vmatprep.subr.bf16.mxu0 %v2659_v25 }
 0x647   : > { %v2634_v34 = vpop.eup %2633  ;;  %v1867_v11 = vpop.xlane.xlu0 %1866 }
 0x648   : > { %v1871_v15 = vsub.f32 %v1851_v4, %v1867_v11  ;;  %v1886_v16 = vsel %vm1350_vm11, %v2634_v34, 0.0  ;;  %v2132_v4 = vld [vmem:[%s3318_s12] sm:$0xff] }
 0x649   : > { %1887 = vadd.xlane.f32.xlu1 %v1886_v16 }
 0x64a   : > { %v1878_v40 = vmul.f32 1.442695, %v1871_v15 }
 0x64c   : > { %2637 = vpow2.f32 %v1878_v40  ;;  %v1590_v40 = vpack.c.bf16 %v3204_v29, %v3204_v29 }
 0x64e   : > { %v2636_v59 = vpop.eup %2635 }
 0x64f   : > { %v1883_v41 = vsel %vm1350_vm11, %v2636_v59, 0.0 }
 0x650   : > { %1884 = vadd.xlane.f32.xlu0 %v1883_v41 }
 0x656   : > { %v2638_v61 = vpop.eup %2637 }
 0x657   : > { %v1889_v19 = vsel %vm1350_vm11, %v2638_v61, 0.0 }
 0x658   : > { %1890 = vadd.xlane.f32.xlu0 %v1889_v19 }
 0x65a   : > { %2000 = vrot.lane.b32.xlu1 %v3145_v1, %s2663_s24 }
 0x65e   : > { %2048 = vrot.lane.b32.xlu1 %v3141_v49, %s2663_s24 }
 0x66e   : > { %1952 = vrot.lane.b32.xlu0 %v3055_v14, %s2663_s24 }
 0x6ca   : > { %v1882_v22 = vpop.xlane.xlu1 %1881 }
 0x6cb   : > { %2639 = vrcp.f32 %v1882_v22 }
 0x6d5   : > { %v2640_v53 = vpop.eup %2639 }
 0x6d6   : > { %v1896_v26 = vmul.f32 %v2640_v53, %v2632_v58  ;;  %v1888_v17 = vpop.xlane.xlu1 %1887 }
 0x6d7   : > { %2641 = vrcp.f32 %v1888_v17 }
 0x6d8   : > { %v1900_v8 = vpack.c.bf16 %v1896_v26, %v1896_v26  ;;  %v1591_v26 = vpack.c.bf16 %v3226_v18, %v3226_v18 }
 0x6da   : > { %2528 = vmatmul.mubr.msk.bf16.vlgmr.msra.gmra.mrb[36].mxu0 %vm1350_vm11, %v1900_v8  ;;  %v2001_v27 = vpop.permute.xlu1 %2000  ;;  %v2336_v8 = vld [vmem:[%s3319_s13] ss:$0 sm:$0xff] }
 0x6db   : > { %v2006_v54 = vsel %vm1402_vm3, %v2001_v27, 0  ;;  %2539 = vmatprep.mubr.msk.bf16.mxu0 %vm2660_vm1, %v2659_v25  ;;  %v2647_v27 = vld [vmem:[%s2756_s19] sm:$0xff] }
 0x6dc   : > { %2538 = vmatpush3.bf16.msra.mxu0 %v2006_v54  ;;  %v2210_v54 = vadd.f32 %v2647_v27, %v2336_v8 }
 0x6dd   : > { %v1885_v49 = vpop.xlane.xlu0 %1884 }
 0x6de   : > { %2643 = vrcp.f32 %v1885_v49  ;;  %v2049_v36 = vpop.permute.xlu1 %2048 }
 0x6df   : > { %v2054_v43 = vsel %vm1402_vm3, %v2049_v36, 0 }
 0x6e1   : > { %v2642_v1 = vpop.eup %2641 }
 0x6e2   : > { %v1898_v14 = vmul.f32 %v2642_v1, %v2634_v34  ;;  %v2648_v1 = vld [vmem:[%s2756_s19 + $0x8] sm:$0xff] }
 0x6e4   : > { %v1902_v28 = vpack.c.bf16 %v1898_v14, %v1898_v14  ;;  %v2211_v14 = vadd.f32 %v2648_v1, %v2336_v8 }
 0x6e5   : > { %v1891_v42 = vpop.xlane.xlu0 %1890 }
 0x6e6   : > { %2645 = vrcp.f32 %v1891_v42  ;;  %2540 = vmatmul.mubr.msk.bf16.vlgmr.msra.gmra.mrb[40].mxu0 %vm1350_vm11, %v1902_v28 }
 0x6e8   : > { %v2644_v32 = vpop.eup %2643 }
 0x6e9   : > { %v1897_v33 = vmul.f32 %v2644_v32, %v2636_v59  ;;  %v1953_v13 = vpop.permute.xlu0 %1952 }
 0x6ea   : > { %v1958_v30 = vsel %vm1402_vm3, %v1953_v13, 0 }
 0x6eb   : > { %2532 = vmatpush3.bf16.msra.mxu1 %v1958_v30  ;;  %v1901_v48 = vpack.c.bf16 %v1897_v33, %v1897_v33  ;;  %v2650_v33 = vld [vmem:[%s2756_s19 + $0x18] sm:$0xff] }
 0x6ec   : > { %2543 = vmatprep.subr.bf16.mxu1 %v2659_v25  ;;  %v2213_v13 = vadd.f32 %v2650_v33, %v2336_v8 }
 0x6ee   : > { %2534 = vmatmul.mubr.msk.bf16.vlgmr.msra.gmra.mrb[36].mxu1 %vm1350_vm11, %v1901_v48 }
 0x6ef   : > { %2544 = vmatpush3.bf16.msra.mxu1 %v2054_v43  ;;  %2545 = vmatprep.mubr.msk.bf16.mxu1 %vm2660_vm1, %v2659_v25  ;;  %v2133_v25 = vld [vmem:[%s3318_s12 + $0x8] sm:$0xff] }
 0x6f0   : > { %v2646_v45 = vpop.eup %2645  ;;  %v2136_v6 = vpack.c.bf16 %v2133_v25, %v2132_v4 }
 0x6f1   : > { %v1899_v35 = vmul.f32 %v2646_v45, %v2638_v61 }
 0x6f2   : > { %2549 = vmatprep.subr.bf16.mxu0 %v2136_v6 }
 0x6f3   : > { %v1903_v47 = vpack.c.bf16 %v1899_v35, %v1899_v35  ;;  %2550 = vmatpush3.bf16.msra.mxu0 %v2136_v6 }
 0x6f4   : > { %2551 = vmatprep.subr.bf16.mxu0 %v2137_v51 }
 0x6f6   : > { %2546 = vmatmul.mubr.msk.bf16.vlgmr.msra.gmra.mrb[40].mxu1 %vm1350_vm11, %v1903_v47 }
 0x6f7   : > { %2552 = vmatpush3.bf16.msra.mxu0 %v2137_v51 }
 0x7ad   : > { %v1946_v31 = vpop.f32.mrb[36].mxu0 }
 0x7ae   : > { %v2529_v60 = vpop.f32.mrb[37].mxu0  ;;  %2100 = vrot.lane.b32.xlu0 %v1946_v31, %s2664_s27 }
 0x7af   : > { %v1949_v52 = vpop.f32.mrb[38].mxu0 }
 0x7b0   : > { %v2530_v38 = vpop.f32.mrb[39].mxu0 }
 0x7b9   : > { %v2042_v21 = vpop.f32.mrb[40].mxu0 }
 0x7ba   : > { %v2541_v3 = vpop.f32.mrb[41].mxu0  ;;  %2104 = vrot.lane.b32.xlu0 %v2042_v21, %s2664_s27 }
 0x7bb   : > { %v2045_v5 = vpop.f32.mrb[42].mxu0 }
 0x7bc   : > { %v2542_v7 = vpop.f32.mrb[43].mxu0 }
 0x7c1   : > { %v1994_v55 = vpop.f32.mrb[36].mxu1 }
 0x7c2   : > { %2102 = vrot.lane.b32.xlu1 %v1994_v55, %s2664_s27  ;;  %v2535_v56 = vpop.f32.mrb[37].mxu1 }
 0x7c3   : > { %v1997_v57 = vpop.f32.mrb[38].mxu1 }
 0x7c4   : > { %v2536_v58 = vpop.f32.mrb[39].mxu1 }
 0x7c9   : > { %v2090_v63 = vpop.f32.mrb[40].mxu1 }
 0x7ca   : > { %2106 = vrot.lane.b32.xlu1 %v2090_v63, %s2664_s27  ;;  %v2547_v39 = vpop.f32.mrb[41].mxu1 }
 0x7cb   : > { %v2093_v0 = vpop.f32.mrb[42].mxu1 }
 0x7cc   : > { %v2548_v20 = vpop.f32.mrb[43].mxu1 }
 0x820   : > { %v2101_v24 = vpop.permute.xlu0 %2100 }
 0x821   : > { %v2112_v9 = vmul.f32 %v3193_v37, %v2101_v24  ;;  %v1589_v37 = vpack.c.bf16 %v3196_v12, %v3196_v12 }
 0x823   : > { %v2116_v34 = vpack.c.bf16 %v2112_v9, %v2112_v9 }
 0x825   : > { %v2122_v11 = vsel %vm1165_vm2, %v1588_v10, %v2116_v34 }
 0x82c   : > { %v2105_v15 = vpop.permute.xlu0 %2104 }
 0x82d   : > { %v2114_v16 = vmul.f32 %v3201_v62, %v2105_v15 }
 0x82f   : > { %v2118_v59 = vpack.c.bf16 %v2114_v16, %v2114_v16 }
 0x831   : > { %v2128_v41 = vsel %vm1165_vm2, %v1590_v40, %v2118_v59 }
 0x834   : > { %v2103_v61 = vpop.permute.xlu1 %2102 }
 0x835   : > { %v2113_v19 = vmul.f32 %v3191_v50, %v2103_v61 }
 0x837   : > { %v2117_v44 = vpack.c.bf16 %v2113_v19, %v2113_v19 }
 0x839   : > { %v2125_v22 = vsel %vm1165_vm2, %v1589_v37, %v2117_v44 }
 0x83a   : > { %v2332_v53 = vcombine.low %v2122_v11, %v2125_v22 }
 0x83c   : > { %v2107_v62 = vpop.permute.xlu1 %2106  ;;  %2553 = vmatprep.mubr.msk.bf16.mxu0 %vm478_vm0, %v2332_v53 }
 0x83d   : > { %v2115_v29 = vmul.f32 %v3223_v2, %v2107_v62  ;;  %v2649_v2 = vld [vmem:[%s2756_s19 + $0x10] sm:$0xff] }
 0x83e   : > { %v2212_v18 = vadd.f32 %v2649_v2, %v2336_v8 }
 0x83f   : > { %v2119_v17 = vpack.c.bf16 %v2115_v29, %v2115_v29 }
 0x841   : > { %v2131_v50 = vsel %vm1165_vm2, %v1591_v26, %v2119_v17 }
 0x842   : > { %v2333_v12 = vcombine.low %v2128_v41, %v2131_v50 }
 0x844   : > { %2554 = vmatmul.mubr.msk.bf16.vlgmr.msra.gmra.mrb[44].mxu0 %vm478_vm0, %v2333_v12 }
 0x917   : > { %v2555_v49 = vpop.f32.mrb[44].mxu0 }
 0x918   : > { %v2188_v28 = vpop.f32.mrb[45].mxu0  ;;  %v2216_v48 = vadd.f32 %v2555_v49, %v2212_v18 }
 0x919   : > { %v2214_v42 = vadd.f32 %v2210_v54, %v2188_v28  ;;  %v2556_v32 = vpop.f32.mrb[46].mxu0 }
 0x91a   : > { %v2191_v30 = vpop.f32.mrb[47].mxu0  ;;  %v2217_v43 = vadd.f32 %v2556_v32, %v2213_v13  ;;  %2220 = vst.msk [vmem:[%s469_s28 + $0x10] sm:$0xff] %vm478_vm0, %v2216_v48 }
 0x91b   : > { %2218 = vst.msk [vmem:[%s469_s28] sm:$0xff] %vm478_vm0, %v2214_v42  ;;  %v2215_v36 = vadd.f32 %v2211_v14, %v2191_v30 }
 0x91c   : > { %2221 = vst.msk [vmem:[%s469_s28 + $0x18] sm:$0xff] %vm478_vm0, %v2217_v43 }
 0x91d   : > { %2219 = vst.msk [vmem:[%s469_s28 + $0x8] sm:$0xff] %vm478_vm0, %v2215_v36 }
 0x91e PF: > { %s24_s29 = sadd.s32 1, %s2657_s29  }
 0x91f   : > { %p21_p4 = scmp.ge.s32.totalorder %s24_s29, 4  }
 0x921   :  { %23 = sbr.rel (!%p21_p4) target bundleno = 1 (0x1), region = 106 }

</bundles_post_ra>
